<compile_context>
chip_gen: v7x
topology: tpu7x:2x2x1
jax: 0.10.0
libtpu: 0.0.40
codegen_flags: <defaults>
</compile_context>

<pallas_src>
import functools

import jax
import jax.numpy as jnp
from jax.experimental import pallas as pl
from jax.experimental.pallas import tpu as pltpu


def _lstm_kernel(ids_ref,                       # (T*B, 1)  int32 time-major tokens
                 emb_ref,                       # (V, E)    bf16 embedding table
                 wih0_ref, whh0_ref, b0_ref,    # layer 0: (E,4H) bf16, (H,4H) bf16, (1,4H) f32
                 w1s_ref, b1_ref,               # layer 1: (2H,4H) bf16 = [wih1;whh1], (1,4H) f32
                 wout_ref, bout_ref,            # output : (H,V) bf16, (1,V) f32
                 h0_ref, c0_ref,                # initial state (2, B, H) f32
                 logits_ref,                    # out: (T*B, V) f32, time-major rows
                 hN_ref, cN_ref,                # out: final state (2, B, H) f32
                 gx0_sc,                        # scratch (T*B, 4H) f32: hoisted layer-0 x-proj
                 h1_all_sc):                    # scratch (T*B, H)  f32: layer-1 hidden seq
    TB = ids_ref.shape[0]
    _, B, H = h0_ref.shape
    T = TB // B
    V, E = emb_ref.shape
    f32 = jnp.float32
    bf16 = jnp.bfloat16

    def act(gates, c_prev):
        # Gate columns pre-ordered [i, f, o, g] by the wrapper.
        # Sigmoid via tanh identity: one EUP pass over the 3H sigmoid lanes.
        sig = 0.5 * jnp.tanh(0.5 * gates[:, :3 * H]) + 0.5
        i = sig[:, 0:H]
        f = sig[:, H:2 * H]
        o = sig[:, 2 * H:3 * H]
        g = jnp.tanh(gates[:, 3 * H:])
        c_new = f * c_prev + i * g
        h_new = o * jnp.tanh(c_new)
        return h_new, c_new

    # ---- fused embedding gather (one-hot MXU matmul) + hoisted layer-0 x-proj ----
    ids = ids_ref[...]                                               # (TB, 1) int32
    onehot = jnp.where(
        jax.lax.broadcasted_iota(jnp.int32, (TB, V), 1) == ids, 1.0, 0.0
    ).astype(bf16)                                                   # (TB, V)
    # one-hot @ emb picks the bf16 embedding rows exactly (f32 accumulation).
    x_all = jnp.dot(onehot, emb_ref[...], preferred_element_type=f32)    # (TB, E)
    gx0_sc[...] = (jnp.dot(x_all.astype(bf16), wih0_ref[...],
                           preferred_element_type=f32) + b0_ref[...])    # (TB, 4H)

    # ---- wavefront-fused serial recurrence ----
    # Prologue: layer-0 step 0.
    g0 = gx0_sc[pl.ds(0, B), :] + jnp.dot(h0_ref[0].astype(bf16), whh0_ref[...],
                                          preferred_element_type=f32)
    h0_c, c0_c = act(g0, c0_ref[0])
    carry0 = (h0_c, c0_c, h0_ref[1], c0_ref[1])

    def body(t, carry):
        h0_prev, c0_prev, h1_prev, c1_prev = carry
        # layer 0, step t (recurrent dot only; x-projection was hoisted).
        goff = pl.multiple_of(t * B, B)
        gates0 = gx0_sc[pl.ds(goff, B), :] + jnp.dot(
            h0_prev.astype(bf16), whh0_ref[...], preferred_element_type=f32)
        # layer 1, step t-1: single stacked matmul [h0_{t-1} | h1_{t-2}] @ [wih1;whh1].
        lhs1 = jnp.concatenate([h0_prev, h1_prev], axis=1).astype(bf16)   # (B, 2H)
        gates1 = jnp.dot(lhs1, w1s_ref[...],
                         preferred_element_type=f32) + b1_ref[...]
        h0_new, c0_new = act(gates0, c0_prev)
        h1_new, c1_new = act(gates1, c1_prev)
        hoff = pl.multiple_of((t - 1) * B, B)
        h1_all_sc[pl.ds(hoff, B), :] = h1_new
        return (h0_new, c0_new, h1_new, c1_new)

    # Fully unrolled: T is small and static, gives the scheduler full visibility.
    h0_c, c0_c, h1_c, c1_c = jax.lax.fori_loop(1, T, body, carry0, unroll=True)

    # Epilogue: layer-1 step T-1.
    lhs1 = jnp.concatenate([h0_c, h1_c], axis=1).astype(bf16)
    gates1 = jnp.dot(lhs1, w1s_ref[...], preferred_element_type=f32) + b1_ref[...]
    h1_c, c1_c = act(gates1, c1_c)
    h1_all_sc[pl.ds((T - 1) * B, B), :] = h1_c

    # ---- hoisted output projection (lane-dense (TB, V) store) ----
    logits_ref[...] = (jnp.dot(h1_all_sc[...].astype(bf16), wout_ref[...],
                               preferred_element_type=f32) + bout_ref[...])

    # Final LSTM state straight to the output refs.
    hN_ref[0] = h0_c
    hN_ref[1] = h1_c
    cN_ref[0] = c0_c
    cN_ref[1] = c1_c


def _reorder_gate_cols(w):
    """Reorder gate columns from PyTorch's [i, f, g, o] to kernel [i, f, o, g]."""
    H = w.shape[-1] // 4
    return jnp.concatenate(
        [w[..., :2 * H], w[..., 3 * H:], w[..., 2 * H:3 * H]], axis=-1)


def char_lstm_forward(x_tokens, prev_state, params):
    """x_tokens: int32 (B, T) batch_first; prev_state: (h, c) each (L, B, H)."""
    h0, c0 = prev_state
    emb_table = params["emb"]                       # (V, E)
    B, T = x_tokens.shape
    L, _, H = h0.shape
    V, E = emb_table.shape
    assert L == 2, "kernel specialized to num_layers=2 (module default)"

    bf16 = jnp.bfloat16
    # Pure layout / dtype prep (done once under jit):
    #   - gate-column reorder [i,f,g,o] -> [i,f,o,g]
    #   - stack layer-1 weights vertically for the single K=2H matmul
    #   - cast MXU operands to bf16 (biases / state stay f32)
    wih0 = _reorder_gate_cols(params["wih0"]).astype(bf16)
    whh0 = _reorder_gate_cols(params["whh0"]).astype(bf16)
    b0 = _reorder_gate_cols(params["b0"])
    w1s = jnp.concatenate([_reorder_gate_cols(params["wih1"]),
                           _reorder_gate_cols(params["whh1"])], axis=0).astype(bf16)
    b1 = _reorder_gate_cols(params["b1"])
    wout = params["wout"].astype(bf16)
    bout = params["bout"]
    emb_bf = emb_table.astype(bf16)

    # Time-major flattened token ids: row t*B + b.
    ids_tm = x_tokens.T.reshape(T * B, 1).astype(jnp.int32)

    vmem = pl.BlockSpec(memory_space=pltpu.MemorySpace.VMEM)
    out_shape = (
        jax.ShapeDtypeStruct((T * B, V), jnp.float32),   # logits, time-major rows
        jax.ShapeDtypeStruct((L, B, H), jnp.float32),    # h_N
        jax.ShapeDtypeStruct((L, B, H), jnp.float32),    # c_N
    )

    logits_flat, h_n, c_n = pl.pallas_call(
        _lstm_kernel,
        out_shape=out_shape,
        in_specs=[vmem] * 11,
        out_specs=(vmem, vmem, vmem),
        scratch_shapes=[
            pltpu.VMEM((T * B, 4 * H), jnp.float32),     # hoisted layer-0 x-projection
            pltpu.VMEM((T * B, H), jnp.float32),         # layer-1 hidden sequence
        ],
    )(
        ids_tm, emb_bf,
        wih0, whh0, b0,
        w1s, b1,
        wout, bout,
        h0, c0,
    )

    # Back to PyTorch batch_first (B, T, V): one cheap XLA transpose.
    logits = jnp.transpose(logits_flat.reshape(T, B, V), (1, 0, 2))
    return logits, (h_n, c_n)


def _reference_forward(x_tokens, prev_state, params, mxu_dtype=jnp.float32):
    """Pure-JAX reference (torch.nn.LSTM batch_first semantics).

    mxu_dtype=bfloat16 mimics the kernel's bf16-operand / f32-accumulation matmuls.
    """
    h0, c0 = prev_state
    H = h0.shape[-1]
    emb_x = jnp.take(params["emb"], x_tokens, axis=0)   # (B, T, E)

    def mm(a, b):
        return jnp.dot(a.astype(mxu_dtype), b.astype(mxu_dtype),
                       preferred_element_type=jnp.float32)

    def cell(x_in, h_prev, c_prev, wih, whh, b):
        gates = mm(x_in, wih) + mm(h_prev, whh) + b
        i = jax.nn.sigmoid(gates[:, 0 * H:1 * H])
        f = jax.nn.sigmoid(gates[:, 1 * H:2 * H])
        g = jnp.tanh(gates[:, 2 * H:3 * H])
        o = jax.nn.sigmoid(gates[:, 3 * H:4 * H])
        c_new = f * c_prev + i * g
        h_new = o * jnp.tanh(c_new)
        return h_new, c_new

    def step(carry, x_t):
        h0_, c0_, h1_, c1_ = carry
        h0n, c0n = cell(x_t, h0_, c0_, params["wih0"], params["whh0"], params["b0"])
        h1n, c1n = cell(h0n, h1_, c1_, params["wih1"], params["whh1"], params["b1"])
        logits_t = mm(h1n, params["wout"]) + params["bout"]
        return (h0n, c0n, h1n, c1n), logits_t

    carry0 = (h0[0], c0[0], h0[1], c0[1])
    carry, logits_tm = jax.lax.scan(step, carry0, jnp.transpose(emb_x, (1, 0, 2)))
    logits = jnp.transpose(logits_tm, (1, 0, 2))
    h_n = jnp.stack([carry[0], carry[2]], axis=0)
    c_n = jnp.stack([carry[1], carry[3]], axis=0)
    return logits, (h_n, c_n)


def make_params(key, num_tokens, emb_size, hidden, scale=0.1):
    ks = jax.random.split(key, 9)
    u = lambda k, s: (jax.random.uniform(k, s, jnp.float32, -1.0, 1.0) * scale)
    return {
        "emb": u(ks[0], (num_tokens, emb_size)),
        # LSTM layer 0 (weights stored transposed: (in, 4H), (H, 4H)),
        # PyTorch gate order [i, f, g, o]; b = b_ih + b_hh folded.
        "wih0": u(ks[1], (emb_size, 4 * hidden)),
        "whh0": u(ks[2], (hidden, 4 * hidden)),
        "b0":   u(ks[3], (1, 4 * hidden)),
        # LSTM layer 1
        "wih1": u(ks[4], (hidden, 4 * hidden)),
        "whh1": u(ks[5], (hidden, 4 * hidden)),
        "b1":   u(ks[6], (1, 4 * hidden)),
        # hid_to_logits
        "wout": u(ks[7], (hidden, num_tokens)),
        "bout": u(ks[8], (1, num_tokens)),
    }


if __name__ == "__main__":
    NUM_TOKENS = 128   # vocab == logits width; multiple of 128 -> lane-dense store
    EMB_SIZE = 64      # module default
    HIDDEN = 128       # module default; 128-lane aligned gate slices
    NUM_LAYERS = 2
    BATCH = 8          # full 8-sublane vregs
    SEQ = 16

    key = jax.random.PRNGKey(0)
    k_param, k_tok = jax.random.split(key)
    params = make_params(k_param, NUM_TOKENS, EMB_SIZE, HIDDEN)

    x_tokens = jax.random.randint(k_tok, (BATCH, SEQ), 0, NUM_TOKENS, dtype=jnp.int32)
    prev_state = (jnp.zeros((NUM_LAYERS, BATCH, HIDDEN), jnp.float32),
                  jnp.zeros((NUM_LAYERS, BATCH, HIDDEN), jnp.float32))

    fwd = jax.jit(functools.partial(char_lstm_forward, params=params))
    logits, (h_n, c_n) = fwd(x_tokens, prev_state)
    jax.block_until_ready((logits, h_n, c_n))

    assert logits.shape == (BATCH, SEQ, NUM_TOKENS)
    assert h_n.shape == (NUM_LAYERS, BATCH, HIDDEN)
    assert c_n.shape == (NUM_LAYERS, BATCH, HIDDEN)

    # Tight check vs a reference that mirrors the kernel's bf16-on-MXU numerics.
    ref_l_bf, (ref_h_bf, ref_c_bf) = _reference_forward(
        x_tokens, prev_state, params, mxu_dtype=jnp.bfloat16)
    assert jnp.allclose(logits, ref_l_bf, atol=2e-3, rtol=2e-3)
    assert jnp.allclose(h_n, ref_h_bf, atol=2e-3, rtol=2e-3)
    assert jnp.allclose(c_n, ref_c_bf, atol=2e-3, rtol=2e-3)

    # Loose check vs the full-f32 reference (bf16 MXU operands shift results slightly).
    ref_l, (ref_h, ref_c) = _reference_forward(x_tokens, prev_state, params)
    assert jnp.allclose(logits, ref_l, atol=2e-2, rtol=2e-2)
    assert jnp.allclose(h_n, ref_h, atol=2e-2, rtol=2e-2)
    assert jnp.allclose(c_n, ref_c, atol=2e-2, rtol=2e-2)

    print("KERNEL_OK")
</pallas_src>

<mosaic_0001>
module attributes {stable_mosaic.version = 11 : i64} {
  func.func @_lstm_kernel(%arg0: memref<128x1xi32, #tpu.memory_space<vmem>>, %arg1: memref<128x64xbf16, #tpu.memory_space<vmem>>, %arg2: memref<64x512xbf16, #tpu.memory_space<vmem>>, %arg3: memref<128x512xbf16, #tpu.memory_space<vmem>>, %arg4: memref<1x512xf32, #tpu.memory_space<vmem>>, %arg5: memref<256x512xbf16, #tpu.memory_space<vmem>>, %arg6: memref<1x512xf32, #tpu.memory_space<vmem>>, %arg7: memref<128x128xbf16, #tpu.memory_space<vmem>>, %arg8: memref<1x128xf32, #tpu.memory_space<vmem>>, %arg9: memref<2x8x128xf32, #tpu.memory_space<vmem>>, %arg10: memref<2x8x128xf32, #tpu.memory_space<vmem>>, %arg11: memref<128x128xf32, #tpu.memory_space<vmem>>, %arg12: memref<2x8x128xf32, #tpu.memory_space<vmem>>, %arg13: memref<2x8x128xf32, #tpu.memory_space<vmem>>, %arg14: memref<128x512xf32, #tpu.memory_space<vmem>>, %arg15: memref<128x128xf32, #tpu.memory_space<vmem>>) attributes {dimension_semantics = [], scalar_prefetch = 0 : i64, scratch_operands = 2 : i64, tpu.core_type = #tpu.core_type<tc>} {
    %c0 = arith.constant 0 : index
    %c0_0 = arith.constant 0 : index
    %0 = vector.load %arg0[%c0, %c0_0] : memref<128x1xi32, #tpu.memory_space<vmem>>, vector<128x1xi32>
    %1 = tpu.iota {dimensions = array<i32: 1>} : vector<128x128xi32>
    %2 = vector.broadcast %0 : vector<128x1xi32> to vector<128x128xi32>
    %3 = arith.cmpi eq, %1, %2 : vector<128x128xi32>
    %cst = arith.constant 1.000000e+00 : f32
    %cst_1 = arith.constant 0.000000e+00 : f32
    %4 = vector.broadcast %cst : f32 to vector<128x128xf32>
    %5 = vector.broadcast %cst_1 : f32 to vector<128x128xf32>
    %6 = arith.select %3, %4, %5 : vector<128x128xi1>, vector<128x128xf32>
    %7 = arith.truncf %6 : vector<128x128xf32> to vector<128x128xbf16>
    %c0_2 = arith.constant 0 : index
    %c0_3 = arith.constant 0 : index
    %8 = vector.load %arg1[%c0_2, %c0_3] : memref<128x64xbf16, #tpu.memory_space<vmem>>, vector<128x64xbf16>
    %cst_4 = arith.constant dense<0.000000e+00> : vector<128x64xf32>
    %9 = tpu.matmul %7, %8, %cst_4 {dimension_numbers = #tpu.dot_dimension_numbers<[1], [0], [0], [1], [0, 0, 1, 1], [], []>} : vector<128x128xbf16>, vector<128x64xbf16>, vector<128x64xf32> -> vector<128x64xf32>
    %10 = arith.truncf %9 : vector<128x64xf32> to vector<128x64xbf16>
    %c0_5 = arith.constant 0 : index
    %c0_6 = arith.constant 0 : index
    %11 = vector.load %arg2[%c0_5, %c0_6] : memref<64x512xbf16, #tpu.memory_space<vmem>>, vector<64x512xbf16>
    %cst_7 = arith.constant dense<0.000000e+00> : vector<128x512xf32>
    %12 = tpu.matmul %10, %11, %cst_7 {dimension_numbers = #tpu.dot_dimension_numbers<[1], [0], [0], [1], [0, 0, 1, 1], [], []>} : vector<128x64xbf16>, vector<64x512xbf16>, vector<128x512xf32> -> vector<128x512xf32>
    %c0_8 = arith.constant 0 : index
    %c0_9 = arith.constant 0 : index
    %13 = vector.load %arg4[%c0_8, %c0_9] : memref<1x512xf32, #tpu.memory_space<vmem>>, vector<1x512xf32>
    %14 = vector.broadcast %13 : vector<1x512xf32> to vector<128x512xf32>
    %15 = arith.addf %12, %14 : vector<128x512xf32>
    %c0_10 = arith.constant 0 : index
    %c0_11 = arith.constant 0 : index
    %16 = vector.load %arg14[%c0_10, %c0_11] : memref<128x512xf32, #tpu.memory_space<vmem>>, vector<128x512xf32>
    tpu.vector_store %arg14[%c0_10, %c0_11], %15 {strides = array<i32>} : memref<128x512xf32, #tpu.memory_space<vmem>>, vector<128x512xf32>,
    %c0_12 = arith.constant 0 : index
    %c0_13 = arith.constant 0 : index
    %17 = vector.load %arg14[%c0_12, %c0_13] : memref<128x512xf32, #tpu.memory_space<vmem>>, vector<8x512xf32>
    %c0_14 = arith.constant 0 : index
    %c0_15 = arith.constant 0 : index
    %c0_16 = arith.constant 0 : index
    %18 = vector.load %arg9[%c0_14, %c0_15, %c0_16] : memref<2x8x128xf32, #tpu.memory_space<vmem>>, vector<1x8x128xf32>
    %19 = vector.shape_cast %18 : vector<1x8x128xf32> to vector<8x128xf32>
    %20 = arith.truncf %19 : vector<8x128xf32> to vector<8x128xbf16>
    %c0_17 = arith.constant 0 : index
    %c0_18 = arith.constant 0 : index
    %21 = vector.load %arg3[%c0_17, %c0_18] : memref<128x512xbf16, #tpu.memory_space<vmem>>, vector<128x512xbf16>
    %cst_19 = arith.constant dense<0.000000e+00> : vector<8x512xf32>
    %22 = tpu.matmul %20, %21, %cst_19 {dimension_numbers = #tpu.dot_dimension_numbers<[1], [0], [0], [1], [0, 0, 1, 1], [], []>} : vector<8x128xbf16>, vector<128x512xbf16>, vector<8x512xf32> -> vector<8x512xf32>
    %23 = arith.addf %17, %22 : vector<8x512xf32>
    %c0_20 = arith.constant 0 : index
    %c0_21 = arith.constant 0 : index
    %c0_22 = arith.constant 0 : index
    %24 = vector.load %arg10[%c0_20, %c0_21, %c0_22] : memref<2x8x128xf32, #tpu.memory_space<vmem>>, vector<1x8x128xf32>
    %25 = vector.shape_cast %24 : vector<1x8x128xf32> to vector<8x128xf32>
    %26 = vector.extract_strided_slice %23 {offsets = [0, 0], sizes = [8, 384], strides = [1, 1]} : vector<8x512xf32> to vector<8x384xf32>
    %cst_23 = arith.constant 5.000000e-01 : f32
    %27 = vector.broadcast %cst_23 : f32 to vector<8x384xf32>
    %28 = arith.mulf %27, %26 : vector<8x384xf32>
    %29 = math.tanh %28 : vector<8x384xf32>
    %cst_24 = arith.constant 5.000000e-01 : f32
    %30 = vector.broadcast %cst_24 : f32 to vector<8x384xf32>
    %31 = arith.mulf %30, %29 : vector<8x384xf32>
    %cst_25 = arith.constant 5.000000e-01 : f32
    %32 = vector.broadcast %cst_25 : f32 to vector<8x384xf32>
    %33 = arith.addf %31, %32 : vector<8x384xf32>
    %34 = vector.extract_strided_slice %33 {offsets = [0, 0], sizes = [8, 128], strides = [1, 1]} : vector<8x384xf32> to vector<8x128xf32>
    %35 = vector.extract_strided_slice %33 {offsets = [0, 128], sizes = [8, 128], strides = [1, 1]} : vector<8x384xf32> to vector<8x128xf32>
    %36 = vector.extract_strided_slice %33 {offsets = [0, 256], sizes = [8, 128], strides = [1, 1]} : vector<8x384xf32> to vector<8x128xf32>
    %37 = vector.extract_strided_slice %23 {offsets = [0, 384], sizes = [8, 128], strides = [1, 1]} : vector<8x512xf32> to vector<8x128xf32>
    %38 = math.tanh %37 : vector<8x128xf32>
    %39 = arith.mulf %35, %25 : vector<8x128xf32>
    %40 = arith.mulf %34, %38 : vector<8x128xf32>
    %41 = arith.addf %39, %40 : vector<8x128xf32>
    %42 = math.tanh %41 : vector<8x128xf32>
    %43 = arith.mulf %36, %42 : vector<8x128xf32>
    %c1 = arith.constant 1 : index
    %c0_26 = arith.constant 0 : index
    %c0_27 = arith.constant 0 : index
    %44 = vector.load %arg9[%c1, %c0_26, %c0_27] : memref<2x8x128xf32, #tpu.memory_space<vmem>>, vector<1x8x128xf32>
    %45 = vector.shape_cast %44 : vector<1x8x128xf32> to vector<8x128xf32>
    %c1_28 = arith.constant 1 : index
    %c0_29 = arith.constant 0 : index
    %c0_30 = arith.constant 0 : index
    %46 = vector.load %arg10[%c1_28, %c0_29, %c0_30] : memref<2x8x128xf32, #tpu.memory_space<vmem>>, vector<1x8x128xf32>
    %47 = vector.shape_cast %46 : vector<1x8x128xf32> to vector<8x128xf32>
    %c1_i32 = arith.constant 1 : i32
    %c8_i32 = arith.constant 8 : i32
    %48 = arith.muli %c1_i32, %c8_i32 : i32
    %49 = tpu.assume_multiple %48, 8 : i32
    %50 = arith.index_cast %49 : i32 to index
    %c0_31 = arith.constant 0 : index
    %51 = vector.load %arg14[%50, %c0_31] : memref<128x512xf32, #tpu.memory_space<vmem>>, vector<8x512xf32>
    %52 = arith.truncf %43 : vector<8x128xf32> to vector<8x128xbf16>
    %c0_32 = arith.constant 0 : index
    %c0_33 = arith.constant 0 : index
    %53 = vector.load %arg3[%c0_32, %c0_33] : memref<128x512xbf16, #tpu.memory_space<vmem>>, vector<128x512xbf16>
    %cst_34 = arith.constant dense<0.000000e+00> : vector<8x512xf32>
    %54 = tpu.matmul %52, %53, %cst_34 {dimension_numbers = #tpu.dot_dimension_numbers<[1], [0], [0], [1], [0, 0, 1, 1], [], []>} : vector<8x128xbf16>, vector<128x512xbf16>, vector<8x512xf32> -> vector<8x512xf32>
    %55 = arith.addf %51, %54 : vector<8x512xf32>
    %56 = tpu.concatenate %43, %45 in 1 : vector<8x128xf32>, vector<8x128xf32> -> vector<8x256xf32>
    %57 = arith.truncf %56 : vector<8x256xf32> to vector<8x256xbf16>
    %c0_35 = arith.constant 0 : index
    %c0_36 = arith.constant 0 : index
    %58 = vector.load %arg5[%c0_35, %c0_36] : memref<256x512xbf16, #tpu.memory_space<vmem>>, vector<256x512xbf16>
    %cst_37 = arith.constant dense<0.000000e+00> : vector<8x512xf32>
    %59 = tpu.matmul %57, %58, %cst_37 {dimension_numbers = #tpu.dot_dimension_numbers<[1], [0], [0], [1], [0, 0, 1, 1], [], []>} : vector<8x256xbf16>, vector<256x512xbf16>, vector<8x512xf32> -> vector<8x512xf32>
    %c0_38 = arith.constant 0 : index
    %c0_39 = arith.constant 0 : index
    %60 = vector.load %arg6[%c0_38, %c0_39] : memref<1x512xf32, #tpu.memory_space<vmem>>, vector<1x512xf32>
    %61 = vector.broadcast %60 : vector<1x512xf32> to vector<8x512xf32>
    %62 = arith.addf %59, %61 : vector<8x512xf32>
    %63 = vector.extract_strided_slice %55 {offsets = [0, 0], sizes = [8, 384], strides = [1, 1]} : vector<8x512xf32> to vector<8x384xf32>
    %cst_40 = arith.constant 5.000000e-01 : f32
    %64 = vector.broadcast %cst_40 : f32 to vector<8x384xf32>
    %65 = arith.mulf %64, %63 : vector<8x384xf32>
    %66 = math.tanh %65 : vector<8x384xf32>
    %cst_41 = arith.constant 5.000000e-01 : f32
    %67 = vector.broadcast %cst_41 : f32 to vector<8x384xf32>
    %68 = arith.mulf %67, %66 : vector<8x384xf32>
    %cst_42 = arith.constant 5.000000e-01 : f32
    %69 = vector.broadcast %cst_42 : f32 to vector<8x384xf32>
    %70 = arith.addf %68, %69 : vector<8x384xf32>
    %71 = vector.extract_strided_slice %70 {offsets = [0, 0], sizes = [8, 128], strides = [1, 1]} : vector<8x384xf32> to vector<8x128xf32>
    %72 = vector.extract_strided_slice %70 {offsets = [0, 128], sizes = [8, 128], strides = [1, 1]} : vector<8x384xf32> to vector<8x128xf32>
    %73 = vector.extract_strided_slice %70 {offsets = [0, 256], sizes = [8, 128], strides = [1, 1]} : vector<8x384xf32> to vector<8x128xf32>
    %74 = vector.extract_strided_slice %55 {offsets = [0, 384], sizes = [8, 128], strides = [1, 1]} : vector<8x512xf32> to vector<8x128xf32>
    %75 = math.tanh %74 : vector<8x128xf32>
    %76 = arith.mulf %72, %41 : vector<8x128xf32>
    %77 = arith.mulf %71, %75 : vector<8x128xf32>
    %78 = arith.addf %76, %77 : vector<8x128xf32>
    %79 = math.tanh %78 : vector<8x128xf32>
    %80 = arith.mulf %73, %79 : vector<8x128xf32>
    %81 = vector.extract_strided_slice %62 {offsets = [0, 0], sizes = [8, 384], strides = [1, 1]} : vector<8x512xf32> to vector<8x384xf32>
    %cst_43 = arith.constant 5.000000e-01 : f32
    %82 = vector.broadcast %cst_43 : f32 to vector<8x384xf32>
    %83 = arith.mulf %82, %81 : vector<8x384xf32>
    %84 = math.tanh %83 : vector<8x384xf32>
    %cst_44 = arith.constant 5.000000e-01 : f32
    %85 = vector.broadcast %cst_44 : f32 to vector<8x384xf32>
    %86 = arith.mulf %85, %84 : vector<8x384xf32>
    %cst_45 = arith.constant 5.000000e-01 : f32
    %87 = vector.broadcast %cst_45 : f32 to vector<8x384xf32>
    %88 = arith.addf %86, %87 : vector<8x384xf32>
    %89 = vector.extract_strided_slice %88 {offsets = [0, 0], sizes = [8, 128], strides = [1, 1]} : vector<8x384xf32> to vector<8x128xf32>
    %90 = vector.extract_strided_slice %88 {offsets = [0, 128], sizes = [8, 128], strides = [1, 1]} : vector<8x384xf32> to vector<8x128xf32>
    %91 = vector.extract_strided_slice %88 {offsets = [0, 256], sizes = [8, 128], strides = [1, 1]} : vector<8x384xf32> to vector<8x128xf32>
    %92 = vector.extract_strided_slice %62 {offsets = [0, 384], sizes = [8, 128], strides = [1, 1]} : vector<8x512xf32> to vector<8x128xf32>
    %93 = math.tanh %92 : vector<8x128xf32>
    %94 = arith.mulf %90, %47 : vector<8x128xf32>
    %95 = arith.mulf %89, %93 : vector<8x128xf32>
    %96 = arith.addf %94, %95 : vector<8x128xf32>
    %97 = math.tanh %96 : vector<8x128xf32>
    %98 = arith.mulf %91, %97 : vector<8x128xf32>
    %c1_i32_46 = arith.constant 1 : i32
    %99 = arith.subi %c1_i32, %c1_i32_46 : i32
    %c8_i32_47 = arith.constant 8 : i32
    %100 = arith.muli %99, %c8_i32_47 : i32
    %101 = tpu.assume_multiple %100, 8 : i32
    %102 = arith.index_cast %101 : i32 to index
    %c0_48 = arith.constant 0 : index
    %103 = vector.load %arg15[%102, %c0_48] : memref<128x128xf32, #tpu.memory_space<vmem>>, vector<8x128xf32>
    tpu.vector_store %arg15[%102, %c0_48], %98 {strides = array<i32>} : memref<128x128xf32, #tpu.memory_space<vmem>>, vector<8x128xf32>,
    %c2_i32 = arith.constant 2 : i32
    %c8_i32_49 = arith.constant 8 : i32
    %104 = arith.muli %c2_i32, %c8_i32_49 : i32
    %105 = tpu.assume_multiple %104, 8 : i32
    %106 = arith.index_cast %105 : i32 to index
    %c0_50 = arith.constant 0 : index
    %107 = vector.load %arg14[%106, %c0_50] : memref<128x512xf32, #tpu.memory_space<vmem>>, vector<8x512xf32>
    %108 = arith.truncf %80 : vector<8x128xf32> to vector<8x128xbf16>
    %c0_51 = arith.constant 0 : index
    %c0_52 = arith.constant 0 : index
    %109 = vector.load %arg3[%c0_51, %c0_52] : memref<128x512xbf16, #tpu.memory_space<vmem>>, vector<128x512xbf16>
    %cst_53 = arith.constant dense<0.000000e+00> : vector<8x512xf32>
    %110 = tpu.matmul %108, %109, %cst_53 {dimension_numbers = #tpu.dot_dimension_numbers<[1], [0], [0], [1], [0, 0, 1, 1], [], []>} : vector<8x128xbf16>, vector<128x512xbf16>, vector<8x512xf32> -> vector<8x512xf32>
    %111 = arith.addf %107, %110 : vector<8x512xf32>
    %112 = tpu.concatenate %80, %98 in 1 : vector<8x128xf32>, vector<8x128xf32> -> vector<8x256xf32>
    %113 = arith.truncf %112 : vector<8x256xf32> to vector<8x256xbf16>
    %c0_54 = arith.constant 0 : index
    %c0_55 = arith.constant 0 : index
    %114 = vector.load %arg5[%c0_54, %c0_55] : memref<256x512xbf16, #tpu.memory_space<vmem>>, vector<256x512xbf16>
    %cst_56 = arith.constant dense<0.000000e+00> : vector<8x512xf32>
    %115 = tpu.matmul %113, %114, %cst_56 {dimension_numbers = #tpu.dot_dimension_numbers<[1], [0], [0], [1], [0, 0, 1, 1], [], []>} : vector<8x256xbf16>, vector<256x512xbf16>, vector<8x512xf32> -> vector<8x512xf32>
    %c0_57 = arith.constant 0 : index
    %c0_58 = arith.constant 0 : index
    %116 = vector.load %arg6[%c0_57, %c0_58] : memref<1x512xf32, #tpu.memory_space<vmem>>, vector<1x512xf32>
    %117 = vector.broadcast %116 : vector<1x512xf32> to vector<8x512xf32>
    %118 = arith.addf %115, %117 : vector<8x512xf32>
    %119 = vector.extract_strided_slice %111 {offsets = [0, 0], sizes = [8, 384], strides = [1, 1]} : vector<8x512xf32> to vector<8x384xf32>
    %cst_59 = arith.constant 5.000000e-01 : f32
    %120 = vector.broadcast %cst_59 : f32 to vector<8x384xf32>
    %121 = arith.mulf %120, %119 : vector<8x384xf32>
    %122 = math.tanh %121 : vector<8x384xf32>
    %cst_60 = arith.constant 5.000000e-01 : f32
    %123 = vector.broadcast %cst_60 : f32 to vector<8x384xf32>
    %124 = arith.mulf %123, %122 : vector<8x384xf32>
    %cst_61 = arith.constant 5.000000e-01 : f32
    %125 = vector.broadcast %cst_61 : f32 to vector<8x384xf32>
    %126 = arith.addf %124, %125 : vector<8x384xf32>
    %127 = vector.extract_strided_slice %126 {offsets = [0, 0], sizes = [8, 128], strides = [1, 1]} : vector<8x384xf32> to vector<8x128xf32>
    %128 = vector.extract_strided_slice %126 {offsets = [0, 128], sizes = [8, 128], strides = [1, 1]} : vector<8x384xf32> to vector<8x128xf32>
    %129 = vector.extract_strided_slice %126 {offsets = [0, 256], sizes = [8, 128], strides = [1, 1]} : vector<8x384xf32> to vector<8x128xf32>
    %130 = vector.extract_strided_slice %111 {offsets = [0, 384], sizes = [8, 128], strides = [1, 1]} : vector<8x512xf32> to vector<8x128xf32>
    %131 = math.tanh %130 : vector<8x128xf32>
    %132 = arith.mulf %128, %78 : vector<8x128xf32>
    %133 = arith.mulf %127, %131 : vector<8x128xf32>
    %134 = arith.addf %132, %133 : vector<8x128xf32>
    %135 = math.tanh %134 : vector<8x128xf32>
    %136 = arith.mulf %129, %135 : vector<8x128xf32>
    %137 = vector.extract_strided_slice %118 {offsets = [0, 0], sizes = [8, 384], strides = [1, 1]} : vector<8x512xf32> to vector<8x384xf32>
    %cst_62 = arith.constant 5.000000e-01 : f32
    %138 = vector.broadcast %cst_62 : f32 to vector<8x384xf32>
    %139 = arith.mulf %138, %137 : vector<8x384xf32>
    %140 = math.tanh %139 : vector<8x384xf32>
    %cst_63 = arith.constant 5.000000e-01 : f32
    %141 = vector.broadcast %cst_63 : f32 to vector<8x384xf32>
    %142 = arith.mulf %141, %140 : vector<8x384xf32>
    %cst_64 = arith.constant 5.000000e-01 : f32
    %143 = vector.broadcast %cst_64 : f32 to vector<8x384xf32>
    %144 = arith.addf %142, %143 : vector<8x384xf32>
    %145 = vector.extract_strided_slice %144 {offsets = [0, 0], sizes = [8, 128], strides = [1, 1]} : vector<8x384xf32> to vector<8x128xf32>
    %146 = vector.extract_strided_slice %144 {offsets = [0, 128], sizes = [8, 128], strides = [1, 1]} : vector<8x384xf32> to vector<8x128xf32>
    %147 = vector.extract_strided_slice %144 {offsets = [0, 256], sizes = [8, 128], strides = [1, 1]} : vector<8x384xf32> to vector<8x128xf32>
    %148 = vector.extract_strided_slice %118 {offsets = [0, 384], sizes = [8, 128], strides = [1, 1]} : vector<8x512xf32> to vector<8x128xf32>
    %149 = math.tanh %148 : vector<8x128xf32>
    %150 = arith.mulf %146, %96 : vector<8x128xf32>
    %151 = arith.mulf %145, %149 : vector<8x128xf32>
    %152 = arith.addf %150, %151 : vector<8x128xf32>
    %153 = math.tanh %152 : vector<8x128xf32>
    %154 = arith.mulf %147, %153 : vector<8x128xf32>
    %c1_i32_65 = arith.constant 1 : i32
    %155 = arith.subi %c2_i32, %c1_i32_65 : i32
    %c8_i32_66 = arith.constant 8 : i32
    %156 = arith.muli %155, %c8_i32_66 : i32
    %157 = tpu.assume_multiple %156, 8 : i32
    %158 = arith.index_cast %157 : i32 to index
    %c0_67 = arith.constant 0 : index
    %159 = vector.load %arg15[%158, %c0_67] : memref<128x128xf32, #tpu.memory_space<vmem>>, vector<8x128xf32>
    tpu.vector_store %arg15[%158, %c0_67], %154 {strides = array<i32>} : memref<128x128xf32, #tpu.memory_space<vmem>>, vector<8x128xf32>,
    %c3_i32 = arith.constant 3 : i32
    %c8_i32_68 = arith.constant 8 : i32
    %160 = arith.muli %c3_i32, %c8_i32_68 : i32
    %161 = tpu.assume_multiple %160, 8 : i32
    %162 = arith.index_cast %161 : i32 to index
    %c0_69 = arith.constant 0 : index
    %163 = vector.load %arg14[%162, %c0_69] : memref<128x512xf32, #tpu.memory_space<vmem>>, vector<8x512xf32>
    %164 = arith.truncf %136 : vector<8x128xf32> to vector<8x128xbf16>
    %c0_70 = arith.constant 0 : index
    %c0_71 = arith.constant 0 : index
    %165 = vector.load %arg3[%c0_70, %c0_71] : memref<128x512xbf16, #tpu.memory_space<vmem>>, vector<128x512xbf16>
    %cst_72 = arith.constant dense<0.000000e+00> : vector<8x512xf32>
    %166 = tpu.matmul %164, %165, %cst_72 {dimension_numbers = #tpu.dot_dimension_numbers<[1], [0], [0], [1], [0, 0, 1, 1], [], []>} : vector<8x128xbf16>, vector<128x512xbf16>, vector<8x512xf32> -> vector<8x512xf32>
    %167 = arith.addf %163, %166 : vector<8x512xf32>
    %168 = tpu.concatenate %136, %154 in 1 : vector<8x128xf32>, vector<8x128xf32> -> vector<8x256xf32>
    %169 = arith.truncf %168 : vector<8x256xf32> to vector<8x256xbf16>
    %c0_73 = arith.constant 0 : index
    %c0_74 = arith.constant 0 : index
    %170 = vector.load %arg5[%c0_73, %c0_74] : memref<256x512xbf16, #tpu.memory_space<vmem>>, vector<256x512xbf16>
    %cst_75 = arith.constant dense<0.000000e+00> : vector<8x512xf32>
    %171 = tpu.matmul %169, %170, %cst_75 {dimension_numbers = #tpu.dot_dimension_numbers<[1], [0], [0], [1], [0, 0, 1, 1], [], []>} : vector<8x256xbf16>, vector<256x512xbf16>, vector<8x512xf32> -> vector<8x512xf32>
    %c0_76 = arith.constant 0 : index
    %c0_77 = arith.constant 0 : index
    %172 = vector.load %arg6[%c0_76, %c0_77] : memref<1x512xf32, #tpu.memory_space<vmem>>, vector<1x512xf32>
    %173 = vector.broadcast %172 : vector<1x512xf32> to vector<8x512xf32>
    %174 = arith.addf %171, %173 : vector<8x512xf32>
    %175 = vector.extract_strided_slice %167 {offsets = [0, 0], sizes = [8, 384], strides = [1, 1]} : vector<8x512xf32> to vector<8x384xf32>
    %cst_78 = arith.constant 5.000000e-01 : f32
    %176 = vector.broadcast %cst_78 : f32 to vector<8x384xf32>
    %177 = arith.mulf %176, %175 : vector<8x384xf32>
    %178 = math.tanh %177 : vector<8x384xf32>
    %cst_79 = arith.constant 5.000000e-01 : f32
    %179 = vector.broadcast %cst_79 : f32 to vector<8x384xf32>
    %180 = arith.mulf %179, %178 : vector<8x384xf32>
    %cst_80 = arith.constant 5.000000e-01 : f32
    %181 = vector.broadcast %cst_80 : f32 to vector<8x384xf32>
    %182 = arith.addf %180, %181 : vector<8x384xf32>
    %183 = vector.extract_strided_slice %182 {offsets = [0, 0], sizes = [8, 128], strides = [1, 1]} : vector<8x384xf32> to vector<8x128xf32>
    %184 = vector.extract_strided_slice %182 {offsets = [0, 128], sizes = [8, 128], strides = [1, 1]} : vector<8x384xf32> to vector<8x128xf32>
    %185 = vector.extract_strided_slice %182 {offsets = [0, 256], sizes = [8, 128], strides = [1, 1]} : vector<8x384xf32> to vector<8x128xf32>
    %186 = vector.extract_strided_slice %167 {offsets = [0, 384], sizes = [8, 128], strides = [1, 1]} : vector<8x512xf32> to vector<8x128xf32>
    %187 = math.tanh %186 : vector<8x128xf32>
    %188 = arith.mulf %184, %134 : vector<8x128xf32>
    %189 = arith.mulf %183, %187 : vector<8x128xf32>
    %190 = arith.addf %188, %189 : vector<8x128xf32>
    %191 = math.tanh %190 : vector<8x128xf32>
    %192 = arith.mulf %185, %191 : vector<8x128xf32>
    %193 = vector.extract_strided_slice %174 {offsets = [0, 0], sizes = [8, 384], strides = [1, 1]} : vector<8x512xf32> to vector<8x384xf32>
    %cst_81 = arith.constant 5.000000e-01 : f32
    %194 = vector.broadcast %cst_81 : f32 to vector<8x384xf32>
    %195 = arith.mulf %194, %193 : vector<8x384xf32>
    %196 = math.tanh %195 : vector<8x384xf32>
    %cst_82 = arith.constant 5.000000e-01 : f32
    %197 = vector.broadcast %cst_82 : f32 to vector<8x384xf32>
    %198 = arith.mulf %197, %196 : vector<8x384xf32>
    %cst_83 = arith.constant 5.000000e-01 : f32
    %199 = vector.broadcast %cst_83 : f32 to vector<8x384xf32>
    %200 = arith.addf %198, %199 : vector<8x384xf32>
    %201 = vector.extract_strided_slice %200 {offsets = [0, 0], sizes = [8, 128], strides = [1, 1]} : vector<8x384xf32> to vector<8x128xf32>
    %202 = vector.extract_strided_slice %200 {offsets = [0, 128], sizes = [8, 128], strides = [1, 1]} : vector<8x384xf32> to vector<8x128xf32>
    %203 = vector.extract_strided_slice %200 {offsets = [0, 256], sizes = [8, 128], strides = [1, 1]} : vector<8x384xf32> to vector<8x128xf32>
    %204 = vector.extract_strided_slice %174 {offsets = [0, 384], sizes = [8, 128], strides = [1, 1]} : vector<8x512xf32> to vector<8x128xf32>
    %205 = math.tanh %204 : vector<8x128xf32>
    %206 = arith.mulf %202, %152 : vector<8x128xf32>
    %207 = arith.mulf %201, %205 : vector<8x128xf32>
    %208 = arith.addf %206, %207 : vector<8x128xf32>
    %209 = math.tanh %208 : vector<8x128xf32>
    %210 = arith.mulf %203, %209 : vector<8x128xf32>
    %c1_i32_84 = arith.constant 1 : i32
    %211 = arith.subi %c3_i32, %c1_i32_84 : i32
    %c8_i32_85 = arith.constant 8 : i32
    %212 = arith.muli %211, %c8_i32_85 : i32
    %213 = tpu.assume_multiple %212, 8 : i32
    %214 = arith.index_cast %213 : i32 to index
    %c0_86 = arith.constant 0 : index
    %215 = vector.load %arg15[%214, %c0_86] : memref<128x128xf32, #tpu.memory_space<vmem>>, vector<8x128xf32>
    tpu.vector_store %arg15[%214, %c0_86], %210 {strides = array<i32>} : memref<128x128xf32, #tpu.memory_space<vmem>>, vector<8x128xf32>,
    %c4_i32 = arith.constant 4 : i32
    %c8_i32_87 = arith.constant 8 : i32
    %216 = arith.muli %c4_i32, %c8_i32_87 : i32
    %217 = tpu.assume_multiple %216, 8 : i32
    %218 = arith.index_cast %217 : i32 to index
    %c0_88 = arith.constant 0 : index
    %219 = vector.load %arg14[%218, %c0_88] : memref<128x512xf32, #tpu.memory_space<vmem>>, vector<8x512xf32>
    %220 = arith.truncf %192 : vector<8x128xf32> to vector<8x128xbf16>
    %c0_89 = arith.constant 0 : index
    %c0_90 = arith.constant 0 : index
    %221 = vector.load %arg3[%c0_89, %c0_90] : memref<128x512xbf16, #tpu.memory_space<vmem>>, vector<128x512xbf16>
    %cst_91 = arith.constant dense<0.000000e+00> : vector<8x512xf32>
    %222 = tpu.matmul %220, %221, %cst_91 {dimension_numbers = #tpu.dot_dimension_numbers<[1], [0], [0], [1], [0, 0, 1, 1], [], []>} : vector<8x128xbf16>, vector<128x512xbf16>, vector<8x512xf32> -> vector<8x512xf32>
    %223 = arith.addf %219, %222 : vector<8x512xf32>
    %224 = tpu.concatenate %192, %210 in 1 : vector<8x128xf32>, vector<8x128xf32> -> vector<8x256xf32>
    %225 = arith.truncf %224 : vector<8x256xf32> to vector<8x256xbf16>
    %c0_92 = arith.constant 0 : index
    %c0_93 = arith.constant 0 : index
    %226 = vector.load %arg5[%c0_92, %c0_93] : memref<256x512xbf16, #tpu.memory_space<vmem>>, vector<256x512xbf16>
    %cst_94 = arith.constant dense<0.000000e+00> : vector<8x512xf32>
    %227 = tpu.matmul %225, %226, %cst_94 {dimension_numbers = #tpu.dot_dimension_numbers<[1], [0], [0], [1], [0, 0, 1, 1], [], []>} : vector<8x256xbf16>, vector<256x512xbf16>, vector<8x512xf32> -> vector<8x512xf32>
    %c0_95 = arith.constant 0 : index
    %c0_96 = arith.constant 0 : index
    %228 = vector.load %arg6[%c0_95, %c0_96] : memref<1x512xf32, #tpu.memory_space<vmem>>, vector<1x512xf32>
    %229 = vector.broadcast %228 : vector<1x512xf32> to vector<8x512xf32>
    %230 = arith.addf %227, %229 : vector<8x512xf32>
    %231 = vector.extract_strided_slice %223 {offsets = [0, 0], sizes = [8, 384], strides = [1, 1]} : vector<8x512xf32> to vector<8x384xf32>
    %cst_97 = arith.constant 5.000000e-01 : f32
    %232 = vector.broadcast %cst_97 : f32 to vector<8x384xf32>
    %233 = arith.mulf %232, %231 : vector<8x384xf32>
    %234 = math.tanh %233 : vector<8x384xf32>
    %cst_98 = arith.constant 5.000000e-01 : f32
    %235 = vector.broadcast %cst_98 : f32 to vector<8x384xf32>
    %236 = arith.mulf %235, %234 : vector<8x384xf32>
    %cst_99 = arith.constant 5.000000e-01 : f32
    %237 = vector.broadcast %cst_99 : f32 to vector<8x384xf32>
    %238 = arith.addf %236, %237 : vector<8x384xf32>
    %239 = vector.extract_strided_slice %238 {offsets = [0, 0], sizes = [8, 128], strides = [1, 1]} : vector<8x384xf32> to vector<8x128xf32>
    %240 = vector.extract_strided_slice %238 {offsets = [0, 128], sizes = [8, 128], strides = [1, 1]} : vector<8x384xf32> to vector<8x128xf32>
    %241 = vector.extract_strided_slice %238 {offsets = [0, 256], sizes = [8, 128], strides = [1, 1]} : vector<8x384xf32> to vector<8x128xf32>
    %242 = vector.extract_strided_slice %223 {offsets = [0, 384], sizes = [8, 128], strides = [1, 1]} : vector<8x512xf32> to vector<8x128xf32>
    %243 = math.tanh %242 : vector<8x128xf32>
    %244 = arith.mulf %240, %190 : vector<8x128xf32>
    %245 = arith.mulf %239, %243 : vector<8x128xf32>
    %246 = arith.addf %244, %245 : vector<8x128xf32>
    %247 = math.tanh %246 : vector<8x128xf32>
    %248 = arith.mulf %241, %247 : vector<8x128xf32>
    %249 = vector.extract_strided_slice %230 {offsets = [0, 0], sizes = [8, 384], strides = [1, 1]} : vector<8x512xf32> to vector<8x384xf32>
    %cst_100 = arith.constant 5.000000e-01 : f32
    %250 = vector.broadcast %cst_100 : f32 to vector<8x384xf32>
    %251 = arith.mulf %250, %249 : vector<8x384xf32>
    %252 = math.tanh %251 : vector<8x384xf32>
    %cst_101 = arith.constant 5.000000e-01 : f32
    %253 = vector.broadcast %cst_101 : f32 to vector<8x384xf32>
    %254 = arith.mulf %253, %252 : vector<8x384xf32>
    %cst_102 = arith.constant 5.000000e-01 : f32
    %255 = vector.broadcast %cst_102 : f32 to vector<8x384xf32>
    %256 = arith.addf %254, %255 : vector<8x384xf32>
    %257 = vector.extract_strided_slice %256 {offsets = [0, 0], sizes = [8, 128], strides = [1, 1]} : vector<8x384xf32> to vector<8x128xf32>
    %258 = vector.extract_strided_slice %256 {offsets = [0, 128], sizes = [8, 128], strides = [1, 1]} : vector<8x384xf32> to vector<8x128xf32>
    %259 = vector.extract_strided_slice %256 {offsets = [0, 256], sizes = [8, 128], strides = [1, 1]} : vector<8x384xf32> to vector<8x128xf32>
    %260 = vector.extract_strided_slice %230 {offsets = [0, 384], sizes = [8, 128], strides = [1, 1]} : vector<8x512xf32> to vector<8x128xf32>
    %261 = math.tanh %260 : vector<8x128xf32>
    %262 = arith.mulf %258, %208 : vector<8x128xf32>
    %263 = arith.mulf %257, %261 : vector<8x128xf32>
    %264 = arith.addf %262, %263 : vector<8x128xf32>
    %265 = math.tanh %264 : vector<8x128xf32>
    %266 = arith.mulf %259, %265 : vector<8x128xf32>
    %c1_i32_103 = arith.constant 1 : i32
    %267 = arith.subi %c4_i32, %c1_i32_103 : i32
    %c8_i32_104 = arith.constant 8 : i32
    %268 = arith.muli %267, %c8_i32_104 : i32
    %269 = tpu.assume_multiple %268, 8 : i32
    %270 = arith.index_cast %269 : i32 to index
    %c0_105 = arith.constant 0 : index
    %271 = vector.load %arg15[%270, %c0_105] : memref<128x128xf32, #tpu.memory_space<vmem>>, vector<8x128xf32>
    tpu.vector_store %arg15[%270, %c0_105], %266 {strides = array<i32>} : memref<128x128xf32, #tpu.memory_space<vmem>>, vector<8x128xf32>,
    %c5_i32 = arith.constant 5 : i32
    %c8_i32_106 = arith.constant 8 : i32
    %272 = arith.muli %c5_i32, %c8_i32_106 : i32
    %273 = tpu.assume_multiple %272, 8 : i32
    %274 = arith.index_cast %273 : i32 to index
    %c0_107 = arith.constant 0 : index
    %275 = vector.load %arg14[%274, %c0_107] : memref<128x512xf32, #tpu.memory_space<vmem>>, vector<8x512xf32>
    %276 = arith.truncf %248 : vector<8x128xf32> to vector<8x128xbf16>
    %c0_108 = arith.constant 0 : index
    %c0_109 = arith.constant 0 : index
    %277 = vector.load %arg3[%c0_108, %c0_109] : memref<128x512xbf16, #tpu.memory_space<vmem>>, vector<128x512xbf16>
    %cst_110 = arith.constant dense<0.000000e+00> : vector<8x512xf32>
    %278 = tpu.matmul %276, %277, %cst_110 {dimension_numbers = #tpu.dot_dimension_numbers<[1], [0], [0], [1], [0, 0, 1, 1], [], []>} : vector<8x128xbf16>, vector<128x512xbf16>, vector<8x512xf32> -> vector<8x512xf32>
    %279 = arith.addf %275, %278 : vector<8x512xf32>
    %280 = tpu.concatenate %248, %266 in 1 : vector<8x128xf32>, vector<8x128xf32> -> vector<8x256xf32>
    %281 = arith.truncf %280 : vector<8x256xf32> to vector<8x256xbf16>
    %c0_111 = arith.constant 0 : index
    %c0_112 = arith.constant 0 : index
    %282 = vector.load %arg5[%c0_111, %c0_112] : memref<256x512xbf16, #tpu.memory_space<vmem>>, vector<256x512xbf16>
    %cst_113 = arith.constant dense<0.000000e+00> : vector<8x512xf32>
    %283 = tpu.matmul %281, %282, %cst_113 {dimension_numbers = #tpu.dot_dimension_numbers<[1], [0], [0], [1], [0, 0, 1, 1], [], []>} : vector<8x256xbf16>, vector<256x512xbf16>, vector<8x512xf32> -> vector<8x512xf32>
    %c0_114 = arith.constant 0 : index
    %c0_115 = arith.constant 0 : index
    %284 = vector.load %arg6[%c0_114, %c0_115] : memref<1x512xf32, #tpu.memory_space<vmem>>, vector<1x512xf32>
    %285 = vector.broadcast %284 : vector<1x512xf32> to vector<8x512xf32>
    %286 = arith.addf %283, %285 : vector<8x512xf32>
    %287 = vector.extract_strided_slice %279 {offsets = [0, 0], sizes = [8, 384], strides = [1, 1]} : vector<8x512xf32> to vector<8x384xf32>
    %cst_116 = arith.constant 5.000000e-01 : f32
    %288 = vector.broadcast %cst_116 : f32 to vector<8x384xf32>
    %289 = arith.mulf %288, %287 : vector<8x384xf32>
    %290 = math.tanh %289 : vector<8x384xf32>
    %cst_117 = arith.constant 5.000000e-01 : f32
    %291 = vector.broadcast %cst_117 : f32 to vector<8x384xf32>
    %292 = arith.mulf %291, %290 : vector<8x384xf32>
    %cst_118 = arith.constant 5.000000e-01 : f32
    %293 = vector.broadcast %cst_118 : f32 to vector<8x384xf32>
    %294 = arith.addf %292, %293 : vector<8x384xf32>
    %295 = vector.extract_strided_slice %294 {offsets = [0, 0], sizes = [8, 128], strides = [1, 1]} : vector<8x384xf32> to vector<8x128xf32>
    %296 = vector.extract_strided_slice %294 {offsets = [0, 128], sizes = [8, 128], strides = [1, 1]} : vector<8x384xf32> to vector<8x128xf32>
    %297 = vector.extract_strided_slice %294 {offsets = [0, 256], sizes = [8, 128], strides = [1, 1]} : vector<8x384xf32> to vector<8x128xf32>
    %298 = vector.extract_strided_slice %279 {offsets = [0, 384], sizes = [8, 128], strides = [1, 1]} : vector<8x512xf32> to vector<8x128xf32>
    %299 = math.tanh %298 : vector<8x128xf32>
    %300 = arith.mulf %296, %246 : vector<8x128xf32>
    %301 = arith.mulf %295, %299 : vector<8x128xf32>
    %302 = arith.addf %300, %301 : vector<8x128xf32>
    %303 = math.tanh %302 : vector<8x128xf32>
    %304 = arith.mulf %297, %303 : vector<8x128xf32>
    %305 = vector.extract_strided_slice %286 {offsets = [0, 0], sizes = [8, 384], strides = [1, 1]} : vector<8x512xf32> to vector<8x384xf32>
    %cst_119 = arith.constant 5.000000e-01 : f32
    %306 = vector.broadcast %cst_119 : f32 to vector<8x384xf32>
    %307 = arith.mulf %306, %305 : vector<8x384xf32>
    %308 = math.tanh %307 : vector<8x384xf32>
    %cst_120 = arith.constant 5.000000e-01 : f32
    %309 = vector.broadcast %cst_120 : f32 to vector<8x384xf32>
    %310 = arith.mulf %309, %308 : vector<8x384xf32>
    %cst_121 = arith.constant 5.000000e-01 : f32
    %311 = vector.broadcast %cst_121 : f32 to vector<8x384xf32>
    %312 = arith.addf %310, %311 : vector<8x384xf32>
    %313 = vector.extract_strided_slice %312 {offsets = [0, 0], sizes = [8, 128], strides = [1, 1]} : vector<8x384xf32> to vector<8x128xf32>
    %314 = vector.extract_strided_slice %312 {offsets = [0, 128], sizes = [8, 128], strides = [1, 1]} : vector<8x384xf32> to vector<8x128xf32>
    %315 = vector.extract_strided_slice %312 {offsets = [0, 256], sizes = [8, 128], strides = [1, 1]} : vector<8x384xf32> to vector<8x128xf32>
    %316 = vector.extract_strided_slice %286 {offsets = [0, 384], sizes = [8, 128], strides = [1, 1]} : vector<8x512xf32> to vector<8x128xf32>
    %317 = math.tanh %316 : vector<8x128xf32>
    %318 = arith.mulf %314, %264 : vector<8x128xf32>
    %319 = arith.mulf %313, %317 : vector<8x128xf32>
    %320 = arith.addf %318, %319 : vector<8x128xf32>
    %321 = math.tanh %320 : vector<8x128xf32>
    %322 = arith.mulf %315, %321 : vector<8x128xf32>
    %c1_i32_122 = arith.constant 1 : i32
    %323 = arith.subi %c5_i32, %c1_i32_122 : i32
    %c8_i32_123 = arith.constant 8 : i32
    %324 = arith.muli %323, %c8_i32_123 : i32
    %325 = tpu.assume_multiple %324, 8 : i32
    %326 = arith.index_cast %325 : i32 to index
    %c0_124 = arith.constant 0 : index
    %327 = vector.load %arg15[%326, %c0_124] : memref<128x128xf32, #tpu.memory_space<vmem>>, vector<8x128xf32>
    tpu.vector_store %arg15[%326, %c0_124], %322 {strides = array<i32>} : memref<128x128xf32, #tpu.memory_space<vmem>>, vector<8x128xf32>,
    %c6_i32 = arith.constant 6 : i32
    %c8_i32_125 = arith.constant 8 : i32
    %328 = arith.muli %c6_i32, %c8_i32_125 : i32
    %329 = tpu.assume_multiple %328, 8 : i32
    %330 = arith.index_cast %329 : i32 to index
    %c0_126 = arith.constant 0 : index
    %331 = vector.load %arg14[%330, %c0_126] : memref<128x512xf32, #tpu.memory_space<vmem>>, vector<8x512xf32>
    %332 = arith.truncf %304 : vector<8x128xf32> to vector<8x128xbf16>
    %c0_127 = arith.constant 0 : index
    %c0_128 = arith.constant 0 : index
    %333 = vector.load %arg3[%c0_127, %c0_128] : memref<128x512xbf16, #tpu.memory_space<vmem>>, vector<128x512xbf16>
    %cst_129 = arith.constant dense<0.000000e+00> : vector<8x512xf32>
    %334 = tpu.matmul %332, %333, %cst_129 {dimension_numbers = #tpu.dot_dimension_numbers<[1], [0], [0], [1], [0, 0, 1, 1], [], []>} : vector<8x128xbf16>, vector<128x512xbf16>, vector<8x512xf32> -> vector<8x512xf32>
    %335 = arith.addf %331, %334 : vector<8x512xf32>
    %336 = tpu.concatenate %304, %322 in 1 : vector<8x128xf32>, vector<8x128xf32> -> vector<8x256xf32>
    %337 = arith.truncf %336 : vector<8x256xf32> to vector<8x256xbf16>
    %c0_130 = arith.constant 0 : index
    %c0_131 = arith.constant 0 : index
    %338 = vector.load %arg5[%c0_130, %c0_131] : memref<256x512xbf16, #tpu.memory_space<vmem>>, vector<256x512xbf16>
    %cst_132 = arith.constant dense<0.000000e+00> : vector<8x512xf32>
    %339 = tpu.matmul %337, %338, %cst_132 {dimension_numbers = #tpu.dot_dimension_numbers<[1], [0], [0], [1], [0, 0, 1, 1], [], []>} : vector<8x256xbf16>, vector<256x512xbf16>, vector<8x512xf32> -> vector<8x512xf32>
    %c0_133 = arith.constant 0 : index
    %c0_134 = arith.constant 0 : index
    %340 = vector.load %arg6[%c0_133, %c0_134] : memref<1x512xf32, #tpu.memory_space<vmem>>, vector<1x512xf32>
    %341 = vector.broadcast %340 : vector<1x512xf32> to vector<8x512xf32>
    %342 = arith.addf %339, %341 : vector<8x512xf32>
    %343 = vector.extract_strided_slice %335 {offsets = [0, 0], sizes = [8, 384], strides = [1, 1]} : vector<8x512xf32> to vector<8x384xf32>
    %cst_135 = arith.constant 5.000000e-01 : f32
    %344 = vector.broadcast %cst_135 : f32 to vector<8x384xf32>
    %345 = arith.mulf %344, %343 : vector<8x384xf32>
    %346 = math.tanh %345 : vector<8x384xf32>
    %cst_136 = arith.constant 5.000000e-01 : f32
    %347 = vector.broadcast %cst_136 : f32 to vector<8x384xf32>
    %348 = arith.mulf %347, %346 : vector<8x384xf32>
    %cst_137 = arith.constant 5.000000e-01 : f32
    %349 = vector.broadcast %cst_137 : f32 to vector<8x384xf32>
    %350 = arith.addf %348, %349 : vector<8x384xf32>
    %351 = vector.extract_strided_slice %350 {offsets = [0, 0], sizes = [8, 128], strides = [1, 1]} : vector<8x384xf32> to vector<8x128xf32>
    %352 = vector.extract_strided_slice %350 {offsets = [0, 128], sizes = [8, 128], strides = [1, 1]} : vector<8x384xf32> to vector<8x128xf32>
    %353 = vector.extract_strided_slice %350 {offsets = [0, 256], sizes = [8, 128], strides = [1, 1]} : vector<8x384xf32> to vector<8x128xf32>
    %354 = vector.extract_strided_slice %335 {offsets = [0, 384], sizes = [8, 128], strides = [1, 1]} : vector<8x512xf32> to vector<8x128xf32>
    %355 = math.tanh %354 : vector<8x128xf32>
    %356 = arith.mulf %352, %302 : vector<8x128xf32>
    %357 = arith.mulf %351, %355 : vector<8x128xf32>
    %358 = arith.addf %356, %357 : vector<8x128xf32>
    %359 = math.tanh %358 : vector<8x128xf32>
    %360 = arith.mulf %353, %359 : vector<8x128xf32>
    %361 = vector.extract_strided_slice %342 {offsets = [0, 0], sizes = [8, 384], strides = [1, 1]} : vector<8x512xf32> to vector<8x384xf32>
    %cst_138 = arith.constant 5.000000e-01 : f32
    %362 = vector.broadcast %cst_138 : f32 to vector<8x384xf32>
    %363 = arith.mulf %362, %361 : vector<8x384xf32>
    %364 = math.tanh %363 : vector<8x384xf32>
    %cst_139 = arith.constant 5.000000e-01 : f32
    %365 = vector.broadcast %cst_139 : f32 to vector<8x384xf32>
    %366 = arith.mulf %365, %364 : vector<8x384xf32>
    %cst_140 = arith.constant 5.000000e-01 : f32
    %367 = vector.broadcast %cst_140 : f32 to vector<8x384xf32>
    %368 = arith.addf %366, %367 : vector<8x384xf32>
    %369 = vector.extract_strided_slice %368 {offsets = [0, 0], sizes = [8, 128], strides = [1, 1]} : vector<8x384xf32> to vector<8x128xf32>
    %370 = vector.extract_strided_slice %368 {offsets = [0, 128], sizes = [8, 128], strides = [1, 1]} : vector<8x384xf32> to vector<8x128xf32>
    %371 = vector.extract_strided_slice %368 {offsets = [0, 256], sizes = [8, 128], strides = [1, 1]} : vector<8x384xf32> to vector<8x128xf32>
    %372 = vector.extract_strided_slice %342 {offsets = [0, 384], sizes = [8, 128], strides = [1, 1]} : vector<8x512xf32> to vector<8x128xf32>
    %373 = math.tanh %372 : vector<8x128xf32>
    %374 = arith.mulf %370, %320 : vector<8x128xf32>
    %375 = arith.mulf %369, %373 : vector<8x128xf32>
    %376 = arith.addf %374, %375 : vector<8x128xf32>
    %377 = math.tanh %376 : vector<8x128xf32>
    %378 = arith.mulf %371, %377 : vector<8x128xf32>
    %c1_i32_141 = arith.constant 1 : i32
    %379 = arith.subi %c6_i32, %c1_i32_141 : i32
    %c8_i32_142 = arith.constant 8 : i32
    %380 = arith.muli %379, %c8_i32_142 : i32
    %381 = tpu.assume_multiple %380, 8 : i32
    %382 = arith.index_cast %381 : i32 to index
    %c0_143 = arith.constant 0 : index
    %383 = vector.load %arg15[%382, %c0_143] : memref<128x128xf32, #tpu.memory_space<vmem>>, vector<8x128xf32>
    tpu.vector_store %arg15[%382, %c0_143], %378 {strides = array<i32>} : memref<128x128xf32, #tpu.memory_space<vmem>>, vector<8x128xf32>,
    %c7_i32 = arith.constant 7 : i32
    %c8_i32_144 = arith.constant 8 : i32
    %384 = arith.muli %c7_i32, %c8_i32_144 : i32
    %385 = tpu.assume_multiple %384, 8 : i32
    %386 = arith.index_cast %385 : i32 to index
    %c0_145 = arith.constant 0 : index
    %387 = vector.load %arg14[%386, %c0_145] : memref<128x512xf32, #tpu.memory_space<vmem>>, vector<8x512xf32>
    %388 = arith.truncf %360 : vector<8x128xf32> to vector<8x128xbf16>
    %c0_146 = arith.constant 0 : index
    %c0_147 = arith.constant 0 : index
    %389 = vector.load %arg3[%c0_146, %c0_147] : memref<128x512xbf16, #tpu.memory_space<vmem>>, vector<128x512xbf16>
    %cst_148 = arith.constant dense<0.000000e+00> : vector<8x512xf32>
    %390 = tpu.matmul %388, %389, %cst_148 {dimension_numbers = #tpu.dot_dimension_numbers<[1], [0], [0], [1], [0, 0, 1, 1], [], []>} : vector<8x128xbf16>, vector<128x512xbf16>, vector<8x512xf32> -> vector<8x512xf32>
    %391 = arith.addf %387, %390 : vector<8x512xf32>
    %392 = tpu.concatenate %360, %378 in 1 : vector<8x128xf32>, vector<8x128xf32> -> vector<8x256xf32>
    %393 = arith.truncf %392 : vector<8x256xf32> to vector<8x256xbf16>
    %c0_149 = arith.constant 0 : index
    %c0_150 = arith.constant 0 : index
    %394 = vector.load %arg5[%c0_149, %c0_150] : memref<256x512xbf16, #tpu.memory_space<vmem>>, vector<256x512xbf16>
    %cst_151 = arith.constant dense<0.000000e+00> : vector<8x512xf32>
    %395 = tpu.matmul %393, %394, %cst_151 {dimension_numbers = #tpu.dot_dimension_numbers<[1], [0], [0], [1], [0, 0, 1, 1], [], []>} : vector<8x256xbf16>, vector<256x512xbf16>, vector<8x512xf32> -> vector<8x512xf32>
    %c0_152 = arith.constant 0 : index
    %c0_153 = arith.constant 0 : index
    %396 = vector.load %arg6[%c0_152, %c0_153] : memref<1x512xf32, #tpu.memory_space<vmem>>, vector<1x512xf32>
    %397 = vector.broadcast %396 : vector<1x512xf32> to vector<8x512xf32>
    %398 = arith.addf %395, %397 : vector<8x512xf32>
    %399 = vector.extract_strided_slice %391 {offsets = [0, 0], sizes = [8, 384], strides = [1, 1]} : vector<8x512xf32> to vector<8x384xf32>
    %cst_154 = arith.constant 5.000000e-01 : f32
    %400 = vector.broadcast %cst_154 : f32 to vector<8x384xf32>
    %401 = arith.mulf %400, %399 : vector<8x384xf32>
    %402 = math.tanh %401 : vector<8x384xf32>
    %cst_155 = arith.constant 5.000000e-01 : f32
    %403 = vector.broadcast %cst_155 : f32 to vector<8x384xf32>
    %404 = arith.mulf %403, %402 : vector<8x384xf32>
    %cst_156 = arith.constant 5.000000e-01 : f32
    %405 = vector.broadcast %cst_156 : f32 to vector<8x384xf32>
    %406 = arith.addf %404, %405 : vector<8x384xf32>
    %407 = vector.extract_strided_slice %406 {offsets = [0, 0], sizes = [8, 128], strides = [1, 1]} : vector<8x384xf32> to vector<8x128xf32>
    %408 = vector.extract_strided_slice %406 {offsets = [0, 128], sizes = [8, 128], strides = [1, 1]} : vector<8x384xf32> to vector<8x128xf32>
    %409 = vector.extract_strided_slice %406 {offsets = [0, 256], sizes = [8, 128], strides = [1, 1]} : vector<8x384xf32> to vector<8x128xf32>
    %410 = vector.extract_strided_slice %391 {offsets = [0, 384], sizes = [8, 128], strides = [1, 1]} : vector<8x512xf32> to vector<8x128xf32>
    %411 = math.tanh %410 : vector<8x128xf32>
    %412 = arith.mulf %408, %358 : vector<8x128xf32>
    %413 = arith.mulf %407, %411 : vector<8x128xf32>
    %414 = arith.addf %412, %413 : vector<8x128xf32>
    %415 = math.tanh %414 : vector<8x128xf32>
    %416 = arith.mulf %409, %415 : vector<8x128xf32>
    %417 = vector.extract_strided_slice %398 {offsets = [0, 0], sizes = [8, 384], strides = [1, 1]} : vector<8x512xf32> to vector<8x384xf32>
    %cst_157 = arith.constant 5.000000e-01 : f32
    %418 = vector.broadcast %cst_157 : f32 to vector<8x384xf32>
    %419 = arith.mulf %418, %417 : vector<8x384xf32>
    %420 = math.tanh %419 : vector<8x384xf32>
    %cst_158 = arith.constant 5.000000e-01 : f32
    %421 = vector.broadcast %cst_158 : f32 to vector<8x384xf32>
    %422 = arith.mulf %421, %420 : vector<8x384xf32>
    %cst_159 = arith.constant 5.000000e-01 : f32
    %423 = vector.broadcast %cst_159 : f32 to vector<8x384xf32>
    %424 = arith.addf %422, %423 : vector<8x384xf32>
    %425 = vector.extract_strided_slice %424 {offsets = [0, 0], sizes = [8, 128], strides = [1, 1]} : vector<8x384xf32> to vector<8x128xf32>
    %426 = vector.extract_strided_slice %424 {offsets = [0, 128], sizes = [8, 128], strides = [1, 1]} : vector<8x384xf32> to vector<8x128xf32>
    %427 = vector.extract_strided_slice %424 {offsets = [0, 256], sizes = [8, 128], strides = [1, 1]} : vector<8x384xf32> to vector<8x128xf32>
    %428 = vector.extract_strided_slice %398 {offsets = [0, 384], sizes = [8, 128], strides = [1, 1]} : vector<8x512xf32> to vector<8x128xf32>
    %429 = math.tanh %428 : vector<8x128xf32>
    %430 = arith.mulf %426, %376 : vector<8x128xf32>
    %431 = arith.mulf %425, %429 : vector<8x128xf32>
    %432 = arith.addf %430, %431 : vector<8x128xf32>
    %433 = math.tanh %432 : vector<8x128xf32>
    %434 = arith.mulf %427, %433 : vector<8x128xf32>
    %c1_i32_160 = arith.constant 1 : i32
    %435 = arith.subi %c7_i32, %c1_i32_160 : i32
    %c8_i32_161 = arith.constant 8 : i32
    %436 = arith.muli %435, %c8_i32_161 : i32
    %437 = tpu.assume_multiple %436, 8 : i32
    %438 = arith.index_cast %437 : i32 to index
    %c0_162 = arith.constant 0 : index
    %439 = vector.load %arg15[%438, %c0_162] : memref<128x128xf32, #tpu.memory_space<vmem>>, vector<8x128xf32>
    tpu.vector_store %arg15[%438, %c0_162], %434 {strides = array<i32>} : memref<128x128xf32, #tpu.memory_space<vmem>>, vector<8x128xf32>,
    %c8_i32_163 = arith.constant 8 : i32
    %c8_i32_164 = arith.constant 8 : i32
    %440 = arith.muli %c8_i32_163, %c8_i32_164 : i32
    %441 = tpu.assume_multiple %440, 8 : i32
    %442 = arith.index_cast %441 : i32 to index
    %c0_165 = arith.constant 0 : index
    %443 = vector.load %arg14[%442, %c0_165] : memref<128x512xf32, #tpu.memory_space<vmem>>, vector<8x512xf32>
    %444 = arith.truncf %416 : vector<8x128xf32> to vector<8x128xbf16>
    %c0_166 = arith.constant 0 : index
    %c0_167 = arith.constant 0 : index
    %445 = vector.load %arg3[%c0_166, %c0_167] : memref<128x512xbf16, #tpu.memory_space<vmem>>, vector<128x512xbf16>
    %cst_168 = arith.constant dense<0.000000e+00> : vector<8x512xf32>
    %446 = tpu.matmul %444, %445, %cst_168 {dimension_numbers = #tpu.dot_dimension_numbers<[1], [0], [0], [1], [0, 0, 1, 1], [], []>} : vector<8x128xbf16>, vector<128x512xbf16>, vector<8x512xf32> -> vector<8x512xf32>
    %447 = arith.addf %443, %446 : vector<8x512xf32>
    %448 = tpu.concatenate %416, %434 in 1 : vector<8x128xf32>, vector<8x128xf32> -> vector<8x256xf32>
    %449 = arith.truncf %448 : vector<8x256xf32> to vector<8x256xbf16>
    %c0_169 = arith.constant 0 : index
    %c0_170 = arith.constant 0 : index
    %450 = vector.load %arg5[%c0_169, %c0_170] : memref<256x512xbf16, #tpu.memory_space<vmem>>, vector<256x512xbf16>
    %cst_171 = arith.constant dense<0.000000e+00> : vector<8x512xf32>
    %451 = tpu.matmul %449, %450, %cst_171 {dimension_numbers = #tpu.dot_dimension_numbers<[1], [0], [0], [1], [0, 0, 1, 1], [], []>} : vector<8x256xbf16>, vector<256x512xbf16>, vector<8x512xf32> -> vector<8x512xf32>
    %c0_172 = arith.constant 0 : index
    %c0_173 = arith.constant 0 : index
    %452 = vector.load %arg6[%c0_172, %c0_173] : memref<1x512xf32, #tpu.memory_space<vmem>>, vector<1x512xf32>
    %453 = vector.broadcast %452 : vector<1x512xf32> to vector<8x512xf32>
    %454 = arith.addf %451, %453 : vector<8x512xf32>
    %455 = vector.extract_strided_slice %447 {offsets = [0, 0], sizes = [8, 384], strides = [1, 1]} : vector<8x512xf32> to vector<8x384xf32>
    %cst_174 = arith.constant 5.000000e-01 : f32
    %456 = vector.broadcast %cst_174 : f32 to vector<8x384xf32>
    %457 = arith.mulf %456, %455 : vector<8x384xf32>
    %458 = math.tanh %457 : vector<8x384xf32>
    %cst_175 = arith.constant 5.000000e-01 : f32
    %459 = vector.broadcast %cst_175 : f32 to vector<8x384xf32>
    %460 = arith.mulf %459, %458 : vector<8x384xf32>
    %cst_176 = arith.constant 5.000000e-01 : f32
    %461 = vector.broadcast %cst_176 : f32 to vector<8x384xf32>
    %462 = arith.addf %460, %461 : vector<8x384xf32>
    %463 = vector.extract_strided_slice %462 {offsets = [0, 0], sizes = [8, 128], strides = [1, 1]} : vector<8x384xf32> to vector<8x128xf32>
    %464 = vector.extract_strided_slice %462 {offsets = [0, 128], sizes = [8, 128], strides = [1, 1]} : vector<8x384xf32> to vector<8x128xf32>
    %465 = vector.extract_strided_slice %462 {offsets = [0, 256], sizes = [8, 128], strides = [1, 1]} : vector<8x384xf32> to vector<8x128xf32>
    %466 = vector.extract_strided_slice %447 {offsets = [0, 384], sizes = [8, 128], strides = [1, 1]} : vector<8x512xf32> to vector<8x128xf32>
    %467 = math.tanh %466 : vector<8x128xf32>
    %468 = arith.mulf %464, %414 : vector<8x128xf32>
    %469 = arith.mulf %463, %467 : vector<8x128xf32>
    %470 = arith.addf %468, %469 : vector<8x128xf32>
    %471 = math.tanh %470 : vector<8x128xf32>
    %472 = arith.mulf %465, %471 : vector<8x128xf32>
    %473 = vector.extract_strided_slice %454 {offsets = [0, 0], sizes = [8, 384], strides = [1, 1]} : vector<8x512xf32> to vector<8x384xf32>
    %cst_177 = arith.constant 5.000000e-01 : f32
    %474 = vector.broadcast %cst_177 : f32 to vector<8x384xf32>
    %475 = arith.mulf %474, %473 : vector<8x384xf32>
    %476 = math.tanh %475 : vector<8x384xf32>
    %cst_178 = arith.constant 5.000000e-01 : f32
    %477 = vector.broadcast %cst_178 : f32 to vector<8x384xf32>
    %478 = arith.mulf %477, %476 : vector<8x384xf32>
    %cst_179 = arith.constant 5.000000e-01 : f32
    %479 = vector.broadcast %cst_179 : f32 to vector<8x384xf32>
    %480 = arith.addf %478, %479 : vector<8x384xf32>
    %481 = vector.extract_strided_slice %480 {offsets = [0, 0], sizes = [8, 128], strides = [1, 1]} : vector<8x384xf32> to vector<8x128xf32>
    %482 = vector.extract_strided_slice %480 {offsets = [0, 128], sizes = [8, 128], strides = [1, 1]} : vector<8x384xf32> to vector<8x128xf32>
    %483 = vector.extract_strided_slice %480 {offsets = [0, 256], sizes = [8, 128], strides = [1, 1]} : vector<8x384xf32> to vector<8x128xf32>
    %484 = vector.extract_strided_slice %454 {offsets = [0, 384], sizes = [8, 128], strides = [1, 1]} : vector<8x512xf32> to vector<8x128xf32>
    %485 = math.tanh %484 : vector<8x128xf32>
    %486 = arith.mulf %482, %432 : vector<8x128xf32>
    %487 = arith.mulf %481, %485 : vector<8x128xf32>
    %488 = arith.addf %486, %487 : vector<8x128xf32>
    %489 = math.tanh %488 : vector<8x128xf32>
    %490 = arith.mulf %483, %489 : vector<8x128xf32>
    %c1_i32_180 = arith.constant 1 : i32
    %491 = arith.subi %c8_i32_163, %c1_i32_180 : i32
    %c8_i32_181 = arith.constant 8 : i32
    %492 = arith.muli %491, %c8_i32_181 : i32
    %493 = tpu.assume_multiple %492, 8 : i32
    %494 = arith.index_cast %493 : i32 to index
    %c0_182 = arith.constant 0 : index
    %495 = vector.load %arg15[%494, %c0_182] : memref<128x128xf32, #tpu.memory_space<vmem>>, vector<8x128xf32>
    tpu.vector_store %arg15[%494, %c0_182], %490 {strides = array<i32>} : memref<128x128xf32, #tpu.memory_space<vmem>>, vector<8x128xf32>,
    %c9_i32 = arith.constant 9 : i32
    %c8_i32_183 = arith.constant 8 : i32
    %496 = arith.muli %c9_i32, %c8_i32_183 : i32
    %497 = tpu.assume_multiple %496, 8 : i32
    %498 = arith.index_cast %497 : i32 to index
    %c0_184 = arith.constant 0 : index
    %499 = vector.load %arg14[%498, %c0_184] : memref<128x512xf32, #tpu.memory_space<vmem>>, vector<8x512xf32>
    %500 = arith.truncf %472 : vector<8x128xf32> to vector<8x128xbf16>
    %c0_185 = arith.constant 0 : index
    %c0_186 = arith.constant 0 : index
    %501 = vector.load %arg3[%c0_185, %c0_186] : memref<128x512xbf16, #tpu.memory_space<vmem>>, vector<128x512xbf16>
    %cst_187 = arith.constant dense<0.000000e+00> : vector<8x512xf32>
    %502 = tpu.matmul %500, %501, %cst_187 {dimension_numbers = #tpu.dot_dimension_numbers<[1], [0], [0], [1], [0, 0, 1, 1], [], []>} : vector<8x128xbf16>, vector<128x512xbf16>, vector<8x512xf32> -> vector<8x512xf32>
    %503 = arith.addf %499, %502 : vector<8x512xf32>
    %504 = tpu.concatenate %472, %490 in 1 : vector<8x128xf32>, vector<8x128xf32> -> vector<8x256xf32>
    %505 = arith.truncf %504 : vector<8x256xf32> to vector<8x256xbf16>
    %c0_188 = arith.constant 0 : index
    %c0_189 = arith.constant 0 : index
    %506 = vector.load %arg5[%c0_188, %c0_189] : memref<256x512xbf16, #tpu.memory_space<vmem>>, vector<256x512xbf16>
    %cst_190 = arith.constant dense<0.000000e+00> : vector<8x512xf32>
    %507 = tpu.matmul %505, %506, %cst_190 {dimension_numbers = #tpu.dot_dimension_numbers<[1], [0], [0], [1], [0, 0, 1, 1], [], []>} : vector<8x256xbf16>, vector<256x512xbf16>, vector<8x512xf32> -> vector<8x512xf32>
    %c0_191 = arith.constant 0 : index
    %c0_192 = arith.constant 0 : index
    %508 = vector.load %arg6[%c0_191, %c0_192] : memref<1x512xf32, #tpu.memory_space<vmem>>, vector<1x512xf32>
    %509 = vector.broadcast %508 : vector<1x512xf32> to vector<8x512xf32>
    %510 = arith.addf %507, %509 : vector<8x512xf32>
    %511 = vector.extract_strided_slice %503 {offsets = [0, 0], sizes = [8, 384], strides = [1, 1]} : vector<8x512xf32> to vector<8x384xf32>
    %cst_193 = arith.constant 5.000000e-01 : f32
    %512 = vector.broadcast %cst_193 : f32 to vector<8x384xf32>
    %513 = arith.mulf %512, %511 : vector<8x384xf32>
    %514 = math.tanh %513 : vector<8x384xf32>
    %cst_194 = arith.constant 5.000000e-01 : f32
    %515 = vector.broadcast %cst_194 : f32 to vector<8x384xf32>
    %516 = arith.mulf %515, %514 : vector<8x384xf32>
    %cst_195 = arith.constant 5.000000e-01 : f32
    %517 = vector.broadcast %cst_195 : f32 to vector<8x384xf32>
    %518 = arith.addf %516, %517 : vector<8x384xf32>
    %519 = vector.extract_strided_slice %518 {offsets = [0, 0], sizes = [8, 128], strides = [1, 1]} : vector<8x384xf32> to vector<8x128xf32>
    %520 = vector.extract_strided_slice %518 {offsets = [0, 128], sizes = [8, 128], strides = [1, 1]} : vector<8x384xf32> to vector<8x128xf32>
    %521 = vector.extract_strided_slice %518 {offsets = [0, 256], sizes = [8, 128], strides = [1, 1]} : vector<8x384xf32> to vector<8x128xf32>
    %522 = vector.extract_strided_slice %503 {offsets = [0, 384], sizes = [8, 128], strides = [1, 1]} : vector<8x512xf32> to vector<8x128xf32>
    %523 = math.tanh %522 : vector<8x128xf32>
    %524 = arith.mulf %520, %470 : vector<8x128xf32>
    %525 = arith.mulf %519, %523 : vector<8x128xf32>
    %526 = arith.addf %524, %525 : vector<8x128xf32>
    %527 = math.tanh %526 : vector<8x128xf32>
    %528 = arith.mulf %521, %527 : vector<8x128xf32>
    %529 = vector.extract_strided_slice %510 {offsets = [0, 0], sizes = [8, 384], strides = [1, 1]} : vector<8x512xf32> to vector<8x384xf32>
    %cst_196 = arith.constant 5.000000e-01 : f32
    %530 = vector.broadcast %cst_196 : f32 to vector<8x384xf32>
    %531 = arith.mulf %530, %529 : vector<8x384xf32>
    %532 = math.tanh %531 : vector<8x384xf32>
    %cst_197 = arith.constant 5.000000e-01 : f32
    %533 = vector.broadcast %cst_197 : f32 to vector<8x384xf32>
    %534 = arith.mulf %533, %532 : vector<8x384xf32>
    %cst_198 = arith.constant 5.000000e-01 : f32
    %535 = vector.broadcast %cst_198 : f32 to vector<8x384xf32>
    %536 = arith.addf %534, %535 : vector<8x384xf32>
    %537 = vector.extract_strided_slice %536 {offsets = [0, 0], sizes = [8, 128], strides = [1, 1]} : vector<8x384xf32> to vector<8x128xf32>
    %538 = vector.extract_strided_slice %536 {offsets = [0, 128], sizes = [8, 128], strides = [1, 1]} : vector<8x384xf32> to vector<8x128xf32>
    %539 = vector.extract_strided_slice %536 {offsets = [0, 256], sizes = [8, 128], strides = [1, 1]} : vector<8x384xf32> to vector<8x128xf32>
    %540 = vector.extract_strided_slice %510 {offsets = [0, 384], sizes = [8, 128], strides = [1, 1]} : vector<8x512xf32> to vector<8x128xf32>
    %541 = math.tanh %540 : vector<8x128xf32>
    %542 = arith.mulf %538, %488 : vector<8x128xf32>
    %543 = arith.mulf %537, %541 : vector<8x128xf32>
    %544 = arith.addf %542, %543 : vector<8x128xf32>
    %545 = math.tanh %544 : vector<8x128xf32>
    %546 = arith.mulf %539, %545 : vector<8x128xf32>
    %c1_i32_199 = arith.constant 1 : i32
    %547 = arith.subi %c9_i32, %c1_i32_199 : i32
    %c8_i32_200 = arith.constant 8 : i32
    %548 = arith.muli %547, %c8_i32_200 : i32
    %549 = tpu.assume_multiple %548, 8 : i32
    %550 = arith.index_cast %549 : i32 to index
    %c0_201 = arith.constant 0 : index
    %551 = vector.load %arg15[%550, %c0_201] : memref<128x128xf32, #tpu.memory_space<vmem>>, vector<8x128xf32>
    tpu.vector_store %arg15[%550, %c0_201], %546 {strides = array<i32>} : memref<128x128xf32, #tpu.memory_space<vmem>>, vector<8x128xf32>,
    %c10_i32 = arith.constant 10 : i32
    %c8_i32_202 = arith.constant 8 : i32
    %552 = arith.muli %c10_i32, %c8_i32_202 : i32
    %553 = tpu.assume_multiple %552, 8 : i32
    %554 = arith.index_cast %553 : i32 to index
    %c0_203 = arith.constant 0 : index
    %555 = vector.load %arg14[%554, %c0_203] : memref<128x512xf32, #tpu.memory_space<vmem>>, vector<8x512xf32>
    %556 = arith.truncf %528 : vector<8x128xf32> to vector<8x128xbf16>
    %c0_204 = arith.constant 0 : index
    %c0_205 = arith.constant 0 : index
    %557 = vector.load %arg3[%c0_204, %c0_205] : memref<128x512xbf16, #tpu.memory_space<vmem>>, vector<128x512xbf16>
    %cst_206 = arith.constant dense<0.000000e+00> : vector<8x512xf32>
    %558 = tpu.matmul %556, %557, %cst_206 {dimension_numbers = #tpu.dot_dimension_numbers<[1], [0], [0], [1], [0, 0, 1, 1], [], []>} : vector<8x128xbf16>, vector<128x512xbf16>, vector<8x512xf32> -> vector<8x512xf32>
    %559 = arith.addf %555, %558 : vector<8x512xf32>
    %560 = tpu.concatenate %528, %546 in 1 : vector<8x128xf32>, vector<8x128xf32> -> vector<8x256xf32>
    %561 = arith.truncf %560 : vector<8x256xf32> to vector<8x256xbf16>
    %c0_207 = arith.constant 0 : index
    %c0_208 = arith.constant 0 : index
    %562 = vector.load %arg5[%c0_207, %c0_208] : memref<256x512xbf16, #tpu.memory_space<vmem>>, vector<256x512xbf16>
    %cst_209 = arith.constant dense<0.000000e+00> : vector<8x512xf32>
    %563 = tpu.matmul %561, %562, %cst_209 {dimension_numbers = #tpu.dot_dimension_numbers<[1], [0], [0], [1], [0, 0, 1, 1], [], []>} : vector<8x256xbf16>, vector<256x512xbf16>, vector<8x512xf32> -> vector<8x512xf32>
    %c0_210 = arith.constant 0 : index
    %c0_211 = arith.constant 0 : index
    %564 = vector.load %arg6[%c0_210, %c0_211] : memref<1x512xf32, #tpu.memory_space<vmem>>, vector<1x512xf32>
    %565 = vector.broadcast %564 : vector<1x512xf32> to vector<8x512xf32>
    %566 = arith.addf %563, %565 : vector<8x512xf32>
    %567 = vector.extract_strided_slice %559 {offsets = [0, 0], sizes = [8, 384], strides = [1, 1]} : vector<8x512xf32> to vector<8x384xf32>
    %cst_212 = arith.constant 5.000000e-01 : f32
    %568 = vector.broadcast %cst_212 : f32 to vector<8x384xf32>
    %569 = arith.mulf %568, %567 : vector<8x384xf32>
    %570 = math.tanh %569 : vector<8x384xf32>
    %cst_213 = arith.constant 5.000000e-01 : f32
    %571 = vector.broadcast %cst_213 : f32 to vector<8x384xf32>
    %572 = arith.mulf %571, %570 : vector<8x384xf32>
    %cst_214 = arith.constant 5.000000e-01 : f32
    %573 = vector.broadcast %cst_214 : f32 to vector<8x384xf32>
    %574 = arith.addf %572, %573 : vector<8x384xf32>
    %575 = vector.extract_strided_slice %574 {offsets = [0, 0], sizes = [8, 128], strides = [1, 1]} : vector<8x384xf32> to vector<8x128xf32>
    %576 = vector.extract_strided_slice %574 {offsets = [0, 128], sizes = [8, 128], strides = [1, 1]} : vector<8x384xf32> to vector<8x128xf32>
    %577 = vector.extract_strided_slice %574 {offsets = [0, 256], sizes = [8, 128], strides = [1, 1]} : vector<8x384xf32> to vector<8x128xf32>
    %578 = vector.extract_strided_slice %559 {offsets = [0, 384], sizes = [8, 128], strides = [1, 1]} : vector<8x512xf32> to vector<8x128xf32>
    %579 = math.tanh %578 : vector<8x128xf32>
    %580 = arith.mulf %576, %526 : vector<8x128xf32>
    %581 = arith.mulf %575, %579 : vector<8x128xf32>
    %582 = arith.addf %580, %581 : vector<8x128xf32>
    %583 = math.tanh %582 : vector<8x128xf32>
    %584 = arith.mulf %577, %583 : vector<8x128xf32>
    %585 = vector.extract_strided_slice %566 {offsets = [0, 0], sizes = [8, 384], strides = [1, 1]} : vector<8x512xf32> to vector<8x384xf32>
    %cst_215 = arith.constant 5.000000e-01 : f32
    %586 = vector.broadcast %cst_215 : f32 to vector<8x384xf32>
    %587 = arith.mulf %586, %585 : vector<8x384xf32>
    %588 = math.tanh %587 : vector<8x384xf32>
    %cst_216 = arith.constant 5.000000e-01 : f32
    %589 = vector.broadcast %cst_216 : f32 to vector<8x384xf32>
    %590 = arith.mulf %589, %588 : vector<8x384xf32>
    %cst_217 = arith.constant 5.000000e-01 : f32
    %591 = vector.broadcast %cst_217 : f32 to vector<8x384xf32>
    %592 = arith.addf %590, %591 : vector<8x384xf32>
    %593 = vector.extract_strided_slice %592 {offsets = [0, 0], sizes = [8, 128], strides = [1, 1]} : vector<8x384xf32> to vector<8x128xf32>
    %594 = vector.extract_strided_slice %592 {offsets = [0, 128], sizes = [8, 128], strides = [1, 1]} : vector<8x384xf32> to vector<8x128xf32>
    %595 = vector.extract_strided_slice %592 {offsets = [0, 256], sizes = [8, 128], strides = [1, 1]} : vector<8x384xf32> to vector<8x128xf32>
    %596 = vector.extract_strided_slice %566 {offsets = [0, 384], sizes = [8, 128], strides = [1, 1]} : vector<8x512xf32> to vector<8x128xf32>
    %597 = math.tanh %596 : vector<8x128xf32>
    %598 = arith.mulf %594, %544 : vector<8x128xf32>
    %599 = arith.mulf %593, %597 : vector<8x128xf32>
    %600 = arith.addf %598, %599 : vector<8x128xf32>
    %601 = math.tanh %600 : vector<8x128xf32>
    %602 = arith.mulf %595, %601 : vector<8x128xf32>
    %c1_i32_218 = arith.constant 1 : i32
    %603 = arith.subi %c10_i32, %c1_i32_218 : i32
    %c8_i32_219 = arith.constant 8 : i32
    %604 = arith.muli %603, %c8_i32_219 : i32
    %605 = tpu.assume_multiple %604, 8 : i32
    %606 = arith.index_cast %605 : i32 to index
    %c0_220 = arith.constant 0 : index
    %607 = vector.load %arg15[%606, %c0_220] : memref<128x128xf32, #tpu.memory_space<vmem>>, vector<8x128xf32>
    tpu.vector_store %arg15[%606, %c0_220], %602 {strides = array<i32>} : memref<128x128xf32, #tpu.memory_space<vmem>>, vector<8x128xf32>,
    %c11_i32 = arith.constant 11 : i32
    %c8_i32_221 = arith.constant 8 : i32
    %608 = arith.muli %c11_i32, %c8_i32_221 : i32
    %609 = tpu.assume_multiple %608, 8 : i32
    %610 = arith.index_cast %609 : i32 to index
    %c0_222 = arith.constant 0 : index
    %611 = vector.load %arg14[%610, %c0_222] : memref<128x512xf32, #tpu.memory_space<vmem>>, vector<8x512xf32>
    %612 = arith.truncf %584 : vector<8x128xf32> to vector<8x128xbf16>
    %c0_223 = arith.constant 0 : index
    %c0_224 = arith.constant 0 : index
    %613 = vector.load %arg3[%c0_223, %c0_224] : memref<128x512xbf16, #tpu.memory_space<vmem>>, vector<128x512xbf16>
    %cst_225 = arith.constant dense<0.000000e+00> : vector<8x512xf32>
    %614 = tpu.matmul %612, %613, %cst_225 {dimension_numbers = #tpu.dot_dimension_numbers<[1], [0], [0], [1], [0, 0, 1, 1], [], []>} : vector<8x128xbf16>, vector<128x512xbf16>, vector<8x512xf32> -> vector<8x512xf32>
    %615 = arith.addf %611, %614 : vector<8x512xf32>
    %616 = tpu.concatenate %584, %602 in 1 : vector<8x128xf32>, vector<8x128xf32> -> vector<8x256xf32>
    %617 = arith.truncf %616 : vector<8x256xf32> to vector<8x256xbf16>
    %c0_226 = arith.constant 0 : index
    %c0_227 = arith.constant 0 : index
    %618 = vector.load %arg5[%c0_226, %c0_227] : memref<256x512xbf16, #tpu.memory_space<vmem>>, vector<256x512xbf16>
    %cst_228 = arith.constant dense<0.000000e+00> : vector<8x512xf32>
    %619 = tpu.matmul %617, %618, %cst_228 {dimension_numbers = #tpu.dot_dimension_numbers<[1], [0], [0], [1], [0, 0, 1, 1], [], []>} : vector<8x256xbf16>, vector<256x512xbf16>, vector<8x512xf32> -> vector<8x512xf32>
    %c0_229 = arith.constant 0 : index
    %c0_230 = arith.constant 0 : index
    %620 = vector.load %arg6[%c0_229, %c0_230] : memref<1x512xf32, #tpu.memory_space<vmem>>, vector<1x512xf32>
    %621 = vector.broadcast %620 : vector<1x512xf32> to vector<8x512xf32>
    %622 = arith.addf %619, %621 : vector<8x512xf32>
    %623 = vector.extract_strided_slice %615 {offsets = [0, 0], sizes = [8, 384], strides = [1, 1]} : vector<8x512xf32> to vector<8x384xf32>
    %cst_231 = arith.constant 5.000000e-01 : f32
    %624 = vector.broadcast %cst_231 : f32 to vector<8x384xf32>
    %625 = arith.mulf %624, %623 : vector<8x384xf32>
    %626 = math.tanh %625 : vector<8x384xf32>
    %cst_232 = arith.constant 5.000000e-01 : f32
    %627 = vector.broadcast %cst_232 : f32 to vector<8x384xf32>
    %628 = arith.mulf %627, %626 : vector<8x384xf32>
    %cst_233 = arith.constant 5.000000e-01 : f32
    %629 = vector.broadcast %cst_233 : f32 to vector<8x384xf32>
    %630 = arith.addf %628, %629 : vector<8x384xf32>
    %631 = vector.extract_strided_slice %630 {offsets = [0, 0], sizes = [8, 128], strides = [1, 1]} : vector<8x384xf32> to vector<8x128xf32>
    %632 = vector.extract_strided_slice %630 {offsets = [0, 128], sizes = [8, 128], strides = [1, 1]} : vector<8x384xf32> to vector<8x128xf32>
    %633 = vector.extract_strided_slice %630 {offsets = [0, 256], sizes = [8, 128], strides = [1, 1]} : vector<8x384xf32> to vector<8x128xf32>
    %634 = vector.extract_strided_slice %615 {offsets = [0, 384], sizes = [8, 128], strides = [1, 1]} : vector<8x512xf32> to vector<8x128xf32>
    %635 = math.tanh %634 : vector<8x128xf32>
    %636 = arith.mulf %632, %582 : vector<8x128xf32>
    %637 = arith.mulf %631, %635 : vector<8x128xf32>
    %638 = arith.addf %636, %637 : vector<8x128xf32>
    %639 = math.tanh %638 : vector<8x128xf32>
    %640 = arith.mulf %633, %639 : vector<8x128xf32>
    %641 = vector.extract_strided_slice %622 {offsets = [0, 0], sizes = [8, 384], strides = [1, 1]} : vector<8x512xf32> to vector<8x384xf32>
    %cst_234 = arith.constant 5.000000e-01 : f32
    %642 = vector.broadcast %cst_234 : f32 to vector<8x384xf32>
    %643 = arith.mulf %642, %641 : vector<8x384xf32>
    %644 = math.tanh %643 : vector<8x384xf32>
    %cst_235 = arith.constant 5.000000e-01 : f32
    %645 = vector.broadcast %cst_235 : f32 to vector<8x384xf32>
    %646 = arith.mulf %645, %644 : vector<8x384xf32>
    %cst_236 = arith.constant 5.000000e-01 : f32
    %647 = vector.broadcast %cst_236 : f32 to vector<8x384xf32>
    %648 = arith.addf %646, %647 : vector<8x384xf32>
    %649 = vector.extract_strided_slice %648 {offsets = [0, 0], sizes = [8, 128], strides = [1, 1]} : vector<8x384xf32> to vector<8x128xf32>
    %650 = vector.extract_strided_slice %648 {offsets = [0, 128], sizes = [8, 128], strides = [1, 1]} : vector<8x384xf32> to vector<8x128xf32>
    %651 = vector.extract_strided_slice %648 {offsets = [0, 256], sizes = [8, 128], strides = [1, 1]} : vector<8x384xf32> to vector<8x128xf32>
    %652 = vector.extract_strided_slice %622 {offsets = [0, 384], sizes = [8, 128], strides = [1, 1]} : vector<8x512xf32> to vector<8x128xf32>
    %653 = math.tanh %652 : vector<8x128xf32>
    %654 = arith.mulf %650, %600 : vector<8x128xf32>
    %655 = arith.mulf %649, %653 : vector<8x128xf32>
    %656 = arith.addf %654, %655 : vector<8x128xf32>
    %657 = math.tanh %656 : vector<8x128xf32>
    %658 = arith.mulf %651, %657 : vector<8x128xf32>
    %c1_i32_237 = arith.constant 1 : i32
    %659 = arith.subi %c11_i32, %c1_i32_237 : i32
    %c8_i32_238 = arith.constant 8 : i32
    %660 = arith.muli %659, %c8_i32_238 : i32
    %661 = tpu.assume_multiple %660, 8 : i32
    %662 = arith.index_cast %661 : i32 to index
    %c0_239 = arith.constant 0 : index
    %663 = vector.load %arg15[%662, %c0_239] : memref<128x128xf32, #tpu.memory_space<vmem>>, vector<8x128xf32>
    tpu.vector_store %arg15[%662, %c0_239], %658 {strides = array<i32>} : memref<128x128xf32, #tpu.memory_space<vmem>>, vector<8x128xf32>,
    %c12_i32 = arith.constant 12 : i32
    %c8_i32_240 = arith.constant 8 : i32
    %664 = arith.muli %c12_i32, %c8_i32_240 : i32
    %665 = tpu.assume_multiple %664, 8 : i32
    %666 = arith.index_cast %665 : i32 to index
    %c0_241 = arith.constant 0 : index
    %667 = vector.load %arg14[%666, %c0_241] : memref<128x512xf32, #tpu.memory_space<vmem>>, vector<8x512xf32>
    %668 = arith.truncf %640 : vector<8x128xf32> to vector<8x128xbf16>
    %c0_242 = arith.constant 0 : index
    %c0_243 = arith.constant 0 : index
    %669 = vector.load %arg3[%c0_242, %c0_243] : memref<128x512xbf16, #tpu.memory_space<vmem>>, vector<128x512xbf16>
    %cst_244 = arith.constant dense<0.000000e+00> : vector<8x512xf32>
    %670 = tpu.matmul %668, %669, %cst_244 {dimension_numbers = #tpu.dot_dimension_numbers<[1], [0], [0], [1], [0, 0, 1, 1], [], []>} : vector<8x128xbf16>, vector<128x512xbf16>, vector<8x512xf32> -> vector<8x512xf32>
    %671 = arith.addf %667, %670 : vector<8x512xf32>
    %672 = tpu.concatenate %640, %658 in 1 : vector<8x128xf32>, vector<8x128xf32> -> vector<8x256xf32>
    %673 = arith.truncf %672 : vector<8x256xf32> to vector<8x256xbf16>
    %c0_245 = arith.constant 0 : index
    %c0_246 = arith.constant 0 : index
    %674 = vector.load %arg5[%c0_245, %c0_246] : memref<256x512xbf16, #tpu.memory_space<vmem>>, vector<256x512xbf16>
    %cst_247 = arith.constant dense<0.000000e+00> : vector<8x512xf32>
    %675 = tpu.matmul %673, %674, %cst_247 {dimension_numbers = #tpu.dot_dimension_numbers<[1], [0], [0], [1], [0, 0, 1, 1], [], []>} : vector<8x256xbf16>, vector<256x512xbf16>, vector<8x512xf32> -> vector<8x512xf32>
    %c0_248 = arith.constant 0 : index
    %c0_249 = arith.constant 0 : index
    %676 = vector.load %arg6[%c0_248, %c0_249] : memref<1x512xf32, #tpu.memory_space<vmem>>, vector<1x512xf32>
    %677 = vector.broadcast %676 : vector<1x512xf32> to vector<8x512xf32>
    %678 = arith.addf %675, %677 : vector<8x512xf32>
    %679 = vector.extract_strided_slice %671 {offsets = [0, 0], sizes = [8, 384], strides = [1, 1]} : vector<8x512xf32> to vector<8x384xf32>
    %cst_250 = arith.constant 5.000000e-01 : f32
    %680 = vector.broadcast %cst_250 : f32 to vector<8x384xf32>
    %681 = arith.mulf %680, %679 : vector<8x384xf32>
    %682 = math.tanh %681 : vector<8x384xf32>
    %cst_251 = arith.constant 5.000000e-01 : f32
    %683 = vector.broadcast %cst_251 : f32 to vector<8x384xf32>
    %684 = arith.mulf %683, %682 : vector<8x384xf32>
    %cst_252 = arith.constant 5.000000e-01 : f32
    %685 = vector.broadcast %cst_252 : f32 to vector<8x384xf32>
    %686 = arith.addf %684, %685 : vector<8x384xf32>
    %687 = vector.extract_strided_slice %686 {offsets = [0, 0], sizes = [8, 128], strides = [1, 1]} : vector<8x384xf32> to vector<8x128xf32>
    %688 = vector.extract_strided_slice %686 {offsets = [0, 128], sizes = [8, 128], strides = [1, 1]} : vector<8x384xf32> to vector<8x128xf32>
    %689 = vector.extract_strided_slice %686 {offsets = [0, 256], sizes = [8, 128], strides = [1, 1]} : vector<8x384xf32> to vector<8x128xf32>
    %690 = vector.extract_strided_slice %671 {offsets = [0, 384], sizes = [8, 128], strides = [1, 1]} : vector<8x512xf32> to vector<8x128xf32>
    %691 = math.tanh %690 : vector<8x128xf32>
    %692 = arith.mulf %688, %638 : vector<8x128xf32>
    %693 = arith.mulf %687, %691 : vector<8x128xf32>
    %694 = arith.addf %692, %693 : vector<8x128xf32>
    %695 = math.tanh %694 : vector<8x128xf32>
    %696 = arith.mulf %689, %695 : vector<8x128xf32>
    %697 = vector.extract_strided_slice %678 {offsets = [0, 0], sizes = [8, 384], strides = [1, 1]} : vector<8x512xf32> to vector<8x384xf32>
    %cst_253 = arith.constant 5.000000e-01 : f32
    %698 = vector.broadcast %cst_253 : f32 to vector<8x384xf32>
    %699 = arith.mulf %698, %697 : vector<8x384xf32>
    %700 = math.tanh %699 : vector<8x384xf32>
    %cst_254 = arith.constant 5.000000e-01 : f32
    %701 = vector.broadcast %cst_254 : f32 to vector<8x384xf32>
    %702 = arith.mulf %701, %700 : vector<8x384xf32>
    %cst_255 = arith.constant 5.000000e-01 : f32
    %703 = vector.broadcast %cst_255 : f32 to vector<8x384xf32>
    %704 = arith.addf %702, %703 : vector<8x384xf32>
    %705 = vector.extract_strided_slice %704 {offsets = [0, 0], sizes = [8, 128], strides = [1, 1]} : vector<8x384xf32> to vector<8x128xf32>
    %706 = vector.extract_strided_slice %704 {offsets = [0, 128], sizes = [8, 128], strides = [1, 1]} : vector<8x384xf32> to vector<8x128xf32>
    %707 = vector.extract_strided_slice %704 {offsets = [0, 256], sizes = [8, 128], strides = [1, 1]} : vector<8x384xf32> to vector<8x128xf32>
    %708 = vector.extract_strided_slice %678 {offsets = [0, 384], sizes = [8, 128], strides = [1, 1]} : vector<8x512xf32> to vector<8x128xf32>
    %709 = math.tanh %708 : vector<8x128xf32>
    %710 = arith.mulf %706, %656 : vector<8x128xf32>
    %711 = arith.mulf %705, %709 : vector<8x128xf32>
    %712 = arith.addf %710, %711 : vector<8x128xf32>
    %713 = math.tanh %712 : vector<8x128xf32>
    %714 = arith.mulf %707, %713 : vector<8x128xf32>
    %c1_i32_256 = arith.constant 1 : i32
    %715 = arith.subi %c12_i32, %c1_i32_256 : i32
    %c8_i32_257 = arith.constant 8 : i32
    %716 = arith.muli %715, %c8_i32_257 : i32
    %717 = tpu.assume_multiple %716, 8 : i32
    %718 = arith.index_cast %717 : i32 to index
    %c0_258 = arith.constant 0 : index
    %719 = vector.load %arg15[%718, %c0_258] : memref<128x128xf32, #tpu.memory_space<vmem>>, vector<8x128xf32>
    tpu.vector_store %arg15[%718, %c0_258], %714 {strides = array<i32>} : memref<128x128xf32, #tpu.memory_space<vmem>>, vector<8x128xf32>,
    %c13_i32 = arith.constant 13 : i32
    %c8_i32_259 = arith.constant 8 : i32
    %720 = arith.muli %c13_i32, %c8_i32_259 : i32
    %721 = tpu.assume_multiple %720, 8 : i32
    %722 = arith.index_cast %721 : i32 to index
    %c0_260 = arith.constant 0 : index
    %723 = vector.load %arg14[%722, %c0_260] : memref<128x512xf32, #tpu.memory_space<vmem>>, vector<8x512xf32>
    %724 = arith.truncf %696 : vector<8x128xf32> to vector<8x128xbf16>
    %c0_261 = arith.constant 0 : index
    %c0_262 = arith.constant 0 : index
    %725 = vector.load %arg3[%c0_261, %c0_262] : memref<128x512xbf16, #tpu.memory_space<vmem>>, vector<128x512xbf16>
    %cst_263 = arith.constant dense<0.000000e+00> : vector<8x512xf32>
    %726 = tpu.matmul %724, %725, %cst_263 {dimension_numbers = #tpu.dot_dimension_numbers<[1], [0], [0], [1], [0, 0, 1, 1], [], []>} : vector<8x128xbf16>, vector<128x512xbf16>, vector<8x512xf32> -> vector<8x512xf32>
    %727 = arith.addf %723, %726 : vector<8x512xf32>
    %728 = tpu.concatenate %696, %714 in 1 : vector<8x128xf32>, vector<8x128xf32> -> vector<8x256xf32>
    %729 = arith.truncf %728 : vector<8x256xf32> to vector<8x256xbf16>
    %c0_264 = arith.constant 0 : index
    %c0_265 = arith.constant 0 : index
    %730 = vector.load %arg5[%c0_264, %c0_265] : memref<256x512xbf16, #tpu.memory_space<vmem>>, vector<256x512xbf16>
    %cst_266 = arith.constant dense<0.000000e+00> : vector<8x512xf32>
    %731 = tpu.matmul %729, %730, %cst_266 {dimension_numbers = #tpu.dot_dimension_numbers<[1], [0], [0], [1], [0, 0, 1, 1], [], []>} : vector<8x256xbf16>, vector<256x512xbf16>, vector<8x512xf32> -> vector<8x512xf32>
    %c0_267 = arith.constant 0 : index
    %c0_268 = arith.constant 0 : index
    %732 = vector.load %arg6[%c0_267, %c0_268] : memref<1x512xf32, #tpu.memory_space<vmem>>, vector<1x512xf32>
    %733 = vector.broadcast %732 : vector<1x512xf32> to vector<8x512xf32>
    %734 = arith.addf %731, %733 : vector<8x512xf32>
    %735 = vector.extract_strided_slice %727 {offsets = [0, 0], sizes = [8, 384], strides = [1, 1]} : vector<8x512xf32> to vector<8x384xf32>
    %cst_269 = arith.constant 5.000000e-01 : f32
    %736 = vector.broadcast %cst_269 : f32 to vector<8x384xf32>
    %737 = arith.mulf %736, %735 : vector<8x384xf32>
    %738 = math.tanh %737 : vector<8x384xf32>
    %cst_270 = arith.constant 5.000000e-01 : f32
    %739 = vector.broadcast %cst_270 : f32 to vector<8x384xf32>
    %740 = arith.mulf %739, %738 : vector<8x384xf32>
    %cst_271 = arith.constant 5.000000e-01 : f32
    %741 = vector.broadcast %cst_271 : f32 to vector<8x384xf32>
    %742 = arith.addf %740, %741 : vector<8x384xf32>
    %743 = vector.extract_strided_slice %742 {offsets = [0, 0], sizes = [8, 128], strides = [1, 1]} : vector<8x384xf32> to vector<8x128xf32>
    %744 = vector.extract_strided_slice %742 {offsets = [0, 128], sizes = [8, 128], strides = [1, 1]} : vector<8x384xf32> to vector<8x128xf32>
    %745 = vector.extract_strided_slice %742 {offsets = [0, 256], sizes = [8, 128], strides = [1, 1]} : vector<8x384xf32> to vector<8x128xf32>
    %746 = vector.extract_strided_slice %727 {offsets = [0, 384], sizes = [8, 128], strides = [1, 1]} : vector<8x512xf32> to vector<8x128xf32>
    %747 = math.tanh %746 : vector<8x128xf32>
    %748 = arith.mulf %744, %694 : vector<8x128xf32>
    %749 = arith.mulf %743, %747 : vector<8x128xf32>
    %750 = arith.addf %748, %749 : vector<8x128xf32>
    %751 = math.tanh %750 : vector<8x128xf32>
    %752 = arith.mulf %745, %751 : vector<8x128xf32>
    %753 = vector.extract_strided_slice %734 {offsets = [0, 0], sizes = [8, 384], strides = [1, 1]} : vector<8x512xf32> to vector<8x384xf32>
    %cst_272 = arith.constant 5.000000e-01 : f32
    %754 = vector.broadcast %cst_272 : f32 to vector<8x384xf32>
    %755 = arith.mulf %754, %753 : vector<8x384xf32>
    %756 = math.tanh %755 : vector<8x384xf32>
    %cst_273 = arith.constant 5.000000e-01 : f32
    %757 = vector.broadcast %cst_273 : f32 to vector<8x384xf32>
    %758 = arith.mulf %757, %756 : vector<8x384xf32>
    %cst_274 = arith.constant 5.000000e-01 : f32
    %759 = vector.broadcast %cst_274 : f32 to vector<8x384xf32>
    %760 = arith.addf %758, %759 : vector<8x384xf32>
    %761 = vector.extract_strided_slice %760 {offsets = [0, 0], sizes = [8, 128], strides = [1, 1]} : vector<8x384xf32> to vector<8x128xf32>
    %762 = vector.extract_strided_slice %760 {offsets = [0, 128], sizes = [8, 128], strides = [1, 1]} : vector<8x384xf32> to vector<8x128xf32>
    %763 = vector.extract_strided_slice %760 {offsets = [0, 256], sizes = [8, 128], strides = [1, 1]} : vector<8x384xf32> to vector<8x128xf32>
    %764 = vector.extract_strided_slice %734 {offsets = [0, 384], sizes = [8, 128], strides = [1, 1]} : vector<8x512xf32> to vector<8x128xf32>
    %765 = math.tanh %764 : vector<8x128xf32>
    %766 = arith.mulf %762, %712 : vector<8x128xf32>
    %767 = arith.mulf %761, %765 : vector<8x128xf32>
    %768 = arith.addf %766, %767 : vector<8x128xf32>
    %769 = math.tanh %768 : vector<8x128xf32>
    %770 = arith.mulf %763, %769 : vector<8x128xf32>
    %c1_i32_275 = arith.constant 1 : i32
    %771 = arith.subi %c13_i32, %c1_i32_275 : i32
    %c8_i32_276 = arith.constant 8 : i32
    %772 = arith.muli %771, %c8_i32_276 : i32
    %773 = tpu.assume_multiple %772, 8 : i32
    %774 = arith.index_cast %773 : i32 to index
    %c0_277 = arith.constant 0 : index
    %775 = vector.load %arg15[%774, %c0_277] : memref<128x128xf32, #tpu.memory_space<vmem>>, vector<8x128xf32>
    tpu.vector_store %arg15[%774, %c0_277], %770 {strides = array<i32>} : memref<128x128xf32, #tpu.memory_space<vmem>>, vector<8x128xf32>,
    %c14_i32 = arith.constant 14 : i32
    %c8_i32_278 = arith.constant 8 : i32
    %776 = arith.muli %c14_i32, %c8_i32_278 : i32
    %777 = tpu.assume_multiple %776, 8 : i32
    %778 = arith.index_cast %777 : i32 to index
    %c0_279 = arith.constant 0 : index
    %779 = vector.load %arg14[%778, %c0_279] : memref<128x512xf32, #tpu.memory_space<vmem>>, vector<8x512xf32>
    %780 = arith.truncf %752 : vector<8x128xf32> to vector<8x128xbf16>
    %c0_280 = arith.constant 0 : index
    %c0_281 = arith.constant 0 : index
    %781 = vector.load %arg3[%c0_280, %c0_281] : memref<128x512xbf16, #tpu.memory_space<vmem>>, vector<128x512xbf16>
    %cst_282 = arith.constant dense<0.000000e+00> : vector<8x512xf32>
    %782 = tpu.matmul %780, %781, %cst_282 {dimension_numbers = #tpu.dot_dimension_numbers<[1], [0], [0], [1], [0, 0, 1, 1], [], []>} : vector<8x128xbf16>, vector<128x512xbf16>, vector<8x512xf32> -> vector<8x512xf32>
    %783 = arith.addf %779, %782 : vector<8x512xf32>
    %784 = tpu.concatenate %752, %770 in 1 : vector<8x128xf32>, vector<8x128xf32> -> vector<8x256xf32>
    %785 = arith.truncf %784 : vector<8x256xf32> to vector<8x256xbf16>
    %c0_283 = arith.constant 0 : index
    %c0_284 = arith.constant 0 : index
    %786 = vector.load %arg5[%c0_283, %c0_284] : memref<256x512xbf16, #tpu.memory_space<vmem>>, vector<256x512xbf16>
    %cst_285 = arith.constant dense<0.000000e+00> : vector<8x512xf32>
    %787 = tpu.matmul %785, %786, %cst_285 {dimension_numbers = #tpu.dot_dimension_numbers<[1], [0], [0], [1], [0, 0, 1, 1], [], []>} : vector<8x256xbf16>, vector<256x512xbf16>, vector<8x512xf32> -> vector<8x512xf32>
    %c0_286 = arith.constant 0 : index
    %c0_287 = arith.constant 0 : index
    %788 = vector.load %arg6[%c0_286, %c0_287] : memref<1x512xf32, #tpu.memory_space<vmem>>, vector<1x512xf32>
    %789 = vector.broadcast %788 : vector<1x512xf32> to vector<8x512xf32>
    %790 = arith.addf %787, %789 : vector<8x512xf32>
    %791 = vector.extract_strided_slice %783 {offsets = [0, 0], sizes = [8, 384], strides = [1, 1]} : vector<8x512xf32> to vector<8x384xf32>
    %cst_288 = arith.constant 5.000000e-01 : f32
    %792 = vector.broadcast %cst_288 : f32 to vector<8x384xf32>
    %793 = arith.mulf %792, %791 : vector<8x384xf32>
    %794 = math.tanh %793 : vector<8x384xf32>
    %cst_289 = arith.constant 5.000000e-01 : f32
    %795 = vector.broadcast %cst_289 : f32 to vector<8x384xf32>
    %796 = arith.mulf %795, %794 : vector<8x384xf32>
    %cst_290 = arith.constant 5.000000e-01 : f32
    %797 = vector.broadcast %cst_290 : f32 to vector<8x384xf32>
    %798 = arith.addf %796, %797 : vector<8x384xf32>
    %799 = vector.extract_strided_slice %798 {offsets = [0, 0], sizes = [8, 128], strides = [1, 1]} : vector<8x384xf32> to vector<8x128xf32>
    %800 = vector.extract_strided_slice %798 {offsets = [0, 128], sizes = [8, 128], strides = [1, 1]} : vector<8x384xf32> to vector<8x128xf32>
    %801 = vector.extract_strided_slice %798 {offsets = [0, 256], sizes = [8, 128], strides = [1, 1]} : vector<8x384xf32> to vector<8x128xf32>
    %802 = vector.extract_strided_slice %783 {offsets = [0, 384], sizes = [8, 128], strides = [1, 1]} : vector<8x512xf32> to vector<8x128xf32>
    %803 = math.tanh %802 : vector<8x128xf32>
    %804 = arith.mulf %800, %750 : vector<8x128xf32>
    %805 = arith.mulf %799, %803 : vector<8x128xf32>
    %806 = arith.addf %804, %805 : vector<8x128xf32>
    %807 = math.tanh %806 : vector<8x128xf32>
    %808 = arith.mulf %801, %807 : vector<8x128xf32>
    %809 = vector.extract_strided_slice %790 {offsets = [0, 0], sizes = [8, 384], strides = [1, 1]} : vector<8x512xf32> to vector<8x384xf32>
    %cst_291 = arith.constant 5.000000e-01 : f32
    %810 = vector.broadcast %cst_291 : f32 to vector<8x384xf32>
    %811 = arith.mulf %810, %809 : vector<8x384xf32>
    %812 = math.tanh %811 : vector<8x384xf32>
    %cst_292 = arith.constant 5.000000e-01 : f32
    %813 = vector.broadcast %cst_292 : f32 to vector<8x384xf32>
    %814 = arith.mulf %813, %812 : vector<8x384xf32>
    %cst_293 = arith.constant 5.000000e-01 : f32
    %815 = vector.broadcast %cst_293 : f32 to vector<8x384xf32>
    %816 = arith.addf %814, %815 : vector<8x384xf32>
    %817 = vector.extract_strided_slice %816 {offsets = [0, 0], sizes = [8, 128], strides = [1, 1]} : vector<8x384xf32> to vector<8x128xf32>
    %818 = vector.extract_strided_slice %816 {offsets = [0, 128], sizes = [8, 128], strides = [1, 1]} : vector<8x384xf32> to vector<8x128xf32>
    %819 = vector.extract_strided_slice %816 {offsets = [0, 256], sizes = [8, 128], strides = [1, 1]} : vector<8x384xf32> to vector<8x128xf32>
    %820 = vector.extract_strided_slice %790 {offsets = [0, 384], sizes = [8, 128], strides = [1, 1]} : vector<8x512xf32> to vector<8x128xf32>
    %821 = math.tanh %820 : vector<8x128xf32>
    %822 = arith.mulf %818, %768 : vector<8x128xf32>
    %823 = arith.mulf %817, %821 : vector<8x128xf32>
    %824 = arith.addf %822, %823 : vector<8x128xf32>
    %825 = math.tanh %824 : vector<8x128xf32>
    %826 = arith.mulf %819, %825 : vector<8x128xf32>
    %c1_i32_294 = arith.constant 1 : i32
    %827 = arith.subi %c14_i32, %c1_i32_294 : i32
    %c8_i32_295 = arith.constant 8 : i32
    %828 = arith.muli %827, %c8_i32_295 : i32
    %829 = tpu.assume_multiple %828, 8 : i32
    %830 = arith.index_cast %829 : i32 to index
    %c0_296 = arith.constant 0 : index
    %831 = vector.load %arg15[%830, %c0_296] : memref<128x128xf32, #tpu.memory_space<vmem>>, vector<8x128xf32>
    tpu.vector_store %arg15[%830, %c0_296], %826 {strides = array<i32>} : memref<128x128xf32, #tpu.memory_space<vmem>>, vector<8x128xf32>,
    %c15_i32 = arith.constant 15 : i32
    %c8_i32_297 = arith.constant 8 : i32
    %832 = arith.muli %c15_i32, %c8_i32_297 : i32
    %833 = tpu.assume_multiple %832, 8 : i32
    %834 = arith.index_cast %833 : i32 to index
    %c0_298 = arith.constant 0 : index
    %835 = vector.load %arg14[%834, %c0_298] : memref<128x512xf32, #tpu.memory_space<vmem>>, vector<8x512xf32>
    %836 = arith.truncf %808 : vector<8x128xf32> to vector<8x128xbf16>
    %c0_299 = arith.constant 0 : index
    %c0_300 = arith.constant 0 : index
    %837 = vector.load %arg3[%c0_299, %c0_300] : memref<128x512xbf16, #tpu.memory_space<vmem>>, vector<128x512xbf16>
    %cst_301 = arith.constant dense<0.000000e+00> : vector<8x512xf32>
    %838 = tpu.matmul %836, %837, %cst_301 {dimension_numbers = #tpu.dot_dimension_numbers<[1], [0], [0], [1], [0, 0, 1, 1], [], []>} : vector<8x128xbf16>, vector<128x512xbf16>, vector<8x512xf32> -> vector<8x512xf32>
    %839 = arith.addf %835, %838 : vector<8x512xf32>
    %840 = tpu.concatenate %808, %826 in 1 : vector<8x128xf32>, vector<8x128xf32> -> vector<8x256xf32>
    %841 = arith.truncf %840 : vector<8x256xf32> to vector<8x256xbf16>
    %c0_302 = arith.constant 0 : index
    %c0_303 = arith.constant 0 : index
    %842 = vector.load %arg5[%c0_302, %c0_303] : memref<256x512xbf16, #tpu.memory_space<vmem>>, vector<256x512xbf16>
    %cst_304 = arith.constant dense<0.000000e+00> : vector<8x512xf32>
    %843 = tpu.matmul %841, %842, %cst_304 {dimension_numbers = #tpu.dot_dimension_numbers<[1], [0], [0], [1], [0, 0, 1, 1], [], []>} : vector<8x256xbf16>, vector<256x512xbf16>, vector<8x512xf32> -> vector<8x512xf32>
    %c0_305 = arith.constant 0 : index
    %c0_306 = arith.constant 0 : index
    %844 = vector.load %arg6[%c0_305, %c0_306] : memref<1x512xf32, #tpu.memory_space<vmem>>, vector<1x512xf32>
    %845 = vector.broadcast %844 : vector<1x512xf32> to vector<8x512xf32>
    %846 = arith.addf %843, %845 : vector<8x512xf32>
    %847 = vector.extract_strided_slice %839 {offsets = [0, 0], sizes = [8, 384], strides = [1, 1]} : vector<8x512xf32> to vector<8x384xf32>
    %cst_307 = arith.constant 5.000000e-01 : f32
    %848 = vector.broadcast %cst_307 : f32 to vector<8x384xf32>
    %849 = arith.mulf %848, %847 : vector<8x384xf32>
    %850 = math.tanh %849 : vector<8x384xf32>
    %cst_308 = arith.constant 5.000000e-01 : f32
    %851 = vector.broadcast %cst_308 : f32 to vector<8x384xf32>
    %852 = arith.mulf %851, %850 : vector<8x384xf32>
    %cst_309 = arith.constant 5.000000e-01 : f32
    %853 = vector.broadcast %cst_309 : f32 to vector<8x384xf32>
    %854 = arith.addf %852, %853 : vector<8x384xf32>
    %855 = vector.extract_strided_slice %854 {offsets = [0, 0], sizes = [8, 128], strides = [1, 1]} : vector<8x384xf32> to vector<8x128xf32>
    %856 = vector.extract_strided_slice %854 {offsets = [0, 128], sizes = [8, 128], strides = [1, 1]} : vector<8x384xf32> to vector<8x128xf32>
    %857 = vector.extract_strided_slice %854 {offsets = [0, 256], sizes = [8, 128], strides = [1, 1]} : vector<8x384xf32> to vector<8x128xf32>
    %858 = vector.extract_strided_slice %839 {offsets = [0, 384], sizes = [8, 128], strides = [1, 1]} : vector<8x512xf32> to vector<8x128xf32>
    %859 = math.tanh %858 : vector<8x128xf32>
    %860 = arith.mulf %856, %806 : vector<8x128xf32>
    %861 = arith.mulf %855, %859 : vector<8x128xf32>
    %862 = arith.addf %860, %861 : vector<8x128xf32>
    %863 = math.tanh %862 : vector<8x128xf32>
    %864 = arith.mulf %857, %863 : vector<8x128xf32>
    %865 = vector.extract_strided_slice %846 {offsets = [0, 0], sizes = [8, 384], strides = [1, 1]} : vector<8x512xf32> to vector<8x384xf32>
    %cst_310 = arith.constant 5.000000e-01 : f32
    %866 = vector.broadcast %cst_310 : f32 to vector<8x384xf32>
    %867 = arith.mulf %866, %865 : vector<8x384xf32>
    %868 = math.tanh %867 : vector<8x384xf32>
    %cst_311 = arith.constant 5.000000e-01 : f32
    %869 = vector.broadcast %cst_311 : f32 to vector<8x384xf32>
    %870 = arith.mulf %869, %868 : vector<8x384xf32>
    %cst_312 = arith.constant 5.000000e-01 : f32
    %871 = vector.broadcast %cst_312 : f32 to vector<8x384xf32>
    %872 = arith.addf %870, %871 : vector<8x384xf32>
    %873 = vector.extract_strided_slice %872 {offsets = [0, 0], sizes = [8, 128], strides = [1, 1]} : vector<8x384xf32> to vector<8x128xf32>
    %874 = vector.extract_strided_slice %872 {offsets = [0, 128], sizes = [8, 128], strides = [1, 1]} : vector<8x384xf32> to vector<8x128xf32>
    %875 = vector.extract_strided_slice %872 {offsets = [0, 256], sizes = [8, 128], strides = [1, 1]} : vector<8x384xf32> to vector<8x128xf32>
    %876 = vector.extract_strided_slice %846 {offsets = [0, 384], sizes = [8, 128], strides = [1, 1]} : vector<8x512xf32> to vector<8x128xf32>
    %877 = math.tanh %876 : vector<8x128xf32>
    %878 = arith.mulf %874, %824 : vector<8x128xf32>
    %879 = arith.mulf %873, %877 : vector<8x128xf32>
    %880 = arith.addf %878, %879 : vector<8x128xf32>
    %881 = math.tanh %880 : vector<8x128xf32>
    %882 = arith.mulf %875, %881 : vector<8x128xf32>
    %c1_i32_313 = arith.constant 1 : i32
    %883 = arith.subi %c15_i32, %c1_i32_313 : i32
    %c8_i32_314 = arith.constant 8 : i32
    %884 = arith.muli %883, %c8_i32_314 : i32
    %885 = tpu.assume_multiple %884, 8 : i32
    %886 = arith.index_cast %885 : i32 to index
    %c0_315 = arith.constant 0 : index
    %887 = vector.load %arg15[%886, %c0_315] : memref<128x128xf32, #tpu.memory_space<vmem>>, vector<8x128xf32>
    tpu.vector_store %arg15[%886, %c0_315], %882 {strides = array<i32>} : memref<128x128xf32, #tpu.memory_space<vmem>>, vector<8x128xf32>,
    %c15_i32_316 = arith.constant 15 : i32
    %888 = tpu.concatenate %864, %882 in 1 : vector<8x128xf32>, vector<8x128xf32> -> vector<8x256xf32>
    %889 = arith.truncf %888 : vector<8x256xf32> to vector<8x256xbf16>
    %c0_317 = arith.constant 0 : index
    %c0_318 = arith.constant 0 : index
    %890 = vector.load %arg5[%c0_317, %c0_318] : memref<256x512xbf16, #tpu.memory_space<vmem>>, vector<256x512xbf16>
    %cst_319 = arith.constant dense<0.000000e+00> : vector<8x512xf32>
    %891 = tpu.matmul %889, %890, %cst_319 {dimension_numbers = #tpu.dot_dimension_numbers<[1], [0], [0], [1], [0, 0, 1, 1], [], []>} : vector<8x256xbf16>, vector<256x512xbf16>, vector<8x512xf32> -> vector<8x512xf32>
    %c0_320 = arith.constant 0 : index
    %c0_321 = arith.constant 0 : index
    %892 = vector.load %arg6[%c0_320, %c0_321] : memref<1x512xf32, #tpu.memory_space<vmem>>, vector<1x512xf32>
    %893 = vector.broadcast %892 : vector<1x512xf32> to vector<8x512xf32>
    %894 = arith.addf %891, %893 : vector<8x512xf32>
    %895 = vector.extract_strided_slice %894 {offsets = [0, 0], sizes = [8, 384], strides = [1, 1]} : vector<8x512xf32> to vector<8x384xf32>
    %cst_322 = arith.constant 5.000000e-01 : f32
    %896 = vector.broadcast %cst_322 : f32 to vector<8x384xf32>
    %897 = arith.mulf %896, %895 : vector<8x384xf32>
    %898 = math.tanh %897 : vector<8x384xf32>
    %cst_323 = arith.constant 5.000000e-01 : f32
    %899 = vector.broadcast %cst_323 : f32 to vector<8x384xf32>
    %900 = arith.mulf %899, %898 : vector<8x384xf32>
    %cst_324 = arith.constant 5.000000e-01 : f32
    %901 = vector.broadcast %cst_324 : f32 to vector<8x384xf32>
    %902 = arith.addf %900, %901 : vector<8x384xf32>
    %903 = vector.extract_strided_slice %902 {offsets = [0, 0], sizes = [8, 128], strides = [1, 1]} : vector<8x384xf32> to vector<8x128xf32>
    %904 = vector.extract_strided_slice %902 {offsets = [0, 128], sizes = [8, 128], strides = [1, 1]} : vector<8x384xf32> to vector<8x128xf32>
    %905 = vector.extract_strided_slice %902 {offsets = [0, 256], sizes = [8, 128], strides = [1, 1]} : vector<8x384xf32> to vector<8x128xf32>
    %906 = vector.extract_strided_slice %894 {offsets = [0, 384], sizes = [8, 128], strides = [1, 1]} : vector<8x512xf32> to vector<8x128xf32>
    %907 = math.tanh %906 : vector<8x128xf32>
    %908 = arith.mulf %904, %880 : vector<8x128xf32>
    %909 = arith.mulf %903, %907 : vector<8x128xf32>
    %910 = arith.addf %908, %909 : vector<8x128xf32>
    %911 = math.tanh %910 : vector<8x128xf32>
    %912 = arith.mulf %905, %911 : vector<8x128xf32>
    %c120 = arith.constant 120 : index
    %c0_325 = arith.constant 0 : index
    %913 = vector.load %arg15[%c120, %c0_325] : memref<128x128xf32, #tpu.memory_space<vmem>>, vector<8x128xf32>
    tpu.vector_store %arg15[%c120, %c0_325], %912 {strides = array<i32>} : memref<128x128xf32, #tpu.memory_space<vmem>>, vector<8x128xf32>,
    %c0_326 = arith.constant 0 : index
    %c0_327 = arith.constant 0 : index
    %914 = vector.load %arg15[%c0_326, %c0_327] : memref<128x128xf32, #tpu.memory_space<vmem>>, vector<128x128xf32>
    %915 = arith.truncf %914 : vector<128x128xf32> to vector<128x128xbf16>
    %c0_328 = arith.constant 0 : index
    %c0_329 = arith.constant 0 : index
    %916 = vector.load %arg7[%c0_328, %c0_329] : memref<128x128xbf16, #tpu.memory_space<vmem>>, vector<128x128xbf16>
    %cst_330 = arith.constant dense<0.000000e+00> : vector<128x128xf32>
    %917 = tpu.matmul %915, %916, %cst_330 {dimension_numbers = #tpu.dot_dimension_numbers<[1], [0], [0], [1], [0, 0, 1, 1], [], []>} : vector<128x128xbf16>, vector<128x128xbf16>, vector<128x128xf32> -> vector<128x128xf32>
    %c0_331 = arith.constant 0 : index
    %c0_332 = arith.constant 0 : index
    %918 = vector.load %arg8[%c0_331, %c0_332] : memref<1x128xf32, #tpu.memory_space<vmem>>, vector<1x128xf32>
    %919 = vector.broadcast %918 : vector<1x128xf32> to vector<128x128xf32>
    %920 = arith.addf %917, %919 : vector<128x128xf32>
    %c0_333 = arith.constant 0 : index
    %c0_334 = arith.constant 0 : index
    %921 = vector.load %arg11[%c0_333, %c0_334] : memref<128x128xf32, #tpu.memory_space<vmem>>, vector<128x128xf32>
    tpu.vector_store %arg11[%c0_333, %c0_334], %920 {strides = array<i32>} : memref<128x128xf32, #tpu.memory_space<vmem>>, vector<128x128xf32>,
    %c0_335 = arith.constant 0 : index
    %c0_336 = arith.constant 0 : index
    %c0_337 = arith.constant 0 : index
    %922 = vector.load %arg12[%c0_335, %c0_336, %c0_337] : memref<2x8x128xf32, #tpu.memory_space<vmem>>, vector<1x8x128xf32>
    %923 = vector.shape_cast %922 : vector<1x8x128xf32> to vector<8x128xf32>
    %924 = vector.shape_cast %864 : vector<8x128xf32> to vector<1x8x128xf32>
    tpu.vector_store %arg12[%c0_335, %c0_336, %c0_337], %924 {strides = array<i32>} : memref<2x8x128xf32, #tpu.memory_space<vmem>>, vector<1x8x128xf32>,
    %c1_338 = arith.constant 1 : index
    %c0_339 = arith.constant 0 : index
    %c0_340 = arith.constant 0 : index
    %925 = vector.load %arg12[%c1_338, %c0_339, %c0_340] : memref<2x8x128xf32, #tpu.memory_space<vmem>>, vector<1x8x128xf32>
    %926 = vector.shape_cast %925 : vector<1x8x128xf32> to vector<8x128xf32>
    %927 = vector.shape_cast %912 : vector<8x128xf32> to vector<1x8x128xf32>
    tpu.vector_store %arg12[%c1_338, %c0_339, %c0_340], %927 {strides = array<i32>} : memref<2x8x128xf32, #tpu.memory_space<vmem>>, vector<1x8x128xf32>,
    %c0_341 = arith.constant 0 : index
    %c0_342 = arith.constant 0 : index
    %c0_343 = arith.constant 0 : index
    %928 = vector.load %arg13[%c0_341, %c0_342, %c0_343] : memref<2x8x128xf32, #tpu.memory_space<vmem>>, vector<1x8x128xf32>
    %929 = vector.shape_cast %928 : vector<1x8x128xf32> to vector<8x128xf32>
    %930 = vector.shape_cast %862 : vector<8x128xf32> to vector<1x8x128xf32>
    tpu.vector_store %arg13[%c0_341, %c0_342, %c0_343], %930 {strides = array<i32>} : memref<2x8x128xf32, #tpu.memory_space<vmem>>, vector<1x8x128xf32>,
    %c1_344 = arith.constant 1 : index
    %c0_345 = arith.constant 0 : index
    %c0_346 = arith.constant 0 : index
    %931 = vector.load %arg13[%c1_344, %c0_345, %c0_346] : memref<2x8x128xf32, #tpu.memory_space<vmem>>, vector<1x8x128xf32>
    %932 = vector.shape_cast %931 : vector<1x8x128xf32> to vector<8x128xf32>
    %933 = vector.shape_cast %910 : vector<8x128xf32> to vector<1x8x128xf32>
    tpu.vector_store %arg13[%c1_344, %c0_345, %c0_346], %933 {strides = array<i32>} : memref<2x8x128xf32, #tpu.memory_space<vmem>>, vector<1x8x128xf32>,
    return
  }
}

</mosaic_0001>

<bundles_post_ra>
// kernel: char_lstm_forward.1
= control target key start
LH: loop header
LB: loop body
LE: loop exit
PB: predicated region body
PF: predicated region fallthrough
CT: control target
= control target key end

     0   :  { %19 = vsyncpa [#allocation5], 0  ;;  %v23456_v2 = vmov 0   ;;  %v60_v27 = vlaneseq  ;;  %v17087_v35 = vmov 1.0|1.0   ;;  %s23442_s0 = inlined_call_operand.vmem [shape: s32[128,1], index: 0, kind: input, shape index: {}]   ;;  %s23443_s1 = inlined_call_operand.vmem [shape: bf16[128,64], index: 1, kind: input, shape index: {}]   ;;  %s23444_s2 = inlined_call_operand.vmem [shape: bf16[64,512], index: 2, kind: input, shape index: {}]   ;;  %s23445_s3 = inlined_call_operand.vmem [shape: bf16[128,512], index: 3, kind: input, shape index: {}]   ;;  %s23446_s4 = inlined_call_operand.vmem [shape: f32[1,512], index: 4, kind: input, shape index: {}]   ;;  %s23447_s5 = inlined_call_operand.vmem [shape: bf16[256,512], index: 5, kind: input, shape index: {}]   ;;  %s23448_s6 = inlined_call_operand.vmem [shape: f32[1,512], index: 6, kind: input, shape index: {}]   ;;  %s23449_s7 = inlined_call_operand.vmem [shape: bf16[128,128], index: 7, kind: input, shape index: {}]   ;;  %s23450_s8 = inlined_call_operand.vmem [shape: f32[1,128], index: 8, kind: input, shape index: {}]   ;;  %s23451_s9 = inlined_call_operand.vmem [shape: f32[2,8,128], index: 9, kind: input, shape index: {}]   ;;  %s23452_s10 = inlined_call_operand.vmem [shape: f32[2,8,128], index: 10, kind: input, shape index: {}]   ;;  %s23453_s11 = inlined_call_operand.vmem [shape: f32[128,128], index: 11, kind: output, shape index: {0}]   ;;  %s23454_s12 = inlined_call_operand.hbm [shape: f32[2,8,128], index: 12, kind: output, shape index: {1}]   ;;  %s23455_s13 = inlined_call_operand.hbm [shape: f32[2,8,128], index: 13, kind: output, shape index: {2}]  }
   0x1   :  { %v46_v0 = vld [vmem:[%s23442_s0 + $0x10] sm:$0xff]  ;;  %v44_v1 = vld [vmem:[%s23442_s0] sm:$0xff]  ;;  %15525 = vset.pattern.permute.xlu1 %v23456_v2  ;;  %15524 = vset.pattern.permute.xlu0 %v23456_v2  ;;  %v47_v3 = vld [vmem:[%s23442_s0 + $0x18] sm:$0xff] }
   0x2   :  { %69 = vperm.xlu1 %15525, %v46_v0   ;;  %63 = vperm.xlu0 %15524, %v44_v1   ;;  %v45_v4 = vld [vmem:[%s23442_s0 + $0x8] sm:$0xff]  ;;  %v48_v6 = vld [vmem:[%s23442_s0 + $0x20] sm:$0xff]  ;;  %v51_v9 = vld [vmem:[%s23442_s0 + $0x38] sm:$0xff]  ;;  %v17243_v30 = vand.u32 127, %v60_v27 }
   0x3   :  { %v49_v5 = vld [vmem:[%s23442_s0 + $0x28] sm:$0xff]  ;;  %v15526_v7 = vld [vmem:[%s23443_s1] sm:$0xff]   ;;  %v50_v10 = vld [vmem:[%s23442_s0 + $0x30] sm:$0xff] }
   0x4   :  { %v15527_v8 = vld [vmem:[%s23443_s1 + $0x8] sm:$0xff]   ;;  %15438 = vmatprep.subr.bf16.mxu0 %v15526_v7  ;;  %15502 = vmatprep.subr.bf16.mxu1 %v15526_v7  ;;  %v15528_v11 = vld [vmem:[%s23443_s1 + $0x10] sm:$0xff]   ;;  %v52_v13 = vld [vmem:[%s23442_s0 + $0x40] sm:$0xff] }
   0x5   :  { %15439 = vmatpush3.bf16.msra.mxu0 %v15526_v7  ;;  %15510 = vmatpush3.bf16.msra.mxu1 %v15526_v7  ;;  %v53_v12 = vld [vmem:[%s23442_s0 + $0x48] sm:$0xff]  ;;  %v15529_v14 = vld [vmem:[%s23443_s1 + $0x18] sm:$0xff]   ;;  %v54_v16 = vld [vmem:[%s23442_s0 + $0x50] sm:$0xff] }
   0x6   :  { %72 = vperm.xlu1 %15525, %v47_v3   ;;  %66 = vperm.xlu0 %15524, %v45_v4   ;;  %v55_v15 = vld [vmem:[%s23442_s0 + $0x58] sm:$0xff]  ;;  %v15530_v17 = vld [vmem:[%s23443_s1 + $0x20] sm:$0xff]   ;;  %v57_v18 = vld [vmem:[%s23442_s0 + $0x68] sm:$0xff] }
   0x7   :  { %15440 = vmatprep.subr.bf16.mxu0 %v15527_v8  ;;  %15503 = vmatprep.subr.bf16.mxu1 %v15527_v8  ;;  %v56_v19 = vld [vmem:[%s23442_s0 + $0x60] sm:$0xff]  ;;  %v15531_v20 = vld [vmem:[%s23443_s1 + $0x28] sm:$0xff]   ;;  %v59_v21 = vld [vmem:[%s23442_s0 + $0x78] sm:$0xff] }
   0x8   :  { %v58_v22 = vld [vmem:[%s23442_s0 + $0x70] sm:$0xff]  ;;  %v15533_v24 = vld [vmem:[%s23443_s1 + $0x38] sm:$0xff]  }
   0x9   :  { %15441 = vmatpush3.bf16.msra.mxu0 %v15527_v8  ;;  %15511 = vmatpush3.bf16.msra.mxu1 %v15527_v8  ;;  %v15532_v23 = vld [vmem:[%s23443_s1 + $0x30] sm:$0xff]   ;;  %v15539_v26 = vld [vmem:[%s23444_s2 + $0xc] ss:$16 sps:$4 sm:$0xff]   ;;  %v15537_v33 = vld [vmem:[%s23444_s2 + $0x8] ss:$16 sps:$4 sm:$0xff]  }
   0xa   :  { %78 = vperm.xlu1 %15525, %v49_v5   ;;  %75 = vperm.xlu0 %15524, %v48_v6   ;;  %v15536_v25 = vld [vmem:[%s23444_s2 + $0x4] ss:$16 sps:$4 sm:$0xff]   ;;  %v15545_v34 = vld [vmem:[%s23444_s2 + $0x2c] ss:$16 sps:$4 sm:$0xff]   ;;  %v15543_v38 = vld [vmem:[%s23444_s2 + $0x28] ss:$16 sps:$4 sm:$0xff]  }
   0xb   :  { %15442 = vmatprep.subr.bf16.mxu0 %v15528_v11  ;;  %15504 = vmatprep.subr.bf16.mxu1 %v15528_v11  ;;  %v15551_v39 = vld [vmem:[%s23444_s2 + $0x4c] ss:$16 sps:$4 sm:$0xff]   ;;  %v15549_v42 = vld [vmem:[%s23444_s2 + $0x48] ss:$16 sps:$4 sm:$0xff]   ;;  %v15534_v45 = vld [vmem:[%s23444_s2] ss:$16 sps:$4 sm:$0xff]  }
   0xc   :  { %v15542_v46 = vld [vmem:[%s23444_s2 + $0x24] ss:$16 sps:$4 sm:$0xff]   ;;  %v15540_v49 = vld [vmem:[%s23444_s2 + $0x20] ss:$16 sps:$4 sm:$0xff]   ;;  %v15557_v57 = vld [vmem:[%s23444_s2 + $0x6c] ss:$16 sps:$4 sm:$0xff]  }
   0xd   :  { %15443 = vmatpush3.bf16.msra.mxu0 %v15528_v11  ;;  %15512 = vmatpush3.bf16.msra.mxu1 %v15528_v11  ;;  %v15548_v50 = vld [vmem:[%s23444_s2 + $0x44] ss:$16 sps:$4 sm:$0xff]   ;;  %v15546_v53 = vld [vmem:[%s23444_s2 + $0x40] ss:$16 sps:$4 sm:$0xff]   ;;  %v15555_v59 = vld [vmem:[%s23444_s2 + $0x68] ss:$16 sps:$4 sm:$0xff]  }
   0xe   :  { %84 = vperm.xlu1 %15525, %v51_v9   ;;  %81 = vperm.xlu0 %15524, %v50_v10   ;;  %v15554_v56 = vld [vmem:[%s23444_s2 + $0x64] ss:$16 sps:$4 sm:$0xff]   ;;  %v15552_v58 = vld [vmem:[%s23444_s2 + $0x60] ss:$16 sps:$4 sm:$0xff]  }
   0xf   :  { %15444 = vmatprep.subr.bf16.mxu0 %v15529_v14  ;;  %15505 = vmatprep.subr.bf16.mxu1 %v15529_v14  ;;  %v15560_v60 = vld [vmem:[%s23445_s3 + $0x4] ss:$16 sps:$4 sm:$0xff]  }
  0x11   :  { %15445 = vmatpush3.bf16.msra.mxu0 %v15529_v14  ;;  %15513 = vmatpush3.bf16.msra.mxu1 %v15529_v14 }
  0x12   :  { %90 = vperm.xlu1 %15525, %v53_v12   ;;  %87 = vperm.xlu0 %15524, %v52_v13  }
  0x13   :  { %15446 = vmatprep.subr.bf16.mxu0 %v15530_v17  ;;  %15506 = vmatprep.subr.bf16.mxu1 %v15530_v17 }
  0x15   :  { %15447 = vmatpush3.bf16.msra.mxu0 %v15530_v17  ;;  %15514 = vmatpush3.bf16.msra.mxu1 %v15530_v17 }
  0x16   :  { %96 = vperm.xlu1 %15525, %v55_v15   ;;  %93 = vperm.xlu0 %15524, %v54_v16  }
  0x17   :  { %15448 = vmatprep.subr.bf16.mxu0 %v15531_v20  ;;  %15507 = vmatprep.subr.bf16.mxu1 %v15531_v20 }
  0x19   :  { %15449 = vmatpush3.bf16.msra.mxu0 %v15531_v20  ;;  %15515 = vmatpush3.bf16.msra.mxu1 %v15531_v20 }
  0x1a   :  { %102 = vperm.xlu1 %15525, %v57_v18   ;;  %99 = vperm.xlu0 %15524, %v56_v19  }
  0x1b   :  { %15450 = vmatprep.subr.bf16.mxu0 %v15532_v23  ;;  %15508 = vmatprep.subr.bf16.mxu1 %v15532_v23 }
  0x1d   :  { %15451 = vmatpush3.bf16.msra.mxu0 %v15532_v23  ;;  %15516 = vmatpush3.bf16.msra.mxu1 %v15532_v23 }
  0x1e   :  { %108 = vperm.xlu1 %15525, %v59_v21   ;;  %105 = vperm.xlu0 %15524, %v58_v22  }
  0x1f   :  { %15452 = vmatprep.subr.bf16.mxu0 %v15533_v24  ;;  %15509 = vmatprep.subr.bf16.mxu1 %v15533_v24 }
  0x21   :  { %15453 = vmatpush3.bf16.msra.mxu0 %v15533_v24  ;;  %15517 = vmatpush3.bf16.msra.mxu1 %v15533_v24 }
  0x22   :  { %462 = vmatprep.subr.bf16.mxu1 %v15536_v25  ;;  %575 = vmatprep.subr.bf16.mxu0 %v15539_v26 }
  0x81   :  { %v70_v28 = vpop.permute.xlu1 %69  ;;  %v64_v29 = vpop.permute.xlu0 %63 }
  0x82   :  { %vm112_vm0 = vcmp.eq.s32.totalorder %v17243_v30, %v70_v28  ;;  %vm110_vm3 = vcmp.eq.s32.totalorder %v17243_v30, %v64_v29 }
  0x85   :  { %v73_v31 = vpop.permute.xlu1 %72  ;;  %v67_v32 = vpop.permute.xlu0 %66 }
  0x86   :  { %vm113_vm1 = vcmp.eq.s32.totalorder %v17243_v30, %v73_v31  ;;  %vm111_vm2 = vcmp.eq.s32.totalorder %v17243_v30, %v67_v32 }
  0x87   :  { %vm13845_vm4 = vmpackc.low %vm113_vm1, %vm112_vm0 }
  0x88   :  { %vm13843_vm5 = vmpackc.low %vm111_vm2, %vm110_vm3 }
  0x89   :  { %15454 = vmatprep.mubr.msk.bf16.mxu0 %vm13843_vm5, %v17087_v35  ;;  %v79_v36 = vpop.permute.xlu1 %78  ;;  %v76_v37 = vpop.permute.xlu0 %75 }
  0x8a   :  { %vm115_vm6 = vcmp.eq.s32.totalorder %v17243_v30, %v79_v36  ;;  %15455 = vmatmul.mubr.msk.bf16.vlgmr.msra.gmra.mrb[0].mxu0 %vm13845_vm4, %v17087_v35  ;;  %vm114_vm7 = vcmp.eq.s32.totalorder %v17243_v30, %v76_v37 }
  0x8b   :  { %vm13847_vm8 = vmpackc.low %vm115_vm6, %vm114_vm7  ;;  %576 = vmatpush1.bf16.msra.mxu0 %v15537_v33 }
  0x8c   :  { %15458 = vmatprep.mubr.msk.bf16.mxu0 %vm13847_vm8, %v17087_v35  ;;  %577 = vmatprep.subr.bf16.mxu0 %v15545_v34 }
  0x8d   :  { %v85_v40 = vpop.permute.xlu1 %84  ;;  %v82_v41 = vpop.permute.xlu0 %81 }
  0x8e   :  { %vm117_vm9 = vcmp.eq.s32.totalorder %v17243_v30, %v85_v40  ;;  %vm116_vm10 = vcmp.eq.s32.totalorder %v17243_v30, %v82_v41 }
  0x8f   :  { %vm13849_vm11 = vmpackc.low %vm117_vm9, %vm116_vm10  ;;  %578 = vmatpush1.bf16.msra.mxu0 %v15543_v38 }
  0x90   :  { %579 = vmatprep.subr.bf16.mxu0 %v15551_v39 }
  0x91   :  { %v91_v43 = vpop.permute.xlu1 %90  ;;  %v88_v44 = vpop.permute.xlu0 %87 }
  0x92   :  { %vm119_vm12 = vcmp.eq.s32.totalorder %v17243_v30, %v91_v43  ;;  %15459 = vmatmul.mubr.msk.bf16.gmra.mrb[4].mxu0 %vm13849_vm11, %v17087_v35  ;;  %vm118_vm13 = vcmp.eq.s32.totalorder %v17243_v30, %v88_v44 }
  0x93   :  { %vm13851_vm14 = vmpackc.low %vm119_vm12, %vm118_vm13  ;;  %580 = vmatpush1.bf16.msra.mxu0 %v15549_v42  ;;  %607 = vmatprep.mubr.bf16.mxu0 %v23456_v2 }
  0x94   :  { %15462 = vmatprep.mubr.msk.bf16.mxu1 %vm13851_vm14, %v17087_v35  ;;  %581 = vmatprep.subr.bf16.mxu0 %v15557_v57 }
  0x95   :  { %v97_v47 = vpop.permute.xlu1 %96  ;;  %v94_v48 = vpop.permute.xlu0 %93 }
  0x96   :  { %vm121_vm15 = vcmp.eq.s32.totalorder %v17243_v30, %v97_v47  ;;  %vm120_vm0 = vcmp.eq.s32.totalorder %v17243_v30, %v94_v48 }
  0x97   :  { %vm13853_vm1 = vmpackc.low %vm121_vm15, %vm120_vm0  ;;  %582 = vmatpush1.bf16.msra.mxu0 %v15555_v59 }
  0x98   :  { %15463 = vmatmul.mubr.msk.bf16.vlgmr.msra.gmra.mrb[0].mxu1 %vm13853_vm1, %v17087_v35  ;;  %1067 = vmatprep.subr.bf16.mxu0 %v15560_v60 }
  0x99   :  { %v103_v51 = vpop.permute.xlu1 %102  ;;  %v100_v52 = vpop.permute.xlu0 %99  ;;  %463 = vmatpush1.bf16.msra.mxu1 %v15534_v45 }
  0x9a   :  { %vm123_vm2 = vcmp.eq.s32.totalorder %v17243_v30, %v103_v51  ;;  %vm122_vm3 = vcmp.eq.s32.totalorder %v17243_v30, %v100_v52  ;;  %464 = vmatprep.subr.bf16.mxu1 %v15542_v46 }
  0x9b   :  { %vm13855_vm4 = vmpackc.low %vm123_vm2, %vm122_vm3 }
  0x9c   :  { %15466 = vmatprep.mubr.msk.bf16.mxu1 %vm13855_vm4, %v17087_v35 }
  0x9d   :  { %v109_v54 = vpop.permute.xlu1 %108  ;;  %v106_v55 = vpop.permute.xlu0 %105  ;;  %465 = vmatpush1.bf16.msra.mxu1 %v15540_v49 }
  0x9e   :  { %vm125_vm5 = vcmp.eq.s32.totalorder %v17243_v30, %v109_v54  ;;  %vm124_vm6 = vcmp.eq.s32.totalorder %v17243_v30, %v106_v55  ;;  %466 = vmatprep.subr.bf16.mxu1 %v15548_v50 }
  0x9f   :  { %vm13857_vm7 = vmpackc.low %vm125_vm5, %vm124_vm6 }
  0xa0   :  { %15467 = vmatmul.mubr.msk.bf16.gmra.mrb[4].mxu1 %vm13857_vm7, %v17087_v35 }
  0xa1   :  { %467 = vmatpush1.bf16.msra.mxu1 %v15546_v53  ;;  %494 = vmatprep.mubr.bf16.mxu1 %v23456_v2 }
  0xa2   :  { %468 = vmatprep.subr.bf16.mxu1 %v15554_v56 }
  0xa5   :  { %469 = vmatpush1.bf16.msra.mxu1 %v15552_v58 }
  0xa6   :  { %950 = vmatprep.subr.bf16.mxu1 %v15560_v60 }
  0xa7   :  { %20 = vsyncpa [#allocation7], 0  ;;  %v15558_v3 = vld [vmem:[%s23445_s3] ss:$16 sps:$4 sm:$0xff]   ;;  %vm437_vm8 = vcmask 523264   ;;  %v338_v58 = vshrl.u32 %v60_v27, 7 }
  0xa8   :  { %v15563_v5 = vld [vmem:[%s23445_s3 + $0x24] ss:$16 sps:$4 sm:$0xff]   ;;  %v15561_v6 = vld [vmem:[%s23445_s3 + $0x20] ss:$16 sps:$4 sm:$0xff]   ;;  %v17372_v38 = vld [vmem:[%s23445_s3 + $0xc] ss:$16 sps:$4 sm:$0xff]  }
  0xa9   :  { %v15566_v8 = vld [vmem:[%s23445_s3 + $0x44] ss:$16 sps:$4 sm:$0xff]   ;;  %v15564_v14 = vld [vmem:[%s23445_s3 + $0x40] ss:$16 sps:$4 sm:$0xff]   ;;  %v17397_v41 = vld [vmem:[%s23445_s3 + $0x8] ss:$16 sps:$4 sm:$0xff]  }
  0xaa   :  { %v15569_v15 = vld [vmem:[%s23445_s3 + $0x64] ss:$16 sps:$4 sm:$0xff]   ;;  %v15567_v19 = vld [vmem:[%s23445_s3 + $0x60] ss:$16 sps:$4 sm:$0xff]   ;;  %v17402_v42 = vld [vmem:[%s23445_s3 + $0x2c] ss:$16 sps:$4 sm:$0xff]  }
  0xab   :  { %v15572_v22 = vld [vmem:[%s23445_s3 + $0x84] ss:$16 sps:$4 sm:$0xff]   ;;  %v15570_v24 = vld [vmem:[%s23445_s3 + $0x80] ss:$16 sps:$4 sm:$0xff]   ;;  %v17408_v43 = vld [vmem:[%s23445_s3 + $0x28] ss:$16 sps:$4 sm:$0xff]  }
  0xac   :  { %v15575_v25 = vld [vmem:[%s23445_s3 + $0xa4] ss:$16 sps:$4 sm:$0xff]   ;;  %v15573_v30 = vld [vmem:[%s23445_s3 + $0xa0] ss:$16 sps:$4 sm:$0xff]   ;;  %v17415_v44 = vld [vmem:[%s23445_s3 + $0x4c] ss:$16 sps:$4 sm:$0xff]  }
  0xad   :  { %v15578_v33 = vld [vmem:[%s23445_s3 + $0xc4] ss:$16 sps:$4 sm:$0xff]   ;;  %v15576_v35 = vld [vmem:[%s23445_s3 + $0xc0] ss:$16 sps:$4 sm:$0xff]   ;;  %v17421_v45 = vld [vmem:[%s23445_s3 + $0x48] ss:$16 sps:$4 sm:$0xff]  }
  0xae   :  { %v15581_v36 = vld [vmem:[%s23445_s3 + $0xe4] ss:$16 sps:$4 sm:$0xff]   ;;  %v15579_v37 = vld [vmem:[%s23445_s3 + $0xe0] ss:$16 sps:$4 sm:$0xff]   ;;  %v17427_v46 = vld [vmem:[%s23445_s3 + $0x6c] ss:$16 sps:$4 sm:$0xff]  }
  0xaf   :  { %v756_v39 = vld [vmem:[%s23451_s9] sm:$0xff]  ;;  %v17433_v47 = vld [vmem:[%s23445_s3 + $0x68] ss:$16 sps:$4 sm:$0xff]   ;;  %v17439_v48 = vld [vmem:[%s23445_s3 + $0x8c] ss:$16 sps:$4 sm:$0xff]   ;;  %v17491_v59 = vsub.s32 0, %v338_v58 }
  0xb0   :  { %v757_v40 = vpack.c.bf16 %v756_v39, %v756_v39  ;;  %v17445_v49 = vld [vmem:[%s23445_s3 + $0x88] ss:$16 sps:$4 sm:$0xff]   ;;  %v15599_v50 = vld [vmem:[%s23445_s3 + $0xac] ss:$16 sps:$4 sm:$0xff]   ;;  %v17481_v56 = vld [vmem:[%s23447_s5 + $0x4] ss:$16 sps:$4 sm:$0xff]  }
  0xb1   :  { %v15597_v51 = vld [vmem:[%s23445_s3 + $0xa8] ss:$16 sps:$4 sm:$0xff]   ;;  %v15602_v52 = vld [vmem:[%s23445_s3 + $0xcc] ss:$16 sps:$4 sm:$0xff]   ;;  %23824 = vst [vmem:[#allocation10_spill] sm:$0xff] %v17491_v59  ;;  %v17493_v60 = vsub.s32 2, %v338_v58 }
  0xb2   :  { %v15600_v53 = vld [vmem:[%s23445_s3 + $0xc8] ss:$16 sps:$4 sm:$0xff]   ;;  %v15605_v54 = vld [vmem:[%s23445_s3 + $0xec] ss:$16 sps:$4 sm:$0xff]  }
  0xb3   :  { %v15603_v55 = vld [vmem:[%s23445_s3 + $0xe8] ss:$16 sps:$4 sm:$0xff]   ;;  %v17486_v57 = vld [vmem:[%s23447_s5 + $0xc] ss:$16 sps:$4 sm:$0xff]   ;;  %23825 = vst [vmem:[#allocation11_spill] sm:$0xff] %v17493_v60 }
 0x15d   :  { %v15456_v61 = vpop.f32.mrb[0].mxu0 }
 0x15e   :  { %v248_v62 = vpop.f32.mrb[1].mxu0 }
 0x15f   :  { %v15457_v63 = vpop.f32.mrb[2].mxu0 }
 0x160   :  { %v312_v0 = vpack.c.bf16 %v15457_v63, %v15456_v61  ;;  %v251_v1 = vpop.f32.mrb[3].mxu0  ;;  %v17495_v61 = vsub.s32 1, %v338_v58  ;;  %v335_v63 = vld [vmem:[%s23446_s4] sm:$0xf] }
 0x161   :  { %v311_v4 = vpack.c.bf16 %v251_v1, %v248_v62  ;;  %v17497_v62 = vsub.s32 3, %v338_v58  ;;  %v17510_v27 = vrot.slane %v335_v63, %v17493_v60 }
 0x162   :  { %23826 = vst [vmem:[#allocation12_spill] sm:$0xff] %v17495_v61 }
 0x163   :  { %13875 = vmatmul.mubr.msk.bf16.vlgmr.msra.gmra.mrb[8].mxu1 %vm437_vm8, %v311_v4  ;;  %13883 = vmatmul.mubr.msk.bf16.vlgmr.msra.gmra.mrb[8].mxu0 %vm437_vm8, %v311_v4  ;;  %23827 = vst [vmem:[#allocation13_spill] sm:$0xff] %v17497_v62 }
 0x164   :  { %951 = vmatpush1.bf16.msra.mxu1 %v15558_v3  ;;  %504 = vmatprep.mubr.bf16.mxu1 %v23456_v2 }
 0x165   :  { %v15460_v7 = vpop.f32.mrb[4].mxu0  ;;  %617 = vmatprep.mubr.bf16.mxu0 %v23456_v2  ;;  %952 = vmatprep.subr.bf16.mxu1 %v15563_v5 }
 0x166   :  { %v264_v9 = vpop.f32.mrb[5].mxu0  ;;  %1068 = vmatpush1.bf16.msra.mxu0 %v15558_v3  ;;  %v17507_v3 = vrot.slane %v335_v63, %v17491_v59 }
 0x167   :  { %v15461_v10 = vpop.f32.mrb[6].mxu0  ;;  %1069 = vmatprep.subr.bf16.mxu0 %v15563_v5 }
 0x168   :  { %v314_v11 = vpack.c.bf16 %v15461_v10, %v15460_v7  ;;  %v267_v12 = vpop.f32.mrb[7].mxu0  ;;  %953 = vmatpush1.bf16.msra.mxu1 %v15561_v6  ;;  %v17520_v7 = vrot.slane %v335_v63, %v17497_v62 }
 0x169   :  { %v313_v13 = vpack.c.bf16 %v267_v12, %v264_v9  ;;  %954 = vmatprep.subr.bf16.mxu1 %v15566_v8 }
 0x16a   :  { %1070 = vmatpush1.bf16.msra.mxu0 %v15561_v6  ;;  %v17517_v6 = vrot.slane %v335_v63, %v17495_v61 }
 0x16b   :  { %13876 = vmatmul.mubr.msk.bf16.gmra.mrb[12].mxu1 %vm437_vm8, %v312_v0  ;;  %13884 = vmatmul.mubr.msk.bf16.gmra.mrb[12].mxu0 %vm437_vm8, %v312_v0  ;;  %v15464_v16 = vpop.f32.mrb[0].mxu1 }
 0x16c   :  { %v280_v17 = vpop.f32.mrb[1].mxu1  ;;  %514 = vmatprep.mubr.bf16.mxu1 %v23456_v2  ;;  %627 = vmatprep.mubr.bf16.mxu0 %v23456_v2 }
 0x16d   :  { %v15465_v18 = vpop.f32.mrb[2].mxu1  ;;  %955 = vmatpush1.bf16.msra.mxu1 %v15564_v14  ;;  %1071 = vmatprep.subr.bf16.mxu0 %v15566_v8 }
 0x16e   :  { %v316_v20 = vpack.c.bf16 %v15465_v18, %v15464_v16  ;;  %v283_v21 = vpop.f32.mrb[3].mxu1  ;;  %956 = vmatprep.subr.bf16.mxu1 %v15569_v15  ;;  %1072 = vmatpush1.bf16.msra.mxu0 %v15564_v14 }
 0x16f   :  { %v315_v23 = vpack.c.bf16 %v283_v21, %v280_v17  ;;  %1073 = vmatprep.subr.bf16.mxu0 %v15569_v15 }
 0x171   :  { %957 = vmatpush1.bf16.msra.mxu1 %v15567_v19 }
 0x172   :  { %958 = vmatprep.subr.bf16.mxu1 %v15572_v22  ;;  %1074 = vmatpush1.bf16.msra.mxu0 %v15567_v19 }
 0x173   :  { %13877 = vmatmul.mubr.msk.bf16.gmra.mrb[16].mxu1 %vm437_vm8, %v313_v13  ;;  %13885 = vmatmul.mubr.msk.bf16.gmra.mrb[16].mxu0 %vm437_vm8, %v313_v13  ;;  %v15468_v26 = vpop.f32.mrb[4].mxu1 }
 0x174   :  { %v296_v28 = vpop.f32.mrb[5].mxu1  ;;  %524 = vmatprep.mubr.bf16.mxu1 %v23456_v2  ;;  %637 = vmatprep.mubr.bf16.mxu0 %v23456_v2 }
 0x175   :  { %v15469_v29 = vpop.f32.mrb[6].mxu1  ;;  %959 = vmatpush1.bf16.msra.mxu1 %v15570_v24  ;;  %1075 = vmatprep.subr.bf16.mxu0 %v15572_v22 }
 0x176   :  { %v318_v31 = vpack.c.bf16 %v15469_v29, %v15468_v26  ;;  %v299_v32 = vpop.f32.mrb[7].mxu1  ;;  %960 = vmatprep.subr.bf16.mxu1 %v15575_v25  ;;  %1076 = vmatpush1.bf16.msra.mxu0 %v15570_v24 }
 0x177   :  { %v317_v34 = vpack.c.bf16 %v299_v32, %v296_v28  ;;  %1077 = vmatprep.subr.bf16.mxu0 %v15575_v25 }
 0x179   :  { %961 = vmatpush1.bf16.msra.mxu1 %v15573_v30 }
 0x17a   :  { %962 = vmatprep.subr.bf16.mxu1 %v15578_v33  ;;  %1078 = vmatpush1.bf16.msra.mxu0 %v15573_v30 }
 0x17b   :  { %13878 = vmatmul.mubr.msk.bf16.gmra.mrb[20].mxu1 %vm437_vm8, %v314_v11  ;;  %13886 = vmatmul.mubr.msk.bf16.gmra.mrb[20].mxu0 %vm437_vm8, %v314_v11 }
 0x17c   :  { %534 = vmatprep.mubr.bf16.mxu1 %v23456_v2  ;;  %647 = vmatprep.mubr.bf16.mxu0 %v23456_v2 }
 0x17d   :  { %963 = vmatpush1.bf16.msra.mxu1 %v15576_v35  ;;  %1079 = vmatprep.subr.bf16.mxu0 %v15578_v33 }
 0x17e   :  { %964 = vmatprep.subr.bf16.mxu1 %v15581_v36  ;;  %1080 = vmatpush1.bf16.msra.mxu0 %v15576_v35 }
 0x17f   :  { %1081 = vmatprep.subr.bf16.mxu0 %v15581_v36 }
 0x181   :  { %965 = vmatpush1.bf16.msra.mxu1 %v15579_v37 }
 0x182   :  { %991 = vmatprep.subr.bf16.mxu1 %v17372_v38  ;;  %1082 = vmatpush1.bf16.msra.mxu0 %v15579_v37 }
 0x183   :  { %13879 = vmatmul.mubr.msk.bf16.gmra.mrb[24].mxu1 %vm437_vm8, %v315_v23  ;;  %13887 = vmatmul.mubr.msk.bf16.gmra.mrb[24].mxu0 %vm437_vm8, %v315_v23 }
 0x184   :  { %544 = vmatprep.mubr.bf16.mxu1 %v23456_v2  ;;  %657 = vmatprep.mubr.bf16.mxu0 %v23456_v2 }
 0x185   :  { %1560 = vmatprep.subr.bf16.mxu0 %v17481_v56 }
 0x18b   :  { %13880 = vmatmul.mubr.msk.bf16.gmra.mrb[28].mxu1 %vm437_vm8, %v316_v20  ;;  %13888 = vmatmul.mubr.msk.bf16.gmra.mrb[28].mxu0 %vm437_vm8, %v316_v20 }
 0x18c   :  { %554 = vmatprep.mubr.bf16.mxu1 %v23456_v2  ;;  %667 = vmatprep.mubr.bf16.mxu0 %v23456_v2 }
 0x193   :  { %13881 = vmatmul.mubr.msk.bf16.gmra.mrb[32].mxu1 %vm437_vm8, %v317_v34  ;;  %13889 = vmatmul.mubr.msk.bf16.gmra.mrb[32].mxu0 %vm437_vm8, %v317_v34 }
 0x194   :  { %564 = vmatprep.mubr.bf16.mxu1 %v23456_v2  ;;  %677 = vmatprep.mubr.bf16.mxu0 %v23456_v2 }
 0x19b   :  { %13882 = vmatmul.mubr.msk.bf16.gmra.mrb[36].mxu1 %vm437_vm8, %v318_v31  ;;  %13890 = vmatmul.mubr.msk.bf16.gmra.mrb[36].mxu0 %vm437_vm8, %v318_v31 }
 0x19c   :  { %982 = vmatprep.mubr.bf16.mxu1 %v23456_v2  ;;  %1099 = vmatprep.mubr.bf16.mxu0 %v23456_v2 }
 0x1a3   :  { %983 = vmatmul.mubr.bf16.vlgmr.msra.gmra.mrb[40].mxu1 %v757_v40 }
 0x1a4   :  { %992 = vmatpush1.bf16.msra.mxu1 %v17397_v41  ;;  %1023 = vmatprep.mubr.bf16.mxu1 %v23456_v2 }
 0x1a5   :  { %993 = vmatprep.subr.bf16.mxu1 %v17402_v42 }
 0x1a8   :  { %994 = vmatpush1.bf16.msra.mxu1 %v17408_v43 }
 0x1a9   :  { %995 = vmatprep.subr.bf16.mxu1 %v17415_v44 }
 0x1ac   :  { %996 = vmatpush1.bf16.msra.mxu1 %v17421_v45 }
 0x1ad   :  { %997 = vmatprep.subr.bf16.mxu1 %v17427_v46 }
 0x1b0   :  { %998 = vmatpush1.bf16.msra.mxu1 %v17433_v47 }
 0x1b1   :  { %999 = vmatprep.subr.bf16.mxu1 %v17439_v48 }
 0x1b4   :  { %1000 = vmatpush1.bf16.msra.mxu1 %v17445_v49 }
 0x1b5   :  { %1001 = vmatprep.subr.bf16.mxu1 %v15599_v50 }
 0x1b8   :  { %1002 = vmatpush1.bf16.msra.mxu1 %v15597_v51 }
 0x1b9   :  { %1003 = vmatprep.subr.bf16.mxu1 %v15602_v52 }
 0x1bc   :  { %1004 = vmatpush1.bf16.msra.mxu1 %v15600_v53 }
 0x1bd   :  { %1005 = vmatprep.subr.bf16.mxu1 %v15605_v54 }
 0x1c0   :  { %1006 = vmatpush1.bf16.msra.mxu1 %v15603_v55 }
 0x1c1   :  { %1108 = vmatprep.subr.bf16.mxu1 %v17372_v38 }
 0x1c3   :  { %1024 = vmatmul.mubr.bf16.vlgmr.msra.gmra.mrb[44].mxu1 %v757_v40 }
 0x1c4   :  { %1109 = vmatpush1.bf16.msra.mxu1 %v17397_v41  ;;  %1140 = vmatprep.mubr.bf16.mxu1 %v23456_v2 }
 0x1c5   :  { %1110 = vmatprep.subr.bf16.mxu1 %v17402_v42 }
 0x1c8   :  { %1111 = vmatpush1.bf16.msra.mxu1 %v17408_v43 }
 0x1c9   :  { %1112 = vmatprep.subr.bf16.mxu1 %v17415_v44 }
 0x1cc   :  { %1113 = vmatpush1.bf16.msra.mxu1 %v17421_v45 }
 0x1cd   :  { %1114 = vmatprep.subr.bf16.mxu1 %v17427_v46 }
 0x1d0   :  { %1115 = vmatpush1.bf16.msra.mxu1 %v17433_v47 }
 0x1d1   :  { %1116 = vmatprep.subr.bf16.mxu1 %v17439_v48 }
 0x1d4   :  { %1117 = vmatpush1.bf16.msra.mxu1 %v17445_v49 }
 0x1d5   :  { %1118 = vmatprep.subr.bf16.mxu1 %v15599_v50 }
 0x1d8   :  { %1119 = vmatpush1.bf16.msra.mxu1 %v15597_v51 }
 0x1d9   :  { %1120 = vmatprep.subr.bf16.mxu1 %v15602_v52 }
 0x1dc   :  { %1121 = vmatpush1.bf16.msra.mxu1 %v15600_v53 }
 0x1dd   :  { %1122 = vmatprep.subr.bf16.mxu1 %v15605_v54 }
 0x1e0   :  { %1123 = vmatpush1.bf16.msra.mxu1 %v15603_v55 }
 0x1e1   :  { %1601 = vmatprep.subr.bf16.mxu1 %v17486_v57 }
 0x236   :  { %v17502_v0 = vpop.f32.mrb[8].mxu1  ;;  %v17504_v1 = vpop.f32.mrb[8].mxu0 }
 0x237   :  { %v17512_v4 = vpop.f32.mrb[9].mxu1  ;;  %v17514_v5 = vpop.f32.mrb[9].mxu0 }
 0x238   :  { %v500_v8 = vpop.f32.mrb[10].mxu1  ;;  %v613_v9 = vpop.f32.mrb[10].mxu0 }
 0x239   :  { %v17523_v10 = vadd.f32 %v500_v8, %v17507_v3  ;;  %v17526_v11 = vadd.f32 %v613_v9, %v17510_v27  ;;  %v502_v12 = vpop.f32.mrb[11].mxu1  ;;  %v615_v13 = vpop.f32.mrb[11].mxu0 }
 0x23a   :  { %v17529_v14 = vadd.f32 %v502_v12, %v17517_v6  ;;  %v17532_v15 = vadd.f32 %v615_v13, %v17520_v7 }
 0x23e   :  { %v506_v16 = vpop.f32.mrb[12].mxu1  ;;  %v619_v17 = vpop.f32.mrb[12].mxu0 }
 0x23f   :  { %v17535_v18 = vadd.f32 %v506_v16, %v17507_v3  ;;  %v17538_v19 = vadd.f32 %v619_v17, %v17510_v27  ;;  %v508_v20 = vpop.f32.mrb[13].mxu1  ;;  %v621_v21 = vpop.f32.mrb[13].mxu0 }
 0x240   :  { %v17541_v22 = vadd.f32 %v508_v20, %v17517_v6  ;;  %v17544_v23 = vadd.f32 %v621_v21, %v17520_v7  ;;  %v510_v24 = vpop.f32.mrb[14].mxu1  ;;  %v623_v25 = vpop.f32.mrb[14].mxu0 }
 0x241   :  { %23828 = vst [vmem:[#allocation14_spill] sm:$0xff] %v17535_v18  ;;  %23829 = vst [vmem:[#allocation15_spill] sm:$0xff] %v17538_v19  ;;  %v17547_v26 = vadd.f32 %v510_v24, %v17507_v3  ;;  %v17550_v28 = vadd.f32 %v623_v25, %v17510_v27  ;;  %v512_v29 = vpop.f32.mrb[15].mxu1  ;;  %v625_v30 = vpop.f32.mrb[15].mxu0  ;;  %v17964_v19 = vld [vmem:[%s23447_s5 + $0x140] ss:$16 sps:$4 sm:$0xff]  }
 0x242   :  { %23830 = vst [vmem:[#allocation16_spill] sm:$0xff] %v17541_v22  ;;  %23831 = vst [vmem:[#allocation17_spill] sm:$0xff] %v17544_v23  ;;  %v17553_v31 = vadd.f32 %v512_v29, %v17517_v6  ;;  %v17556_v32 = vadd.f32 %v625_v30, %v17520_v7  ;;  %v17952_v23 = vld [vmem:[%s23447_s5 + $0x144] ss:$16 sps:$4 sm:$0xff]   ;;  %v17957_v22 = vld [vmem:[%s23447_s5 + $0x14c] ss:$16 sps:$4 sm:$0xff]  }
 0x243   :  { %23832 = vst [vmem:[#allocation18_spill] sm:$0xff] %v17547_v26  ;;  %23833 = vst [vmem:[#allocation19_spill] sm:$0xff] %v17550_v28  ;;  %v17940_v28 = vld [vmem:[%s23447_s5 + $0x120] ss:$16 sps:$4 sm:$0xff]   ;;  %v17945_v26 = vld [vmem:[%s23447_s5 + $0x128] ss:$16 sps:$4 sm:$0xff]  }
 0x244   :  { %23834 = vst [vmem:[#allocation20_spill] sm:$0xff] %v17553_v31  ;;  %23835 = vst [vmem:[#allocation21_spill] sm:$0xff] %v17556_v32  ;;  %v17928_v32 = vld [vmem:[%s23447_s5 + $0x124] ss:$16 sps:$4 sm:$0xff]   ;;  %v17933_v31 = vld [vmem:[%s23447_s5 + $0x12c] ss:$16 sps:$4 sm:$0xff]  }
 0x245   :  { %23884 = vst [vmem:[#allocation70_spill] sm:$0xff] %v17940_v28  ;;  %23885 = vst [vmem:[#allocation71_spill] sm:$0xff] %v17945_v26  ;;  %v17969_v18 = vld [vmem:[%s23447_s5 + $0x148] ss:$16 sps:$4 sm:$0xff]  }
 0x246   :  { %v516_v33 = vpop.f32.mrb[16].mxu1  ;;  %v629_v34 = vpop.f32.mrb[16].mxu0  ;;  %23886 = vst [vmem:[#allocation72_spill] sm:$0xff] %v17952_v23  ;;  %23887 = vst [vmem:[#allocation73_spill] sm:$0xff] %v17957_v22 }
 0x247   :  { %v17559_v35 = vadd.f32 %v516_v33, %v17507_v3  ;;  %v17562_v36 = vadd.f32 %v629_v34, %v17510_v27  ;;  %v518_v37 = vpop.f32.mrb[17].mxu1  ;;  %v631_v39 = vpop.f32.mrb[17].mxu0  ;;  %23888 = vst [vmem:[#allocation74_spill] sm:$0xff] %v17964_v19  ;;  %23889 = vst [vmem:[#allocation75_spill] sm:$0xff] %v17969_v18 }
 0x248   :  { %v17565_v40 = vadd.f32 %v518_v37, %v17517_v6  ;;  %v17568_v50 = vadd.f32 %v631_v39, %v17520_v7  ;;  %v520_v51 = vpop.f32.mrb[18].mxu1  ;;  %v633_v52 = vpop.f32.mrb[18].mxu0 }
 0x249   :  { %23836 = vst [vmem:[#allocation22_spill] sm:$0xff] %v17559_v35  ;;  %23837 = vst [vmem:[#allocation23_spill] sm:$0xff] %v17562_v36  ;;  %v17571_v53 = vadd.f32 %v520_v51, %v17507_v3  ;;  %v17574_v54 = vadd.f32 %v633_v52, %v17510_v27  ;;  %v522_v55 = vpop.f32.mrb[19].mxu1  ;;  %v635_v58 = vpop.f32.mrb[19].mxu0  ;;  %v17916_v36 = vld [vmem:[%s23447_s5 + $0x100] ss:$16 sps:$4 sm:$0xff]  }
 0x24a   :  { %23838 = vst [vmem:[#allocation24_spill] sm:$0xff] %v17565_v40  ;;  %23839 = vst [vmem:[#allocation25_spill] sm:$0xff] %v17568_v50  ;;  %v17577_v63 = vadd.f32 %v522_v55, %v17517_v6  ;;  %v17580_v8 = vadd.f32 %v635_v58, %v17520_v7  ;;  %v17904_v50 = vld [vmem:[%s23447_s5 + $0x104] ss:$16 sps:$4 sm:$0xff]   ;;  %v17909_v40 = vld [vmem:[%s23447_s5 + $0x10c] ss:$16 sps:$4 sm:$0xff]  }
 0x24b   :  { %23840 = vst [vmem:[#allocation26_spill] sm:$0xff] %v17571_v53  ;;  %23841 = vst [vmem:[#allocation27_spill] sm:$0xff] %v17574_v54  ;;  %v17892_v54 = vld [vmem:[%s23447_s5 + $0xe0] ss:$16 sps:$4 sm:$0xff]   ;;  %v17897_v53 = vld [vmem:[%s23447_s5 + $0xe8] ss:$16 sps:$4 sm:$0xff]  }
 0x24c   :  { %23842 = vst [vmem:[#allocation28_spill] sm:$0xff] %v17577_v63  ;;  %23843 = vst [vmem:[#allocation29_spill] sm:$0xff] %v17580_v8  ;;  %v17880_v8 = vld [vmem:[%s23447_s5 + $0xe4] ss:$16 sps:$4 sm:$0xff]   ;;  %v17885_v63 = vld [vmem:[%s23447_s5 + $0xec] ss:$16 sps:$4 sm:$0xff]  }
 0x24d   :  { %v17921_v35 = vld [vmem:[%s23447_s5 + $0x108] ss:$16 sps:$4 sm:$0xff]  }
 0x24e   :  { %v526_v9 = vpop.f32.mrb[20].mxu1  ;;  %v639_v12 = vpop.f32.mrb[20].mxu0 }
 0x24f   :  { %v17583_v13 = vadd.f32 %v526_v9, %v17507_v3  ;;  %v17586_v16 = vadd.f32 %v639_v12, %v17510_v27  ;;  %v528_v17 = vpop.f32.mrb[21].mxu1  ;;  %v641_v20 = vpop.f32.mrb[21].mxu0 }
 0x250   :  { %v17589_v21 = vadd.f32 %v528_v17, %v17517_v6  ;;  %v17592_v24 = vadd.f32 %v641_v20, %v17520_v7  ;;  %v530_v25 = vpop.f32.mrb[22].mxu1  ;;  %v643_v29 = vpop.f32.mrb[22].mxu0 }
 0x251   :  { %23844 = vst [vmem:[#allocation30_spill] sm:$0xff] %v17583_v13  ;;  %23845 = vst [vmem:[#allocation31_spill] sm:$0xff] %v17586_v16  ;;  %v17595_v30 = vadd.f32 %v530_v25, %v17507_v3  ;;  %v17598_v33 = vadd.f32 %v643_v29, %v17510_v27  ;;  %v532_v34 = vpop.f32.mrb[23].mxu1  ;;  %v645_v37 = vpop.f32.mrb[23].mxu0  ;;  %v17868_v16 = vld [vmem:[%s23447_s5 + $0xc0] ss:$16 sps:$4 sm:$0xff]  }
 0x252   :  { %23846 = vst [vmem:[#allocation32_spill] sm:$0xff] %v17589_v21  ;;  %23847 = vst [vmem:[#allocation33_spill] sm:$0xff] %v17592_v24  ;;  %v17601_v39 = vadd.f32 %v532_v34, %v17517_v6  ;;  %v17604_v51 = vadd.f32 %v645_v37, %v17520_v7  ;;  %v17856_v24 = vld [vmem:[%s23447_s5 + $0xc4] ss:$16 sps:$4 sm:$0xff]   ;;  %v17861_v21 = vld [vmem:[%s23447_s5 + $0xcc] ss:$16 sps:$4 sm:$0xff]  }
 0x253   :  { %23848 = vst [vmem:[#allocation34_spill] sm:$0xff] %v17595_v30  ;;  %23849 = vst [vmem:[#allocation35_spill] sm:$0xff] %v17598_v33  ;;  %v17844_v33 = vld [vmem:[%s23447_s5 + $0xa0] ss:$16 sps:$4 sm:$0xff]   ;;  %v17849_v30 = vld [vmem:[%s23447_s5 + $0xa8] ss:$16 sps:$4 sm:$0xff]  }
 0x254   :  { %23850 = vst [vmem:[#allocation36_spill] sm:$0xff] %v17601_v39  ;;  %23851 = vst [vmem:[#allocation37_spill] sm:$0xff] %v17604_v51  ;;  %v17873_v13 = vld [vmem:[%s23447_s5 + $0xc8] ss:$16 sps:$4 sm:$0xff]  }
 0x256   :  { %v536_v52 = vpop.f32.mrb[24].mxu1  ;;  %v649_v55 = vpop.f32.mrb[24].mxu0 }
 0x257   :  { %v17607_v58 = vadd.f32 %v536_v52, %v17507_v3  ;;  %v17610_v9 = vadd.f32 %v649_v55, %v17510_v27  ;;  %v538_v12 = vpop.f32.mrb[25].mxu1  ;;  %v651_v17 = vpop.f32.mrb[25].mxu0 }
 0x258   :  { %v17613_v20 = vadd.f32 %v538_v12, %v17517_v6  ;;  %v17616_v25 = vadd.f32 %v651_v17, %v17520_v7  ;;  %v540_v29 = vpop.f32.mrb[26].mxu1  ;;  %v653_v34 = vpop.f32.mrb[26].mxu0 }
 0x259   :  { %23852 = vst [vmem:[#allocation38_spill] sm:$0xff] %v17607_v58  ;;  %23853 = vst [vmem:[#allocation39_spill] sm:$0xff] %v17610_v9  ;;  %v17619_v37 = vadd.f32 %v540_v29, %v17507_v3  ;;  %v17622_v2 = vadd.f32 %v653_v34, %v17510_v27  ;;  %v542_v52 = vpop.f32.mrb[27].mxu1  ;;  %v655_v58 = vpop.f32.mrb[27].mxu0 }
 0x25a   :  { %23854 = vst [vmem:[#allocation40_spill] sm:$0xff] %v17613_v20  ;;  %23855 = vst [vmem:[#allocation41_spill] sm:$0xff] %v17616_v25  ;;  %v17625_v55 = vadd.f32 %v542_v52, %v17517_v6  ;;  %v17628_v9 = vadd.f32 %v655_v58, %v17520_v7 }
 0x25b   :  { %23856 = vst [vmem:[#allocation42_spill] sm:$0xff] %v17619_v37  ;;  %23857 = vst [vmem:[#allocation43_spill] sm:$0xff] %v17622_v2 }
 0x25c   :  { %23858 = vst [vmem:[#allocation44_spill] sm:$0xff] %v17625_v55  ;;  %23859 = vst [vmem:[#allocation45_spill] sm:$0xff] %v17628_v9 }
 0x25e   :  { %v546_v12 = vpop.f32.mrb[28].mxu1  ;;  %v659_v20 = vpop.f32.mrb[28].mxu0 }
 0x25f   :  { %v17631_v17 = vadd.f32 %v546_v12, %v17507_v3  ;;  %v17634_v25 = vadd.f32 %v659_v20, %v17510_v27  ;;  %v548_v29 = vpop.f32.mrb[29].mxu1  ;;  %v661_v37 = vpop.f32.mrb[29].mxu0 }
 0x260   :  { %v17637_v34 = vadd.f32 %v548_v29, %v17517_v6  ;;  %v17640_v2 = vadd.f32 %v661_v37, %v17520_v7  ;;  %v550_v52 = vpop.f32.mrb[30].mxu1  ;;  %v663_v55 = vpop.f32.mrb[30].mxu0 }
 0x261   :  { %23860 = vst [vmem:[#allocation46_spill] sm:$0xff] %v17631_v17  ;;  %23861 = vst [vmem:[#allocation47_spill] sm:$0xff] %v17634_v25  ;;  %v17643_v58 = vadd.f32 %v550_v52, %v17507_v3  ;;  %v17646_v9 = vadd.f32 %v663_v55, %v17510_v27  ;;  %v552_v12 = vpop.f32.mrb[31].mxu1  ;;  %v665_v17 = vpop.f32.mrb[31].mxu0 }
 0x262   :  { %23862 = vst [vmem:[#allocation48_spill] sm:$0xff] %v17637_v34  ;;  %23863 = vst [vmem:[#allocation49_spill] sm:$0xff] %v17640_v2  ;;  %v17649_v20 = vadd.f32 %v552_v12, %v17517_v6  ;;  %v17652_v25 = vadd.f32 %v665_v17, %v17520_v7 }
 0x263   :  { %23864 = vst [vmem:[#allocation50_spill] sm:$0xff] %v17643_v58  ;;  %23865 = vst [vmem:[#allocation51_spill] sm:$0xff] %v17646_v9 }
 0x264   :  { %23866 = vst [vmem:[#allocation52_spill] sm:$0xff] %v17649_v20  ;;  %23867 = vst [vmem:[#allocation53_spill] sm:$0xff] %v17652_v25 }
 0x266   :  { %v556_v29 = vpop.f32.mrb[32].mxu1  ;;  %v669_v34 = vpop.f32.mrb[32].mxu0 }
 0x267   :  { %v17655_v37 = vadd.f32 %v556_v29, %v17507_v3  ;;  %v17658_v2 = vadd.f32 %v669_v34, %v17510_v27  ;;  %v558_v52 = vpop.f32.mrb[33].mxu1  ;;  %v671_v58 = vpop.f32.mrb[33].mxu0 }
 0x268   :  { %v17661_v55 = vadd.f32 %v558_v52, %v17517_v6  ;;  %v17664_v9 = vadd.f32 %v671_v58, %v17520_v7  ;;  %v560_v12 = vpop.f32.mrb[34].mxu1  ;;  %v673_v20 = vpop.f32.mrb[34].mxu0 }
 0x269   :  { %23868 = vst [vmem:[#allocation54_spill] sm:$0xff] %v17655_v37  ;;  %23869 = vst [vmem:[#allocation55_spill] sm:$0xff] %v17658_v2  ;;  %v17667_v17 = vadd.f32 %v560_v12, %v17507_v3  ;;  %v17670_v25 = vadd.f32 %v673_v20, %v17510_v27  ;;  %v562_v29 = vpop.f32.mrb[35].mxu1  ;;  %v675_v37 = vpop.f32.mrb[35].mxu0 }
 0x26a   :  { %23870 = vst [vmem:[#allocation56_spill] sm:$0xff] %v17661_v55  ;;  %23871 = vst [vmem:[#allocation57_spill] sm:$0xff] %v17664_v9  ;;  %v17673_v34 = vadd.f32 %v562_v29, %v17517_v6  ;;  %v17676_v2 = vadd.f32 %v675_v37, %v17520_v7 }
 0x26b   :  { %23872 = vst [vmem:[#allocation58_spill] sm:$0xff] %v17667_v17  ;;  %23873 = vst [vmem:[#allocation59_spill] sm:$0xff] %v17670_v25 }
 0x26c   :  { %23874 = vst [vmem:[#allocation60_spill] sm:$0xff] %v17673_v34  ;;  %23875 = vst [vmem:[#allocation61_spill] sm:$0xff] %v17676_v2 }
 0x26e   :  { %v566_v52 = vpop.f32.mrb[36].mxu1  ;;  %v679_v55 = vpop.f32.mrb[36].mxu0 }
 0x26f   :  { %v17679_v58 = vadd.f32 %v566_v52, %v17507_v3  ;;  %v17682_v9 = vadd.f32 %v679_v55, %v17510_v27  ;;  %v568_v12 = vpop.f32.mrb[37].mxu1  ;;  %v681_v17 = vpop.f32.mrb[37].mxu0 }
 0x270   :  { %v17685_v20 = vadd.f32 %v568_v12, %v17517_v6  ;;  %v17688_v25 = vadd.f32 %v681_v17, %v17520_v7  ;;  %v570_v29 = vpop.f32.mrb[38].mxu1  ;;  %v683_v34 = vpop.f32.mrb[38].mxu0  ;;  %v497_v17 = vadd.f32 %v17502_v0, %v17507_v3  ;;  %v499_v12 = vadd.f32 %v17512_v4, %v17517_v6 }
 0x271   :  { %23876 = vst [vmem:[#allocation62_spill] sm:$0xff] %v17679_v58  ;;  %23877 = vst [vmem:[#allocation63_spill] sm:$0xff] %v17682_v9  ;;  %v17691_v37 = vadd.f32 %v570_v29, %v17507_v3  ;;  %v17694_v2 = vadd.f32 %v683_v34, %v17510_v27  ;;  %v572_v52 = vpop.f32.mrb[39].mxu1  ;;  %v685_v58 = vpop.f32.mrb[39].mxu0 }
 0x272   :  { %23878 = vst [vmem:[#allocation64_spill] sm:$0xff] %v17685_v20  ;;  %23879 = vst [vmem:[#allocation65_spill] sm:$0xff] %v17688_v25  ;;  %v17697_v55 = vadd.f32 %v572_v52, %v17517_v6  ;;  %v17700_v9 = vadd.f32 %v685_v58, %v17520_v7  ;;  %v610_v58 = vadd.f32 %v17504_v1, %v17510_v27  ;;  %v1036_v1 = vld [vmem:[%s23452_s10] sm:$0xff] }
 0x273   :  { %23880 = vst [vmem:[#allocation66_spill] sm:$0xff] %v17691_v37  ;;  %23881 = vst [vmem:[#allocation67_spill] sm:$0xff] %v17694_v2  ;;  %v612_v52 = vadd.f32 %v17514_v5, %v17520_v7 }
 0x274   :  { %23882 = vst [vmem:[#allocation68_spill] sm:$0xff] %v17697_v55  ;;  %23883 = vst [vmem:[#allocation69_spill] sm:$0xff] %v17700_v9  ;;  %v17837_v55 = vld [vmem:[%s23447_s5 + $0xac] ss:$16 sps:$4 sm:$0xff]  }
 0x276   :  { %v984_v25 = vpop.f32.mrb[40].mxu1 }
 0x277   :  { %v1032_v29 = vadd.f32 %v984_v25, %v497_v17  ;;  %v986_v37 = vpop.f32.mrb[41].mxu1 }
 0x278   :  { %v1033_v20 = vadd.f32 %v986_v37, %v499_v12  ;;  %v988_v34 = vpop.f32.mrb[42].mxu1 }
 0x279   :  { %v989_v2 = vpop.f32.mrb[43].mxu1  ;;  %v1037_v39 = vmul.f32 0.5, %v1032_v29 }
 0x27a   :  { %v1038_v51 = vmul.f32 0.5, %v1033_v20 }
 0x27c   :  { %16718 = vtanh.f32 %v1038_v51 }
 0x27d   :  { %16720 = vtanh.f32 %v1037_v39 }
 0x286   :  { %v16719_v17 = vpop.eup %16718 }
 0x287   :  { %v16721_v37 = vpop.eup %16720  ;;  %v1044_v2 = vmul.f32 0.5, %v16719_v17  ;;  %v17734_v17 = vld [vmem:[%s23447_s5 + $0x24] ss:$16 sps:$4 sm:$0xff]  }
 0x288   :  { %v1043_v12 = vmul.f32 0.5, %v16721_v37  ;;  %v17739_v37 = vld [vmem:[%s23447_s5 + $0x2c] ss:$16 sps:$4 sm:$0xff]  }
 0x289   :  { %v1047_v51 = vadd.f32 0.5, %v1044_v2 }
 0x28a   :  { %v1046_v27 = vadd.f32 0.5, %v1043_v12  ;;  %v17753_v12 = vld [vmem:[%s23447_s5 + $0x28] ss:$16 sps:$4 sm:$0xff]  }
 0x28b   :  { %v1050_v7 = vmul.f32 %v1047_v51, %v1036_v1  ;;  %v17760_v51 = vld [vmem:[%s23447_s5 + $0x44] ss:$16 sps:$4 sm:$0xff]   ;;  %v17765_v1 = vld [vmem:[%s23447_s5 + $0x4c] ss:$16 sps:$4 sm:$0xff]  }
 0x296   :  { %v1025_v0 = vpop.f32.mrb[44].mxu1 }
 0x297   :  { %v1034_v3 = vadd.f32 %v1025_v0, %v610_v58  ;;  %v1027_v9 = vpop.f32.mrb[45].mxu1 }
 0x298   :  { %v1035_v4 = vadd.f32 %v1027_v9, %v612_v52  ;;  %v1029_v6 = vpop.f32.mrb[46].mxu1 }
 0x299   :  { %v1030_v25 = vpop.f32.mrb[47].mxu1  ;;  %v1039_v20 = vmul.f32 0.5, %v1034_v3  ;;  %v13923_v3 = vld [vmem:[%s23451_s9 + $0x8] sm:$0xff] }
 0x29a   :  { %16722 = vtanh.f32 %v1035_v4  ;;  %v17722_v4 = vld [vmem:[%s23447_s5] ss:$16 sps:$4 sm:$0xff]   ;;  %v17727_v6 = vld [vmem:[%s23447_s5 + $0x8] ss:$16 sps:$4 sm:$0xff]   ;;  %v1153_v2 = vpack.c.bf16 %v13923_v3, %v13923_v3 }
 0x29b   :  { %16724 = vtanh.f32 %v1039_v20  ;;  %v17748_v20 = vld [vmem:[%s23447_s5 + $0x20] ss:$16 sps:$4 sm:$0xff]   ;;  %v17825_v3 = vld [vmem:[%s23447_s5 + $0x88] ss:$16 sps:$4 sm:$0xff]  }
 0x2a4   :  { %v16723_v5 = vpop.eup %16722 }
 0x2a5   :  { %v1051_v39 = vmul.f32 %v16723_v5, %v1046_v27  ;;  %v16725_v9 = vpop.eup %16724  ;;  %v17772_v27 = vld [vmem:[%s23447_s5 + $0x40] ss:$16 sps:$4 sm:$0xff]   ;;  %v17777_v5 = vld [vmem:[%s23447_s5 + $0x48] ss:$16 sps:$4 sm:$0xff]  }
 0x2a6   :  { %v1045_v34 = vmul.f32 0.5, %v16725_v9  ;;  %v17796_v9 = vld [vmem:[%s23447_s5 + $0x60] ss:$16 sps:$4 sm:$0xff]  }
 0x2a7   :  { %v17713_v29 = vadd.f32 %v1051_v39, %v1050_v7  ;;  %v17784_v7 = vld [vmem:[%s23447_s5 + $0x64] ss:$16 sps:$4 sm:$0xff]   ;;  %v17789_v39 = vld [vmem:[%s23447_s5 + $0x6c] ss:$16 sps:$4 sm:$0xff]  }
 0x2a8   :  { %v1048_v58 = vadd.f32 0.5, %v1045_v34  ;;  %v17801_v34 = vld [vmem:[%s23447_s5 + $0x68] ss:$16 sps:$4 sm:$0xff]  }
 0x2a9   :  { %16726 = vtanh.f32 %v17713_v29 }
 0x2b3   :  { %v16727_v52 = vpop.eup %16726 }
 0x2b4   :  { %v1054_v0 = vmul.f32 %v16727_v52, %v1048_v58  ;;  %v17808_v58 = vld [vmem:[%s23447_s5 + $0x84] ss:$16 sps:$4 sm:$0xff]   ;;  %v17813_v52 = vld [vmem:[%s23447_s5 + $0x8c] ss:$16 sps:$4 sm:$0xff]  }
 0x2b6   :  { %v17729_v25 = vpack.c.bf16 %v1054_v0, %v1054_v0  ;;  %v17820_v0 = vld [vmem:[%s23447_s5 + $0x80] ss:$16 sps:$4 sm:$0xff]  }
 0x2b8   :  { %1100 = vmatmul.mubr.bf16.vlgmr.msra.gmra.mrb[40].mxu0 %v17729_v25  ;;  %1141 = vmatmul.mubr.bf16.vlgmr.msra.gmra.mrb[48].mxu1 %v17729_v25 }
 0x2b9   :  { %1561 = vmatpush1.bf16.msra.mxu0 %v17722_v4  ;;  %1602 = vmatpush1.bf16.msra.mxu1 %v17727_v6 }
 0x2ba   :  { %1562 = vmatprep.subr.bf16.mxu0 %v17734_v17  ;;  %1603 = vmatprep.subr.bf16.mxu1 %v17739_v37 }
 0x2bb   :  { %1592 = vmatprep.mubr.bf16.mxu0 %v1153_v2  ;;  %1633 = vmatprep.mubr.bf16.mxu1 %v1153_v2  ;;  %v17832_v2 = vld [vmem:[%s23447_s5 + $0xa4] ss:$16 sps:$4 sm:$0xff]  }
 0x2bd   :  { %1563 = vmatpush1.bf16.msra.mxu0 %v17748_v20  ;;  %1604 = vmatpush1.bf16.msra.mxu1 %v17753_v12 }
 0x2be   :  { %1564 = vmatprep.subr.bf16.mxu0 %v17760_v51  ;;  %1605 = vmatprep.subr.bf16.mxu1 %v17765_v1 }
 0x2c1   :  { %1565 = vmatpush1.bf16.msra.mxu0 %v17772_v27  ;;  %1606 = vmatpush1.bf16.msra.mxu1 %v17777_v5 }
 0x2c2   :  { %1566 = vmatprep.subr.bf16.mxu0 %v17784_v7  ;;  %1607 = vmatprep.subr.bf16.mxu1 %v17789_v39 }
 0x2c5   :  { %1567 = vmatpush1.bf16.msra.mxu0 %v17796_v9  ;;  %1608 = vmatpush1.bf16.msra.mxu1 %v17801_v34 }
 0x2c6   :  { %1568 = vmatprep.subr.bf16.mxu0 %v17808_v58  ;;  %1609 = vmatprep.subr.bf16.mxu1 %v17813_v52 }
 0x2c9   :  { %1569 = vmatpush1.bf16.msra.mxu0 %v17820_v0  ;;  %1610 = vmatpush1.bf16.msra.mxu1 %v17825_v3 }
 0x2ca   :  { %1570 = vmatprep.subr.bf16.mxu0 %v17832_v2  ;;  %1611 = vmatprep.subr.bf16.mxu1 %v17837_v55 }
 0x2cd   :  { %1571 = vmatpush1.bf16.msra.mxu0 %v17844_v33  ;;  %1612 = vmatpush1.bf16.msra.mxu1 %v17849_v30 }
 0x2ce   :  { %1572 = vmatprep.subr.bf16.mxu0 %v17856_v24  ;;  %1613 = vmatprep.subr.bf16.mxu1 %v17861_v21 }
 0x2d1   :  { %1573 = vmatpush1.bf16.msra.mxu0 %v17868_v16  ;;  %1614 = vmatpush1.bf16.msra.mxu1 %v17873_v13 }
 0x2d2   :  { %1574 = vmatprep.subr.bf16.mxu0 %v17880_v8  ;;  %1615 = vmatprep.subr.bf16.mxu1 %v17885_v63 }
 0x2d5   :  { %1575 = vmatpush1.bf16.msra.mxu0 %v17892_v54  ;;  %1616 = vmatpush1.bf16.msra.mxu1 %v17897_v53 }
 0x2d6   :  { %1576 = vmatprep.subr.bf16.mxu0 %v17904_v50  ;;  %1617 = vmatprep.subr.bf16.mxu1 %v17909_v40 }
 0x2d9   :  { %1577 = vmatpush1.bf16.msra.mxu0 %v17916_v36  ;;  %1618 = vmatpush1.bf16.msra.mxu1 %v17921_v35 }
 0x2da   :  { %1578 = vmatprep.subr.bf16.mxu0 %v17928_v32  ;;  %1619 = vmatprep.subr.bf16.mxu1 %v17933_v31 }
 0x2dd   :  { %1579 = vmatpush1.bf16.msra.mxu0 %v17940_v28  ;;  %1620 = vmatpush1.bf16.msra.mxu1 %v17945_v26  ;;  %v17976_v28 = vld [vmem:[%s23447_s5 + $0x164] ss:$16 sps:$4 sm:$0xff]   ;;  %v17981_v26 = vld [vmem:[%s23447_s5 + $0x16c] ss:$16 sps:$4 sm:$0xff]  }
 0x2de   :  { %1580 = vmatprep.subr.bf16.mxu0 %v17952_v23  ;;  %1621 = vmatprep.subr.bf16.mxu1 %v17957_v22  ;;  %23890 = vst [vmem:[#allocation76_spill] sm:$0xff] %v17976_v28  ;;  %23891 = vst [vmem:[#allocation77_spill] sm:$0xff] %v17981_v26  ;;  %v17988_v23 = vld [vmem:[%s23447_s5 + $0x160] ss:$16 sps:$4 sm:$0xff]   ;;  %v17993_v22 = vld [vmem:[%s23447_s5 + $0x168] ss:$16 sps:$4 sm:$0xff]  }
 0x2df   :  { %23892 = vst [vmem:[#allocation78_spill] sm:$0xff] %v17988_v23  ;;  %23893 = vst [vmem:[#allocation79_spill] sm:$0xff] %v17993_v22 }
 0x2e1   :  { %1581 = vmatpush1.bf16.msra.mxu0 %v17964_v19  ;;  %1622 = vmatpush1.bf16.msra.mxu1 %v17969_v18  ;;  %v18000_v19 = vld [vmem:[%s23447_s5 + $0x184] ss:$16 sps:$4 sm:$0xff]   ;;  %v18005_v18 = vld [vmem:[%s23447_s5 + $0x18c] ss:$16 sps:$4 sm:$0xff]  }
 0x2e2   :  { %1582 = vmatprep.subr.bf16.mxu0 %v17976_v28  ;;  %1623 = vmatprep.subr.bf16.mxu1 %v17981_v26  ;;  %23894 = vst [vmem:[#allocation80_spill] sm:$0xff] %v18000_v19  ;;  %23895 = vst [vmem:[#allocation81_spill] sm:$0xff] %v18005_v18  ;;  %v18012_v28 = vld [vmem:[%s23447_s5 + $0x180] ss:$16 sps:$4 sm:$0xff]   ;;  %v18017_v26 = vld [vmem:[%s23447_s5 + $0x188] ss:$16 sps:$4 sm:$0xff]  }
 0x2e3   :  { %23896 = vst [vmem:[#allocation82_spill] sm:$0xff] %v18012_v28  ;;  %23897 = vst [vmem:[#allocation83_spill] sm:$0xff] %v18017_v26 }
 0x2e5   :  { %1583 = vmatpush1.bf16.msra.mxu0 %v17988_v23  ;;  %1624 = vmatpush1.bf16.msra.mxu1 %v17993_v22  ;;  %v18024_v23 = vld [vmem:[%s23447_s5 + $0x1a4] ss:$16 sps:$4 sm:$0xff]   ;;  %v18029_v22 = vld [vmem:[%s23447_s5 + $0x1ac] ss:$16 sps:$4 sm:$0xff]  }
 0x2e6   :  { %1584 = vmatprep.subr.bf16.mxu0 %v18000_v19  ;;  %1625 = vmatprep.subr.bf16.mxu1 %v18005_v18  ;;  %23898 = vst [vmem:[#allocation84_spill] sm:$0xff] %v18024_v23  ;;  %23899 = vst [vmem:[#allocation85_spill] sm:$0xff] %v18029_v22  ;;  %v18036_v19 = vld [vmem:[%s23447_s5 + $0x1a0] ss:$16 sps:$4 sm:$0xff]   ;;  %v18041_v18 = vld [vmem:[%s23447_s5 + $0x1a8] ss:$16 sps:$4 sm:$0xff]  }
 0x2e7   :  { %23900 = vst [vmem:[#allocation86_spill] sm:$0xff] %v18036_v19  ;;  %23901 = vst [vmem:[#allocation87_spill] sm:$0xff] %v18041_v18 }
 0x2e9   :  { %1585 = vmatpush1.bf16.msra.mxu0 %v18012_v28  ;;  %1626 = vmatpush1.bf16.msra.mxu1 %v18017_v26  ;;  %v18048_v28 = vld [vmem:[%s23447_s5 + $0x1c4] ss:$16 sps:$4 sm:$0xff]   ;;  %v18053_v26 = vld [vmem:[%s23447_s5 + $0x1cc] ss:$16 sps:$4 sm:$0xff]  }
 0x2ea   :  { %1586 = vmatprep.subr.bf16.mxu0 %v18024_v23  ;;  %1627 = vmatprep.subr.bf16.mxu1 %v18029_v22  ;;  %23902 = vst [vmem:[#allocation88_spill] sm:$0xff] %v18048_v28  ;;  %23903 = vst [vmem:[#allocation89_spill] sm:$0xff] %v18053_v26  ;;  %v18060_v23 = vld [vmem:[%s23447_s5 + $0x1c0] ss:$16 sps:$4 sm:$0xff]   ;;  %v18065_v22 = vld [vmem:[%s23447_s5 + $0x1c8] ss:$16 sps:$4 sm:$0xff]  }
 0x2eb   :  { %23904 = vst [vmem:[#allocation90_spill] sm:$0xff] %v18065_v22 }
 0x2ed   :  { %1587 = vmatpush1.bf16.msra.mxu0 %v18036_v19  ;;  %1628 = vmatpush1.bf16.msra.mxu1 %v18041_v18  ;;  %v18072_v19 = vld [vmem:[%s23447_s5 + $0x1e4] ss:$16 sps:$4 sm:$0xff]   ;;  %v18077_v18 = vld [vmem:[%s23447_s5 + $0x1ec] ss:$16 sps:$4 sm:$0xff]  }
 0x2ee   :  { %1588 = vmatprep.subr.bf16.mxu0 %v18048_v28  ;;  %1629 = vmatprep.subr.bf16.mxu1 %v18053_v26  ;;  %23905 = vst [vmem:[#allocation91_spill] sm:$0xff] %v18077_v18  ;;  %v18084_v28 = vld [vmem:[%s23447_s5 + $0x1e0] ss:$16 sps:$4 sm:$0xff]   ;;  %v18089_v26 = vld [vmem:[%s23447_s5 + $0x1e8] ss:$16 sps:$4 sm:$0xff]  }
 0x2ef   :  { %23906 = vst [vmem:[#allocation92_spill] sm:$0xff] %v18084_v28  ;;  %23907 = vst [vmem:[#allocation93_spill] sm:$0xff] %v18089_v26 }
 0x2f1   :  { %1589 = vmatpush1.bf16.msra.mxu0 %v18060_v23  ;;  %1630 = vmatpush1.bf16.msra.mxu1 %v18065_v22  ;;  %v23908_v22 = vmov 0  }
 0x2f2   :  { %1590 = vmatprep.subr.bf16.mxu0 %v18072_v19  ;;  %1631 = vmatprep.subr.bf16.mxu1 %v18077_v18 }
 0x2f5   :  { %1591 = vmatpush1.bf16.msra.mxu0 %v18084_v28  ;;  %1632 = vmatpush1.bf16.msra.mxu1 %v18089_v26 }
 0x2f6   :  { %1920 = vmatprep.subr.bf16.mxu1 %v17372_v38  ;;  %v18112_v38 = vld [vmem:[%s23445_s3 + $0x4] ss:$16 sps:$4 sm:$0xff]  }
 0x2f7   :  { %23909 = vst [vmem:[#allocation94_spill] sm:$0xff] %v18112_v38  ;;  %1879 = vmatprep.subr.bf16.mxu0 %v18112_v38 }
 0x2f8   :  { %1593 = vmatmul.mubr.bf16.vlgmr.msra.gmra.mrb[44].mxu0 %v17729_v25  ;;  %1634 = vmatmul.mubr.bf16.vlgmr.msra.gmra.mrb[52].mxu1 %v17729_v25  ;;  %v18172_v25 = vld [vmem:[%s23445_s3 + $0xa0] ss:$16 sps:$4 sm:$0xff]  }
 0x2f9   :  { %1921 = vmatpush1.bf16.msra.mxu1 %v17397_v41  ;;  %1911 = vmatprep.mubr.bf16.mxu0 %v23908_v22  ;;  %v18117_v41 = vld [vmem:[%s23445_s3] ss:$16 sps:$4 sm:$0xff]   ;;  %23919 = vst [vmem:[#allocation104_spill] sm:$0xff] %v18172_v25 }
 0x2fa   :  { %1922 = vmatprep.subr.bf16.mxu1 %v17402_v42  ;;  %1952 = vmatprep.mubr.bf16.mxu1 %v23908_v22  ;;  %23910 = vst [vmem:[#allocation95_spill] sm:$0xff] %v18117_v41  ;;  %v18124_v42 = vld [vmem:[%s23445_s3 + $0x24] ss:$16 sps:$4 sm:$0xff]  }
 0x2fb   :  { %1880 = vmatpush1.bf16.msra.mxu0 %v18117_v41  ;;  %23911 = vst [vmem:[#allocation96_spill] sm:$0xff] %v18124_v42 }
 0x2fc   :  { %1881 = vmatprep.subr.bf16.mxu0 %v18124_v42 }
 0x2fd   :  { %1923 = vmatpush1.bf16.msra.mxu1 %v17408_v43  ;;  %v18129_v43 = vld [vmem:[%s23445_s3 + $0x20] ss:$16 sps:$4 sm:$0xff]  }
 0x2fe   :  { %1924 = vmatprep.subr.bf16.mxu1 %v17415_v44  ;;  %23912 = vst [vmem:[#allocation97_spill] sm:$0xff] %v18129_v43  ;;  %v18136_v44 = vld [vmem:[%s23445_s3 + $0x44] ss:$16 sps:$4 sm:$0xff]  }
 0x2ff   :  { %1882 = vmatpush1.bf16.msra.mxu0 %v18129_v43  ;;  %23913 = vst [vmem:[#allocation98_spill] sm:$0xff] %v18136_v44 }
 0x300   :  { %1883 = vmatprep.subr.bf16.mxu0 %v18136_v44  ;;  %v18206_v44 = vld [vmem:[%s23445_s3 + $0xc0] ss:$16 sps:$4 sm:$0xff]  }
 0x301   :  { %1925 = vmatpush1.bf16.msra.mxu1 %v17421_v45  ;;  %v18141_v45 = vld [vmem:[%s23445_s3 + $0x40] ss:$16 sps:$4 sm:$0xff]   ;;  %23925 = vst [vmem:[#allocation110_spill] sm:$0xff] %v18206_v44 }
 0x302   :  { %1926 = vmatprep.subr.bf16.mxu1 %v17427_v46  ;;  %23914 = vst [vmem:[#allocation99_spill] sm:$0xff] %v18141_v45  ;;  %v18148_v46 = vld [vmem:[%s23445_s3 + $0x64] ss:$16 sps:$4 sm:$0xff]  }
 0x303   :  { %1884 = vmatpush1.bf16.msra.mxu0 %v18141_v45  ;;  %23915 = vst [vmem:[#allocation100_spill] sm:$0xff] %v18148_v46  ;;  %v18198_v45 = vld [vmem:[%s23445_s3 + $0xcc] ss:$16 sps:$4 sm:$0xff]  }
 0x304   :  { %1885 = vmatprep.subr.bf16.mxu0 %v18148_v46  ;;  %v18182_v46 = vld [vmem:[%s23445_s3 + $0xa8] ss:$16 sps:$4 sm:$0xff]   ;;  %23924 = vst [vmem:[#allocation109_spill] sm:$0xff] %v18198_v45 }
 0x305   :  { %1927 = vmatpush1.bf16.msra.mxu1 %v17433_v47  ;;  %v18153_v47 = vld [vmem:[%s23445_s3 + $0x60] ss:$16 sps:$4 sm:$0xff]   ;;  %23921 = vst [vmem:[#allocation106_spill] sm:$0xff] %v18182_v46 }
 0x306   :  { %1928 = vmatprep.subr.bf16.mxu1 %v17439_v48  ;;  %23916 = vst [vmem:[#allocation101_spill] sm:$0xff] %v18153_v47  ;;  %v18160_v48 = vld [vmem:[%s23445_s3 + $0x84] ss:$16 sps:$4 sm:$0xff]  }
 0x307   :  { %1886 = vmatpush1.bf16.msra.mxu0 %v18153_v47  ;;  %23917 = vst [vmem:[#allocation102_spill] sm:$0xff] %v18160_v48  ;;  %v18177_v47 = vld [vmem:[%s23445_s3 + $0xa4] ss:$16 sps:$4 sm:$0xff]  }
 0x308   :  { %1887 = vmatprep.subr.bf16.mxu0 %v18160_v48  ;;  %23920 = vst [vmem:[#allocation105_spill] sm:$0xff] %v18177_v47  ;;  %v18187_v48 = vld [vmem:[%s23445_s3 + $0xac] ss:$16 sps:$4 sm:$0xff]  }
 0x309   :  { %1929 = vmatpush1.bf16.msra.mxu1 %v17445_v49  ;;  %v18165_v49 = vld [vmem:[%s23445_s3 + $0x80] ss:$16 sps:$4 sm:$0xff]   ;;  %23922 = vst [vmem:[#allocation107_spill] sm:$0xff] %v18187_v48 }
 0x30a   :  { %23918 = vst [vmem:[#allocation103_spill] sm:$0xff] %v18165_v49  ;;  %1930 = vmatprep.subr.bf16.mxu1 %v18187_v48  ;;  %v18218_v48 = vld [vmem:[%s23445_s3 + $0xe4] ss:$16 sps:$4 sm:$0xff]  }
 0x30b   :  { %1888 = vmatpush1.bf16.msra.mxu0 %v18165_v49  ;;  %v18192_v49 = vld [vmem:[%s23445_s3 + $0xc4] ss:$16 sps:$4 sm:$0xff]   ;;  %23927 = vst [vmem:[#allocation112_spill] sm:$0xff] %v18218_v48 }
 0x30c   :  { %23923 = vst [vmem:[#allocation108_spill] sm:$0xff] %v18192_v49  ;;  %1889 = vmatprep.subr.bf16.mxu0 %v18177_v47  ;;  %v18211_v47 = vld [vmem:[%s23445_s3 + $0xc8] ss:$16 sps:$4 sm:$0xff]  }
 0x30d   :  { %1931 = vmatpush1.bf16.msra.mxu1 %v18182_v46  ;;  %23926 = vst [vmem:[#allocation111_spill] sm:$0xff] %v18211_v47  ;;  %v18223_v46 = vld [vmem:[%s23445_s3 + $0xec] ss:$16 sps:$4 sm:$0xff]  }
 0x30e   :  { %1932 = vmatprep.subr.bf16.mxu1 %v18198_v45  ;;  %23928 = vst [vmem:[#allocation113_spill] sm:$0xff] %v18223_v46  ;;  %v18235_v45 = vld [vmem:[%s23445_s3 + $0xe8] ss:$16 sps:$4 sm:$0xff]  }
 0x30f   :  { %1890 = vmatpush1.bf16.msra.mxu0 %v18172_v25  ;;  %23930 = vst [vmem:[#allocation115_spill] sm:$0xff] %v18235_v45 }
 0x310   :  { %1891 = vmatprep.subr.bf16.mxu0 %v18192_v49  ;;  %v18230_v49 = vld [vmem:[%s23445_s3 + $0xe0] ss:$16 sps:$4 sm:$0xff]  }
 0x311   :  { %1933 = vmatpush1.bf16.msra.mxu1 %v18211_v47  ;;  %23929 = vst [vmem:[#allocation114_spill] sm:$0xff] %v18230_v49 }
 0x312   :  { %1934 = vmatprep.subr.bf16.mxu1 %v18223_v46 }
 0x313   :  { %1892 = vmatpush1.bf16.msra.mxu0 %v18206_v44 }
 0x314   :  { %1893 = vmatprep.subr.bf16.mxu0 %v18218_v48 }
 0x315   :  { %1935 = vmatpush1.bf16.msra.mxu1 %v18235_v45 }
 0x316   :  { %2413 = vmatprep.subr.bf16.mxu1 %v17486_v57 }
 0x317   :  { %1894 = vmatpush1.bf16.msra.mxu0 %v18230_v49 }
 0x318   :  { %2372 = vmatprep.subr.bf16.mxu0 %v17481_v56 }
 0x38b   :  { %v1101_v47 = vpop.f32.mrb[40].mxu0  ;;  %v1142_v44 = vpop.f32.mrb[48].mxu1 }
 0x38c   :  { %v1149_v25 = vadd.f32 %v1101_v47, %v17523_v10  ;;  %v1151_v43 = vadd.f32 %v1142_v44, %v17526_v11  ;;  %v1103_v42 = vpop.f32.mrb[41].mxu0  ;;  %v1144_v22 = vpop.f32.mrb[49].mxu1 }
 0x38d   :  { %v1150_v48 = vadd.f32 %v1103_v42, %v17529_v14  ;;  %v1152_v46 = vadd.f32 %v1144_v22, %v17532_v15  ;;  %v1105_v41 = vpop.f32.mrb[42].mxu0  ;;  %v1146_v49 = vpop.f32.mrb[50].mxu1 }
 0x38e   :  { %v1642_v38 = vmul.f32 0.5, %v1149_v25  ;;  %v1106_v45 = vpop.f32.mrb[43].mxu0  ;;  %v1147_v26 = vpop.f32.mrb[51].mxu1  ;;  %v1644_v57 = vmul.f32 0.5, %v1151_v43  ;;  %v23941_v49 = vld [vmem:[#allocation80_spill] sm:$0xff]  ;;  %v23942_v25 = vld [vmem:[#allocation81_spill] sm:$0xff] }
 0x38f   :  { %v1643_v56 = vmul.f32 0.5, %v1150_v48  ;;  %v23940_v48 = vld [vmem:[#allocation79_spill] sm:$0xff] }
 0x390   :  { %16728 = vtanh.f32 %v1642_v38 }
 0x391   :  { %16730 = vtanh.f32 %v1643_v56 }
 0x392   :  { %16732 = vtanh.f32 %v1152_v46 }
 0x393   :  { %16734 = vtanh.f32 %v1644_v57  ;;  %v23943_v57 = vld [vmem:[#allocation82_spill] sm:$0xff] }
 0x39a   :  { %v16729_v28 = vpop.eup %16728 }
 0x39b   :  { %v1648_v10 = vmul.f32 0.5, %v16729_v28  ;;  %v16731_v47 = vpop.eup %16730 }
 0x39c   :  { %v1649_v44 = vmul.f32 0.5, %v16731_v47  ;;  %v16733_v18 = vpop.eup %16732  ;;  %v23945_v47 = vld [vmem:[#allocation84_spill] sm:$0xff] }
 0x39d   :  { %v1651_v11 = vadd.f32 0.5, %v1648_v10  ;;  %v16735_v26 = vpop.eup %16734  ;;  %v23944_v10 = vld [vmem:[#allocation83_spill] sm:$0xff] }
 0x39e   :  { %v1652_v14 = vadd.f32 0.5, %v1649_v44  ;;  %v1650_v38 = vmul.f32 0.5, %v16735_v26  ;;  %v23949_v26 = vld [vmem:[#allocation88_spill] sm:$0xff] }
 0x39f   :  { %v1656_v42 = vmul.f32 %v16733_v18, %v1651_v11  ;;  %v1218_v18 = vld [vmem:[%s23448_s6] sm:$0xf]  ;;  %v23946_v11 = vld [vmem:[#allocation85_spill] sm:$0xff] }
 0x3a0   :  { %v1655_v15 = vmul.f32 %v1652_v14, %v17713_v29  ;;  %v1653_v41 = vadd.f32 0.5, %v1650_v38  ;;  %v1223_v28 = vrot.slane %v1218_v18, %v17491_v59  ;;  %v1227_v29 = vrot.slane %v1218_v18, %v17495_v61  ;;  %v23947_v14 = vld [vmem:[#allocation86_spill] sm:$0xff]  ;;  %v23950_v38 = vld [vmem:[#allocation89_spill] sm:$0xff] }
 0x3a2   :  { %v18248_v22 = vadd.f32 %v1656_v42, %v1655_v15  ;;  %v23948_v42 = vld [vmem:[#allocation87_spill] sm:$0xff] }
 0x3a4   :  { %16736 = vtanh.f32 %v18248_v22 }
 0x3ae   :  { %v16737_v45 = vpop.eup %16736 }
 0x3af   :  { %v1659_v43 = vmul.f32 %v16737_v45, %v1653_v41  ;;  %v23951_v41 = vld [vmem:[#allocation90_spill] sm:$0xff] }
 0x3b1   :  { %v18251_v46 = vpack.c.bf16 %v1659_v43, %v1659_v43  ;;  %v23952_v43 = vld [vmem:[#allocation91_spill] sm:$0xff] }
 0x3b3   :  { %1912 = vmatmul.mubr.bf16.vlgmr.msra.gmra.mrb[48].mxu0 %v18251_v46  ;;  %1953 = vmatmul.mubr.bf16.vlgmr.msra.gmra.mrb[56].mxu1 %v18251_v46 }
 0x3b4   :  { %2373 = vmatpush1.bf16.msra.mxu0 %v17722_v4  ;;  %2414 = vmatpush1.bf16.msra.mxu1 %v17727_v6 }
 0x3b5   :  { %2374 = vmatprep.subr.bf16.mxu0 %v17734_v17  ;;  %2415 = vmatprep.subr.bf16.mxu1 %v17739_v37 }
 0x3b8   :  { %2375 = vmatpush1.bf16.msra.mxu0 %v17748_v20  ;;  %2416 = vmatpush1.bf16.msra.mxu1 %v17753_v12  ;;  %v1235_v20 = vrot.slane %v1218_v18, %v17497_v62 }
 0x3b9   :  { %2376 = vmatprep.subr.bf16.mxu0 %v17760_v51  ;;  %2417 = vmatprep.subr.bf16.mxu1 %v17765_v1 }
 0x3bc   :  { %2377 = vmatpush1.bf16.msra.mxu0 %v17772_v27  ;;  %2418 = vmatpush1.bf16.msra.mxu1 %v17777_v5  ;;  %v1231_v5 = vrot.slane %v1218_v18, %v17493_v60 }
 0x3bd   :  { %2378 = vmatprep.subr.bf16.mxu0 %v17784_v7  ;;  %2419 = vmatprep.subr.bf16.mxu1 %v17789_v39 }
 0x3c0   :  { %2379 = vmatpush1.bf16.msra.mxu0 %v17796_v9  ;;  %2420 = vmatpush1.bf16.msra.mxu1 %v17801_v34  ;;  %v13924_v9 = vld [vmem:[%s23452_s10 + $0x8] sm:$0xff]  ;;  %v23937_v34 = vld [vmem:[#allocation76_spill] sm:$0xff] }
 0x3c1   :  { %2380 = vmatprep.subr.bf16.mxu0 %v17808_v58  ;;  %2421 = vmatprep.subr.bf16.mxu1 %v17813_v52  ;;  %v23938_v58 = vld [vmem:[#allocation77_spill] sm:$0xff] }
 0x3c4   :  { %2381 = vmatpush1.bf16.msra.mxu0 %v17820_v0  ;;  %2422 = vmatpush1.bf16.msra.mxu1 %v17825_v3 }
 0x3c5   :  { %2382 = vmatprep.subr.bf16.mxu0 %v17832_v2  ;;  %2423 = vmatprep.subr.bf16.mxu1 %v17837_v55  ;;  %v23939_v2 = vld [vmem:[#allocation78_spill] sm:$0xff] }
 0x3c8   :  { %2383 = vmatpush1.bf16.msra.mxu0 %v17844_v33  ;;  %2424 = vmatpush1.bf16.msra.mxu1 %v17849_v30 }
 0x3c9   :  { %2384 = vmatprep.subr.bf16.mxu0 %v17856_v24  ;;  %2425 = vmatprep.subr.bf16.mxu1 %v17861_v21 }
 0x3cb   :  { %v1594_v4 = vpop.f32.mrb[44].mxu0  ;;  %v1635_v6 = vpop.f32.mrb[52].mxu1 }
 0x3cc   :  { %v1595_v17 = vadd.f32 %v1594_v4, %v1223_v28  ;;  %v1596_v37 = vpop.f32.mrb[45].mxu0  ;;  %v1637_v12 = vpop.f32.mrb[53].mxu1  ;;  %2385 = vmatpush1.bf16.msra.mxu0 %v17868_v16  ;;  %2426 = vmatpush1.bf16.msra.mxu1 %v17873_v13  ;;  %v1636_v13 = vadd.f32 %v1635_v6, %v1231_v5  ;;  %v23933_v16 = vld [vmem:[#allocation72_spill] sm:$0xff]  ;;  %v23955_v4 = vld [vmem:[#allocation93_spill] sm:$0xff]  ;;  %v23970_v5 = vld [vmem:[#allocation110_spill] sm:$0xff] }
 0x3cd   :  { %v1597_v55 = vadd.f32 %v1596_v37, %v1227_v29  ;;  %v1598_v51 = vpop.f32.mrb[46].mxu0  ;;  %v1639_v1 = vpop.f32.mrb[54].mxu1  ;;  %2386 = vmatprep.subr.bf16.mxu0 %v17880_v8  ;;  %2427 = vmatprep.subr.bf16.mxu1 %v17885_v63  ;;  %v1638_v24 = vadd.f32 %v1637_v12, %v1235_v20  ;;  %v23931_v8 = vld [vmem:[#allocation70_spill] sm:$0xff]  ;;  %v23954_v29 = vld [vmem:[#allocation92_spill] sm:$0xff]  ;;  %v23960_v20 = vld [vmem:[#allocation97_spill] sm:$0xff] }
 0x3ce   :  { %v1660_v30 = vmul.f32 0.5, %v1595_v17  ;;  %v1599_v33 = vpop.f32.mrb[47].mxu0  ;;  %v1640_v27 = vpop.f32.mrb[55].mxu1  ;;  %v1662_v63 = vmul.f32 0.5, %v1636_v13  ;;  %v23956_v17 = vld [vmem:[#allocation94_spill] sm:$0xff]  ;;  %v23959_v37 = vld [vmem:[#allocation96_spill] sm:$0xff] }
 0x3cf   :  { %v1661_v21 = vmul.f32 0.5, %v1597_v55  ;;  %v23961_v12 = vld [vmem:[#allocation98_spill] sm:$0xff]  ;;  %v23962_v55 = vld [vmem:[#allocation99_spill] sm:$0xff]  ;;  %v23963_v51 = vld [vmem:[#allocation100_spill] sm:$0xff] }
 0x3d0   :  { %16738 = vtanh.f32 %v1660_v30  ;;  %2387 = vmatpush1.bf16.msra.mxu0 %v17892_v54  ;;  %2428 = vmatpush1.bf16.msra.mxu1 %v17897_v53  ;;  %v23932_v54 = vld [vmem:[#allocation71_spill] sm:$0xff]  ;;  %v23964_v1 = vld [vmem:[#allocation101_spill] sm:$0xff]  ;;  %v23965_v30 = vld [vmem:[#allocation102_spill] sm:$0xff] }
 0x3d1   :  { %16740 = vtanh.f32 %v1661_v21  ;;  %2388 = vmatprep.subr.bf16.mxu0 %v17904_v50  ;;  %2429 = vmatprep.subr.bf16.mxu1 %v17909_v40  ;;  %v23934_v50 = vld [vmem:[#allocation73_spill] sm:$0xff]  ;;  %v23968_v27 = vld [vmem:[#allocation104_spill] sm:$0xff] }
 0x3d2   :  { %16742 = vtanh.f32 %v1638_v24  ;;  %v23967_v33 = vld [vmem:[#allocation105_spill] sm:$0xff]  ;;  %v23969_v21 = vld [vmem:[#allocation108_spill] sm:$0xff] }
 0x3d3   :  { %16744 = vtanh.f32 %v1662_v63  ;;  %v18354_v24 = vld [vmem:[%s23445_s3 + $0xc] ss:$16 sps:$4 sm:$0xff]   ;;  %v18360_v13 = vld [vmem:[%s23445_s3 + $0x8] ss:$16 sps:$4 sm:$0xff]   ;;  %v23971_v63 = vld [vmem:[#allocation112_spill] sm:$0xff] }
 0x3d4   :  { %2389 = vmatpush1.bf16.msra.mxu0 %v17916_v36  ;;  %2430 = vmatpush1.bf16.msra.mxu1 %v17921_v35  ;;  %v23935_v35 = vld [vmem:[#allocation74_spill] sm:$0xff] }
 0x3d5   :  { %2390 = vmatprep.subr.bf16.mxu0 %v17928_v32  ;;  %2431 = vmatprep.subr.bf16.mxu1 %v17933_v31  ;;  %v23936_v32 = vld [vmem:[#allocation75_spill] sm:$0xff] }
 0x3d8   :  { %2391 = vmatpush1.bf16.msra.mxu0 %v23931_v8  ;;  %2432 = vmatpush1.bf16.msra.mxu1 %v23932_v54  ;;  %v18368_v8 = vld [vmem:[%s23445_s3 + $0x2c] ss:$16 sps:$4 sm:$0xff]   ;;  %v23972_v54 = vld [vmem:[#allocation114_spill] sm:$0xff] }
 0x3d9   :  { %2392 = vmatprep.subr.bf16.mxu0 %v23933_v16  ;;  %2433 = vmatprep.subr.bf16.mxu1 %v23934_v50  ;;  %v18381_v16 = vld [vmem:[%s23445_s3 + $0x4c] ss:$16 sps:$4 sm:$0xff]   ;;  %v18386_v50 = vld [vmem:[%s23445_s3 + $0x48] ss:$16 sps:$4 sm:$0xff]  }
 0x3da   :  { %v16739_v53 = vpop.eup %16738 }
 0x3db   :  { %v1666_v40 = vmul.f32 0.5, %v16739_v53  ;;  %v16741_v7 = vpop.eup %16740  ;;  %v18374_v53 = vld [vmem:[%s23445_s3 + $0x28] ss:$16 sps:$4 sm:$0xff]  }
 0x3dc   :  { %v1667_v36 = vmul.f32 0.5, %v16741_v7  ;;  %2393 = vmatpush1.bf16.msra.mxu0 %v23935_v35  ;;  %2434 = vmatpush1.bf16.msra.mxu1 %v23936_v32  ;;  %v16743_v31 = vpop.eup %16742  ;;  %v18398_v7 = vld [vmem:[%s23445_s3 + $0x68] ss:$16 sps:$4 sm:$0xff]   ;;  %v23974_v32 = vld [vmem:[#allocation106_spill] sm:$0xff] }
 0x3dd   :  { %v1669_v39 = vadd.f32 0.5, %v1666_v40  ;;  %2394 = vmatprep.subr.bf16.mxu0 %v23937_v34  ;;  %2435 = vmatprep.subr.bf16.mxu1 %v23938_v58  ;;  %v16745_v44 = vpop.eup %16744  ;;  %v18393_v40 = vld [vmem:[%s23445_s3 + $0x6c] ss:$16 sps:$4 sm:$0xff]  }
 0x3de   :  { %v1670_v52 = vadd.f32 0.5, %v1667_v36  ;;  %v1668_v15 = vmul.f32 0.5, %v16745_v44  ;;  %v18410_v36 = vld [vmem:[%s23445_s3 + $0x88] ss:$16 sps:$4 sm:$0xff]  }
 0x3df   :  { %v1674_v0 = vmul.f32 %v16743_v31, %v1669_v39  ;;  %v18405_v39 = vld [vmem:[%s23445_s3 + $0x8c] ss:$16 sps:$4 sm:$0xff]  }
 0x3e0   :  { %v1673_v3 = vmul.f32 %v13924_v9, %v1670_v52  ;;  %2395 = vmatpush1.bf16.msra.mxu0 %v23939_v2  ;;  %2436 = vmatpush1.bf16.msra.mxu1 %v23940_v48  ;;  %v1671_v45 = vadd.f32 0.5, %v1668_v15  ;;  %v23973_v35 = vld [vmem:[#allocation107_spill] sm:$0xff]  ;;  %v23975_v31 = vld [vmem:[#allocation109_spill] sm:$0xff]  ;;  %v18423_v52 = vld [vmem:[%s23447_s5 + $0x4] ss:$16 sps:$4 sm:$0xff]  }
 0x3e1   :  { %2396 = vmatprep.subr.bf16.mxu0 %v23941_v49  ;;  %2437 = vmatprep.subr.bf16.mxu1 %v23942_v25  ;;  %v23976_v9 = vld [vmem:[#allocation111_spill] sm:$0xff]  ;;  %v23977_v34 = vld [vmem:[#allocation113_spill] sm:$0xff]  ;;  %v23979_v48 = vld [vmem:[#allocation14_spill] sm:$0xff] }
 0x3e2   :  { %v18313_v56 = vadd.f32 %v1674_v0, %v1673_v3  ;;  %v23978_v58 = vld [vmem:[#allocation115_spill] sm:$0xff] }
 0x3e3   :  { %v18428_v0 = vld [vmem:[%s23447_s5 + $0xc] ss:$16 sps:$4 sm:$0xff]  }
 0x3e4   :  { %16746 = vtanh.f32 %v18313_v56  ;;  %2397 = vmatpush1.bf16.msra.mxu0 %v23943_v57  ;;  %2438 = vmatpush1.bf16.msra.mxu1 %v23944_v10  ;;  %v23980_v25 = vld [vmem:[#allocation15_spill] sm:$0xff] }
 0x3e5   :  { %2398 = vmatprep.subr.bf16.mxu0 %v23945_v47  ;;  %2439 = vmatprep.subr.bf16.mxu1 %v23946_v11  ;;  %v23981_v11 = vld [vmem:[#allocation16_spill] sm:$0xff] }
 0x3e8   :  { %2399 = vmatpush1.bf16.msra.mxu0 %v23947_v14  ;;  %2440 = vmatpush1.bf16.msra.mxu1 %v23948_v42  ;;  %v23982_v14 = vld [vmem:[#allocation17_spill] sm:$0xff] }
 0x3e9   :  { %2400 = vmatprep.subr.bf16.mxu0 %v23949_v26  ;;  %2441 = vmatprep.subr.bf16.mxu1 %v23950_v38 }
 0x3ec   :  { %2401 = vmatpush1.bf16.msra.mxu0 %v18060_v23  ;;  %2442 = vmatpush1.bf16.msra.mxu1 %v23951_v41  ;;  %v23958_v23 = vmov 0  }
 0x3ed   :  { %2402 = vmatprep.subr.bf16.mxu0 %v18072_v19  ;;  %2443 = vmatprep.subr.bf16.mxu1 %v23952_v43  ;;  %v23957_v19 = vld [vmem:[#allocation95_spill] sm:$0xff] }
 0x3ee   :  { %v16747_v18 = vpop.eup %16746 }
 0x3ef   :  { %v18328_v28 = vmul.f32 %v16747_v18, %v1671_v45 }
 0x3f0   :  { %2403 = vmatpush1.bf16.msra.mxu0 %v23954_v29  ;;  %2444 = vmatpush1.bf16.msra.mxu1 %v23955_v4 }
 0x3f1   :  { %23953 = vst [vmem:[#allocation70_spill] sm:$0xff] %v18328_v28  ;;  %v1965_v6 = vpack.c.bf16 %v18328_v28, %v18328_v28  ;;  %2692 = vmatprep.subr.bf16.mxu0 %v23956_v17  ;;  %2733 = vmatprep.subr.bf16.mxu1 %v18354_v24 }
 0x3f3   :  { %2404 = vmatprep.mubr.bf16.mxu0 %v1965_v6  ;;  %2445 = vmatprep.mubr.bf16.mxu1 %v1965_v6 }
 0x3f4   :  { %2405 = vmatmul.mubr.bf16.vlgmr.msra.gmra.mrb[52].mxu0 %v18251_v46  ;;  %2446 = vmatmul.mubr.bf16.vlgmr.msra.gmra.mrb[60].mxu1 %v18251_v46  ;;  %v23966_v46 = vld [vmem:[#allocation103_spill] sm:$0xff] }
 0x3f5   :  { %2693 = vmatpush1.bf16.msra.mxu0 %v23957_v19  ;;  %2724 = vmatprep.mubr.bf16.mxu0 %v23958_v23 }
 0x3f6   :  { %2694 = vmatprep.subr.bf16.mxu0 %v23959_v37  ;;  %2765 = vmatprep.mubr.bf16.mxu1 %v23958_v23 }
 0x3f7   :  { %2734 = vmatpush1.bf16.msra.mxu1 %v18360_v13 }
 0x3f8   :  { %2735 = vmatprep.subr.bf16.mxu1 %v18368_v8 }
 0x3f9   :  { %2695 = vmatpush1.bf16.msra.mxu0 %v23960_v20 }
 0x3fa   :  { %2696 = vmatprep.subr.bf16.mxu0 %v23961_v12 }
 0x3fb   :  { %2736 = vmatpush1.bf16.msra.mxu1 %v18374_v53 }
 0x3fc   :  { %2737 = vmatprep.subr.bf16.mxu1 %v18381_v16 }
 0x3fd   :  { %2697 = vmatpush1.bf16.msra.mxu0 %v23962_v55 }
 0x3fe   :  { %2698 = vmatprep.subr.bf16.mxu0 %v23963_v51 }
 0x3ff   :  { %2738 = vmatpush1.bf16.msra.mxu1 %v18386_v50 }
 0x400   :  { %2739 = vmatprep.subr.bf16.mxu1 %v18393_v40 }
 0x401   :  { %2699 = vmatpush1.bf16.msra.mxu0 %v23964_v1 }
 0x402   :  { %2700 = vmatprep.subr.bf16.mxu0 %v23965_v30 }
 0x403   :  { %2740 = vmatpush1.bf16.msra.mxu1 %v18398_v7 }
 0x404   :  { %2741 = vmatprep.subr.bf16.mxu1 %v18405_v39 }
 0x405   :  { %2701 = vmatpush1.bf16.msra.mxu0 %v23966_v46 }
 0x406   :  { %2702 = vmatprep.subr.bf16.mxu0 %v23967_v33 }
 0x407   :  { %2742 = vmatpush1.bf16.msra.mxu1 %v18410_v36 }
 0x408   :  { %2743 = vmatprep.subr.bf16.mxu1 %v23973_v35  ;;  %v18469_v35 = vld [vmem:[%s23447_s5 + $0x20] ss:$16 sps:$4 sm:$0xff]  }
 0x409   :  { %2703 = vmatpush1.bf16.msra.mxu0 %v23968_v27 }
 0x40a   :  { %2704 = vmatprep.subr.bf16.mxu0 %v23969_v21  ;;  %v18443_v21 = vld [vmem:[%s23447_s5] ss:$16 sps:$4 sm:$0xff]  }
 0x40b   :  { %2744 = vmatpush1.bf16.msra.mxu1 %v23974_v32  ;;  %v18474_v32 = vld [vmem:[%s23447_s5 + $0x28] ss:$16 sps:$4 sm:$0xff]  }
 0x40c   :  { %2745 = vmatprep.subr.bf16.mxu1 %v23975_v31  ;;  %v18481_v31 = vld [vmem:[%s23447_s5 + $0x44] ss:$16 sps:$4 sm:$0xff]  }
 0x40d   :  { %2705 = vmatpush1.bf16.msra.mxu0 %v23970_v5  ;;  %v18448_v5 = vld [vmem:[%s23447_s5 + $0x8] ss:$16 sps:$4 sm:$0xff]  }
 0x40e   :  { %2706 = vmatprep.subr.bf16.mxu0 %v23971_v63  ;;  %v18455_v63 = vld [vmem:[%s23447_s5 + $0x24] ss:$16 sps:$4 sm:$0xff]  }
 0x40f   :  { %2746 = vmatpush1.bf16.msra.mxu1 %v23976_v9  ;;  %v18486_v9 = vld [vmem:[%s23447_s5 + $0x4c] ss:$16 sps:$4 sm:$0xff]  }
 0x410   :  { %2747 = vmatprep.subr.bf16.mxu1 %v23977_v34  ;;  %v18493_v34 = vld [vmem:[%s23447_s5 + $0x40] ss:$16 sps:$4 sm:$0xff]  }
 0x411   :  { %2707 = vmatpush1.bf16.msra.mxu0 %v23972_v54  ;;  %v18460_v54 = vld [vmem:[%s23447_s5 + $0x2c] ss:$16 sps:$4 sm:$0xff]  }
 0x412   :  { %3185 = vmatprep.subr.bf16.mxu0 %v18423_v52 }
 0x413   :  { %2748 = vmatpush1.bf16.msra.mxu1 %v23978_v58  ;;  %v18498_v58 = vld [vmem:[%s23447_s5 + $0x48] ss:$16 sps:$4 sm:$0xff]  }
 0x414   :  { %3226 = vmatprep.subr.bf16.mxu1 %v18428_v0 }
 0x486   :  { %v1913_v3 = vpop.f32.mrb[48].mxu0  ;;  %v1954_v2 = vpop.f32.mrb[56].mxu1 }
 0x487   :  { %v1961_v49 = vadd.f32 %v1913_v3, %v23979_v48  ;;  %v1963_v57 = vadd.f32 %v1954_v2, %v23980_v25  ;;  %v1915_v10 = vpop.f32.mrb[49].mxu0  ;;  %v1956_v47 = vpop.f32.mrb[57].mxu1  ;;  %v18505_v3 = vld [vmem:[%s23447_s5 + $0x64] ss:$16 sps:$4 sm:$0xff]   ;;  %v18510_v2 = vld [vmem:[%s23447_s5 + $0x6c] ss:$16 sps:$4 sm:$0xff]  }
 0x488   :  { %v1962_v44 = vadd.f32 %v1915_v10, %v23981_v11  ;;  %v1964_v42 = vadd.f32 %v1956_v47, %v23982_v14  ;;  %v1917_v15 = vpop.f32.mrb[50].mxu0  ;;  %v1958_v26 = vpop.f32.mrb[58].mxu1  ;;  %v18517_v48 = vld [vmem:[%s23447_s5 + $0x60] ss:$16 sps:$4 sm:$0xff]   ;;  %v18529_v25 = vld [vmem:[%s23447_s5 + $0x84] ss:$16 sps:$4 sm:$0xff]  }
 0x489   :  { %v2454_v38 = vmul.f32 0.5, %v1961_v49  ;;  %v1918_v41 = vpop.f32.mrb[51].mxu0  ;;  %v1959_v45 = vpop.f32.mrb[59].mxu1  ;;  %v2456_v18 = vmul.f32 0.5, %v1963_v57  ;;  %v18522_v49 = vld [vmem:[%s23447_s5 + $0x68] ss:$16 sps:$4 sm:$0xff]  }
 0x48a   :  { %v2455_v43 = vmul.f32 0.5, %v1962_v44  ;;  %v18534_v57 = vld [vmem:[%s23447_s5 + $0x8c] ss:$16 sps:$4 sm:$0xff]   ;;  %v18541_v10 = vld [vmem:[%s23447_s5 + $0x80] ss:$16 sps:$4 sm:$0xff]  }
 0x48b   :  { %16748 = vtanh.f32 %v2454_v38  ;;  %v18546_v47 = vld [vmem:[%s23447_s5 + $0x88] ss:$16 sps:$4 sm:$0xff]   ;;  %v18553_v11 = vld [vmem:[%s23447_s5 + $0xa4] ss:$16 sps:$4 sm:$0xff]   ;;  %v18558_v44 = vld [vmem:[%s23447_s5 + $0xac] ss:$16 sps:$4 sm:$0xff]  }
 0x48c   :  { %16750 = vtanh.f32 %v2455_v43  ;;  %v18565_v14 = vld [vmem:[%s23447_s5 + $0xa0] ss:$16 sps:$4 sm:$0xff]   ;;  %v18580_v26 = vld [vmem:[%s23447_s5 + $0xc4] ss:$16 sps:$4 sm:$0xff]   ;;  %v18585_v38 = vld [vmem:[%s23447_s5 + $0xcc] ss:$16 sps:$4 sm:$0xff]  }
 0x48d   :  { %16752 = vtanh.f32 %v1964_v42  ;;  %v18570_v42 = vld [vmem:[%s23447_s5 + $0xa8] ss:$16 sps:$4 sm:$0xff]   ;;  %v2030_v15 = vld [vmem:[%s23448_s6] sm:$0xf] }
 0x48e   :  { %16754 = vtanh.f32 %v2456_v18  ;;  %v2035_v41 = vrot.slane %v2030_v15, %v17491_v59  ;;  %v18593_v45 = vld [vmem:[%s23447_s5 + $0xc0] ss:$16 sps:$4 sm:$0xff]   ;;  %v18598_v43 = vld [vmem:[%s23447_s5 + $0xc8] ss:$16 sps:$4 sm:$0xff]   ;;  %v2039_v18 = vrot.slane %v2030_v15, %v17495_v61 }
 0x495   :  { %v16749_v29 = vpop.eup %16748 }
 0x496   :  { %v2460_v4 = vmul.f32 0.5, %v16749_v29  ;;  %v16751_v6 = vpop.eup %16750  ;;  %v18606_v29 = vld [vmem:[%s23447_s5 + $0xe4] ss:$16 sps:$4 sm:$0xff]  }
 0x497   :  { %v2461_v19 = vmul.f32 0.5, %v16751_v6  ;;  %v16753_v37 = vpop.eup %16752 }
 0x498   :  { %v2463_v17 = vadd.f32 0.5, %v2460_v4  ;;  %v16755_v1 = vpop.eup %16754  ;;  %v18611_v4 = vld [vmem:[%s23447_s5 + $0xec] ss:$16 sps:$4 sm:$0xff]  }
 0x499   :  { %v2464_v20 = vadd.f32 0.5, %v2461_v19  ;;  %v2462_v30 = vmul.f32 0.5, %v16755_v1  ;;  %v18624_v1 = vld [vmem:[%s23447_s5 + $0xe8] ss:$16 sps:$4 sm:$0xff]  }
 0x49a   :  { %v2468_v12 = vmul.f32 %v16753_v37, %v2463_v17 }
 0x49b   :  { %v2467_v55 = vmul.f32 %v2464_v20, %v18248_v22  ;;  %v2465_v46 = vadd.f32 0.5, %v2462_v30  ;;  %v2047_v20 = vrot.slane %v2030_v15, %v17497_v62 }
 0x49d   :  { %v18437_v51 = vadd.f32 %v2468_v12, %v2467_v55  ;;  %v18619_v55 = vld [vmem:[%s23447_s5 + $0xe0] ss:$16 sps:$4 sm:$0xff]  }
 0x49f   :  { %16756 = vtanh.f32 %v18437_v51 }
 0x4a9   :  { %v16757_v33 = vpop.eup %16756 }
 0x4aa   :  { %v2471_v27 = vmul.f32 %v16757_v33, %v2465_v46 }
 0x4ac   :  { %v18450_v22 = vpack.c.bf16 %v2471_v27, %v2471_v27  ;;  %v18631_v27 = vld [vmem:[%s23447_s5 + $0x104] ss:$16 sps:$4 sm:$0xff]  }
 0x4ae   :  { %2725 = vmatmul.mubr.bf16.vlgmr.msra.gmra.mrb[56].mxu0 %v18450_v22  ;;  %2766 = vmatmul.mubr.bf16.vlgmr.msra.gmra.mrb[64].mxu1 %v18450_v22 }
 0x4af   :  { %3186 = vmatpush1.bf16.msra.mxu0 %v18443_v21  ;;  %3227 = vmatpush1.bf16.msra.mxu1 %v18448_v5 }
 0x4b0   :  { %3187 = vmatprep.subr.bf16.mxu0 %v18455_v63  ;;  %3228 = vmatprep.subr.bf16.mxu1 %v18460_v54 }
 0x4b3   :  { %3188 = vmatpush1.bf16.msra.mxu0 %v18469_v35  ;;  %3229 = vmatpush1.bf16.msra.mxu1 %v18474_v32 }
 0x4b4   :  { %3189 = vmatprep.subr.bf16.mxu0 %v18481_v31  ;;  %3230 = vmatprep.subr.bf16.mxu1 %v18486_v9 }
 0x4b7   :  { %3190 = vmatpush1.bf16.msra.mxu0 %v18493_v34  ;;  %3231 = vmatpush1.bf16.msra.mxu1 %v18498_v58 }
 0x4b8   :  { %3191 = vmatprep.subr.bf16.mxu0 %v18505_v3  ;;  %3232 = vmatprep.subr.bf16.mxu1 %v18510_v2 }
 0x4bb   :  { %3192 = vmatpush1.bf16.msra.mxu0 %v18517_v48  ;;  %3233 = vmatpush1.bf16.msra.mxu1 %v18522_v49 }
 0x4bc   :  { %3193 = vmatprep.subr.bf16.mxu0 %v18529_v25  ;;  %3234 = vmatprep.subr.bf16.mxu1 %v18534_v57 }
 0x4bf   :  { %3194 = vmatpush1.bf16.msra.mxu0 %v18541_v10  ;;  %3235 = vmatpush1.bf16.msra.mxu1 %v18546_v47 }
 0x4c0   :  { %3195 = vmatprep.subr.bf16.mxu0 %v18553_v11  ;;  %3236 = vmatprep.subr.bf16.mxu1 %v18558_v44 }
 0x4c3   :  { %3196 = vmatpush1.bf16.msra.mxu0 %v18565_v14  ;;  %3237 = vmatpush1.bf16.msra.mxu1 %v18570_v42 }
 0x4c4   :  { %3197 = vmatprep.subr.bf16.mxu0 %v18580_v26  ;;  %3238 = vmatprep.subr.bf16.mxu1 %v18585_v38 }
 0x4c7   :  { %v2406_v6 = vpop.f32.mrb[52].mxu0  ;;  %v2447_v17 = vpop.f32.mrb[60].mxu1  ;;  %3198 = vmatpush1.bf16.msra.mxu0 %v18593_v45  ;;  %3239 = vmatpush1.bf16.msra.mxu1 %v18598_v43 }
 0x4c8   :  { %v2407_v19 = vadd.f32 %v2406_v6, %v2035_v41  ;;  %v2408_v37 = vpop.f32.mrb[53].mxu0  ;;  %v2449_v12 = vpop.f32.mrb[61].mxu1  ;;  %3199 = vmatprep.subr.bf16.mxu0 %v18606_v29  ;;  %3240 = vmatprep.subr.bf16.mxu1 %v18611_v4  ;;  %v18636_v41 = vld [vmem:[%s23447_s5 + $0x10c] ss:$16 sps:$4 sm:$0xff]  }
 0x4c9   :  { %v2409_v30 = vadd.f32 %v2408_v37, %v2039_v18  ;;  %v2410_v46 = vpop.f32.mrb[54].mxu0  ;;  %v2451_v33 = vpop.f32.mrb[62].mxu1  ;;  %v2450_v37 = vadd.f32 %v2449_v12, %v2047_v20  ;;  %v18673_v20 = vld [vmem:[%s23447_s5 + $0x128] ss:$16 sps:$4 sm:$0xff]  }
 0x4ca   :  { %v2472_v6 = vmul.f32 0.5, %v2407_v19  ;;  %v2411_v28 = vpop.f32.mrb[55].mxu0  ;;  %v2452_v62 = vpop.f32.mrb[63].mxu1  ;;  %v18643_v46 = vld [vmem:[%s23447_s5 + $0x100] ss:$16 sps:$4 sm:$0xff]   ;;  %23988 = vst [vmem:[#allocation76_spill] sm:$0xff] %v18673_v20 }
 0x4cb   :  { %v2473_v18 = vmul.f32 0.5, %v2409_v30  ;;  %3200 = vmatpush1.bf16.msra.mxu0 %v18619_v55  ;;  %3241 = vmatpush1.bf16.msra.mxu1 %v18624_v1  ;;  %23983 = vst [vmem:[#allocation71_spill] sm:$0xff] %v18643_v46  ;;  %v18648_v33 = vld [vmem:[%s23447_s5 + $0x108] ss:$16 sps:$4 sm:$0xff]   ;;  %v2043_v28 = vrot.slane %v2030_v15, %v17493_v60  ;;  %v18656_v62 = vld [vmem:[%s23447_s5 + $0x124] ss:$16 sps:$4 sm:$0xff]  }
 0x4cc   :  { %16758 = vtanh.f32 %v2472_v6  ;;  %23984 = vst [vmem:[#allocation72_spill] sm:$0xff] %v18648_v33  ;;  %3201 = vmatprep.subr.bf16.mxu0 %v18631_v27  ;;  %3242 = vmatprep.subr.bf16.mxu1 %v18636_v41  ;;  %23985 = vst [vmem:[#allocation73_spill] sm:$0xff] %v18656_v62  ;;  %v18661_v19 = vld [vmem:[%s23447_s5 + $0x12c] ss:$16 sps:$4 sm:$0xff]   ;;  %v18668_v15 = vld [vmem:[%s23447_s5 + $0x120] ss:$16 sps:$4 sm:$0xff]  }
 0x4cd   :  { %23986 = vst [vmem:[#allocation74_spill] sm:$0xff] %v18661_v19  ;;  %16760 = vtanh.f32 %v2473_v18  ;;  %23987 = vst [vmem:[#allocation75_spill] sm:$0xff] %v18668_v15  ;;  %v2448_v12 = vadd.f32 %v2447_v17, %v2043_v28  ;;  %v18680_v30 = vld [vmem:[%s23447_s5 + $0x144] ss:$16 sps:$4 sm:$0xff]   ;;  %v18685_v6 = vld [vmem:[%s23447_s5 + $0x14c] ss:$16 sps:$4 sm:$0xff]  }
 0x4ce   :  { %16762 = vtanh.f32 %v2450_v37  ;;  %23989 = vst [vmem:[#allocation77_spill] sm:$0xff] %v18680_v30  ;;  %23990 = vst [vmem:[#allocation78_spill] sm:$0xff] %v18685_v6  ;;  %v18692_v17 = vld [vmem:[%s23447_s5 + $0x140] ss:$16 sps:$4 sm:$0xff]   ;;  %v18697_v18 = vld [vmem:[%s23447_s5 + $0x148] ss:$16 sps:$4 sm:$0xff]  }
 0x4cf   :  { %3202 = vmatpush1.bf16.msra.mxu0 %v18643_v46  ;;  %3243 = vmatpush1.bf16.msra.mxu1 %v18648_v33  ;;  %23991 = vst [vmem:[#allocation79_spill] sm:$0xff] %v18692_v17  ;;  %23992 = vst [vmem:[#allocation80_spill] sm:$0xff] %v18697_v18  ;;  %v2474_v37 = vmul.f32 0.5, %v2448_v12  ;;  %v18704_v28 = vld [vmem:[%s23447_s5 + $0x164] ss:$16 sps:$4 sm:$0xff]  }
 0x4d0   :  { %3203 = vmatprep.subr.bf16.mxu0 %v18656_v62  ;;  %3244 = vmatprep.subr.bf16.mxu1 %v18661_v19  ;;  %v18716_v12 = vld [vmem:[%s23447_s5 + $0x160] ss:$16 sps:$4 sm:$0xff]  }
 0x4d1   :  { %16764 = vtanh.f32 %v2474_v37 }
 0x4d3   :  { %3204 = vmatpush1.bf16.msra.mxu0 %v18668_v15  ;;  %3245 = vmatpush1.bf16.msra.mxu1 %v18673_v20  ;;  %v18709_v20 = vld [vmem:[%s23447_s5 + $0x16c] ss:$16 sps:$4 sm:$0xff]  }
 0x4d4   :  { %3205 = vmatprep.subr.bf16.mxu0 %v18680_v30  ;;  %3246 = vmatprep.subr.bf16.mxu1 %v18685_v6  ;;  %v18721_v6 = vld [vmem:[%s23447_s5 + $0x168] ss:$16 sps:$4 sm:$0xff]  }
 0x4d6   :  { %v16759_v15 = vpop.eup %16758 }
 0x4d7   :  { %v2478_v19 = vmul.f32 0.5, %v16759_v15  ;;  %v16761_v62 = vpop.eup %16760  ;;  %3206 = vmatpush1.bf16.msra.mxu0 %v18692_v17  ;;  %3247 = vmatpush1.bf16.msra.mxu1 %v18697_v18  ;;  %v18728_v15 = vld [vmem:[%s23447_s5 + $0x184] ss:$16 sps:$4 sm:$0xff]   ;;  %v18733_v18 = vld [vmem:[%s23447_s5 + $0x18c] ss:$16 sps:$4 sm:$0xff]  }
 0x4d8   :  { %v2479_v33 = vmul.f32 0.5, %v16761_v62  ;;  %3207 = vmatprep.subr.bf16.mxu0 %v18704_v28  ;;  %3248 = vmatprep.subr.bf16.mxu1 %v18709_v20  ;;  %v16763_v17 = vpop.eup %16762  ;;  %v18740_v62 = vld [vmem:[%s23447_s5 + $0x180] ss:$16 sps:$4 sm:$0xff]  }
 0x4d9   :  { %v2481_v30 = vadd.f32 0.5, %v2478_v19  ;;  %23993 = vst [vmem:[#allocation81_spill] sm:$0xff] %v18740_v62  ;;  %v18745_v19 = vld [vmem:[%s23447_s5 + $0x188] ss:$16 sps:$4 sm:$0xff]  }
 0x4da   :  { %v2482_v46 = vadd.f32 0.5, %v2479_v33  ;;  %23994 = vst [vmem:[#allocation82_spill] sm:$0xff] %v18745_v19  ;;  %v18753_v33 = vld [vmem:[%s23447_s5 + $0x1a4] ss:$16 sps:$4 sm:$0xff]  }
 0x4db   :  { %v2486_v60 = vmul.f32 %v16763_v17, %v2481_v30  ;;  %3208 = vmatpush1.bf16.msra.mxu0 %v18716_v12  ;;  %3249 = vmatpush1.bf16.msra.mxu1 %v18721_v6  ;;  %23995 = vst [vmem:[#allocation83_spill] sm:$0xff] %v18753_v33  ;;  %v18758_v30 = vld [vmem:[%s23447_s5 + $0x1ac] ss:$16 sps:$4 sm:$0xff]  }
 0x4dc   :  { %v2485_v37 = vmul.f32 %v2482_v46, %v18313_v56  ;;  %3209 = vmatprep.subr.bf16.mxu0 %v18728_v15  ;;  %3250 = vmatprep.subr.bf16.mxu1 %v18733_v18  ;;  %23996 = vst [vmem:[#allocation84_spill] sm:$0xff] %v18758_v30  ;;  %v18767_v56 = vld [vmem:[%s23447_s5 + $0x1a0] ss:$16 sps:$4 sm:$0xff]   ;;  %v18772_v46 = vld [vmem:[%s23447_s5 + $0x1a8] ss:$16 sps:$4 sm:$0xff]  }
 0x4dd   :  { %23998 = vst [vmem:[#allocation86_spill] sm:$0xff] %v18767_v56  ;;  %23999 = vst [vmem:[#allocation87_spill] sm:$0xff] %v18772_v46 }
 0x4de   :  { %v18760_v17 = vadd.f32 %v2486_v60, %v2485_v37  ;;  %v18780_v60 = vld [vmem:[%s23447_s5 + $0x1c4] ss:$16 sps:$4 sm:$0xff]   ;;  %v18785_v37 = vld [vmem:[%s23447_s5 + $0x1cc] ss:$16 sps:$4 sm:$0xff]  }
 0x4df   :  { %3210 = vmatpush1.bf16.msra.mxu0 %v18740_v62  ;;  %3251 = vmatpush1.bf16.msra.mxu1 %v18745_v19  ;;  %24000 = vst [vmem:[#allocation88_spill] sm:$0xff] %v18780_v60  ;;  %24001 = vst [vmem:[#allocation89_spill] sm:$0xff] %v18785_v37  ;;  %v16765_v19 = vpop.eup %16764 }
 0x4e0   :  { %23997 = vst [vmem:[#allocation85_spill] sm:$0xff] %v18760_v17  ;;  %16766 = vtanh.f32 %v18760_v17  ;;  %3211 = vmatprep.subr.bf16.mxu0 %v18753_v33  ;;  %3252 = vmatprep.subr.bf16.mxu1 %v18758_v30  ;;  %v18792_v33 = vld [vmem:[%s23447_s5 + $0x1c0] ss:$16 sps:$4 sm:$0xff]   ;;  %v18797_v30 = vld [vmem:[%s23447_s5 + $0x1c8] ss:$16 sps:$4 sm:$0xff]   ;;  %v2480_v62 = vmul.f32 0.5, %v16765_v19 }
 0x4e1   :  { %24002 = vst [vmem:[#allocation90_spill] sm:$0xff] %v18792_v33  ;;  %24003 = vst [vmem:[#allocation91_spill] sm:$0xff] %v18797_v30 }
 0x4e2   :  { %v2483_v17 = vadd.f32 0.5, %v2480_v62  ;;  %v18913_v62 = vld [vmem:[%s23445_s3 + $0xa4] ss:$16 sps:$4 sm:$0xff]  }
 0x4e3   :  { %3212 = vmatpush1.bf16.msra.mxu0 %v18767_v56  ;;  %3253 = vmatpush1.bf16.msra.mxu1 %v18772_v46  ;;  %v18804_v56 = vld [vmem:[%s23447_s5 + $0x1e4] ss:$16 sps:$4 sm:$0xff]   ;;  %v18809_v46 = vld [vmem:[%s23447_s5 + $0x1ec] ss:$16 sps:$4 sm:$0xff]   ;;  %24018 = vst [vmem:[#allocation108_spill] sm:$0xff] %v18913_v62 }
 0x4e4   :  { %3213 = vmatprep.subr.bf16.mxu0 %v18780_v60  ;;  %3254 = vmatprep.subr.bf16.mxu1 %v18785_v37  ;;  %v18816_v60 = vld [vmem:[%s23447_s5 + $0x1e0] ss:$16 sps:$4 sm:$0xff]   ;;  %v18821_v37 = vld [vmem:[%s23447_s5 + $0x1e8] ss:$16 sps:$4 sm:$0xff]  }
 0x4e5   :  { %24004 = vst [vmem:[#allocation92_spill] sm:$0xff] %v18816_v60  ;;  %24005 = vst [vmem:[#allocation93_spill] sm:$0xff] %v18821_v37 }
 0x4e7   :  { %3214 = vmatpush1.bf16.msra.mxu0 %v18792_v33  ;;  %3255 = vmatpush1.bf16.msra.mxu1 %v18797_v30 }
 0x4e8   :  { %3215 = vmatprep.subr.bf16.mxu0 %v18804_v56  ;;  %3256 = vmatprep.subr.bf16.mxu1 %v18809_v46 }
 0x4ea   :  { %v16767_v19 = vpop.eup %16766 }
 0x4eb   :  { %3216 = vmatpush1.bf16.msra.mxu0 %v18816_v60  ;;  %3257 = vmatpush1.bf16.msra.mxu1 %v18821_v37  ;;  %v18827_v30 = vmul.f32 %v16767_v19, %v2483_v17  ;;  %v18923_v17 = vld [vmem:[%s23445_s3 + $0xac] ss:$16 sps:$4 sm:$0xff]   ;;  %v18928_v19 = vld [vmem:[%s23445_s3 + $0xc4] ss:$16 sps:$4 sm:$0xff]  }
 0x4ec   :  { %3546 = vmatprep.subr.bf16.mxu1 %v18354_v24  ;;  %v18848_v24 = vld [vmem:[%s23445_s3 + $0x4] ss:$16 sps:$4 sm:$0xff]   ;;  %24020 = vst [vmem:[#allocation112_spill] sm:$0xff] %v18923_v17  ;;  %24021 = vst [vmem:[#allocation114_spill] sm:$0xff] %v18928_v19 }
 0x4ed   :  { %24006 = vst [vmem:[#allocation94_spill] sm:$0xff] %v18827_v30  ;;  %v2778_v33 = vpack.c.bf16 %v18827_v30, %v18827_v30  ;;  %24007 = vst [vmem:[#allocation95_spill] sm:$0xff] %v18848_v24  ;;  %3505 = vmatprep.subr.bf16.mxu0 %v18848_v24  ;;  %v18934_v30 = vld [vmem:[%s23445_s3 + $0xcc] ss:$16 sps:$4 sm:$0xff]  }
 0x4ee   :  { %24022 = vst [vmem:[#allocation107_spill] sm:$0xff] %v18934_v30 }
 0x4ef   :  { %3217 = vmatprep.mubr.bf16.mxu0 %v2778_v33  ;;  %3258 = vmatprep.mubr.bf16.mxu1 %v2778_v33  ;;  %v18918_v33 = vld [vmem:[%s23445_s3 + $0xa8] ss:$16 sps:$4 sm:$0xff]  }
 0x4f0   :  { %3218 = vmatmul.mubr.bf16.vlgmr.msra.gmra.mrb[60].mxu0 %v18450_v22  ;;  %3259 = vmatmul.mubr.bf16.vlgmr.msra.gmra.mrb[68].mxu1 %v18450_v22  ;;  %v18908_v22 = vld [vmem:[%s23445_s3 + $0xa0] ss:$16 sps:$4 sm:$0xff]   ;;  %24019 = vst [vmem:[#allocation110_spill] sm:$0xff] %v18918_v33 }
 0x4f1   :  { %3547 = vmatpush1.bf16.msra.mxu1 %v18360_v13  ;;  %3537 = vmatprep.mubr.bf16.mxu0 %v23958_v23  ;;  %v18853_v13 = vld [vmem:[%s23445_s3] ss:$16 sps:$4 sm:$0xff]   ;;  %24017 = vst [vmem:[#allocation104_spill] sm:$0xff] %v18908_v22 }
 0x4f2   :  { %3548 = vmatprep.subr.bf16.mxu1 %v18368_v8  ;;  %3578 = vmatprep.mubr.bf16.mxu1 %v23958_v23  ;;  %24008 = vst [vmem:[#allocation96_spill] sm:$0xff] %v18853_v13  ;;  %v18860_v8 = vld [vmem:[%s23445_s3 + $0x24] ss:$16 sps:$4 sm:$0xff]  }
 0x4f3   :  { %3506 = vmatpush1.bf16.msra.mxu0 %v18853_v13  ;;  %24009 = vst [vmem:[#allocation97_spill] sm:$0xff] %v18860_v8 }
 0x4f4   :  { %3507 = vmatprep.subr.bf16.mxu0 %v18860_v8  ;;  %v24032_v8 = vld [vmem:[#allocation21_spill] sm:$0xff] }
 0x4f5   :  { %3549 = vmatpush1.bf16.msra.mxu1 %v18374_v53  ;;  %v18865_v53 = vld [vmem:[%s23445_s3 + $0x20] ss:$16 sps:$4 sm:$0xff]  }
 0x4f6   :  { %3550 = vmatprep.subr.bf16.mxu1 %v18381_v16  ;;  %24010 = vst [vmem:[#allocation98_spill] sm:$0xff] %v18865_v53  ;;  %v18872_v16 = vld [vmem:[%s23445_s3 + $0x44] ss:$16 sps:$4 sm:$0xff]  }
 0x4f7   :  { %3508 = vmatpush1.bf16.msra.mxu0 %v18865_v53  ;;  %24011 = vst [vmem:[#allocation99_spill] sm:$0xff] %v18872_v16  ;;  %v24031_v53 = vld [vmem:[#allocation20_spill] sm:$0xff] }
 0x4f8   :  { %3509 = vmatprep.subr.bf16.mxu0 %v18872_v16 }
 0x4f9   :  { %3551 = vmatpush1.bf16.msra.mxu1 %v18386_v50  ;;  %v18877_v50 = vld [vmem:[%s23445_s3 + $0x40] ss:$16 sps:$4 sm:$0xff]  }
 0x4fa   :  { %3552 = vmatprep.subr.bf16.mxu1 %v18393_v40  ;;  %24012 = vst [vmem:[#allocation100_spill] sm:$0xff] %v18877_v50  ;;  %v18884_v40 = vld [vmem:[%s23445_s3 + $0x64] ss:$16 sps:$4 sm:$0xff]  }
 0x4fb   :  { %3510 = vmatpush1.bf16.msra.mxu0 %v18877_v50  ;;  %24013 = vst [vmem:[#allocation101_spill] sm:$0xff] %v18884_v40 }
 0x4fc   :  { %3511 = vmatprep.subr.bf16.mxu0 %v18884_v40 }
 0x4fd   :  { %3553 = vmatpush1.bf16.msra.mxu1 %v18398_v7  ;;  %v18889_v7 = vld [vmem:[%s23445_s3 + $0x60] ss:$16 sps:$4 sm:$0xff]  }
 0x4fe   :  { %3554 = vmatprep.subr.bf16.mxu1 %v18405_v39  ;;  %24014 = vst [vmem:[#allocation102_spill] sm:$0xff] %v18889_v7  ;;  %v18896_v39 = vld [vmem:[%s23445_s3 + $0x84] ss:$16 sps:$4 sm:$0xff]  }
 0x4ff   :  { %3512 = vmatpush1.bf16.msra.mxu0 %v18889_v7  ;;  %24015 = vst [vmem:[#allocation103_spill] sm:$0xff] %v18896_v39  ;;  %v24030_v7 = vld [vmem:[#allocation19_spill] sm:$0xff] }
 0x500   :  { %3513 = vmatprep.subr.bf16.mxu0 %v18896_v39 }
 0x501   :  { %3555 = vmatpush1.bf16.msra.mxu1 %v18410_v36  ;;  %v18901_v36 = vld [vmem:[%s23445_s3 + $0x80] ss:$16 sps:$4 sm:$0xff]  }
 0x502   :  { %24016 = vst [vmem:[#allocation105_spill] sm:$0xff] %v18901_v36  ;;  %3556 = vmatprep.subr.bf16.mxu1 %v18923_v17  ;;  %v18954_v17 = vld [vmem:[%s23445_s3 + $0xe4] ss:$16 sps:$4 sm:$0xff]  }
 0x503   :  { %3514 = vmatpush1.bf16.msra.mxu0 %v18901_v36  ;;  %v18942_v36 = vld [vmem:[%s23445_s3 + $0xc0] ss:$16 sps:$4 sm:$0xff]   ;;  %24025 = vst [vmem:[#allocation111_spill] sm:$0xff] %v18954_v17 }
 0x504   :  { %3515 = vmatprep.subr.bf16.mxu0 %v18913_v62  ;;  %24023 = vst [vmem:[#allocation106_spill] sm:$0xff] %v18942_v36  ;;  %v18947_v62 = vld [vmem:[%s23445_s3 + $0xc8] ss:$16 sps:$4 sm:$0xff]  }
 0x505   :  { %3557 = vmatpush1.bf16.msra.mxu1 %v18918_v33  ;;  %24024 = vst [vmem:[#allocation109_spill] sm:$0xff] %v18947_v62  ;;  %v18959_v33 = vld [vmem:[%s23445_s3 + $0xec] ss:$16 sps:$4 sm:$0xff]  }
 0x506   :  { %3558 = vmatprep.subr.bf16.mxu1 %v18934_v30  ;;  %24026 = vst [vmem:[#allocation113_spill] sm:$0xff] %v18959_v33  ;;  %v18971_v30 = vld [vmem:[%s23445_s3 + $0xe8] ss:$16 sps:$4 sm:$0xff]  }
 0x507   :  { %3516 = vmatpush1.bf16.msra.mxu0 %v18908_v22  ;;  %24028 = vst [vmem:[#allocation14_spill] sm:$0xff] %v18971_v30  ;;  %v24029_v22 = vld [vmem:[#allocation18_spill] sm:$0xff] }
 0x508   :  { %3517 = vmatprep.subr.bf16.mxu0 %v18928_v19  ;;  %v18966_v19 = vld [vmem:[%s23445_s3 + $0xe0] ss:$16 sps:$4 sm:$0xff]  }
 0x509   :  { %3559 = vmatpush1.bf16.msra.mxu1 %v18947_v62  ;;  %24027 = vst [vmem:[#allocation115_spill] sm:$0xff] %v18966_v19 }
 0x50a   :  { %3560 = vmatprep.subr.bf16.mxu1 %v18959_v33 }
 0x50b   :  { %3518 = vmatpush1.bf16.msra.mxu0 %v18942_v36 }
 0x50c   :  { %3519 = vmatprep.subr.bf16.mxu0 %v18954_v17 }
 0x50d   :  { %3561 = vmatpush1.bf16.msra.mxu1 %v18971_v30 }
 0x50e   :  { %4039 = vmatprep.subr.bf16.mxu1 %v18428_v0 }
 0x50f   :  { %3520 = vmatpush1.bf16.msra.mxu0 %v18966_v19 }
 0x510   :  { %3998 = vmatprep.subr.bf16.mxu0 %v18423_v52 }
 0x581   :  { %v2726_v62 = vpop.f32.mrb[56].mxu0  ;;  %v2767_v36 = vpop.f32.mrb[64].mxu1 }
 0x582   :  { %v2774_v39 = vadd.f32 %v2726_v62, %v24029_v22  ;;  %v2776_v40 = vadd.f32 %v2767_v36, %v24030_v7  ;;  %v2728_v50 = vpop.f32.mrb[57].mxu0  ;;  %v2769_v16 = vpop.f32.mrb[65].mxu1 }
 0x583   :  { %v2775_v17 = vadd.f32 %v2728_v50, %v24031_v53  ;;  %v2777_v33 = vadd.f32 %v2769_v16, %v24032_v8  ;;  %v2730_v23 = vpop.f32.mrb[58].mxu0  ;;  %v2771_v19 = vpop.f32.mrb[66].mxu1 }
 0x584   :  { %v3267_v13 = vmul.f32 0.5, %v2774_v39  ;;  %v2731_v30 = vpop.f32.mrb[59].mxu0  ;;  %v2772_v24 = vpop.f32.mrb[67].mxu1  ;;  %v3269_v0 = vmul.f32 0.5, %v2776_v40 }
 0x585   :  { %v3268_v52 = vmul.f32 0.5, %v2775_v17 }
 0x586   :  { %16768 = vtanh.f32 %v3267_v13 }
 0x587   :  { %16770 = vtanh.f32 %v3268_v52 }
 0x588   :  { %16772 = vtanh.f32 %v2777_v33 }
 0x589   :  { %16774 = vtanh.f32 %v3269_v0 }
 0x590   :  { %v16769_v37 = vpop.eup %16768 }
 0x591   :  { %v3273_v22 = vmul.f32 0.5, %v16769_v37  ;;  %v16771_v62 = vpop.eup %16770 }
 0x592   :  { %v3274_v36 = vmul.f32 0.5, %v16771_v62  ;;  %v16773_v60 = vpop.eup %16772 }
 0x593   :  { %v3276_v7 = vadd.f32 0.5, %v3273_v22  ;;  %v16775_v30 = vpop.eup %16774  ;;  %v24045_v22 = vld [vmem:[#allocation85_spill] sm:$0xff] }
 0x594   :  { %v3277_v53 = vadd.f32 0.5, %v3274_v36  ;;  %v3275_v24 = vmul.f32 0.5, %v16775_v30  ;;  %v24048_v36 = vld [vmem:[#allocation83_spill] sm:$0xff]  ;;  %v24054_v30 = vld [vmem:[#allocation90_spill] sm:$0xff] }
 0x595   :  { %v3281_v50 = vmul.f32 %v16773_v60, %v3276_v7  ;;  %v24044_v60 = vld [vmem:[#allocation80_spill] sm:$0xff] }
 0x596   :  { %v3280_v23 = vmul.f32 %v3277_v53, %v18437_v51  ;;  %v3278_v13 = vadd.f32 0.5, %v3275_v24  ;;  %v2843_v51 = vld [vmem:[%s23448_s6] sm:$0xf]  ;;  %v24049_v53 = vld [vmem:[#allocation84_spill] sm:$0xff]  ;;  %v24055_v24 = vld [vmem:[#allocation91_spill] sm:$0xff] }
 0x598   :  { %v18984_v8 = vadd.f32 %v3281_v50, %v3280_v23  ;;  %v24053_v50 = vld [vmem:[#allocation89_spill] sm:$0xff] }
 0x59a   :  { %16776 = vtanh.f32 %v18984_v8 }
 0x5a4   :  { %v16777_v16 = vpop.eup %16776 }
 0x5a5   :  { %v3284_v40 = vmul.f32 %v16777_v16, %v3278_v13 }
 0x5a7   :  { %v18987_v39 = vpack.c.bf16 %v3284_v40, %v3284_v40  ;;  %v24056_v40 = vld [vmem:[#allocation92_spill] sm:$0xff] }
 0x5a9   :  { %3538 = vmatmul.mubr.bf16.vlgmr.msra.gmra.mrb[64].mxu0 %v18987_v39  ;;  %3579 = vmatmul.mubr.bf16.vlgmr.msra.gmra.mrb[72].mxu1 %v18987_v39 }
 0x5aa   :  { %3999 = vmatpush1.bf16.msra.mxu0 %v18443_v21  ;;  %4040 = vmatpush1.bf16.msra.mxu1 %v18448_v5  ;;  %v2848_v21 = vrot.slane %v2843_v51, %v17491_v59  ;;  %v2852_v5 = vrot.slane %v2843_v51, %v17495_v61 }
 0x5ab   :  { %4000 = vmatprep.subr.bf16.mxu0 %v18455_v63  ;;  %4041 = vmatprep.subr.bf16.mxu1 %v18460_v54 }
 0x5ae   :  { %4001 = vmatpush1.bf16.msra.mxu0 %v18469_v35  ;;  %4042 = vmatpush1.bf16.msra.mxu1 %v18474_v32 }
 0x5af   :  { %4002 = vmatprep.subr.bf16.mxu0 %v18481_v31  ;;  %4043 = vmatprep.subr.bf16.mxu1 %v18486_v9  ;;  %v24033_v31 = vld [vmem:[#allocation13_spill] sm:$0xff] }
 0x5b0   :  { %v2860_v9 = vrot.slane %v2843_v51, %v24033_v31 }
 0x5b2   :  { %4003 = vmatpush1.bf16.msra.mxu0 %v18493_v34  ;;  %4044 = vmatpush1.bf16.msra.mxu1 %v18498_v58 }
 0x5b3   :  { %4004 = vmatprep.subr.bf16.mxu0 %v18505_v3  ;;  %4045 = vmatprep.subr.bf16.mxu1 %v18510_v2 }
 0x5b6   :  { %4005 = vmatpush1.bf16.msra.mxu0 %v18517_v48  ;;  %4046 = vmatpush1.bf16.msra.mxu1 %v18522_v49 }
 0x5b7   :  { %4006 = vmatprep.subr.bf16.mxu0 %v18529_v25  ;;  %4047 = vmatprep.subr.bf16.mxu1 %v18534_v57 }
 0x5ba   :  { %4007 = vmatpush1.bf16.msra.mxu0 %v18541_v10  ;;  %4048 = vmatpush1.bf16.msra.mxu1 %v18546_v47  ;;  %v24034_v47 = vld [vmem:[#allocation11_spill] sm:$0xff] }
 0x5bb   :  { %4008 = vmatprep.subr.bf16.mxu0 %v18553_v11  ;;  %4049 = vmatprep.subr.bf16.mxu1 %v18558_v44  ;;  %v2856_v11 = vrot.slane %v2843_v51, %v24034_v47  ;;  %v24035_v44 = vld [vmem:[#allocation71_spill] sm:$0xff]  ;;  %v24057_v51 = vld [vmem:[#allocation93_spill] sm:$0xff] }
 0x5be   :  { %4009 = vmatpush1.bf16.msra.mxu0 %v18565_v14  ;;  %4050 = vmatpush1.bf16.msra.mxu1 %v18570_v42  ;;  %v24036_v14 = vld [vmem:[#allocation72_spill] sm:$0xff]  ;;  %v24037_v42 = vld [vmem:[#allocation73_spill] sm:$0xff] }
 0x5bf   :  { %4010 = vmatprep.subr.bf16.mxu0 %v18580_v26  ;;  %4051 = vmatprep.subr.bf16.mxu1 %v18585_v38  ;;  %v24038_v26 = vld [vmem:[#allocation74_spill] sm:$0xff] }
 0x5c2   :  { %4011 = vmatpush1.bf16.msra.mxu0 %v18593_v45  ;;  %4052 = vmatpush1.bf16.msra.mxu1 %v18598_v43  ;;  %v24039_v45 = vld [vmem:[#allocation75_spill] sm:$0xff]  ;;  %v24040_v43 = vld [vmem:[#allocation76_spill] sm:$0xff] }
 0x5c3   :  { %v3219_v63 = vpop.f32.mrb[60].mxu0  ;;  %v3260_v54 = vpop.f32.mrb[68].mxu1  ;;  %4012 = vmatprep.subr.bf16.mxu0 %v18606_v29  ;;  %4053 = vmatprep.subr.bf16.mxu1 %v18611_v4  ;;  %v24041_v29 = vld [vmem:[#allocation77_spill] sm:$0xff]  ;;  %v24042_v4 = vld [vmem:[#allocation78_spill] sm:$0xff] }
 0x5c4   :  { %v3220_v35 = vadd.f32 %v3219_v63, %v2848_v21  ;;  %v3221_v32 = vpop.f32.mrb[61].mxu0  ;;  %v3262_v34 = vpop.f32.mrb[69].mxu1  ;;  %v3261_v38 = vadd.f32 %v3260_v54, %v2856_v11  ;;  %v24062_v54 = vld [vmem:[#allocation97_spill] sm:$0xff]  ;;  %v24074_v11 = vld [vmem:[#allocation111_spill] sm:$0xff] }
 0x5c5   :  { %v3222_v58 = vadd.f32 %v3221_v32, %v2852_v5  ;;  %v3223_v3 = vpop.f32.mrb[62].mxu0  ;;  %v3264_v2 = vpop.f32.mrb[70].mxu1  ;;  %v3263_v10 = vadd.f32 %v3262_v34, %v2860_v9  ;;  %v24059_v5 = vld [vmem:[#allocation95_spill] sm:$0xff]  ;;  %v24065_v9 = vld [vmem:[#allocation100_spill] sm:$0xff]  ;;  %v24066_v34 = vld [vmem:[#allocation101_spill] sm:$0xff] }
 0x5c6   :  { %v3285_v48 = vmul.f32 0.5, %v3220_v35  ;;  %v3224_v49 = vpop.f32.mrb[63].mxu0  ;;  %v3265_v25 = vpop.f32.mrb[71].mxu1  ;;  %4013 = vmatpush1.bf16.msra.mxu0 %v18619_v55  ;;  %4054 = vmatpush1.bf16.msra.mxu1 %v18624_v1  ;;  %v3287_v55 = vmul.f32 0.5, %v3261_v38  ;;  %v24063_v35 = vld [vmem:[#allocation98_spill] sm:$0xff]  ;;  %v24064_v32 = vld [vmem:[#allocation99_spill] sm:$0xff] }
 0x5c7   :  { %v3286_v57 = vmul.f32 0.5, %v3222_v58  ;;  %4014 = vmatprep.subr.bf16.mxu0 %v18631_v27  ;;  %4055 = vmatprep.subr.bf16.mxu1 %v18636_v41  ;;  %v24043_v41 = vld [vmem:[#allocation79_spill] sm:$0xff]  ;;  %v24067_v58 = vld [vmem:[#allocation102_spill] sm:$0xff]  ;;  %v24070_v2 = vld [vmem:[#allocation108_spill] sm:$0xff] }
 0x5c8   :  { %16778 = vtanh.f32 %v3285_v48  ;;  %v24068_v3 = vld [vmem:[#allocation103_spill] sm:$0xff]  ;;  %v24071_v48 = vld [vmem:[#allocation104_spill] sm:$0xff]  ;;  %v24072_v49 = vld [vmem:[#allocation114_spill] sm:$0xff] }
 0x5c9   :  { %16780 = vtanh.f32 %v3286_v57  ;;  %v19088_v25 = vld [vmem:[%s23445_s3 + $0xc] ss:$16 sps:$4 sm:$0xff]   ;;  %v19093_v57 = vld [vmem:[%s23445_s3 + $0x8] ss:$16 sps:$4 sm:$0xff]  }
 0x5ca   :  { %4015 = vmatpush1.bf16.msra.mxu0 %v24035_v44  ;;  %4056 = vmatpush1.bf16.msra.mxu1 %v24036_v14  ;;  %16782 = vtanh.f32 %v3263_v10  ;;  %v24073_v10 = vld [vmem:[#allocation106_spill] sm:$0xff]  ;;  %v19102_v44 = vld [vmem:[%s23445_s3 + $0x2c] ss:$16 sps:$4 sm:$0xff]   ;;  %v19107_v14 = vld [vmem:[%s23445_s3 + $0x28] ss:$16 sps:$4 sm:$0xff]  }
 0x5cb   :  { %4016 = vmatprep.subr.bf16.mxu0 %v24037_v42  ;;  %4057 = vmatprep.subr.bf16.mxu1 %v24038_v26  ;;  %16784 = vtanh.f32 %v3287_v55  ;;  %v24075_v42 = vld [vmem:[#allocation115_spill] sm:$0xff]  ;;  %v24076_v55 = vld [vmem:[#allocation112_spill] sm:$0xff] }
 0x5cc   :  { %v19115_v26 = vld [vmem:[%s23445_s3 + $0x4c] ss:$16 sps:$4 sm:$0xff]   ;;  %v19120_v38 = vld [vmem:[%s23445_s3 + $0x48] ss:$16 sps:$4 sm:$0xff]  }
 0x5ce   :  { %4017 = vmatpush1.bf16.msra.mxu0 %v24039_v45  ;;  %4058 = vmatpush1.bf16.msra.mxu1 %v24040_v43  ;;  %v19127_v45 = vld [vmem:[%s23445_s3 + $0x6c] ss:$16 sps:$4 sm:$0xff]   ;;  %v19132_v43 = vld [vmem:[%s23445_s3 + $0x68] ss:$16 sps:$4 sm:$0xff]  }
 0x5cf   :  { %4018 = vmatprep.subr.bf16.mxu0 %v24041_v29  ;;  %4059 = vmatprep.subr.bf16.mxu1 %v24042_v4  ;;  %v19139_v29 = vld [vmem:[%s23445_s3 + $0x8c] ss:$16 sps:$4 sm:$0xff]   ;;  %v19144_v4 = vld [vmem:[%s23445_s3 + $0x88] ss:$16 sps:$4 sm:$0xff]  }
 0x5d2   :  { %v16779_v1 = vpop.eup %16778  ;;  %4019 = vmatpush1.bf16.msra.mxu0 %v24043_v41  ;;  %4060 = vmatpush1.bf16.msra.mxu1 %v24044_v60  ;;  %v24079_v41 = vld [vmem:[#allocation109_spill] sm:$0xff] }
 0x5d3   :  { %v3291_v27 = vmul.f32 0.5, %v16779_v1  ;;  %v16781_v37 = vpop.eup %16780  ;;  %4020 = vmatprep.subr.bf16.mxu0 %v18704_v28  ;;  %4061 = vmatprep.subr.bf16.mxu1 %v18709_v20  ;;  %v24046_v28 = vld [vmem:[#allocation81_spill] sm:$0xff]  ;;  %v24047_v20 = vld [vmem:[#allocation82_spill] sm:$0xff] }
 0x5d4   :  { %v3292_v17 = vmul.f32 0.5, %v16781_v37  ;;  %v16783_v19 = vpop.eup %16782  ;;  %v24077_v1 = vld [vmem:[#allocation110_spill] sm:$0xff]  ;;  %v24080_v60 = vld [vmem:[#allocation113_spill] sm:$0xff] }
 0x5d5   :  { %v3294_v33 = vadd.f32 0.5, %v3291_v27  ;;  %v24078_v27 = vld [vmem:[#allocation107_spill] sm:$0xff]  ;;  %v24081_v37 = vld [vmem:[#allocation14_spill] sm:$0xff] }
 0x5d6   :  { %v3295_v52 = vadd.f32 0.5, %v3292_v17  ;;  %4021 = vmatpush1.bf16.msra.mxu0 %v18716_v12  ;;  %4062 = vmatpush1.bf16.msra.mxu1 %v18721_v6  ;;  %v16785_v12 = vpop.eup %16784  ;;  %v24050_v6 = vld [vmem:[#allocation86_spill] sm:$0xff]  ;;  %v19162_v17 = vld [vmem:[%s23447_s5 + $0xc] ss:$16 sps:$4 sm:$0xff]  }
 0x5d7   :  { %v3299_v0 = vmul.f32 %v16783_v19, %v3294_v33  ;;  %4022 = vmatprep.subr.bf16.mxu0 %v18728_v15  ;;  %4063 = vmatprep.subr.bf16.mxu1 %v18733_v18  ;;  %v24051_v15 = vld [vmem:[#allocation87_spill] sm:$0xff]  ;;  %v24052_v18 = vld [vmem:[#allocation88_spill] sm:$0xff]  ;;  %v3293_v23 = vmul.f32 0.5, %v16785_v12 }
 0x5d8   :  { %v3298_v62 = vmul.f32 %v3295_v52, %v24045_v22  ;;  %v19157_v33 = vld [vmem:[%s23447_s5 + $0x4] ss:$16 sps:$4 sm:$0xff]  }
 0x5d9   :  { %v3296_v13 = vadd.f32 0.5, %v3293_v23 }
 0x5da   :  { %v19047_v7 = vadd.f32 %v3299_v0, %v3298_v62  ;;  %4023 = vmatpush1.bf16.msra.mxu0 %v24046_v28  ;;  %4064 = vmatpush1.bf16.msra.mxu1 %v24047_v20  ;;  %v24082_v0 = vld [vmem:[#allocation22_spill] sm:$0xff]  ;;  %v24083_v62 = vld [vmem:[#allocation23_spill] sm:$0xff] }
 0x5db   :  { %4024 = vmatprep.subr.bf16.mxu0 %v24048_v36  ;;  %4065 = vmatprep.subr.bf16.mxu1 %v24049_v53  ;;  %v24084_v53 = vld [vmem:[#allocation24_spill] sm:$0xff] }
 0x5dc   :  { %16786 = vtanh.f32 %v19047_v7 }
 0x5de   :  { %4025 = vmatpush1.bf16.msra.mxu0 %v24050_v6  ;;  %4066 = vmatpush1.bf16.msra.mxu1 %v24051_v15  ;;  %v24085_v6 = vld [vmem:[#allocation25_spill] sm:$0xff] }
 0x5df   :  { %4026 = vmatprep.subr.bf16.mxu0 %v24052_v18  ;;  %4067 = vmatprep.subr.bf16.mxu1 %v24053_v50 }
 0x5e2   :  { %4027 = vmatpush1.bf16.msra.mxu0 %v24054_v30  ;;  %4068 = vmatpush1.bf16.msra.mxu1 %v24055_v24 }
 0x5e3   :  { %4028 = vmatprep.subr.bf16.mxu0 %v18804_v56  ;;  %4069 = vmatprep.subr.bf16.mxu1 %v18809_v46  ;;  %v24060_v56 = vld [vmem:[#allocation96_spill] sm:$0xff]  ;;  %v24061_v46 = vmov 0  }
 0x5e6   :  { %v16787_v16 = vpop.eup %16786  ;;  %4029 = vmatpush1.bf16.msra.mxu0 %v24056_v40  ;;  %4070 = vmatpush1.bf16.msra.mxu1 %v24057_v51 }
 0x5e7   :  { %v19064_v21 = vmul.f32 %v16787_v16, %v3296_v13  ;;  %4318 = vmatprep.subr.bf16.mxu0 %v24059_v5  ;;  %4359 = vmatprep.subr.bf16.mxu1 %v19088_v25 }
 0x5e9   :  { %24058 = vst [vmem:[#allocation15_spill] sm:$0xff] %v19064_v21  ;;  %v3591_v63 = vpack.c.bf16 %v19064_v21, %v19064_v21 }
 0x5eb   :  { %4030 = vmatprep.mubr.bf16.mxu0 %v3591_v63  ;;  %4071 = vmatprep.mubr.bf16.mxu1 %v3591_v63 }
 0x5ec   :  { %4031 = vmatmul.mubr.bf16.vlgmr.msra.gmra.mrb[68].mxu0 %v18987_v39  ;;  %4072 = vmatmul.mubr.bf16.vlgmr.msra.gmra.mrb[76].mxu1 %v18987_v39  ;;  %v24069_v39 = vld [vmem:[#allocation105_spill] sm:$0xff] }
 0x5ed   :  { %4319 = vmatpush1.bf16.msra.mxu0 %v24060_v56  ;;  %4350 = vmatprep.mubr.bf16.mxu0 %v24061_v46 }
 0x5ee   :  { %4320 = vmatprep.subr.bf16.mxu0 %v24062_v54  ;;  %4391 = vmatprep.mubr.bf16.mxu1 %v24061_v46 }
 0x5ef   :  { %4360 = vmatpush1.bf16.msra.mxu1 %v19093_v57 }
 0x5f0   :  { %4361 = vmatprep.subr.bf16.mxu1 %v19102_v44 }
 0x5f1   :  { %4321 = vmatpush1.bf16.msra.mxu0 %v24063_v35 }
 0x5f2   :  { %4322 = vmatprep.subr.bf16.mxu0 %v24064_v32 }
 0x5f3   :  { %4362 = vmatpush1.bf16.msra.mxu1 %v19107_v14 }
 0x5f4   :  { %4363 = vmatprep.subr.bf16.mxu1 %v19115_v26 }
 0x5f5   :  { %4323 = vmatpush1.bf16.msra.mxu0 %v24065_v9 }
 0x5f6   :  { %4324 = vmatprep.subr.bf16.mxu0 %v24066_v34 }
 0x5f7   :  { %4364 = vmatpush1.bf16.msra.mxu1 %v19120_v38 }
 0x5f8   :  { %4365 = vmatprep.subr.bf16.mxu1 %v19127_v45 }
 0x5f9   :  { %4325 = vmatpush1.bf16.msra.mxu0 %v24067_v58 }
 0x5fa   :  { %4326 = vmatprep.subr.bf16.mxu0 %v24068_v3 }
 0x5fb   :  { %4366 = vmatpush1.bf16.msra.mxu1 %v19132_v43 }
 0x5fc   :  { %4367 = vmatprep.subr.bf16.mxu1 %v19139_v29 }
 0x5fd   :  { %4327 = vmatpush1.bf16.msra.mxu0 %v24069_v39 }
 0x5fe   :  { %4328 = vmatprep.subr.bf16.mxu0 %v24070_v2 }
 0x5ff   :  { %4368 = vmatpush1.bf16.msra.mxu1 %v19144_v4 }
 0x600   :  { %4369 = vmatprep.subr.bf16.mxu1 %v24076_v55  ;;  %v19203_v55 = vld [vmem:[%s23447_s5 + $0x20] ss:$16 sps:$4 sm:$0xff]  }
 0x601   :  { %4329 = vmatpush1.bf16.msra.mxu0 %v24071_v48 }
 0x602   :  { %4330 = vmatprep.subr.bf16.mxu0 %v24072_v49  ;;  %v19177_v49 = vld [vmem:[%s23447_s5] ss:$16 sps:$4 sm:$0xff]  }
 0x603   :  { %4370 = vmatpush1.bf16.msra.mxu1 %v24077_v1  ;;  %v19208_v1 = vld [vmem:[%s23447_s5 + $0x28] ss:$16 sps:$4 sm:$0xff]  }
 0x604   :  { %4371 = vmatprep.subr.bf16.mxu1 %v24078_v27  ;;  %v19215_v27 = vld [vmem:[%s23447_s5 + $0x44] ss:$16 sps:$4 sm:$0xff]  }
 0x605   :  { %4331 = vmatpush1.bf16.msra.mxu0 %v24073_v10  ;;  %v19182_v10 = vld [vmem:[%s23447_s5 + $0x8] ss:$16 sps:$4 sm:$0xff]  }
 0x606   :  { %4332 = vmatprep.subr.bf16.mxu0 %v24074_v11  ;;  %v19189_v11 = vld [vmem:[%s23447_s5 + $0x24] ss:$16 sps:$4 sm:$0xff]  }
 0x607   :  { %4372 = vmatpush1.bf16.msra.mxu1 %v24079_v41  ;;  %v19220_v41 = vld [vmem:[%s23447_s5 + $0x4c] ss:$16 sps:$4 sm:$0xff]  }
 0x608   :  { %4373 = vmatprep.subr.bf16.mxu1 %v24080_v60  ;;  %v19227_v60 = vld [vmem:[%s23447_s5 + $0x40] ss:$16 sps:$4 sm:$0xff]  }
 0x609   :  { %4333 = vmatpush1.bf16.msra.mxu0 %v24075_v42  ;;  %v19194_v42 = vld [vmem:[%s23447_s5 + $0x2c] ss:$16 sps:$4 sm:$0xff]  }
 0x60a   :  { %4811 = vmatprep.subr.bf16.mxu0 %v19157_v33 }
 0x60b   :  { %4374 = vmatpush1.bf16.msra.mxu1 %v24081_v37  ;;  %v19232_v37 = vld [vmem:[%s23447_s5 + $0x48] ss:$16 sps:$4 sm:$0xff]  }
 0x60c   :  { %4852 = vmatprep.subr.bf16.mxu1 %v19162_v17 }
 0x67c   :  { %v3539_v19 = vpop.f32.mrb[64].mxu0  ;;  %v3580_v52 = vpop.f32.mrb[72].mxu1 }
 0x67d   :  { %v3587_v22 = vadd.f32 %v3539_v19, %v24082_v0  ;;  %v3589_v28 = vadd.f32 %v3580_v52, %v24083_v62  ;;  %v3541_v20 = vpop.f32.mrb[65].mxu0  ;;  %v3582_v36 = vpop.f32.mrb[73].mxu1  ;;  %v19239_v19 = vld [vmem:[%s23447_s5 + $0x64] ss:$16 sps:$4 sm:$0xff]   ;;  %v19244_v52 = vld [vmem:[%s23447_s5 + $0x6c] ss:$16 sps:$4 sm:$0xff]  }
 0x67e   :  { %v3588_v12 = vadd.f32 %v3541_v20, %v24084_v53  ;;  %v3590_v15 = vadd.f32 %v3582_v36, %v24085_v6  ;;  %v3543_v18 = vpop.f32.mrb[66].mxu0  ;;  %v3584_v50 = vpop.f32.mrb[74].mxu1  ;;  %v19251_v0 = vld [vmem:[%s23447_s5 + $0x60] ss:$16 sps:$4 sm:$0xff]   ;;  %v19263_v62 = vld [vmem:[%s23447_s5 + $0x84] ss:$16 sps:$4 sm:$0xff]  }
 0x67f   :  { %v4080_v23 = vmul.f32 0.5, %v3587_v22  ;;  %v3544_v30 = vpop.f32.mrb[67].mxu0  ;;  %v3585_v24 = vpop.f32.mrb[75].mxu1  ;;  %v4082_v16 = vmul.f32 0.5, %v3589_v28  ;;  %v19256_v22 = vld [vmem:[%s23447_s5 + $0x68] ss:$16 sps:$4 sm:$0xff]  }
 0x680   :  { %v4081_v13 = vmul.f32 0.5, %v3588_v12  ;;  %v19268_v28 = vld [vmem:[%s23447_s5 + $0x8c] ss:$16 sps:$4 sm:$0xff]   ;;  %v19275_v20 = vld [vmem:[%s23447_s5 + $0x80] ss:$16 sps:$4 sm:$0xff]  }
 0x681   :  { %16788 = vtanh.f32 %v4080_v23  ;;  %v19280_v36 = vld [vmem:[%s23447_s5 + $0x88] ss:$16 sps:$4 sm:$0xff]   ;;  %v19287_v53 = vld [vmem:[%s23447_s5 + $0xa4] ss:$16 sps:$4 sm:$0xff]   ;;  %v19292_v12 = vld [vmem:[%s23447_s5 + $0xac] ss:$16 sps:$4 sm:$0xff]  }
 0x682   :  { %16790 = vtanh.f32 %v4081_v13  ;;  %v19299_v6 = vld [vmem:[%s23447_s5 + $0xa0] ss:$16 sps:$4 sm:$0xff]   ;;  %v19311_v18 = vld [vmem:[%s23447_s5 + $0xc4] ss:$16 sps:$4 sm:$0xff]   ;;  %v19316_v50 = vld [vmem:[%s23447_s5 + $0xcc] ss:$16 sps:$4 sm:$0xff]  }
 0x683   :  { %16792 = vtanh.f32 %v3590_v15  ;;  %v19304_v15 = vld [vmem:[%s23447_s5 + $0xa8] ss:$16 sps:$4 sm:$0xff]   ;;  %v3656_v23 = vld [vmem:[%s23448_s6] sm:$0xf]  ;;  %v19338_v13 = vld [vmem:[%s23447_s5 + $0xe4] ss:$16 sps:$4 sm:$0xff]  }
 0x684   :  { %16794 = vtanh.f32 %v4082_v16  ;;  %v19326_v30 = vld [vmem:[%s23447_s5 + $0xc0] ss:$16 sps:$4 sm:$0xff]   ;;  %v19331_v24 = vld [vmem:[%s23447_s5 + $0xc8] ss:$16 sps:$4 sm:$0xff]   ;;  %24088 = vst [vmem:[#allocation18_spill] sm:$0xff] %v19338_v13 }
 0x685   :  { %24086 = vst [vmem:[#allocation16_spill] sm:$0xff] %v19326_v30  ;;  %24087 = vst [vmem:[#allocation17_spill] sm:$0xff] %v19331_v24  ;;  %v19343_v16 = vld [vmem:[%s23447_s5 + $0xec] ss:$16 sps:$4 sm:$0xff]  }
 0x686   :  { %24089 = vst [vmem:[#allocation19_spill] sm:$0xff] %v19343_v16 }
 0x68b   :  { %v16789_v40 = vpop.eup %16788 }
 0x68c   :  { %v4086_v51 = vmul.f32 0.5, %v16789_v40  ;;  %v16791_v5 = vpop.eup %16790  ;;  %v3661_v40 = vrot.slane %v3656_v23, %v17491_v59 }
 0x68d   :  { %v4087_v56 = vmul.f32 0.5, %v16791_v5  ;;  %v16793_v54 = vpop.eup %16792  ;;  %v19352_v5 = vld [vmem:[%s23447_s5 + $0xe0] ss:$16 sps:$4 sm:$0xff]  }
 0x68e   :  { %v4089_v63 = vadd.f32 0.5, %v4086_v51  ;;  %v16795_v58 = vpop.eup %16794  ;;  %v3665_v51 = vrot.slane %v3656_v23, %v17495_v61 }
 0x68f   :  { %v4090_v35 = vadd.f32 0.5, %v4087_v56  ;;  %v4088_v3 = vmul.f32 0.5, %v16795_v58 }
 0x690   :  { %v4094_v32 = vmul.f32 %v16793_v54, %v4089_v63  ;;  %v19357_v63 = vld [vmem:[%s23447_s5 + $0xe8] ss:$16 sps:$4 sm:$0xff]  }
 0x691   :  { %v4093_v9 = vmul.f32 %v4090_v35, %v18984_v8  ;;  %v4091_v39 = vadd.f32 0.5, %v4088_v3  ;;  %v19364_v35 = vld [vmem:[%s23447_s5 + $0x104] ss:$16 sps:$4 sm:$0xff]   ;;  %v3673_v3 = vrot.slane %v3656_v23, %v24033_v31 }
 0x693   :  { %v19171_v34 = vadd.f32 %v4094_v32, %v4093_v9  ;;  %v19369_v32 = vld [vmem:[%s23447_s5 + $0x10c] ss:$16 sps:$4 sm:$0xff]  }
 0x695   :  { %16796 = vtanh.f32 %v19171_v34 }
 0x69f   :  { %v16797_v2 = vpop.eup %16796 }
 0x6a0   :  { %v4097_v48 = vmul.f32 %v16797_v2, %v4091_v39 }
 0x6a2   :  { %v19184_v8 = vpack.c.bf16 %v4097_v48, %v4097_v48 }
 0x6a4   :  { %4351 = vmatmul.mubr.bf16.vlgmr.msra.gmra.mrb[72].mxu0 %v19184_v8  ;;  %4392 = vmatmul.mubr.bf16.vlgmr.msra.gmra.mrb[80].mxu1 %v19184_v8 }
 0x6a5   :  { %4812 = vmatpush1.bf16.msra.mxu0 %v19177_v49  ;;  %4853 = vmatpush1.bf16.msra.mxu1 %v19182_v10 }
 0x6a6   :  { %4813 = vmatprep.subr.bf16.mxu0 %v19189_v11  ;;  %4854 = vmatprep.subr.bf16.mxu1 %v19194_v42 }
 0x6a9   :  { %4814 = vmatpush1.bf16.msra.mxu0 %v19203_v55  ;;  %4855 = vmatpush1.bf16.msra.mxu1 %v19208_v1 }
 0x6aa   :  { %4815 = vmatprep.subr.bf16.mxu0 %v19215_v27  ;;  %4856 = vmatprep.subr.bf16.mxu1 %v19220_v41 }
 0x6ad   :  { %4816 = vmatpush1.bf16.msra.mxu0 %v19227_v60  ;;  %4857 = vmatpush1.bf16.msra.mxu1 %v19232_v37 }
 0x6ae   :  { %4817 = vmatprep.subr.bf16.mxu0 %v19239_v19  ;;  %4858 = vmatprep.subr.bf16.mxu1 %v19244_v52 }
 0x6b1   :  { %4818 = vmatpush1.bf16.msra.mxu0 %v19251_v0  ;;  %4859 = vmatpush1.bf16.msra.mxu1 %v19256_v22 }
 0x6b2   :  { %4819 = vmatprep.subr.bf16.mxu0 %v19263_v62  ;;  %4860 = vmatprep.subr.bf16.mxu1 %v19268_v28 }
 0x6b5   :  { %4820 = vmatpush1.bf16.msra.mxu0 %v19275_v20  ;;  %4861 = vmatpush1.bf16.msra.mxu1 %v19280_v36 }
 0x6b6   :  { %4821 = vmatprep.subr.bf16.mxu0 %v19287_v53  ;;  %4862 = vmatprep.subr.bf16.mxu1 %v19292_v12 }
 0x6b9   :  { %4822 = vmatpush1.bf16.msra.mxu0 %v19299_v6  ;;  %4863 = vmatpush1.bf16.msra.mxu1 %v19304_v15 }
 0x6ba   :  { %4823 = vmatprep.subr.bf16.mxu0 %v19311_v18  ;;  %4864 = vmatprep.subr.bf16.mxu1 %v19316_v50 }
 0x6bd   :  { %4824 = vmatpush1.bf16.msra.mxu0 %v19326_v30  ;;  %4865 = vmatpush1.bf16.msra.mxu1 %v19331_v24 }
 0x6be   :  { %4825 = vmatprep.subr.bf16.mxu0 %v19338_v13  ;;  %4866 = vmatprep.subr.bf16.mxu1 %v19343_v16  ;;  %v19375_v16 = vld [vmem:[%s23447_s5 + $0x100] ss:$16 sps:$4 sm:$0xff]  }
 0x6bf   :  { %v4032_v56 = vpop.f32.mrb[68].mxu0  ;;  %v4073_v54 = vpop.f32.mrb[76].mxu1 }
 0x6c0   :  { %v4033_v9 = vadd.f32 %v4032_v56, %v3661_v40  ;;  %v4034_v58 = vpop.f32.mrb[69].mxu0  ;;  %v4075_v39 = vpop.f32.mrb[77].mxu1  ;;  %v19382_v40 = vld [vmem:[%s23447_s5 + $0x108] ss:$16 sps:$4 sm:$0xff]   ;;  %v3669_v56 = vrot.slane %v3656_v23, %v24034_v47  ;;  %v19414_v23 = vld [vmem:[%s23447_s5 + $0x144] ss:$16 sps:$4 sm:$0xff]  }
 0x6c1   :  { %v4035_v2 = vadd.f32 %v4034_v58, %v3665_v51  ;;  %v4036_v48 = vpop.f32.mrb[70].mxu0  ;;  %v4077_v21 = vpop.f32.mrb[78].mxu1  ;;  %4826 = vmatpush1.bf16.msra.mxu0 %v19352_v5  ;;  %4867 = vmatpush1.bf16.msra.mxu1 %v19357_v63  ;;  %v19407_v58 = vld [vmem:[%s23447_s5 + $0x128] ss:$16 sps:$4 sm:$0xff]   ;;  %24094 = vst [vmem:[#allocation73_spill] sm:$0xff] %v19414_v23 }
 0x6c2   :  { %v4098_v13 = vmul.f32 0.5, %v4033_v9  ;;  %v4037_v24 = vpop.f32.mrb[71].mxu0  ;;  %v4078_v30 = vpop.f32.mrb[79].mxu1  ;;  %4827 = vmatprep.subr.bf16.mxu0 %v19364_v35  ;;  %4868 = vmatprep.subr.bf16.mxu1 %v19369_v32  ;;  %v19389_v21 = vld [vmem:[%s23447_s5 + $0x124] ss:$16 sps:$4 sm:$0xff]   ;;  %24093 = vst [vmem:[#allocation72_spill] sm:$0xff] %v19407_v58 }
 0x6c3   :  { %v4099_v51 = vmul.f32 0.5, %v4035_v2  ;;  %24090 = vst [vmem:[#allocation20_spill] sm:$0xff] %v19389_v21  ;;  %v19394_v30 = vld [vmem:[%s23447_s5 + $0x12c] ss:$16 sps:$4 sm:$0xff]   ;;  %v4076_v24 = vadd.f32 %v4075_v39, %v3673_v3  ;;  %v19402_v9 = vld [vmem:[%s23447_s5 + $0x120] ss:$16 sps:$4 sm:$0xff]   ;;  %v4074_v3 = vadd.f32 %v4073_v54, %v3669_v56 }
 0x6c4   :  { %24091 = vst [vmem:[#allocation21_spill] sm:$0xff] %v19394_v30  ;;  %16798 = vtanh.f32 %v4098_v13  ;;  %24092 = vst [vmem:[#allocation71_spill] sm:$0xff] %v19402_v9  ;;  %v19419_v13 = vld [vmem:[%s23447_s5 + $0x14c] ss:$16 sps:$4 sm:$0xff]   ;;  %v19426_v39 = vld [vmem:[%s23447_s5 + $0x140] ss:$16 sps:$4 sm:$0xff]  }
 0x6c5   :  { %16800 = vtanh.f32 %v4099_v51  ;;  %4828 = vmatpush1.bf16.msra.mxu0 %v19375_v16  ;;  %4869 = vmatpush1.bf16.msra.mxu1 %v19382_v40  ;;  %24095 = vst [vmem:[#allocation74_spill] sm:$0xff] %v19419_v13  ;;  %24096 = vst [vmem:[#allocation75_spill] sm:$0xff] %v19426_v39  ;;  %v19431_v2 = vld [vmem:[%s23447_s5 + $0x148] ss:$16 sps:$4 sm:$0xff]   ;;  %v19438_v54 = vld [vmem:[%s23447_s5 + $0x164] ss:$16 sps:$4 sm:$0xff]  }
 0x6c6   :  { %4829 = vmatprep.subr.bf16.mxu0 %v19389_v21  ;;  %4870 = vmatprep.subr.bf16.mxu1 %v19394_v30  ;;  %16802 = vtanh.f32 %v4076_v24  ;;  %24097 = vst [vmem:[#allocation76_spill] sm:$0xff] %v19431_v2  ;;  %24098 = vst [vmem:[#allocation77_spill] sm:$0xff] %v19438_v54  ;;  %v19443_v48 = vld [vmem:[%s23447_s5 + $0x16c] ss:$16 sps:$4 sm:$0xff]   ;;  %v4100_v51 = vmul.f32 0.5, %v4074_v3 }
 0x6c7   :  { %24099 = vst [vmem:[#allocation78_spill] sm:$0xff] %v19443_v48  ;;  %v19450_v56 = vld [vmem:[%s23447_s5 + $0x160] ss:$16 sps:$4 sm:$0xff]   ;;  %v19462_v3 = vld [vmem:[%s23447_s5 + $0x184] ss:$16 sps:$4 sm:$0xff]  }
 0x6c8   :  { %16804 = vtanh.f32 %v4100_v51 }
 0x6c9   :  { %4830 = vmatpush1.bf16.msra.mxu0 %v19402_v9  ;;  %4871 = vmatpush1.bf16.msra.mxu1 %v19407_v58 }
 0x6ca   :  { %4831 = vmatprep.subr.bf16.mxu0 %v19414_v23  ;;  %4872 = vmatprep.subr.bf16.mxu1 %v19419_v13  ;;  %v19455_v13 = vld [vmem:[%s23447_s5 + $0x168] ss:$16 sps:$4 sm:$0xff]  }
 0x6cd   :  { %4832 = vmatpush1.bf16.msra.mxu0 %v19426_v39  ;;  %4873 = vmatpush1.bf16.msra.mxu1 %v19431_v2  ;;  %v19467_v2 = vld [vmem:[%s23447_s5 + $0x18c] ss:$16 sps:$4 sm:$0xff]  }
 0x6ce   :  { %v16799_v24 = vpop.eup %16798  ;;  %4833 = vmatprep.subr.bf16.mxu0 %v19438_v54  ;;  %4874 = vmatprep.subr.bf16.mxu1 %v19443_v48  ;;  %v19479_v48 = vld [vmem:[%s23447_s5 + $0x188] ss:$16 sps:$4 sm:$0xff]  }
 0x6cf   :  { %v4104_v23 = vmul.f32 0.5, %v16799_v24  ;;  %v16801_v39 = vpop.eup %16800  ;;  %v19474_v24 = vld [vmem:[%s23447_s5 + $0x180] ss:$16 sps:$4 sm:$0xff]   ;;  %24100 = vst [vmem:[#allocation79_spill] sm:$0xff] %v19479_v48 }
 0x6d0   :  { %v4105_v9 = vmul.f32 0.5, %v16801_v39  ;;  %v16803_v30 = vpop.eup %16802  ;;  %v19491_v39 = vld [vmem:[%s23447_s5 + $0x1ac] ss:$16 sps:$4 sm:$0xff]  }
 0x6d1   :  { %v4107_v58 = vadd.f32 0.5, %v4104_v23  ;;  %4834 = vmatpush1.bf16.msra.mxu0 %v19450_v56  ;;  %4875 = vmatpush1.bf16.msra.mxu1 %v19455_v13  ;;  %v19486_v23 = vld [vmem:[%s23447_s5 + $0x1a4] ss:$16 sps:$4 sm:$0xff]   ;;  %24102 = vst [vmem:[#allocation85_spill] sm:$0xff] %v19491_v39 }
 0x6d2   :  { %v4108_v54 = vadd.f32 0.5, %v4105_v9  ;;  %4835 = vmatprep.subr.bf16.mxu0 %v19462_v3  ;;  %4876 = vmatprep.subr.bf16.mxu1 %v19467_v2  ;;  %24101 = vst [vmem:[#allocation80_spill] sm:$0xff] %v19486_v23  ;;  %v19504_v9 = vld [vmem:[%s23447_s5 + $0x1a8] ss:$16 sps:$4 sm:$0xff]  }
 0x6d3   :  { %v4112_v21 = vmul.f32 %v16803_v30, %v4107_v58  ;;  %v19499_v30 = vld [vmem:[%s23447_s5 + $0x1a0] ss:$16 sps:$4 sm:$0xff]   ;;  %24104 = vst [vmem:[#allocation82_spill] sm:$0xff] %v19504_v9 }
 0x6d4   :  { %v4111_v51 = vmul.f32 %v4108_v54, %v19047_v7  ;;  %24103 = vst [vmem:[#allocation81_spill] sm:$0xff] %v19499_v30  ;;  %v19513_v7 = vld [vmem:[%s23447_s5 + $0x1c4] ss:$16 sps:$4 sm:$0xff]   ;;  %v19518_v54 = vld [vmem:[%s23447_s5 + $0x1cc] ss:$16 sps:$4 sm:$0xff]  }
 0x6d5   :  { %4836 = vmatpush1.bf16.msra.mxu0 %v19474_v24  ;;  %4877 = vmatpush1.bf16.msra.mxu1 %v19479_v48  ;;  %24105 = vst [vmem:[#allocation83_spill] sm:$0xff] %v19513_v7  ;;  %24106 = vst [vmem:[#allocation84_spill] sm:$0xff] %v19518_v54 }
 0x6d6   :  { %v19506_v58 = vadd.f32 %v4112_v21, %v4111_v51  ;;  %4837 = vmatprep.subr.bf16.mxu0 %v19486_v23  ;;  %4878 = vmatprep.subr.bf16.mxu1 %v19491_v39  ;;  %v19526_v21 = vld [vmem:[%s23447_s5 + $0x1c0] ss:$16 sps:$4 sm:$0xff]   ;;  %v19531_v51 = vld [vmem:[%s23447_s5 + $0x1c8] ss:$16 sps:$4 sm:$0xff]   ;;  %v16805_v39 = vpop.eup %16804 }
 0x6d7   :  { %24107 = vst [vmem:[#allocation86_spill] sm:$0xff] %v19526_v21  ;;  %24108 = vst [vmem:[#allocation87_spill] sm:$0xff] %v19531_v51  ;;  %v4106_v23 = vmul.f32 0.5, %v16805_v39 }
 0x6d8   :  { %16806 = vtanh.f32 %v19506_v58 }
 0x6d9   :  { %4838 = vmatpush1.bf16.msra.mxu0 %v19499_v30  ;;  %4879 = vmatpush1.bf16.msra.mxu1 %v19504_v9  ;;  %v19538_v30 = vld [vmem:[%s23447_s5 + $0x1e4] ss:$16 sps:$4 sm:$0xff]   ;;  %v19543_v9 = vld [vmem:[%s23447_s5 + $0x1ec] ss:$16 sps:$4 sm:$0xff]   ;;  %v4109_v48 = vadd.f32 0.5, %v4106_v23 }
 0x6da   :  { %4839 = vmatprep.subr.bf16.mxu0 %v19513_v7  ;;  %4880 = vmatprep.subr.bf16.mxu1 %v19518_v54  ;;  %v19550_v7 = vld [vmem:[%s23447_s5 + $0x1e0] ss:$16 sps:$4 sm:$0xff]   ;;  %v19555_v54 = vld [vmem:[%s23447_s5 + $0x1e8] ss:$16 sps:$4 sm:$0xff]  }
 0x6db   :  { %24109 = vst [vmem:[#allocation88_spill] sm:$0xff] %v19550_v7  ;;  %24110 = vst [vmem:[#allocation89_spill] sm:$0xff] %v19555_v54  ;;  %v19652_v23 = vld [vmem:[%s23445_s3 + $0xa8] ss:$16 sps:$4 sm:$0xff]  }
 0x6dc   :  { %24124 = vst [vmem:[#allocation105_spill] sm:$0xff] %v19652_v23 }
 0x6dd   :  { %4840 = vmatpush1.bf16.msra.mxu0 %v19526_v21  ;;  %4881 = vmatpush1.bf16.msra.mxu1 %v19531_v51 }
 0x6de   :  { %4841 = vmatprep.subr.bf16.mxu0 %v19538_v30  ;;  %4882 = vmatprep.subr.bf16.mxu1 %v19543_v9 }
 0x6e1   :  { %4842 = vmatpush1.bf16.msra.mxu0 %v19550_v7  ;;  %4883 = vmatpush1.bf16.msra.mxu1 %v19555_v54 }
 0x6e2   :  { %v16807_v39 = vpop.eup %16806  ;;  %5172 = vmatprep.subr.bf16.mxu1 %v19088_v25  ;;  %v19582_v25 = vld [vmem:[%s23445_s3 + $0x4] ss:$16 sps:$4 sm:$0xff]  }
 0x6e3   :  { %v19562_v51 = vmul.f32 %v16807_v39, %v4109_v48  ;;  %24112 = vst [vmem:[#allocation91_spill] sm:$0xff] %v19582_v25  ;;  %5131 = vmatprep.subr.bf16.mxu0 %v19582_v25  ;;  %v19647_v48 = vld [vmem:[%s23445_s3 + $0xa4] ss:$16 sps:$4 sm:$0xff]  }
 0x6e4   :  { %24123 = vst [vmem:[#allocation103_spill] sm:$0xff] %v19647_v48  ;;  %v19662_v39 = vld [vmem:[%s23445_s3 + $0xc4] ss:$16 sps:$4 sm:$0xff]  }
 0x6e5   :  { %24111 = vst [vmem:[#allocation90_spill] sm:$0xff] %v19562_v51  ;;  %v4404_v21 = vpack.c.bf16 %v19562_v51, %v19562_v51  ;;  %24126 = vst [vmem:[#allocation104_spill] sm:$0xff] %v19662_v39  ;;  %v19668_v51 = vld [vmem:[%s23445_s3 + $0xcc] ss:$16 sps:$4 sm:$0xff]  }
 0x6e6   :  { %24127 = vst [vmem:[#allocation114_spill] sm:$0xff] %v19668_v51 }
 0x6e7   :  { %4843 = vmatprep.mubr.bf16.mxu0 %v4404_v21  ;;  %4884 = vmatprep.mubr.bf16.mxu1 %v4404_v21  ;;  %v19657_v21 = vld [vmem:[%s23445_s3 + $0xac] ss:$16 sps:$4 sm:$0xff]  }
 0x6e8   :  { %4844 = vmatmul.mubr.bf16.vlgmr.msra.gmra.mrb[76].mxu0 %v19184_v8  ;;  %4885 = vmatmul.mubr.bf16.vlgmr.msra.gmra.mrb[84].mxu1 %v19184_v8  ;;  %v19642_v8 = vld [vmem:[%s23445_s3 + $0xa0] ss:$16 sps:$4 sm:$0xff]   ;;  %24125 = vst [vmem:[#allocation108_spill] sm:$0xff] %v19657_v21 }
 0x6e9   :  { %5173 = vmatpush1.bf16.msra.mxu1 %v19093_v57  ;;  %5163 = vmatprep.mubr.bf16.mxu0 %v24061_v46  ;;  %v19587_v57 = vld [vmem:[%s23445_s3] ss:$16 sps:$4 sm:$0xff]   ;;  %24122 = vst [vmem:[#allocation102_spill] sm:$0xff] %v19642_v8 }
 0x6ea   :  { %5174 = vmatprep.subr.bf16.mxu1 %v19102_v44  ;;  %5204 = vmatprep.mubr.bf16.mxu1 %v24061_v46  ;;  %24113 = vst [vmem:[#allocation92_spill] sm:$0xff] %v19587_v57  ;;  %v19594_v44 = vld [vmem:[%s23445_s3 + $0x24] ss:$16 sps:$4 sm:$0xff]  }
 0x6eb   :  { %5132 = vmatpush1.bf16.msra.mxu0 %v19587_v57  ;;  %24114 = vst [vmem:[#allocation93_spill] sm:$0xff] %v19594_v44 }
 0x6ec   :  { %5133 = vmatprep.subr.bf16.mxu0 %v19594_v44  ;;  %v24137_v44 = vld [vmem:[#allocation29_spill] sm:$0xff] }
 0x6ed   :  { %5175 = vmatpush1.bf16.msra.mxu1 %v19107_v14  ;;  %v19599_v14 = vld [vmem:[%s23445_s3 + $0x20] ss:$16 sps:$4 sm:$0xff]  }
 0x6ee   :  { %5176 = vmatprep.subr.bf16.mxu1 %v19115_v26  ;;  %24115 = vst [vmem:[#allocation95_spill] sm:$0xff] %v19599_v14  ;;  %v19606_v26 = vld [vmem:[%s23445_s3 + $0x44] ss:$16 sps:$4 sm:$0xff]  }
 0x6ef   :  { %5134 = vmatpush1.bf16.msra.mxu0 %v19599_v14  ;;  %24116 = vst [vmem:[#allocation96_spill] sm:$0xff] %v19606_v26  ;;  %v24136_v14 = vld [vmem:[#allocation28_spill] sm:$0xff] }
 0x6f0   :  { %5135 = vmatprep.subr.bf16.mxu0 %v19606_v26 }
 0x6f1   :  { %5177 = vmatpush1.bf16.msra.mxu1 %v19120_v38  ;;  %v19611_v38 = vld [vmem:[%s23445_s3 + $0x40] ss:$16 sps:$4 sm:$0xff]  }
 0x6f2   :  { %5178 = vmatprep.subr.bf16.mxu1 %v19127_v45  ;;  %24117 = vst [vmem:[#allocation97_spill] sm:$0xff] %v19611_v38  ;;  %v19618_v45 = vld [vmem:[%s23445_s3 + $0x64] ss:$16 sps:$4 sm:$0xff]  }
 0x6f3   :  { %5136 = vmatpush1.bf16.msra.mxu0 %v19611_v38  ;;  %24118 = vst [vmem:[#allocation98_spill] sm:$0xff] %v19618_v45 }
 0x6f4   :  { %5137 = vmatprep.subr.bf16.mxu0 %v19618_v45 }
 0x6f5   :  { %5179 = vmatpush1.bf16.msra.mxu1 %v19132_v43  ;;  %v19623_v43 = vld [vmem:[%s23445_s3 + $0x60] ss:$16 sps:$4 sm:$0xff]  }
 0x6f6   :  { %5180 = vmatprep.subr.bf16.mxu1 %v19139_v29  ;;  %24119 = vst [vmem:[#allocation99_spill] sm:$0xff] %v19623_v43  ;;  %v19630_v29 = vld [vmem:[%s23445_s3 + $0x84] ss:$16 sps:$4 sm:$0xff]  }
 0x6f7   :  { %5138 = vmatpush1.bf16.msra.mxu0 %v19623_v43  ;;  %24120 = vst [vmem:[#allocation100_spill] sm:$0xff] %v19630_v29  ;;  %v24135_v43 = vld [vmem:[#allocation27_spill] sm:$0xff] }
 0x6f8   :  { %5139 = vmatprep.subr.bf16.mxu0 %v19630_v29 }
 0x6f9   :  { %5181 = vmatpush1.bf16.msra.mxu1 %v19144_v4  ;;  %v19635_v4 = vld [vmem:[%s23445_s3 + $0x80] ss:$16 sps:$4 sm:$0xff]  }
 0x6fa   :  { %24121 = vst [vmem:[#allocation101_spill] sm:$0xff] %v19635_v4  ;;  %5182 = vmatprep.subr.bf16.mxu1 %v19657_v21  ;;  %v19688_v21 = vld [vmem:[%s23445_s3 + $0xe4] ss:$16 sps:$4 sm:$0xff]  }
 0x6fb   :  { %5140 = vmatpush1.bf16.msra.mxu0 %v19635_v4  ;;  %v19676_v4 = vld [vmem:[%s23445_s3 + $0xc0] ss:$16 sps:$4 sm:$0xff]   ;;  %24130 = vst [vmem:[#allocation115_spill] sm:$0xff] %v19688_v21 }
 0x6fc   :  { %5141 = vmatprep.subr.bf16.mxu0 %v19647_v48  ;;  %24128 = vst [vmem:[#allocation106_spill] sm:$0xff] %v19676_v4  ;;  %v19681_v48 = vld [vmem:[%s23445_s3 + $0xc8] ss:$16 sps:$4 sm:$0xff]  }
 0x6fd   :  { %5183 = vmatpush1.bf16.msra.mxu1 %v19652_v23  ;;  %24129 = vst [vmem:[#allocation111_spill] sm:$0xff] %v19681_v48  ;;  %v19693_v23 = vld [vmem:[%s23445_s3 + $0xec] ss:$16 sps:$4 sm:$0xff]  }
 0x6fe   :  { %5184 = vmatprep.subr.bf16.mxu1 %v19668_v51  ;;  %24131 = vst [vmem:[#allocation112_spill] sm:$0xff] %v19693_v23  ;;  %v19705_v51 = vld [vmem:[%s23445_s3 + $0xe8] ss:$16 sps:$4 sm:$0xff]  }
 0x6ff   :  { %5142 = vmatpush1.bf16.msra.mxu0 %v19642_v8  ;;  %24133 = vst [vmem:[#allocation107_spill] sm:$0xff] %v19705_v51  ;;  %v24134_v8 = vld [vmem:[#allocation26_spill] sm:$0xff] }
 0x700   :  { %5143 = vmatprep.subr.bf16.mxu0 %v19662_v39  ;;  %v19700_v39 = vld [vmem:[%s23445_s3 + $0xe0] ss:$16 sps:$4 sm:$0xff]  }
 0x701   :  { %5185 = vmatpush1.bf16.msra.mxu1 %v19681_v48  ;;  %24132 = vst [vmem:[#allocation110_spill] sm:$0xff] %v19700_v39 }
 0x702   :  { %5186 = vmatprep.subr.bf16.mxu1 %v19693_v23 }
 0x703   :  { %5144 = vmatpush1.bf16.msra.mxu0 %v19676_v4 }
 0x704   :  { %5145 = vmatprep.subr.bf16.mxu0 %v19688_v21 }
 0x705   :  { %5187 = vmatpush1.bf16.msra.mxu1 %v19705_v51 }
 0x706   :  { %5665 = vmatprep.subr.bf16.mxu1 %v19162_v17 }
 0x707   :  { %5146 = vmatpush1.bf16.msra.mxu0 %v19700_v39 }
 0x708   :  { %5624 = vmatprep.subr.bf16.mxu0 %v19157_v33 }
 0x777   :  { %v4352_v48 = vpop.f32.mrb[72].mxu0  ;;  %v4393_v4 = vpop.f32.mrb[80].mxu1 }
 0x778   :  { %v4400_v29 = vadd.f32 %v4352_v48, %v24134_v8  ;;  %v4402_v45 = vadd.f32 %v4393_v4, %v24135_v43  ;;  %v4354_v38 = vpop.f32.mrb[73].mxu0  ;;  %v4395_v26 = vpop.f32.mrb[81].mxu1 }
 0x779   :  { %v4401_v21 = vadd.f32 %v4354_v38, %v24136_v14  ;;  %v4403_v23 = vadd.f32 %v4395_v26, %v24137_v44  ;;  %v4356_v46 = vpop.f32.mrb[74].mxu0  ;;  %v4397_v39 = vpop.f32.mrb[82].mxu1 }
 0x77a   :  { %v4893_v57 = vmul.f32 0.5, %v4400_v29  ;;  %v4357_v51 = vpop.f32.mrb[75].mxu0  ;;  %v4398_v25 = vpop.f32.mrb[83].mxu1  ;;  %v4895_v17 = vmul.f32 0.5, %v4402_v45 }
 0x77b   :  { %v4894_v33 = vmul.f32 0.5, %v4401_v21  ;;  %v24151_v21 = vld [vmem:[#allocation78_spill] sm:$0xff] }
 0x77c   :  { %16808 = vtanh.f32 %v4893_v57 }
 0x77d   :  { %16810 = vtanh.f32 %v4894_v33 }
 0x77e   :  { %16812 = vtanh.f32 %v4403_v23  ;;  %v24150_v23 = vld [vmem:[#allocation77_spill] sm:$0xff] }
 0x77f   :  { %16814 = vtanh.f32 %v4895_v17 }
 0x786   :  { %v16809_v54 = vpop.eup %16808 }
 0x787   :  { %v4899_v8 = vmul.f32 0.5, %v16809_v54  ;;  %v16811_v48 = vpop.eup %16810  ;;  %v24148_v54 = vld [vmem:[#allocation75_spill] sm:$0xff] }
 0x788   :  { %v4900_v4 = vmul.f32 0.5, %v16811_v48  ;;  %v16813_v7 = vpop.eup %16812 }
 0x789   :  { %v4902_v43 = vadd.f32 0.5, %v4899_v8  ;;  %v16815_v51 = vpop.eup %16814 }
 0x78a   :  { %v4903_v14 = vadd.f32 0.5, %v4900_v4  ;;  %v4901_v25 = vmul.f32 0.5, %v16815_v51  ;;  %v24154_v51 = vld [vmem:[#allocation85_spill] sm:$0xff] }
 0x78b   :  { %v4907_v38 = vmul.f32 %v16813_v7, %v4902_v43 }
 0x78c   :  { %v4906_v46 = vmul.f32 %v4903_v14, %v19171_v34  ;;  %v4904_v57 = vadd.f32 0.5, %v4901_v25  ;;  %v4469_v34 = vld [vmem:[%s23448_s6] sm:$0xf]  ;;  %v24158_v25 = vld [vmem:[#allocation84_spill] sm:$0xff] }
 0x78e   :  { %v19718_v44 = vadd.f32 %v4907_v38, %v4906_v46  ;;  %v24152_v38 = vld [vmem:[#allocation79_spill] sm:$0xff]  ;;  %v24153_v46 = vld [vmem:[#allocation80_spill] sm:$0xff] }
 0x790   :  { %16816 = vtanh.f32 %v19718_v44 }
 0x79a   :  { %v16817_v26 = vpop.eup %16816 }
 0x79b   :  { %v4910_v45 = vmul.f32 %v16817_v26, %v4904_v57  ;;  %v24160_v57 = vld [vmem:[#allocation87_spill] sm:$0xff] }
 0x79d   :  { %v19721_v29 = vpack.c.bf16 %v4910_v45, %v4910_v45  ;;  %v24161_v45 = vld [vmem:[#allocation88_spill] sm:$0xff] }
 0x79f   :  { %5164 = vmatmul.mubr.bf16.vlgmr.msra.gmra.mrb[80].mxu0 %v19721_v29  ;;  %5205 = vmatmul.mubr.bf16.vlgmr.msra.gmra.mrb[88].mxu1 %v19721_v29 }
 0x7a0   :  { %5625 = vmatpush1.bf16.msra.mxu0 %v19177_v49  ;;  %5666 = vmatpush1.bf16.msra.mxu1 %v19182_v10  ;;  %v4474_v49 = vrot.slane %v4469_v34, %v17491_v59  ;;  %v4478_v10 = vrot.slane %v4469_v34, %v17495_v61 }
 0x7a1   :  { %5626 = vmatprep.subr.bf16.mxu0 %v19189_v11  ;;  %5667 = vmatprep.subr.bf16.mxu1 %v19194_v42  ;;  %v24138_v11 = vld [vmem:[#allocation16_spill] sm:$0xff]  ;;  %v24139_v42 = vld [vmem:[#allocation17_spill] sm:$0xff] }
 0x7a4   :  { %5627 = vmatpush1.bf16.msra.mxu0 %v19203_v55  ;;  %5668 = vmatpush1.bf16.msra.mxu1 %v19208_v1  ;;  %v24140_v55 = vld [vmem:[#allocation18_spill] sm:$0xff]  ;;  %v24141_v1 = vld [vmem:[#allocation19_spill] sm:$0xff] }
 0x7a5   :  { %5628 = vmatprep.subr.bf16.mxu0 %v19215_v27  ;;  %5669 = vmatprep.subr.bf16.mxu1 %v19220_v41 }
 0x7a8   :  { %5629 = vmatpush1.bf16.msra.mxu0 %v19227_v60  ;;  %5670 = vmatpush1.bf16.msra.mxu1 %v19232_v37 }
 0x7a9   :  { %5630 = vmatprep.subr.bf16.mxu0 %v19239_v19  ;;  %5671 = vmatprep.subr.bf16.mxu1 %v19244_v52  ;;  %v4486_v19 = vrot.slane %v4469_v34, %v24033_v31 }
 0x7ac   :  { %5631 = vmatpush1.bf16.msra.mxu0 %v19251_v0  ;;  %5672 = vmatpush1.bf16.msra.mxu1 %v19256_v22 }
 0x7ad   :  { %5632 = vmatprep.subr.bf16.mxu0 %v19263_v62  ;;  %5673 = vmatprep.subr.bf16.mxu1 %v19268_v28 }
 0x7b0   :  { %5633 = vmatpush1.bf16.msra.mxu0 %v19275_v20  ;;  %5674 = vmatpush1.bf16.msra.mxu1 %v19280_v36 }
 0x7b1   :  { %5634 = vmatprep.subr.bf16.mxu0 %v19287_v53  ;;  %5675 = vmatprep.subr.bf16.mxu1 %v19292_v12 }
 0x7b4   :  { %5635 = vmatpush1.bf16.msra.mxu0 %v19299_v6  ;;  %5676 = vmatpush1.bf16.msra.mxu1 %v19304_v15  ;;  %v4482_v6 = vrot.slane %v4469_v34, %v24034_v47  ;;  %v24142_v15 = vld [vmem:[#allocation20_spill] sm:$0xff]  ;;  %v24162_v34 = vld [vmem:[#allocation89_spill] sm:$0xff] }
 0x7b5   :  { %5636 = vmatprep.subr.bf16.mxu0 %v19311_v18  ;;  %5677 = vmatprep.subr.bf16.mxu1 %v19316_v50  ;;  %v24143_v18 = vld [vmem:[#allocation21_spill] sm:$0xff] }
 0x7b8   :  { %5637 = vmatpush1.bf16.msra.mxu0 %v24138_v11  ;;  %5678 = vmatpush1.bf16.msra.mxu1 %v24139_v42 }
 0x7b9   :  { %5638 = vmatprep.subr.bf16.mxu0 %v24140_v55  ;;  %5679 = vmatprep.subr.bf16.mxu1 %v24141_v1  ;;  %v24167_v1 = vld [vmem:[#allocation93_spill] sm:$0xff] }
 0x7bb   :  { %v4845_v27 = vpop.f32.mrb[76].mxu0  ;;  %v4886_v41 = vpop.f32.mrb[84].mxu1 }
 0x7bc   :  { %v4846_v60 = vadd.f32 %v4845_v27, %v4474_v49  ;;  %v4847_v37 = vpop.f32.mrb[77].mxu0  ;;  %v4888_v52 = vpop.f32.mrb[85].mxu1  ;;  %5639 = vmatpush1.bf16.msra.mxu0 %v19352_v5  ;;  %5680 = vmatpush1.bf16.msra.mxu1 %v19357_v63  ;;  %v4887_v50 = vadd.f32 %v4886_v41, %v4482_v6  ;;  %v24144_v5 = vld [vmem:[#allocation71_spill] sm:$0xff]  ;;  %v24145_v63 = vld [vmem:[#allocation72_spill] sm:$0xff] }
 0x7bd   :  { %v4848_v0 = vadd.f32 %v4847_v37, %v4478_v10  ;;  %v4849_v22 = vpop.f32.mrb[78].mxu0  ;;  %v4890_v62 = vpop.f32.mrb[86].mxu1  ;;  %5640 = vmatprep.subr.bf16.mxu0 %v19364_v35  ;;  %5681 = vmatprep.subr.bf16.mxu1 %v19369_v32  ;;  %v4889_v12 = vadd.f32 %v4888_v52, %v4486_v19  ;;  %v24146_v35 = vld [vmem:[#allocation73_spill] sm:$0xff]  ;;  %v24147_v32 = vld [vmem:[#allocation74_spill] sm:$0xff]  ;;  %v24163_v10 = vld [vmem:[#allocation91_spill] sm:$0xff] }
 0x7be   :  { %v4911_v28 = vmul.f32 0.5, %v4846_v60  ;;  %v4850_v20 = vpop.f32.mrb[79].mxu0  ;;  %v4891_v36 = vpop.f32.mrb[87].mxu1  ;;  %v4913_v7 = vmul.f32 0.5, %v4887_v50  ;;  %v24168_v27 = vld [vmem:[#allocation95_spill] sm:$0xff]  ;;  %v24169_v41 = vld [vmem:[#allocation96_spill] sm:$0xff] }
 0x7bf   :  { %v4912_v53 = vmul.f32 0.5, %v4848_v0  ;;  %v24170_v60 = vld [vmem:[#allocation97_spill] sm:$0xff]  ;;  %v24171_v37 = vld [vmem:[#allocation98_spill] sm:$0xff]  ;;  %v24172_v19 = vld [vmem:[#allocation99_spill] sm:$0xff] }
 0x7c0   :  { %16818 = vtanh.f32 %v4911_v28  ;;  %5641 = vmatpush1.bf16.msra.mxu0 %v19375_v16  ;;  %5682 = vmatpush1.bf16.msra.mxu1 %v19382_v40  ;;  %v24149_v16 = vld [vmem:[#allocation76_spill] sm:$0xff]  ;;  %v24175_v0 = vld [vmem:[#allocation103_spill] sm:$0xff]  ;;  %v24176_v62 = vld [vmem:[#allocation102_spill] sm:$0xff] }
 0x7c1   :  { %16820 = vtanh.f32 %v4912_v53  ;;  %5642 = vmatprep.subr.bf16.mxu0 %v24142_v15  ;;  %5683 = vmatprep.subr.bf16.mxu1 %v24143_v18  ;;  %v24173_v52 = vld [vmem:[#allocation100_spill] sm:$0xff]  ;;  %v19820_v22 = vld [vmem:[%s23445_s3 + $0xc] ss:$16 sps:$4 sm:$0xff]   ;;  %v19826_v28 = vld [vmem:[%s23445_s3 + $0x8] ss:$16 sps:$4 sm:$0xff]  }
 0x7c2   :  { %16822 = vtanh.f32 %v4889_v12  ;;  %v24177_v20 = vld [vmem:[#allocation104_spill] sm:$0xff]  ;;  %v19834_v36 = vld [vmem:[%s23445_s3 + $0x2c] ss:$16 sps:$4 sm:$0xff]   ;;  %v24178_v53 = vld [vmem:[#allocation106_spill] sm:$0xff] }
 0x7c3   :  { %16824 = vtanh.f32 %v4913_v7  ;;  %v19840_v12 = vld [vmem:[%s23445_s3 + $0x28] ss:$16 sps:$4 sm:$0xff]   ;;  %v19848_v15 = vld [vmem:[%s23445_s3 + $0x4c] ss:$16 sps:$4 sm:$0xff]   ;;  %v24180_v18 = vld [vmem:[#allocation110_spill] sm:$0xff] }
 0x7c4   :  { %5643 = vmatpush1.bf16.msra.mxu0 %v24144_v5  ;;  %5684 = vmatpush1.bf16.msra.mxu1 %v24145_v63  ;;  %v24179_v6 = vld [vmem:[#allocation115_spill] sm:$0xff]  ;;  %v24181_v7 = vld [vmem:[#allocation108_spill] sm:$0xff] }
 0x7c5   :  { %5644 = vmatprep.subr.bf16.mxu0 %v24146_v35  ;;  %5685 = vmatprep.subr.bf16.mxu1 %v24147_v32  ;;  %v19854_v50 = vld [vmem:[%s23445_s3 + $0x48] ss:$16 sps:$4 sm:$0xff]   ;;  %v19861_v5 = vld [vmem:[%s23445_s3 + $0x6c] ss:$16 sps:$4 sm:$0xff]  }
 0x7c6   :  { %v19866_v63 = vld [vmem:[%s23445_s3 + $0x68] ss:$16 sps:$4 sm:$0xff]   ;;  %v19873_v35 = vld [vmem:[%s23445_s3 + $0x8c] ss:$16 sps:$4 sm:$0xff]  }
 0x7c7   :  { %v19878_v32 = vld [vmem:[%s23445_s3 + $0x88] ss:$16 sps:$4 sm:$0xff]  }
 0x7c8   :  { %5645 = vmatpush1.bf16.msra.mxu0 %v24148_v54  ;;  %5686 = vmatpush1.bf16.msra.mxu1 %v24149_v16  ;;  %v24182_v54 = vld [vmem:[#allocation105_spill] sm:$0xff]  ;;  %v24183_v16 = vld [vmem:[#allocation114_spill] sm:$0xff] }
 0x7c9   :  { %5646 = vmatprep.subr.bf16.mxu0 %v24150_v23  ;;  %5687 = vmatprep.subr.bf16.mxu1 %v24151_v21  ;;  %v24185_v23 = vld [vmem:[#allocation112_spill] sm:$0xff]  ;;  %v24186_v21 = vld [vmem:[#allocation107_spill] sm:$0xff] }
 0x7ca   :  { %v16819_v40 = vpop.eup %16818 }
 0x7cb   :  { %v4917_v39 = vmul.f32 0.5, %v16819_v40  ;;  %v16821_v33 = vpop.eup %16820  ;;  %v24184_v40 = vld [vmem:[#allocation111_spill] sm:$0xff] }
 0x7cc   :  { %v4918_v8 = vmul.f32 0.5, %v16821_v33  ;;  %5647 = vmatpush1.bf16.msra.mxu0 %v19450_v56  ;;  %5688 = vmatpush1.bf16.msra.mxu1 %v19455_v13  ;;  %v16823_v48 = vpop.eup %16822  ;;  %v24155_v13 = vld [vmem:[#allocation81_spill] sm:$0xff] }
 0x7cd   :  { %v4920_v17 = vadd.f32 0.5, %v4917_v39  ;;  %5648 = vmatprep.subr.bf16.mxu0 %v19462_v3  ;;  %5689 = vmatprep.subr.bf16.mxu1 %v19467_v2  ;;  %v24156_v3 = vld [vmem:[#allocation82_spill] sm:$0xff]  ;;  %v24157_v2 = vld [vmem:[#allocation83_spill] sm:$0xff] }
 0x7ce   :  { %v4921_v43 = vadd.f32 0.5, %v4918_v8  ;;  %v19891_v39 = vld [vmem:[%s23447_s5 + $0x4] ss:$16 sps:$4 sm:$0xff]   ;;  %v19896_v33 = vld [vmem:[%s23447_s5 + $0xc] ss:$16 sps:$4 sm:$0xff]  }
 0x7cf   :  { %v4925_v4 = vmul.f32 %v16823_v48, %v4920_v17  ;;  %v24187_v48 = vld [vmem:[#allocation30_spill] sm:$0xff] }
 0x7d0   :  { %v4924_v14 = vmul.f32 %v4921_v43, %v19506_v58  ;;  %5649 = vmatpush1.bf16.msra.mxu0 %v19474_v24  ;;  %5690 = vmatpush1.bf16.msra.mxu1 %v24152_v38  ;;  %v16825_v58 = vpop.eup %16824  ;;  %v24159_v24 = vld [vmem:[#allocation86_spill] sm:$0xff] }
 0x7d1   :  { %5650 = vmatprep.subr.bf16.mxu0 %v24153_v46  ;;  %5691 = vmatprep.subr.bf16.mxu1 %v24154_v51  ;;  %v4919_v26 = vmul.f32 0.5, %v16825_v58  ;;  %v24189_v51 = vld [vmem:[#allocation32_spill] sm:$0xff] }
 0x7d2   :  { %v19785_v56 = vadd.f32 %v4925_v4, %v4924_v14  ;;  %v24188_v4 = vld [vmem:[#allocation31_spill] sm:$0xff] }
 0x7d3   :  { %v4922_v49 = vadd.f32 0.5, %v4919_v26 }
 0x7d4   :  { %16826 = vtanh.f32 %v19785_v56  ;;  %5651 = vmatpush1.bf16.msra.mxu0 %v24155_v13  ;;  %5692 = vmatpush1.bf16.msra.mxu1 %v24156_v3  ;;  %v24190_v3 = vld [vmem:[#allocation33_spill] sm:$0xff] }
 0x7d5   :  { %5652 = vmatprep.subr.bf16.mxu0 %v24157_v2  ;;  %5693 = vmatprep.subr.bf16.mxu1 %v24158_v25 }
 0x7d8   :  { %5653 = vmatpush1.bf16.msra.mxu0 %v24159_v24  ;;  %5694 = vmatpush1.bf16.msra.mxu1 %v24160_v57 }
 0x7d9   :  { %5654 = vmatprep.subr.bf16.mxu0 %v19538_v30  ;;  %5695 = vmatprep.subr.bf16.mxu1 %v19543_v9  ;;  %v24165_v30 = vld [vmem:[#allocation92_spill] sm:$0xff]  ;;  %v24166_v9 = vmov 0  }
 0x7dc   :  { %5655 = vmatpush1.bf16.msra.mxu0 %v24161_v45  ;;  %5696 = vmatpush1.bf16.msra.mxu1 %v24162_v34 }
 0x7dd   :  { %5944 = vmatprep.subr.bf16.mxu0 %v24163_v10  ;;  %5985 = vmatprep.subr.bf16.mxu1 %v19820_v22 }
 0x7de   :  { %v16827_v11 = vpop.eup %16826 }
 0x7df   :  { %v19799_v42 = vmul.f32 %v16827_v11, %v4922_v49 }
 0x7e1   :  { %24164 = vst [vmem:[#allocation109_spill] sm:$0xff] %v19799_v42  ;;  %v5217_v55 = vpack.c.bf16 %v19799_v42, %v19799_v42 }
 0x7e3   :  { %5656 = vmatprep.mubr.bf16.mxu0 %v5217_v55  ;;  %5697 = vmatprep.mubr.bf16.mxu1 %v5217_v55 }
 0x7e4   :  { %5657 = vmatmul.mubr.bf16.vlgmr.msra.gmra.mrb[84].mxu0 %v19721_v29  ;;  %5698 = vmatmul.mubr.bf16.vlgmr.msra.gmra.mrb[92].mxu1 %v19721_v29  ;;  %v24174_v29 = vld [vmem:[#allocation101_spill] sm:$0xff] }
 0x7e5   :  { %5945 = vmatpush1.bf16.msra.mxu0 %v24165_v30  ;;  %5976 = vmatprep.mubr.bf16.mxu0 %v24166_v9 }
 0x7e6   :  { %5946 = vmatprep.subr.bf16.mxu0 %v24167_v1  ;;  %6017 = vmatprep.mubr.bf16.mxu1 %v24166_v9 }
 0x7e7   :  { %5986 = vmatpush1.bf16.msra.mxu1 %v19826_v28 }
 0x7e8   :  { %5987 = vmatprep.subr.bf16.mxu1 %v19834_v36 }
 0x7e9   :  { %5947 = vmatpush1.bf16.msra.mxu0 %v24168_v27 }
 0x7ea   :  { %5948 = vmatprep.subr.bf16.mxu0 %v24169_v41 }
 0x7eb   :  { %5988 = vmatpush1.bf16.msra.mxu1 %v19840_v12 }
 0x7ec   :  { %5989 = vmatprep.subr.bf16.mxu1 %v19848_v15 }
 0x7ed   :  { %5949 = vmatpush1.bf16.msra.mxu0 %v24170_v60 }
 0x7ee   :  { %5950 = vmatprep.subr.bf16.mxu0 %v24171_v37 }
 0x7ef   :  { %5990 = vmatpush1.bf16.msra.mxu1 %v19854_v50 }
 0x7f0   :  { %5991 = vmatprep.subr.bf16.mxu1 %v19861_v5 }
 0x7f1   :  { %5951 = vmatpush1.bf16.msra.mxu0 %v24172_v19 }
 0x7f2   :  { %5952 = vmatprep.subr.bf16.mxu0 %v24173_v52 }
 0x7f3   :  { %5992 = vmatpush1.bf16.msra.mxu1 %v19866_v63 }
 0x7f4   :  { %5993 = vmatprep.subr.bf16.mxu1 %v19873_v35 }
 0x7f5   :  { %5953 = vmatpush1.bf16.msra.mxu0 %v24174_v29 }
 0x7f6   :  { %5954 = vmatprep.subr.bf16.mxu0 %v24175_v0 }
 0x7f7   :  { %5994 = vmatpush1.bf16.msra.mxu1 %v19878_v32 }
 0x7f8   :  { %5995 = vmatprep.subr.bf16.mxu1 %v24181_v7  ;;  %v19937_v7 = vld [vmem:[%s23447_s5 + $0x20] ss:$16 sps:$4 sm:$0xff]  }
 0x7f9   :  { %5955 = vmatpush1.bf16.msra.mxu0 %v24176_v62 }
 0x7fa   :  { %5956 = vmatprep.subr.bf16.mxu0 %v24177_v20  ;;  %v19911_v20 = vld [vmem:[%s23447_s5] ss:$16 sps:$4 sm:$0xff]  }
 0x7fb   :  { %5996 = vmatpush1.bf16.msra.mxu1 %v24182_v54  ;;  %v19942_v54 = vld [vmem:[%s23447_s5 + $0x28] ss:$16 sps:$4 sm:$0xff]  }
 0x7fc   :  { %5997 = vmatprep.subr.bf16.mxu1 %v24183_v16  ;;  %v19949_v16 = vld [vmem:[%s23447_s5 + $0x44] ss:$16 sps:$4 sm:$0xff]  }
 0x7fd   :  { %5957 = vmatpush1.bf16.msra.mxu0 %v24178_v53  ;;  %v19916_v53 = vld [vmem:[%s23447_s5 + $0x8] ss:$16 sps:$4 sm:$0xff]  }
 0x7fe   :  { %5958 = vmatprep.subr.bf16.mxu0 %v24179_v6  ;;  %v19923_v6 = vld [vmem:[%s23447_s5 + $0x24] ss:$16 sps:$4 sm:$0xff]  }
 0x7ff   :  { %5998 = vmatpush1.bf16.msra.mxu1 %v24184_v40  ;;  %v19954_v40 = vld [vmem:[%s23447_s5 + $0x4c] ss:$16 sps:$4 sm:$0xff]  }
 0x800   :  { %5999 = vmatprep.subr.bf16.mxu1 %v24185_v23  ;;  %v19961_v23 = vld [vmem:[%s23447_s5 + $0x40] ss:$16 sps:$4 sm:$0xff]  }
 0x801   :  { %5959 = vmatpush1.bf16.msra.mxu0 %v24180_v18  ;;  %v19928_v18 = vld [vmem:[%s23447_s5 + $0x2c] ss:$16 sps:$4 sm:$0xff]  }
 0x802   :  { %6437 = vmatprep.subr.bf16.mxu0 %v19891_v39 }
 0x803   :  { %6000 = vmatpush1.bf16.msra.mxu1 %v24186_v21  ;;  %v19966_v21 = vld [vmem:[%s23447_s5 + $0x48] ss:$16 sps:$4 sm:$0xff]  }
 0x804   :  { %6478 = vmatprep.subr.bf16.mxu1 %v19896_v33 }
 0x872   :  { %v5165_v17 = vpop.f32.mrb[80].mxu0  ;;  %v5206_v8 = vpop.f32.mrb[88].mxu1 }
 0x873   :  { %v5213_v43 = vadd.f32 %v5165_v17, %v24187_v48  ;;  %v5215_v14 = vadd.f32 %v5206_v8, %v24188_v4  ;;  %v5167_v38 = vpop.f32.mrb[81].mxu0  ;;  %v5208_v46 = vpop.f32.mrb[89].mxu1  ;;  %v19973_v17 = vld [vmem:[%s23447_s5 + $0x64] ss:$16 sps:$4 sm:$0xff]   ;;  %v19978_v8 = vld [vmem:[%s23447_s5 + $0x6c] ss:$16 sps:$4 sm:$0xff]  }
 0x874   :  { %v5214_v13 = vadd.f32 %v5167_v38, %v24189_v51  ;;  %v5216_v2 = vadd.f32 %v5208_v46, %v24190_v3  ;;  %v5169_v25 = vpop.f32.mrb[82].mxu0  ;;  %v5210_v58 = vpop.f32.mrb[90].mxu1  ;;  %v19985_v48 = vld [vmem:[%s23447_s5 + $0x60] ss:$16 sps:$4 sm:$0xff]   ;;  %v19997_v4 = vld [vmem:[%s23447_s5 + $0x84] ss:$16 sps:$4 sm:$0xff]  }
 0x875   :  { %v5706_v24 = vmul.f32 0.5, %v5213_v43  ;;  %v5170_v57 = vpop.f32.mrb[83].mxu0  ;;  %v5211_v26 = vpop.f32.mrb[91].mxu1  ;;  %v5708_v34 = vmul.f32 0.5, %v5215_v14  ;;  %v19990_v43 = vld [vmem:[%s23447_s5 + $0x68] ss:$16 sps:$4 sm:$0xff]  }
 0x876   :  { %v5707_v45 = vmul.f32 0.5, %v5214_v13  ;;  %v20002_v14 = vld [vmem:[%s23447_s5 + $0x8c] ss:$16 sps:$4 sm:$0xff]   ;;  %v20009_v38 = vld [vmem:[%s23447_s5 + $0x80] ss:$16 sps:$4 sm:$0xff]  }
 0x877   :  { %16828 = vtanh.f32 %v5706_v24  ;;  %v20014_v46 = vld [vmem:[%s23447_s5 + $0x88] ss:$16 sps:$4 sm:$0xff]   ;;  %v20021_v51 = vld [vmem:[%s23447_s5 + $0xa4] ss:$16 sps:$4 sm:$0xff]   ;;  %v20026_v13 = vld [vmem:[%s23447_s5 + $0xac] ss:$16 sps:$4 sm:$0xff]  }
 0x878   :  { %16830 = vtanh.f32 %v5707_v45  ;;  %v20033_v3 = vld [vmem:[%s23447_s5 + $0xa0] ss:$16 sps:$4 sm:$0xff]   ;;  %v20045_v25 = vld [vmem:[%s23447_s5 + $0xc4] ss:$16 sps:$4 sm:$0xff]   ;;  %v20050_v58 = vld [vmem:[%s23447_s5 + $0xcc] ss:$16 sps:$4 sm:$0xff]  }
 0x879   :  { %16832 = vtanh.f32 %v5216_v2  ;;  %v20038_v2 = vld [vmem:[%s23447_s5 + $0xa8] ss:$16 sps:$4 sm:$0xff]   ;;  %v20057_v24 = vld [vmem:[%s23447_s5 + $0xc0] ss:$16 sps:$4 sm:$0xff]   ;;  %v20072_v45 = vld [vmem:[%s23447_s5 + $0xe4] ss:$16 sps:$4 sm:$0xff]  }
 0x87a   :  { %16834 = vtanh.f32 %v5708_v34  ;;  %v20062_v57 = vld [vmem:[%s23447_s5 + $0xc8] ss:$16 sps:$4 sm:$0xff]   ;;  %v5282_v26 = vld [vmem:[%s23448_s6] sm:$0xf]  ;;  %v20077_v34 = vld [vmem:[%s23447_s5 + $0xec] ss:$16 sps:$4 sm:$0xff]  }
 0x87b   :  { %24191 = vst [vmem:[#allocation113_spill] sm:$0xff] %v20077_v34 }
 0x881   :  { %v16829_v49 = vpop.eup %16828 }
 0x882   :  { %v5712_v10 = vmul.f32 0.5, %v16829_v49  ;;  %v16831_v11 = vpop.eup %16830  ;;  %v5287_v49 = vrot.slane %v5282_v26, %v17491_v59 }
 0x883   :  { %v5713_v30 = vmul.f32 0.5, %v16831_v11  ;;  %v16833_v1 = vpop.eup %16832  ;;  %v20090_v11 = vld [vmem:[%s23447_s5 + $0xe8] ss:$16 sps:$4 sm:$0xff]  }
 0x884   :  { %v5715_v55 = vadd.f32 0.5, %v5712_v10  ;;  %v16835_v19 = vpop.eup %16834  ;;  %v20085_v10 = vld [vmem:[%s23447_s5 + $0xe0] ss:$16 sps:$4 sm:$0xff]   ;;  %24193 = vst [vmem:[#allocation22_spill] sm:$0xff] %v20090_v11 }
 0x885   :  { %v5716_v27 = vadd.f32 0.5, %v5713_v30  ;;  %v5714_v52 = vmul.f32 0.5, %v16835_v19  ;;  %24192 = vst [vmem:[#allocation14_spill] sm:$0xff] %v20085_v10  ;;  %v20098_v30 = vld [vmem:[%s23447_s5 + $0x104] ss:$16 sps:$4 sm:$0xff]  }
 0x886   :  { %v5720_v41 = vmul.f32 %v16833_v1, %v5715_v55  ;;  %v5291_v55 = vrot.slane %v5282_v26, %v17495_v61  ;;  %v20103_v1 = vld [vmem:[%s23447_s5 + $0x10c] ss:$16 sps:$4 sm:$0xff]  }
 0x887   :  { %v5719_v60 = vmul.f32 %v5716_v27, %v19718_v44  ;;  %v5717_v29 = vadd.f32 0.5, %v5714_v52  ;;  %v5299_v52 = vrot.slane %v5282_v26, %v24033_v31  ;;  %v20123_v31 = vld [vmem:[%s23447_s5 + $0x124] ss:$16 sps:$4 sm:$0xff]  }
 0x889   :  { %v19905_v37 = vadd.f32 %v5720_v41, %v5719_v60 }
 0x88b   :  { %16836 = vtanh.f32 %v19905_v37 }
 0x895   :  { %v16837_v0 = vpop.eup %16836 }
 0x896   :  { %v5723_v62 = vmul.f32 %v16837_v0, %v5717_v29  ;;  %v20111_v0 = vld [vmem:[%s23447_s5 + $0x100] ss:$16 sps:$4 sm:$0xff]  }
 0x898   :  { %v19918_v44 = vpack.c.bf16 %v5723_v62, %v5723_v62  ;;  %v20116_v62 = vld [vmem:[%s23447_s5 + $0x108] ss:$16 sps:$4 sm:$0xff]  }
 0x89a   :  { %5977 = vmatmul.mubr.bf16.vlgmr.msra.gmra.mrb[88].mxu0 %v19918_v44  ;;  %6018 = vmatmul.mubr.bf16.vlgmr.msra.gmra.mrb[96].mxu1 %v19918_v44 }
 0x89b   :  { %6438 = vmatpush1.bf16.msra.mxu0 %v19911_v20  ;;  %6479 = vmatpush1.bf16.msra.mxu1 %v19916_v53 }
 0x89c   :  { %6439 = vmatprep.subr.bf16.mxu0 %v19923_v6  ;;  %6480 = vmatprep.subr.bf16.mxu1 %v19928_v18 }
 0x89f   :  { %6440 = vmatpush1.bf16.msra.mxu0 %v19937_v7  ;;  %6481 = vmatpush1.bf16.msra.mxu1 %v19942_v54 }
 0x8a0   :  { %6441 = vmatprep.subr.bf16.mxu0 %v19949_v16  ;;  %6482 = vmatprep.subr.bf16.mxu1 %v19954_v40 }
 0x8a3   :  { %6442 = vmatpush1.bf16.msra.mxu0 %v19961_v23  ;;  %6483 = vmatpush1.bf16.msra.mxu1 %v19966_v21 }
 0x8a4   :  { %6443 = vmatprep.subr.bf16.mxu0 %v19973_v17  ;;  %6484 = vmatprep.subr.bf16.mxu1 %v19978_v8 }
 0x8a7   :  { %6444 = vmatpush1.bf16.msra.mxu0 %v19985_v48  ;;  %6485 = vmatpush1.bf16.msra.mxu1 %v19990_v43 }
 0x8a8   :  { %6445 = vmatprep.subr.bf16.mxu0 %v19997_v4  ;;  %6486 = vmatprep.subr.bf16.mxu1 %v20002_v14 }
 0x8ab   :  { %6446 = vmatpush1.bf16.msra.mxu0 %v20009_v38  ;;  %6487 = vmatpush1.bf16.msra.mxu1 %v20014_v46 }
 0x8ac   :  { %6447 = vmatprep.subr.bf16.mxu0 %v20021_v51  ;;  %6488 = vmatprep.subr.bf16.mxu1 %v20026_v13 }
 0x8af   :  { %6448 = vmatpush1.bf16.msra.mxu0 %v20033_v3  ;;  %6489 = vmatpush1.bf16.msra.mxu1 %v20038_v2 }
 0x8b0   :  { %6449 = vmatprep.subr.bf16.mxu0 %v20045_v25  ;;  %6490 = vmatprep.subr.bf16.mxu1 %v20050_v58 }
 0x8b3   :  { %6450 = vmatpush1.bf16.msra.mxu0 %v20057_v24  ;;  %6491 = vmatpush1.bf16.msra.mxu1 %v20062_v57 }
 0x8b4   :  { %6451 = vmatprep.subr.bf16.mxu0 %v20072_v45  ;;  %6492 = vmatprep.subr.bf16.mxu1 %v20077_v34 }
 0x8b7   :  { %v5658_v27 = vpop.f32.mrb[84].mxu0  ;;  %v5699_v41 = vpop.f32.mrb[92].mxu1  ;;  %6452 = vmatpush1.bf16.msra.mxu0 %v20085_v10  ;;  %6493 = vmatpush1.bf16.msra.mxu1 %v20090_v11  ;;  %v20128_v11 = vld [vmem:[%s23447_s5 + $0x12c] ss:$16 sps:$4 sm:$0xff]  }
 0x8b8   :  { %v5659_v60 = vadd.f32 %v5658_v27, %v5287_v49  ;;  %v5660_v19 = vpop.f32.mrb[85].mxu0  ;;  %v5701_v29 = vpop.f32.mrb[93].mxu1  ;;  %6453 = vmatprep.subr.bf16.mxu0 %v20098_v30  ;;  %6494 = vmatprep.subr.bf16.mxu1 %v20103_v1 }
 0x8b9   :  { %v5661_v42 = vadd.f32 %v5660_v19, %v5291_v55  ;;  %v5662_v49 = vpop.f32.mrb[86].mxu0  ;;  %v5703_v27 = vpop.f32.mrb[94].mxu1  ;;  %v5702_v19 = vadd.f32 %v5701_v29, %v5299_v52  ;;  %v20172_v52 = vld [vmem:[%s23447_s5 + $0x164] ss:$16 sps:$4 sm:$0xff]   ;;  %v20177_v29 = vld [vmem:[%s23447_s5 + $0x16c] ss:$16 sps:$4 sm:$0xff]  }
 0x8ba   :  { %v5724_v10 = vmul.f32 0.5, %v5659_v60  ;;  %v5663_v61 = vpop.f32.mrb[87].mxu0  ;;  %v5704_v34 = vpop.f32.mrb[95].mxu1  ;;  %v20135_v49 = vld [vmem:[%s23447_s5 + $0x120] ss:$16 sps:$4 sm:$0xff]   ;;  %24200 = vst [vmem:[#allocation29_spill] sm:$0xff] %v20172_v52 }
 0x8bb   :  { %v5725_v55 = vmul.f32 0.5, %v5661_v42  ;;  %6454 = vmatpush1.bf16.msra.mxu0 %v20111_v0  ;;  %6495 = vmatpush1.bf16.msra.mxu1 %v20116_v62  ;;  %24194 = vst [vmem:[#allocation23_spill] sm:$0xff] %v20135_v49  ;;  %v20140_v27 = vld [vmem:[%s23447_s5 + $0x128] ss:$16 sps:$4 sm:$0xff]   ;;  %v5295_v61 = vrot.slane %v5282_v26, %v24034_v47  ;;  %v20148_v42 = vld [vmem:[%s23447_s5 + $0x144] ss:$16 sps:$4 sm:$0xff]  }
 0x8bc   :  { %16838 = vtanh.f32 %v5724_v10  ;;  %24195 = vst [vmem:[#allocation24_spill] sm:$0xff] %v20140_v27  ;;  %6455 = vmatprep.subr.bf16.mxu0 %v20123_v31  ;;  %6496 = vmatprep.subr.bf16.mxu1 %v20128_v11  ;;  %24196 = vst [vmem:[#allocation25_spill] sm:$0xff] %v20148_v42  ;;  %v20153_v34 = vld [vmem:[%s23447_s5 + $0x14c] ss:$16 sps:$4 sm:$0xff]   ;;  %v20160_v26 = vld [vmem:[%s23447_s5 + $0x140] ss:$16 sps:$4 sm:$0xff]  }
 0x8bd   :  { %24197 = vst [vmem:[#allocation26_spill] sm:$0xff] %v20153_v34  ;;  %16840 = vtanh.f32 %v5725_v55  ;;  %24198 = vst [vmem:[#allocation27_spill] sm:$0xff] %v20160_v26  ;;  %v20165_v10 = vld [vmem:[%s23447_s5 + $0x148] ss:$16 sps:$4 sm:$0xff]   ;;  %v5700_v60 = vadd.f32 %v5699_v41, %v5295_v61  ;;  %v20184_v41 = vld [vmem:[%s23447_s5 + $0x160] ss:$16 sps:$4 sm:$0xff]  }
 0x8be   :  { %16842 = vtanh.f32 %v5702_v19  ;;  %24199 = vst [vmem:[#allocation28_spill] sm:$0xff] %v20165_v10  ;;  %24201 = vst [vmem:[#allocation16_spill] sm:$0xff] %v20177_v29  ;;  %v20189_v55 = vld [vmem:[%s23447_s5 + $0x168] ss:$16 sps:$4 sm:$0xff]   ;;  %v20196_v61 = vld [vmem:[%s23447_s5 + $0x184] ss:$16 sps:$4 sm:$0xff]  }
 0x8bf   :  { %6456 = vmatpush1.bf16.msra.mxu0 %v20135_v49  ;;  %6497 = vmatpush1.bf16.msra.mxu1 %v20140_v27  ;;  %24202 = vst [vmem:[#allocation17_spill] sm:$0xff] %v20184_v41  ;;  %24203 = vst [vmem:[#allocation18_spill] sm:$0xff] %v20189_v55  ;;  %v5726_v19 = vmul.f32 0.5, %v5700_v60  ;;  %v20208_v60 = vld [vmem:[%s23447_s5 + $0x180] ss:$16 sps:$4 sm:$0xff]  }
 0x8c0   :  { %6457 = vmatprep.subr.bf16.mxu0 %v20148_v42  ;;  %6498 = vmatprep.subr.bf16.mxu1 %v20153_v34 }
 0x8c1   :  { %16844 = vtanh.f32 %v5726_v19 }
 0x8c3   :  { %6458 = vmatpush1.bf16.msra.mxu0 %v20160_v26  ;;  %6499 = vmatpush1.bf16.msra.mxu1 %v20165_v10  ;;  %v20201_v10 = vld [vmem:[%s23447_s5 + $0x18c] ss:$16 sps:$4 sm:$0xff]  }
 0x8c4   :  { %6459 = vmatprep.subr.bf16.mxu0 %v20172_v52  ;;  %6500 = vmatprep.subr.bf16.mxu1 %v20177_v29  ;;  %v20213_v29 = vld [vmem:[%s23447_s5 + $0x188] ss:$16 sps:$4 sm:$0xff]  }
 0x8c6   :  { %v16839_v26 = vpop.eup %16838 }
 0x8c7   :  { %v5730_v34 = vmul.f32 0.5, %v16839_v26  ;;  %v16841_v42 = vpop.eup %16840  ;;  %6460 = vmatpush1.bf16.msra.mxu0 %v20184_v41  ;;  %6501 = vmatpush1.bf16.msra.mxu1 %v20189_v55  ;;  %v20220_v26 = vld [vmem:[%s23447_s5 + $0x1a4] ss:$16 sps:$4 sm:$0xff]   ;;  %v20225_v55 = vld [vmem:[%s23447_s5 + $0x1ac] ss:$16 sps:$4 sm:$0xff]  }
 0x8c8   :  { %v5731_v27 = vmul.f32 0.5, %v16841_v42  ;;  %6461 = vmatprep.subr.bf16.mxu0 %v20196_v61  ;;  %6502 = vmatprep.subr.bf16.mxu1 %v20201_v10  ;;  %24204 = vst [vmem:[#allocation19_spill] sm:$0xff] %v20225_v55  ;;  %v16843_v41 = vpop.eup %16842  ;;  %v20232_v42 = vld [vmem:[%s23447_s5 + $0x1a0] ss:$16 sps:$4 sm:$0xff]  }
 0x8c9   :  { %v5733_v52 = vadd.f32 0.5, %v5730_v34  ;;  %24205 = vst [vmem:[#allocation20_spill] sm:$0xff] %v20232_v42  ;;  %v20237_v34 = vld [vmem:[%s23447_s5 + $0x1a8] ss:$16 sps:$4 sm:$0xff]  }
 0x8ca   :  { %v5734_v49 = vadd.f32 0.5, %v5731_v27  ;;  %24206 = vst [vmem:[#allocation21_spill] sm:$0xff] %v20237_v34  ;;  %v20245_v27 = vld [vmem:[%s23447_s5 + $0x1c4] ss:$16 sps:$4 sm:$0xff]  }
 0x8cb   :  { %v5738_v47 = vmul.f32 %v16843_v41, %v5733_v52  ;;  %6462 = vmatpush1.bf16.msra.mxu0 %v20208_v60  ;;  %6503 = vmatpush1.bf16.msra.mxu1 %v20213_v29  ;;  %24207 = vst [vmem:[#allocation71_spill] sm:$0xff] %v20245_v27  ;;  %v20250_v52 = vld [vmem:[%s23447_s5 + $0x1cc] ss:$16 sps:$4 sm:$0xff]  }
 0x8cc   :  { %v5737_v19 = vmul.f32 %v5734_v49, %v19785_v56  ;;  %6463 = vmatprep.subr.bf16.mxu0 %v20220_v26  ;;  %6504 = vmatprep.subr.bf16.mxu1 %v20225_v55  ;;  %24208 = vst [vmem:[#allocation72_spill] sm:$0xff] %v20250_v52  ;;  %v20259_v56 = vld [vmem:[%s23447_s5 + $0x1c0] ss:$16 sps:$4 sm:$0xff]   ;;  %v20264_v49 = vld [vmem:[%s23447_s5 + $0x1c8] ss:$16 sps:$4 sm:$0xff]  }
 0x8cd   :  { %24210 = vst [vmem:[#allocation74_spill] sm:$0xff] %v20259_v56  ;;  %24211 = vst [vmem:[#allocation75_spill] sm:$0xff] %v20264_v49 }
 0x8ce   :  { %v20252_v41 = vadd.f32 %v5738_v47, %v5737_v19  ;;  %v20272_v47 = vld [vmem:[%s23447_s5 + $0x1e4] ss:$16 sps:$4 sm:$0xff]   ;;  %v20277_v19 = vld [vmem:[%s23447_s5 + $0x1ec] ss:$16 sps:$4 sm:$0xff]  }
 0x8cf   :  { %6464 = vmatpush1.bf16.msra.mxu0 %v20232_v42  ;;  %6505 = vmatpush1.bf16.msra.mxu1 %v20237_v34  ;;  %v16845_v34 = vpop.eup %16844 }
 0x8d0   :  { %24209 = vst [vmem:[#allocation73_spill] sm:$0xff] %v20252_v41  ;;  %16846 = vtanh.f32 %v20252_v41  ;;  %6465 = vmatprep.subr.bf16.mxu0 %v20245_v27  ;;  %6506 = vmatprep.subr.bf16.mxu1 %v20250_v52  ;;  %v20284_v27 = vld [vmem:[%s23447_s5 + $0x1e0] ss:$16 sps:$4 sm:$0xff]   ;;  %v20289_v52 = vld [vmem:[%s23447_s5 + $0x1e8] ss:$16 sps:$4 sm:$0xff]   ;;  %v5732_v42 = vmul.f32 0.5, %v16845_v34 }
 0x8d1   :  { %24212 = vst [vmem:[#allocation76_spill] sm:$0xff] %v20289_v52  ;;  %v20391_v34 = vld [vmem:[%s23445_s3 + $0xac] ss:$16 sps:$4 sm:$0xff]  }
 0x8d2   :  { %24227 = vst [vmem:[#allocation92_spill] sm:$0xff] %v20391_v34 }
 0x8d3   :  { %6466 = vmatpush1.bf16.msra.mxu0 %v20259_v56  ;;  %6507 = vmatpush1.bf16.msra.mxu1 %v20264_v49  ;;  %v5735_v49 = vadd.f32 0.5, %v5732_v42  ;;  %v20386_v42 = vld [vmem:[%s23445_s3 + $0xa8] ss:$16 sps:$4 sm:$0xff]  }
 0x8d4   :  { %6467 = vmatprep.subr.bf16.mxu0 %v20272_v47  ;;  %6508 = vmatprep.subr.bf16.mxu1 %v20277_v19  ;;  %24226 = vst [vmem:[#allocation91_spill] sm:$0xff] %v20386_v42 }
 0x8d7   :  { %6468 = vmatpush1.bf16.msra.mxu0 %v20284_v27  ;;  %6509 = vmatpush1.bf16.msra.mxu1 %v20289_v52 }
 0x8d8   :  { %6798 = vmatprep.subr.bf16.mxu1 %v19820_v22  ;;  %v20316_v22 = vld [vmem:[%s23445_s3 + $0x4] ss:$16 sps:$4 sm:$0xff]  }
 0x8d9   :  { %24214 = vst [vmem:[#allocation78_spill] sm:$0xff] %v20316_v22  ;;  %6757 = vmatprep.subr.bf16.mxu0 %v20316_v22 }
 0x8da   :  { %v16847_v56 = vpop.eup %16846 }
 0x8db   :  { %v20296_v41 = vmul.f32 %v16847_v56, %v5735_v49  ;;  %v20396_v56 = vld [vmem:[%s23445_s3 + $0xc4] ss:$16 sps:$4 sm:$0xff]   ;;  %v20402_v49 = vld [vmem:[%s23445_s3 + $0xcc] ss:$16 sps:$4 sm:$0xff]  }
 0x8dc   :  { %24228 = vst [vmem:[#allocation93_spill] sm:$0xff] %v20396_v56  ;;  %24229 = vst [vmem:[#allocation95_spill] sm:$0xff] %v20402_v49 }
 0x8dd   :  { %24213 = vst [vmem:[#allocation77_spill] sm:$0xff] %v20296_v41  ;;  %v6030_v55 = vpack.c.bf16 %v20296_v41, %v20296_v41  ;;  %v20410_v41 = vld [vmem:[%s23445_s3 + $0xc0] ss:$16 sps:$4 sm:$0xff]  }
 0x8de   :  { %24230 = vst [vmem:[#allocation96_spill] sm:$0xff] %v20410_v41 }
 0x8df   :  { %6469 = vmatprep.mubr.bf16.mxu0 %v6030_v55  ;;  %6510 = vmatprep.mubr.bf16.mxu1 %v6030_v55  ;;  %v20381_v55 = vld [vmem:[%s23445_s3 + $0xa4] ss:$16 sps:$4 sm:$0xff]  }
 0x8e0   :  { %6470 = vmatmul.mubr.bf16.vlgmr.msra.gmra.mrb[92].mxu0 %v19918_v44  ;;  %6511 = vmatmul.mubr.bf16.vlgmr.msra.gmra.mrb[100].mxu1 %v19918_v44  ;;  %v20376_v44 = vld [vmem:[%s23445_s3 + $0xa0] ss:$16 sps:$4 sm:$0xff]   ;;  %24225 = vst [vmem:[#allocation89_spill] sm:$0xff] %v20381_v55 }
 0x8e1   :  { %6799 = vmatpush1.bf16.msra.mxu1 %v19826_v28  ;;  %6789 = vmatprep.mubr.bf16.mxu0 %v24166_v9  ;;  %v20321_v28 = vld [vmem:[%s23445_s3] ss:$16 sps:$4 sm:$0xff]   ;;  %24224 = vst [vmem:[#allocation88_spill] sm:$0xff] %v20376_v44 }
 0x8e2   :  { %6800 = vmatprep.subr.bf16.mxu1 %v19834_v36  ;;  %6830 = vmatprep.mubr.bf16.mxu1 %v24166_v9  ;;  %24215 = vst [vmem:[#allocation79_spill] sm:$0xff] %v20321_v28  ;;  %v20328_v36 = vld [vmem:[%s23445_s3 + $0x24] ss:$16 sps:$4 sm:$0xff]  }
 0x8e3   :  { %6758 = vmatpush1.bf16.msra.mxu0 %v20321_v28  ;;  %24216 = vst [vmem:[#allocation80_spill] sm:$0xff] %v20328_v36 }
 0x8e4   :  { %6759 = vmatprep.subr.bf16.mxu0 %v20328_v36 }
 0x8e5   :  { %6801 = vmatpush1.bf16.msra.mxu1 %v19840_v12  ;;  %v20333_v12 = vld [vmem:[%s23445_s3 + $0x20] ss:$16 sps:$4 sm:$0xff]  }
 0x8e6   :  { %6802 = vmatprep.subr.bf16.mxu1 %v19848_v15  ;;  %24217 = vst [vmem:[#allocation85_spill] sm:$0xff] %v20333_v12  ;;  %v20340_v15 = vld [vmem:[%s23445_s3 + $0x44] ss:$16 sps:$4 sm:$0xff]  }
 0x8e7   :  { %6760 = vmatpush1.bf16.msra.mxu0 %v20333_v12  ;;  %24218 = vst [vmem:[#allocation81_spill] sm:$0xff] %v20340_v15  ;;  %v24239_v12 = vld [vmem:[#allocation37_spill] sm:$0xff] }
 0x8e8   :  { %6761 = vmatprep.subr.bf16.mxu0 %v20340_v15  ;;  %v24238_v15 = vld [vmem:[#allocation36_spill] sm:$0xff] }
 0x8e9   :  { %6803 = vmatpush1.bf16.msra.mxu1 %v19854_v50  ;;  %v20345_v50 = vld [vmem:[%s23445_s3 + $0x40] ss:$16 sps:$4 sm:$0xff]  }
 0x8ea   :  { %6804 = vmatprep.subr.bf16.mxu1 %v19861_v5  ;;  %24219 = vst [vmem:[#allocation82_spill] sm:$0xff] %v20345_v50  ;;  %v20352_v5 = vld [vmem:[%s23445_s3 + $0x64] ss:$16 sps:$4 sm:$0xff]  }
 0x8eb   :  { %6762 = vmatpush1.bf16.msra.mxu0 %v20345_v50  ;;  %24220 = vst [vmem:[#allocation83_spill] sm:$0xff] %v20352_v5 }
 0x8ec   :  { %6763 = vmatprep.subr.bf16.mxu0 %v20352_v5 }
 0x8ed   :  { %6805 = vmatpush1.bf16.msra.mxu1 %v19866_v63  ;;  %v20357_v63 = vld [vmem:[%s23445_s3 + $0x60] ss:$16 sps:$4 sm:$0xff]  }
 0x8ee   :  { %6806 = vmatprep.subr.bf16.mxu1 %v19873_v35  ;;  %24221 = vst [vmem:[#allocation84_spill] sm:$0xff] %v20357_v63  ;;  %v20364_v35 = vld [vmem:[%s23445_s3 + $0x84] ss:$16 sps:$4 sm:$0xff]  }
 0x8ef   :  { %6764 = vmatpush1.bf16.msra.mxu0 %v20357_v63  ;;  %24222 = vst [vmem:[#allocation86_spill] sm:$0xff] %v20364_v35 }
 0x8f0   :  { %6765 = vmatprep.subr.bf16.mxu0 %v20364_v35  ;;  %v24237_v35 = vld [vmem:[#allocation35_spill] sm:$0xff] }
 0x8f1   :  { %6807 = vmatpush1.bf16.msra.mxu1 %v19878_v32  ;;  %v20369_v32 = vld [vmem:[%s23445_s3 + $0x80] ss:$16 sps:$4 sm:$0xff]  }
 0x8f2   :  { %24223 = vst [vmem:[#allocation87_spill] sm:$0xff] %v20369_v32  ;;  %6808 = vmatprep.subr.bf16.mxu1 %v20391_v34  ;;  %v20422_v34 = vld [vmem:[%s23445_s3 + $0xe4] ss:$16 sps:$4 sm:$0xff]  }
 0x8f3   :  { %6766 = vmatpush1.bf16.msra.mxu0 %v20369_v32  ;;  %24232 = vst [vmem:[#allocation98_spill] sm:$0xff] %v20422_v34 }
 0x8f4   :  { %6767 = vmatprep.subr.bf16.mxu0 %v20381_v55  ;;  %v20415_v55 = vld [vmem:[%s23445_s3 + $0xc8] ss:$16 sps:$4 sm:$0xff]  }
 0x8f5   :  { %6809 = vmatpush1.bf16.msra.mxu1 %v20386_v42  ;;  %24231 = vst [vmem:[#allocation97_spill] sm:$0xff] %v20415_v55  ;;  %v20427_v42 = vld [vmem:[%s23445_s3 + $0xec] ss:$16 sps:$4 sm:$0xff]  }
 0x8f6   :  { %6810 = vmatprep.subr.bf16.mxu1 %v20402_v49  ;;  %24233 = vst [vmem:[#allocation99_spill] sm:$0xff] %v20427_v42  ;;  %v20439_v49 = vld [vmem:[%s23445_s3 + $0xe8] ss:$16 sps:$4 sm:$0xff]  }
 0x8f7   :  { %6768 = vmatpush1.bf16.msra.mxu0 %v20376_v44  ;;  %24235 = vst [vmem:[#allocation101_spill] sm:$0xff] %v20439_v49  ;;  %v24236_v44 = vld [vmem:[#allocation34_spill] sm:$0xff] }
 0x8f8   :  { %6769 = vmatprep.subr.bf16.mxu0 %v20396_v56  ;;  %v20434_v56 = vld [vmem:[%s23445_s3 + $0xe0] ss:$16 sps:$4 sm:$0xff]  }
 0x8f9   :  { %6811 = vmatpush1.bf16.msra.mxu1 %v20415_v55  ;;  %24234 = vst [vmem:[#allocation100_spill] sm:$0xff] %v20434_v56 }
 0x8fa   :  { %6812 = vmatprep.subr.bf16.mxu1 %v20427_v42 }
 0x8fb   :  { %6770 = vmatpush1.bf16.msra.mxu0 %v20410_v41 }
 0x8fc   :  { %6771 = vmatprep.subr.bf16.mxu0 %v20422_v34 }
 0x8fd   :  { %6813 = vmatpush1.bf16.msra.mxu1 %v20439_v49 }
 0x8fe   :  { %7291 = vmatprep.subr.bf16.mxu1 %v19896_v33 }
 0x8ff   :  { %6772 = vmatpush1.bf16.msra.mxu0 %v20434_v56 }
 0x900   :  { %7250 = vmatprep.subr.bf16.mxu0 %v19891_v39 }
 0x96d   :  { %v5978_v55 = vpop.f32.mrb[88].mxu0  ;;  %v6019_v41 = vpop.f32.mrb[96].mxu1 }
 0x96e   :  { %v6026_v32 = vadd.f32 %v5978_v55, %v24236_v44  ;;  %v6028_v63 = vadd.f32 %v6019_v41, %v24237_v35  ;;  %v5980_v5 = vpop.f32.mrb[89].mxu0  ;;  %v6021_v50 = vpop.f32.mrb[97].mxu1 }
 0x96f   :  { %v6027_v34 = vadd.f32 %v5980_v5, %v24238_v15  ;;  %v6029_v42 = vadd.f32 %v6021_v50, %v24239_v12  ;;  %v5982_v36 = vpop.f32.mrb[90].mxu0  ;;  %v6023_v56 = vpop.f32.mrb[98].mxu1 }
 0x970   :  { %v6519_v9 = vmul.f32 0.5, %v6026_v32  ;;  %v5983_v49 = vpop.f32.mrb[91].mxu0  ;;  %v6024_v28 = vpop.f32.mrb[99].mxu1  ;;  %v6521_v33 = vmul.f32 0.5, %v6028_v63  ;;  %v24255_v56 = vld [vmem:[#allocation18_spill] sm:$0xff] }
 0x971   :  { %v6520_v39 = vmul.f32 0.5, %v6027_v34  ;;  %v24254_v34 = vld [vmem:[#allocation17_spill] sm:$0xff] }
 0x972   :  { %16848 = vtanh.f32 %v6519_v9 }
 0x973   :  { %16850 = vtanh.f32 %v6520_v39 }
 0x974   :  { %16852 = vtanh.f32 %v6029_v42 }
 0x975   :  { %16854 = vtanh.f32 %v6521_v33 }
 0x97c   :  { %v16849_v22 = vpop.eup %16848 }
 0x97d   :  { %v6525_v44 = vmul.f32 0.5, %v16849_v22  ;;  %v16851_v55 = vpop.eup %16850 }
 0x97e   :  { %v6526_v35 = vmul.f32 0.5, %v16851_v55  ;;  %v16853_v52 = vpop.eup %16852 }
 0x97f   :  { %v6528_v41 = vadd.f32 0.5, %v6525_v44  ;;  %v16855_v28 = vpop.eup %16854 }
 0x980   :  { %v6529_v15 = vadd.f32 0.5, %v6526_v35  ;;  %v6527_v9 = vmul.f32 0.5, %v16855_v28  ;;  %v24256_v35 = vld [vmem:[#allocation19_spill] sm:$0xff] }
 0x981   :  { %v6533_v5 = vmul.f32 %v16853_v52, %v6528_v41  ;;  %v24260_v28 = vld [vmem:[#allocation71_spill] sm:$0xff] }
 0x982   :  { %v6532_v36 = vmul.f32 %v6529_v15, %v19905_v37  ;;  %v6530_v50 = vadd.f32 0.5, %v6527_v9  ;;  %v6095_v37 = vld [vmem:[%s23448_s6] sm:$0xf]  ;;  %v24257_v15 = vld [vmem:[#allocation73_spill] sm:$0xff]  ;;  %v24261_v9 = vld [vmem:[#allocation72_spill] sm:$0xff] }
 0x984   :  { %v20452_v12 = vadd.f32 %v6533_v5, %v6532_v36 }
 0x986   :  { %16856 = vtanh.f32 %v20452_v12 }
 0x990   :  { %v16857_v32 = vpop.eup %16856 }
 0x991   :  { %v6536_v63 = vmul.f32 %v16857_v32, %v6530_v50  ;;  %v24264_v32 = vld [vmem:[#allocation76_spill] sm:$0xff] }
 0x993   :  { %v20455_v42 = vpack.c.bf16 %v6536_v63, %v6536_v63  ;;  %v24265_v63 = vld [vmem:[#allocation78_spill] sm:$0xff] }
 0x995   :  { %6790 = vmatmul.mubr.bf16.vlgmr.msra.gmra.mrb[96].mxu0 %v20455_v42  ;;  %6831 = vmatmul.mubr.bf16.vlgmr.msra.gmra.mrb[104].mxu1 %v20455_v42 }
 0x996   :  { %7251 = vmatpush1.bf16.msra.mxu0 %v19911_v20  ;;  %7292 = vmatpush1.bf16.msra.mxu1 %v19916_v53  ;;  %v6100_v20 = vrot.slane %v6095_v37, %v17491_v59  ;;  %v24240_v53 = vld [vmem:[#allocation113_spill] sm:$0xff] }
 0x997   :  { %7252 = vmatprep.subr.bf16.mxu0 %v19923_v6  ;;  %7293 = vmatprep.subr.bf16.mxu1 %v19928_v18  ;;  %v24241_v6 = vld [vmem:[#allocation12_spill] sm:$0xff] }
 0x998   :  { %v6104_v18 = vrot.slane %v6095_v37, %v24241_v6 }
 0x99a   :  { %7253 = vmatpush1.bf16.msra.mxu0 %v19937_v7  ;;  %7294 = vmatpush1.bf16.msra.mxu1 %v19942_v54 }
 0x99b   :  { %7254 = vmatprep.subr.bf16.mxu0 %v19949_v16  ;;  %7295 = vmatprep.subr.bf16.mxu1 %v19954_v40  ;;  %v24242_v16 = vld [vmem:[#allocation14_spill] sm:$0xff] }
 0x99c   :  { %v24243_v40 = vld [vmem:[#allocation22_spill] sm:$0xff] }
 0x99e   :  { %7255 = vmatpush1.bf16.msra.mxu0 %v19961_v23  ;;  %7296 = vmatpush1.bf16.msra.mxu1 %v19966_v21 }
 0x99f   :  { %7256 = vmatprep.subr.bf16.mxu0 %v19973_v17  ;;  %7297 = vmatprep.subr.bf16.mxu1 %v19978_v8  ;;  %v24244_v17 = vld [vmem:[#allocation13_spill] sm:$0xff] }
 0x9a0   :  { %v6112_v8 = vrot.slane %v6095_v37, %v24244_v17 }
 0x9a2   :  { %7257 = vmatpush1.bf16.msra.mxu0 %v19985_v48  ;;  %7298 = vmatpush1.bf16.msra.mxu1 %v19990_v43 }
 0x9a3   :  { %7258 = vmatprep.subr.bf16.mxu0 %v19997_v4  ;;  %7299 = vmatprep.subr.bf16.mxu1 %v20002_v14 }
 0x9a6   :  { %7259 = vmatpush1.bf16.msra.mxu0 %v20009_v38  ;;  %7300 = vmatpush1.bf16.msra.mxu1 %v20014_v46 }
 0x9a7   :  { %7260 = vmatprep.subr.bf16.mxu0 %v20021_v51  ;;  %7301 = vmatprep.subr.bf16.mxu1 %v20026_v13 }
 0x9aa   :  { %7261 = vmatpush1.bf16.msra.mxu0 %v20033_v3  ;;  %7302 = vmatpush1.bf16.msra.mxu1 %v20038_v2  ;;  %v24245_v2 = vld [vmem:[#allocation11_spill] sm:$0xff] }
 0x9ab   :  { %7262 = vmatprep.subr.bf16.mxu0 %v20045_v25  ;;  %7303 = vmatprep.subr.bf16.mxu1 %v20050_v58  ;;  %v6108_v25 = vrot.slane %v6095_v37, %v24245_v2  ;;  %v24246_v58 = vld [vmem:[#allocation23_spill] sm:$0xff] }
 0x9ae   :  { %7263 = vmatpush1.bf16.msra.mxu0 %v20057_v24  ;;  %7304 = vmatpush1.bf16.msra.mxu1 %v20062_v57  ;;  %v24247_v24 = vld [vmem:[#allocation24_spill] sm:$0xff]  ;;  %v24248_v57 = vld [vmem:[#allocation25_spill] sm:$0xff] }
 0x9af   :  { %7264 = vmatprep.subr.bf16.mxu0 %v20072_v45  ;;  %7305 = vmatprep.subr.bf16.mxu1 %v24240_v53  ;;  %v24249_v45 = vld [vmem:[#allocation26_spill] sm:$0xff] }
 0x9b2   :  { %7265 = vmatpush1.bf16.msra.mxu0 %v24242_v16  ;;  %7306 = vmatpush1.bf16.msra.mxu1 %v24243_v40  ;;  %v24272_v16 = vld [vmem:[#allocation82_spill] sm:$0xff]  ;;  %v24273_v40 = vld [vmem:[#allocation83_spill] sm:$0xff] }
 0x9b3   :  { %v6471_v7 = vpop.f32.mrb[92].mxu0  ;;  %v6512_v54 = vpop.f32.mrb[100].mxu1  ;;  %7266 = vmatprep.subr.bf16.mxu0 %v20098_v30  ;;  %7307 = vmatprep.subr.bf16.mxu1 %v20103_v1  ;;  %v24250_v1 = vld [vmem:[#allocation27_spill] sm:$0xff] }
 0x9b4   :  { %v6472_v23 = vadd.f32 %v6471_v7, %v6100_v20  ;;  %v6473_v21 = vpop.f32.mrb[93].mxu0  ;;  %v6514_v48 = vpop.f32.mrb[101].mxu1  ;;  %v6513_v30 = vadd.f32 %v6512_v54, %v6108_v25  ;;  %v24270_v7 = vld [vmem:[#allocation85_spill] sm:$0xff] }
 0x9b5   :  { %v6474_v43 = vadd.f32 %v6473_v21, %v6104_v18  ;;  %v6475_v4 = vpop.f32.mrb[94].mxu0  ;;  %v6516_v14 = vpop.f32.mrb[102].mxu1  ;;  %v6515_v3 = vadd.f32 %v6514_v48, %v6112_v8  ;;  %v24271_v54 = vld [vmem:[#allocation81_spill] sm:$0xff]  ;;  %v24275_v21 = vld [vmem:[#allocation86_spill] sm:$0xff] }
 0x9b6   :  { %v6537_v38 = vmul.f32 0.5, %v6472_v23  ;;  %v6476_v46 = vpop.f32.mrb[95].mxu0  ;;  %v6517_v51 = vpop.f32.mrb[103].mxu1  ;;  %7267 = vmatpush1.bf16.msra.mxu0 %v20111_v0  ;;  %7308 = vmatpush1.bf16.msra.mxu1 %v20116_v62  ;;  %v24251_v0 = vld [vmem:[#allocation28_spill] sm:$0xff]  ;;  %v6539_v62 = vmul.f32 0.5, %v6513_v30  ;;  %v24277_v8 = vld [vmem:[#allocation89_spill] sm:$0xff] }
 0x9b7   :  { %v6538_v13 = vmul.f32 0.5, %v6474_v43  ;;  %7268 = vmatprep.subr.bf16.mxu0 %v20123_v31  ;;  %7309 = vmatprep.subr.bf16.mxu1 %v20128_v11  ;;  %v24252_v31 = vld [vmem:[#allocation29_spill] sm:$0xff]  ;;  %v24253_v11 = vld [vmem:[#allocation16_spill] sm:$0xff] }
 0x9b8   :  { %16858 = vtanh.f32 %v6537_v38  ;;  %v24274_v23 = vld [vmem:[#allocation84_spill] sm:$0xff]  ;;  %v20554_v48 = vld [vmem:[%s23445_s3 + $0xc] ss:$16 sps:$4 sm:$0xff]   ;;  %v20559_v43 = vld [vmem:[%s23445_s3 + $0x8] ss:$16 sps:$4 sm:$0xff]  }
 0x9b9   :  { %16860 = vtanh.f32 %v6538_v13  ;;  %v24278_v4 = vld [vmem:[#allocation88_spill] sm:$0xff]  ;;  %v24279_v14 = vld [vmem:[#allocation93_spill] sm:$0xff]  ;;  %v24281_v13 = vld [vmem:[#allocation98_spill] sm:$0xff] }
 0x9ba   :  { %7269 = vmatpush1.bf16.msra.mxu0 %v24246_v58  ;;  %7310 = vmatpush1.bf16.msra.mxu1 %v24247_v24  ;;  %16862 = vtanh.f32 %v6515_v3  ;;  %v20568_v38 = vld [vmem:[%s23445_s3 + $0x2c] ss:$16 sps:$4 sm:$0xff]   ;;  %v20573_v46 = vld [vmem:[%s23445_s3 + $0x28] ss:$16 sps:$4 sm:$0xff]   ;;  %v24280_v51 = vld [vmem:[#allocation96_spill] sm:$0xff] }
 0x9bb   :  { %7270 = vmatprep.subr.bf16.mxu0 %v24248_v57  ;;  %7311 = vmatprep.subr.bf16.mxu1 %v24249_v45  ;;  %16864 = vtanh.f32 %v6539_v62  ;;  %v20582_v3 = vld [vmem:[%s23445_s3 + $0x4c] ss:$16 sps:$4 sm:$0xff]   ;;  %v20587_v25 = vld [vmem:[%s23445_s3 + $0x48] ss:$16 sps:$4 sm:$0xff]   ;;  %v24282_v58 = vld [vmem:[#allocation100_spill] sm:$0xff] }
 0x9bc   :  { %v20595_v24 = vld [vmem:[%s23445_s3 + $0x6c] ss:$16 sps:$4 sm:$0xff]   ;;  %v20600_v57 = vld [vmem:[%s23445_s3 + $0x68] ss:$16 sps:$4 sm:$0xff]  }
 0x9bd   :  { %v20607_v45 = vld [vmem:[%s23445_s3 + $0x8c] ss:$16 sps:$4 sm:$0xff]   ;;  %v20612_v30 = vld [vmem:[%s23445_s3 + $0x88] ss:$16 sps:$4 sm:$0xff]  }
 0x9be   :  { %7271 = vmatpush1.bf16.msra.mxu0 %v24250_v1  ;;  %7312 = vmatpush1.bf16.msra.mxu1 %v24251_v0  ;;  %v24283_v1 = vld [vmem:[#allocation92_spill] sm:$0xff]  ;;  %v24284_v0 = vld [vmem:[#allocation91_spill] sm:$0xff] }
 0x9bf   :  { %7272 = vmatprep.subr.bf16.mxu0 %v24252_v31  ;;  %7313 = vmatprep.subr.bf16.mxu1 %v24253_v11  ;;  %v24285_v31 = vld [vmem:[#allocation95_spill] sm:$0xff]  ;;  %v24286_v11 = vld [vmem:[#allocation97_spill] sm:$0xff] }
 0x9c0   :  { %v24287_v62 = vld [vmem:[#allocation99_spill] sm:$0xff] }
 0x9c2   :  { %v16859_v52 = vpop.eup %16858  ;;  %7273 = vmatpush1.bf16.msra.mxu0 %v24254_v34  ;;  %7314 = vmatpush1.bf16.msra.mxu1 %v24255_v56  ;;  %v20630_v34 = vld [vmem:[%s23447_s5 + $0xc] ss:$16 sps:$4 sm:$0xff]  }
 0x9c3   :  { %v6543_v22 = vmul.f32 0.5, %v16859_v52  ;;  %v16861_v49 = vpop.eup %16860  ;;  %7274 = vmatprep.subr.bf16.mxu0 %v20196_v61  ;;  %7315 = vmatprep.subr.bf16.mxu1 %v20201_v10  ;;  %v24258_v61 = vld [vmem:[#allocation20_spill] sm:$0xff]  ;;  %v24259_v10 = vld [vmem:[#allocation21_spill] sm:$0xff] }
 0x9c4   :  { %v6544_v33 = vmul.f32 0.5, %v16861_v49  ;;  %v16863_v44 = vpop.eup %16862  ;;  %v24288_v52 = vld [vmem:[#allocation101_spill] sm:$0xff] }
 0x9c5   :  { %v6546_v39 = vadd.f32 0.5, %v6543_v22  ;;  %v20625_v22 = vld [vmem:[%s23447_s5 + $0x4] ss:$16 sps:$4 sm:$0xff]  }
 0x9c6   :  { %v6547_v55 = vadd.f32 0.5, %v6544_v33  ;;  %7275 = vmatpush1.bf16.msra.mxu0 %v20208_v60  ;;  %7316 = vmatpush1.bf16.msra.mxu1 %v20213_v29  ;;  %v16865_v60 = vpop.eup %16864  ;;  %v24262_v29 = vld [vmem:[#allocation74_spill] sm:$0xff] }
 0x9c7   :  { %v6551_v41 = vmul.f32 %v16863_v44, %v6546_v39  ;;  %7276 = vmatprep.subr.bf16.mxu0 %v20220_v26  ;;  %7317 = vmatprep.subr.bf16.mxu1 %v24256_v35  ;;  %v24263_v26 = vld [vmem:[#allocation75_spill] sm:$0xff]  ;;  %v6545_v50 = vmul.f32 0.5, %v16865_v60  ;;  %v24289_v39 = vld [vmem:[#allocation38_spill] sm:$0xff] }
 0x9c8   :  { %v6550_v5 = vmul.f32 %v6547_v55, %v24257_v15  ;;  %v24290_v44 = vld [vmem:[#allocation39_spill] sm:$0xff]  ;;  %v24291_v15 = vld [vmem:[#allocation40_spill] sm:$0xff] }
 0x9c9   :  { %v6548_v37 = vadd.f32 0.5, %v6545_v50 }
 0x9ca   :  { %v20519_v36 = vadd.f32 %v6551_v41, %v6550_v5  ;;  %7277 = vmatpush1.bf16.msra.mxu0 %v24258_v61  ;;  %7318 = vmatpush1.bf16.msra.mxu1 %v24259_v10  ;;  %v24292_v61 = vld [vmem:[#allocation41_spill] sm:$0xff] }
 0x9cb   :  { %7278 = vmatprep.subr.bf16.mxu0 %v24260_v28  ;;  %7319 = vmatprep.subr.bf16.mxu1 %v24261_v9 }
 0x9cc   :  { %16866 = vtanh.f32 %v20519_v36 }
 0x9ce   :  { %7279 = vmatpush1.bf16.msra.mxu0 %v24262_v29  ;;  %7320 = vmatpush1.bf16.msra.mxu1 %v24263_v26 }
 0x9cf   :  { %7280 = vmatprep.subr.bf16.mxu0 %v20272_v47  ;;  %7321 = vmatprep.subr.bf16.mxu1 %v20277_v19  ;;  %v24267_v47 = vld [vmem:[#allocation79_spill] sm:$0xff]  ;;  %v24269_v19 = vld [vmem:[#allocation80_spill] sm:$0xff] }
 0x9d2   :  { %7281 = vmatpush1.bf16.msra.mxu0 %v20284_v27  ;;  %7322 = vmatpush1.bf16.msra.mxu1 %v24264_v32  ;;  %v24268_v27 = vmov 0  }
 0x9d3   :  { %7570 = vmatprep.subr.bf16.mxu0 %v24265_v63  ;;  %7611 = vmatprep.subr.bf16.mxu1 %v20554_v48 }
 0x9d6   :  { %v16867_v20 = vpop.eup %16866 }
 0x9d7   :  { %v20533_v53 = vmul.f32 %v16867_v20, %v6548_v37 }
 0x9d9   :  { %24266 = vst [vmem:[#allocation103_spill] sm:$0xff] %v20533_v53  ;;  %v6843_v18 = vpack.c.bf16 %v20533_v53, %v20533_v53 }
 0x9db   :  { %7282 = vmatprep.mubr.bf16.mxu0 %v6843_v18  ;;  %7323 = vmatprep.mubr.bf16.mxu1 %v6843_v18 }
 0x9dc   :  { %7283 = vmatmul.mubr.bf16.vlgmr.msra.gmra.mrb[100].mxu0 %v20455_v42  ;;  %7324 = vmatmul.mubr.bf16.vlgmr.msra.gmra.mrb[108].mxu1 %v20455_v42  ;;  %v24276_v42 = vld [vmem:[#allocation87_spill] sm:$0xff] }
 0x9dd   :  { %7571 = vmatpush1.bf16.msra.mxu0 %v24267_v47  ;;  %7602 = vmatprep.mubr.bf16.mxu0 %v24268_v27 }
 0x9de   :  { %7572 = vmatprep.subr.bf16.mxu0 %v24269_v19  ;;  %7643 = vmatprep.mubr.bf16.mxu1 %v24268_v27 }
 0x9df   :  { %7612 = vmatpush1.bf16.msra.mxu1 %v20559_v43 }
 0x9e0   :  { %7613 = vmatprep.subr.bf16.mxu1 %v20568_v38 }
 0x9e1   :  { %7573 = vmatpush1.bf16.msra.mxu0 %v24270_v7 }
 0x9e2   :  { %7574 = vmatprep.subr.bf16.mxu0 %v24271_v54 }
 0x9e3   :  { %7614 = vmatpush1.bf16.msra.mxu1 %v20573_v46 }
 0x9e4   :  { %7615 = vmatprep.subr.bf16.mxu1 %v20582_v3 }
 0x9e5   :  { %7575 = vmatpush1.bf16.msra.mxu0 %v24272_v16 }
 0x9e6   :  { %7576 = vmatprep.subr.bf16.mxu0 %v24273_v40 }
 0x9e7   :  { %7616 = vmatpush1.bf16.msra.mxu1 %v20587_v25 }
 0x9e8   :  { %7617 = vmatprep.subr.bf16.mxu1 %v20595_v24 }
 0x9e9   :  { %7577 = vmatpush1.bf16.msra.mxu0 %v24274_v23 }
 0x9ea   :  { %7578 = vmatprep.subr.bf16.mxu0 %v24275_v21 }
 0x9eb   :  { %7618 = vmatpush1.bf16.msra.mxu1 %v20600_v57 }
 0x9ec   :  { %7619 = vmatprep.subr.bf16.mxu1 %v20607_v45 }
 0x9ed   :  { %7579 = vmatpush1.bf16.msra.mxu0 %v24276_v42 }
 0x9ee   :  { %7580 = vmatprep.subr.bf16.mxu0 %v24277_v8 }
 0x9ef   :  { %7620 = vmatpush1.bf16.msra.mxu1 %v20612_v30 }
 0x9f0   :  { %7621 = vmatprep.subr.bf16.mxu1 %v24283_v1  ;;  %v20671_v1 = vld [vmem:[%s23447_s5 + $0x20] ss:$16 sps:$4 sm:$0xff]  }
 0x9f1   :  { %7581 = vmatpush1.bf16.msra.mxu0 %v24278_v4 }
 0x9f2   :  { %7582 = vmatprep.subr.bf16.mxu0 %v24279_v14  ;;  %v20645_v14 = vld [vmem:[%s23447_s5] ss:$16 sps:$4 sm:$0xff]  }
 0x9f3   :  { %7622 = vmatpush1.bf16.msra.mxu1 %v24284_v0  ;;  %v20676_v0 = vld [vmem:[%s23447_s5 + $0x28] ss:$16 sps:$4 sm:$0xff]  }
 0x9f4   :  { %7623 = vmatprep.subr.bf16.mxu1 %v24285_v31  ;;  %v20683_v31 = vld [vmem:[%s23447_s5 + $0x44] ss:$16 sps:$4 sm:$0xff]  }
 0x9f5   :  { %7583 = vmatpush1.bf16.msra.mxu0 %v24280_v51  ;;  %v20650_v51 = vld [vmem:[%s23447_s5 + $0x8] ss:$16 sps:$4 sm:$0xff]  }
 0x9f6   :  { %7584 = vmatprep.subr.bf16.mxu0 %v24281_v13  ;;  %v20657_v13 = vld [vmem:[%s23447_s5 + $0x24] ss:$16 sps:$4 sm:$0xff]  }
 0x9f7   :  { %7624 = vmatpush1.bf16.msra.mxu1 %v24286_v11  ;;  %v20688_v11 = vld [vmem:[%s23447_s5 + $0x4c] ss:$16 sps:$4 sm:$0xff]  }
 0x9f8   :  { %7625 = vmatprep.subr.bf16.mxu1 %v24287_v62  ;;  %v20695_v62 = vld [vmem:[%s23447_s5 + $0x40] ss:$16 sps:$4 sm:$0xff]  }
 0x9f9   :  { %7585 = vmatpush1.bf16.msra.mxu0 %v24282_v58  ;;  %v20662_v58 = vld [vmem:[%s23447_s5 + $0x2c] ss:$16 sps:$4 sm:$0xff]  }
 0x9fa   :  { %8063 = vmatprep.subr.bf16.mxu0 %v20625_v22 }
 0x9fb   :  { %7626 = vmatpush1.bf16.msra.mxu1 %v24288_v52  ;;  %v20700_v52 = vld [vmem:[%s23447_s5 + $0x48] ss:$16 sps:$4 sm:$0xff]  }
 0x9fc   :  { %8104 = vmatprep.subr.bf16.mxu1 %v20630_v34 }
 0xa68   :  { %v6791_v56 = vpop.f32.mrb[96].mxu0  ;;  %v6832_v49 = vpop.f32.mrb[104].mxu1 }
 0xa69   :  { %v6839_v33 = vadd.f32 %v6791_v56, %v24289_v39  ;;  %v6841_v55 = vadd.f32 %v6832_v49, %v24290_v44  ;;  %v6793_v41 = vpop.f32.mrb[97].mxu0  ;;  %v6834_v35 = vpop.f32.mrb[105].mxu1  ;;  %v20707_v56 = vld [vmem:[%s23447_s5 + $0x64] ss:$16 sps:$4 sm:$0xff]   ;;  %v20712_v49 = vld [vmem:[%s23447_s5 + $0x6c] ss:$16 sps:$4 sm:$0xff]  }
 0xa6a   :  { %v6840_v5 = vadd.f32 %v6793_v41, %v24291_v15  ;;  %v6842_v10 = vadd.f32 %v6834_v35, %v24292_v61  ;;  %v6795_v28 = vpop.f32.mrb[98].mxu0  ;;  %v6836_v9 = vpop.f32.mrb[106].mxu1  ;;  %v20719_v39 = vld [vmem:[%s23447_s5 + $0x60] ss:$16 sps:$4 sm:$0xff]   ;;  %v20731_v44 = vld [vmem:[%s23447_s5 + $0x84] ss:$16 sps:$4 sm:$0xff]  }
 0xa6b   :  { %v7332_v60 = vmul.f32 0.5, %v6839_v33  ;;  %v6796_v29 = vpop.f32.mrb[99].mxu0  ;;  %v6837_v26 = vpop.f32.mrb[107].mxu1  ;;  %v7334_v32 = vmul.f32 0.5, %v6841_v55  ;;  %v20724_v33 = vld [vmem:[%s23447_s5 + $0x68] ss:$16 sps:$4 sm:$0xff]  }
 0xa6c   :  { %v7333_v50 = vmul.f32 0.5, %v6840_v5  ;;  %v20736_v55 = vld [vmem:[%s23447_s5 + $0x8c] ss:$16 sps:$4 sm:$0xff]   ;;  %v20743_v41 = vld [vmem:[%s23447_s5 + $0x80] ss:$16 sps:$4 sm:$0xff]  }
 0xa6d   :  { %16868 = vtanh.f32 %v7332_v60  ;;  %v20748_v35 = vld [vmem:[%s23447_s5 + $0x88] ss:$16 sps:$4 sm:$0xff]   ;;  %v20755_v15 = vld [vmem:[%s23447_s5 + $0xa4] ss:$16 sps:$4 sm:$0xff]   ;;  %v20760_v5 = vld [vmem:[%s23447_s5 + $0xac] ss:$16 sps:$4 sm:$0xff]  }
 0xa6e   :  { %16870 = vtanh.f32 %v7333_v50  ;;  %v20767_v61 = vld [vmem:[%s23447_s5 + $0xa0] ss:$16 sps:$4 sm:$0xff]   ;;  %v20779_v28 = vld [vmem:[%s23447_s5 + $0xc4] ss:$16 sps:$4 sm:$0xff]   ;;  %v20784_v9 = vld [vmem:[%s23447_s5 + $0xcc] ss:$16 sps:$4 sm:$0xff]  }
 0xa6f   :  { %16872 = vtanh.f32 %v6842_v10  ;;  %v20772_v10 = vld [vmem:[%s23447_s5 + $0xa8] ss:$16 sps:$4 sm:$0xff]   ;;  %v20791_v60 = vld [vmem:[%s23447_s5 + $0xc0] ss:$16 sps:$4 sm:$0xff]   ;;  %v20803_v26 = vld [vmem:[%s23447_s5 + $0xe4] ss:$16 sps:$4 sm:$0xff]  }
 0xa70   :  { %16874 = vtanh.f32 %v7334_v32  ;;  %v20796_v29 = vld [vmem:[%s23447_s5 + $0xc8] ss:$16 sps:$4 sm:$0xff]   ;;  %24293 = vst [vmem:[#allocation102_spill] sm:$0xff] %v20803_v26  ;;  %v20808_v50 = vld [vmem:[%s23447_s5 + $0xec] ss:$16 sps:$4 sm:$0xff]  }
 0xa71   :  { %24294 = vst [vmem:[#allocation104_spill] sm:$0xff] %v20808_v50  ;;  %v6908_v32 = vld [vmem:[%s23448_s6] sm:$0xf] }
 0xa72   :  { %v6925_v53 = vrot.slane %v6908_v32, %v24244_v17 }
 0xa77   :  { %v16869_v63 = vpop.eup %16868 }
 0xa78   :  { %v7338_v37 = vmul.f32 0.5, %v16869_v63  ;;  %v16871_v20 = vpop.eup %16870  ;;  %v20818_v63 = vld [vmem:[%s23447_s5 + $0xe0] ss:$16 sps:$4 sm:$0xff]  }
 0xa79   :  { %v7339_v47 = vmul.f32 0.5, %v16871_v20  ;;  %v16873_v19 = vpop.eup %16872  ;;  %24295 = vst [vmem:[#allocation106_spill] sm:$0xff] %v20818_v63  ;;  %v20830_v20 = vld [vmem:[%s23447_s5 + $0x104] ss:$16 sps:$4 sm:$0xff]  }
 0xa7a   :  { %v7341_v18 = vadd.f32 0.5, %v7338_v37  ;;  %v16875_v23 = vpop.eup %16874  ;;  %v20823_v37 = vld [vmem:[%s23447_s5 + $0xe8] ss:$16 sps:$4 sm:$0xff]   ;;  %24297 = vst [vmem:[#allocation110_spill] sm:$0xff] %v20830_v20 }
 0xa7b   :  { %v7342_v7 = vadd.f32 0.5, %v7339_v47  ;;  %v7340_v21 = vmul.f32 0.5, %v16875_v23  ;;  %24296 = vst [vmem:[#allocation115_spill] sm:$0xff] %v20823_v37  ;;  %v6913_v47 = vrot.slane %v6908_v32, %v17491_v59 }
 0xa7c   :  { %v7346_v54 = vmul.f32 %v16873_v19, %v7341_v18  ;;  %v20835_v18 = vld [vmem:[%s23447_s5 + $0x10c] ss:$16 sps:$4 sm:$0xff]   ;;  %v6917_v19 = vrot.slane %v6908_v32, %v24241_v6 }
 0xa7d   :  { %v7345_v16 = vmul.f32 %v7342_v7, %v20452_v12  ;;  %v7343_v42 = vadd.f32 0.5, %v7340_v21  ;;  %24298 = vst [vmem:[#allocation108_spill] sm:$0xff] %v20835_v18  ;;  %v20844_v7 = vld [vmem:[%s23447_s5 + $0x100] ss:$16 sps:$4 sm:$0xff]   ;;  %v20856_v21 = vld [vmem:[%s23447_s5 + $0x124] ss:$16 sps:$4 sm:$0xff]  }
 0xa7f   :  { %v20639_v40 = vadd.f32 %v7346_v54, %v7345_v16  ;;  %v20849_v54 = vld [vmem:[%s23447_s5 + $0x108] ss:$16 sps:$4 sm:$0xff]  }
 0xa81   :  { %16876 = vtanh.f32 %v20639_v40 }
 0xa8b   :  { %v16877_v8 = vpop.eup %16876 }
 0xa8c   :  { %v7349_v4 = vmul.f32 %v16877_v8, %v7343_v42  ;;  %v20861_v42 = vld [vmem:[%s23447_s5 + $0x12c] ss:$16 sps:$4 sm:$0xff]  }
 0xa8e   :  { %v20652_v12 = vpack.c.bf16 %v7349_v4, %v7349_v4 }
 0xa90   :  { %7603 = vmatmul.mubr.bf16.vlgmr.msra.gmra.mrb[104].mxu0 %v20652_v12  ;;  %7644 = vmatmul.mubr.bf16.vlgmr.msra.gmra.mrb[112].mxu1 %v20652_v12 }
 0xa91   :  { %8064 = vmatpush1.bf16.msra.mxu0 %v20645_v14  ;;  %8105 = vmatpush1.bf16.msra.mxu1 %v20650_v51 }
 0xa92   :  { %8065 = vmatprep.subr.bf16.mxu0 %v20657_v13  ;;  %8106 = vmatprep.subr.bf16.mxu1 %v20662_v58 }
 0xa95   :  { %8066 = vmatpush1.bf16.msra.mxu0 %v20671_v1  ;;  %8107 = vmatpush1.bf16.msra.mxu1 %v20676_v0 }
 0xa96   :  { %8067 = vmatprep.subr.bf16.mxu0 %v20683_v31  ;;  %8108 = vmatprep.subr.bf16.mxu1 %v20688_v11 }
 0xa99   :  { %8068 = vmatpush1.bf16.msra.mxu0 %v20695_v62  ;;  %8109 = vmatpush1.bf16.msra.mxu1 %v20700_v52 }
 0xa9a   :  { %8069 = vmatprep.subr.bf16.mxu0 %v20707_v56  ;;  %8110 = vmatprep.subr.bf16.mxu1 %v20712_v49 }
 0xa9d   :  { %8070 = vmatpush1.bf16.msra.mxu0 %v20719_v39  ;;  %8111 = vmatpush1.bf16.msra.mxu1 %v20724_v33 }
 0xa9e   :  { %8071 = vmatprep.subr.bf16.mxu0 %v20731_v44  ;;  %8112 = vmatprep.subr.bf16.mxu1 %v20736_v55 }
 0xaa1   :  { %8072 = vmatpush1.bf16.msra.mxu0 %v20743_v41  ;;  %8113 = vmatpush1.bf16.msra.mxu1 %v20748_v35 }
 0xaa2   :  { %8073 = vmatprep.subr.bf16.mxu0 %v20755_v15  ;;  %8114 = vmatprep.subr.bf16.mxu1 %v20760_v5 }
 0xaa5   :  { %8074 = vmatpush1.bf16.msra.mxu0 %v20767_v61  ;;  %8115 = vmatpush1.bf16.msra.mxu1 %v20772_v10 }
 0xaa6   :  { %8075 = vmatprep.subr.bf16.mxu0 %v20779_v28  ;;  %8116 = vmatprep.subr.bf16.mxu1 %v20784_v9 }
 0xaa9   :  { %8076 = vmatpush1.bf16.msra.mxu0 %v20791_v60  ;;  %8117 = vmatpush1.bf16.msra.mxu1 %v20796_v29 }
 0xaaa   :  { %8077 = vmatprep.subr.bf16.mxu0 %v20803_v26  ;;  %8118 = vmatprep.subr.bf16.mxu1 %v20808_v50 }
 0xaad   :  { %8078 = vmatpush1.bf16.msra.mxu0 %v20818_v63  ;;  %8119 = vmatpush1.bf16.msra.mxu1 %v20823_v37 }
 0xaae   :  { %8079 = vmatprep.subr.bf16.mxu0 %v20830_v20  ;;  %8120 = vmatprep.subr.bf16.mxu1 %v20835_v18  ;;  %v20867_v18 = vld [vmem:[%s23447_s5 + $0x120] ss:$16 sps:$4 sm:$0xff]  }
 0xaaf   :  { %v7284_v16 = vpop.f32.mrb[100].mxu0  ;;  %v7325_v23 = vpop.f32.mrb[108].mxu1 }
 0xab0   :  { %v7285_v8 = vadd.f32 %v7284_v16, %v6913_v47  ;;  %v7286_v4 = vpop.f32.mrb[101].mxu0  ;;  %v7327_v37 = vpop.f32.mrb[109].mxu1  ;;  %v20874_v47 = vld [vmem:[%s23447_s5 + $0x128] ss:$16 sps:$4 sm:$0xff]  }
 0xab1   :  { %v7287_v63 = vadd.f32 %v7286_v4, %v6917_v19  ;;  %v7288_v6 = vpop.f32.mrb[102].mxu0  ;;  %v7329_v20 = vpop.f32.mrb[110].mxu1  ;;  %8080 = vmatpush1.bf16.msra.mxu0 %v20844_v7  ;;  %8121 = vmatpush1.bf16.msra.mxu1 %v20849_v54  ;;  %v20899_v16 = vld [vmem:[%s23447_s5 + $0x148] ss:$16 sps:$4 sm:$0xff]   ;;  %v20935_v4 = vld [vmem:[%s23447_s5 + $0x18c] ss:$16 sps:$4 sm:$0xff]  }
 0xab2   :  { %v7350_v59 = vmul.f32 0.5, %v7285_v8  ;;  %v7289_v50 = vpop.f32.mrb[103].mxu0  ;;  %v7330_v26 = vpop.f32.mrb[111].mxu1  ;;  %8081 = vmatprep.subr.bf16.mxu0 %v20856_v21  ;;  %8122 = vmatprep.subr.bf16.mxu1 %v20861_v42  ;;  %v20881_v6 = vld [vmem:[%s23447_s5 + $0x144] ss:$16 sps:$4 sm:$0xff]   ;;  %v6921_v20 = vrot.slane %v6908_v32, %v24245_v2  ;;  %24302 = vst [vmem:[#allocation112_spill] sm:$0xff] %v20899_v16 }
 0xab3   :  { %v7351_v19 = vmul.f32 0.5, %v7287_v63  ;;  %24299 = vst [vmem:[#allocation105_spill] sm:$0xff] %v20881_v6  ;;  %v20886_v26 = vld [vmem:[%s23447_s5 + $0x14c] ss:$16 sps:$4 sm:$0xff]   ;;  %v7328_v50 = vadd.f32 %v7327_v37, %v6925_v53  ;;  %v20894_v63 = vld [vmem:[%s23447_s5 + $0x140] ss:$16 sps:$4 sm:$0xff]  }
 0xab4   :  { %24300 = vst [vmem:[#allocation114_spill] sm:$0xff] %v20886_v26  ;;  %16878 = vtanh.f32 %v7350_v59  ;;  %24301 = vst [vmem:[#allocation111_spill] sm:$0xff] %v20894_v63  ;;  %v20906_v59 = vld [vmem:[%s23447_s5 + $0x164] ss:$16 sps:$4 sm:$0xff]   ;;  %v20911_v53 = vld [vmem:[%s23447_s5 + $0x16c] ss:$16 sps:$4 sm:$0xff]   ;;  %v7326_v32 = vadd.f32 %v7325_v23, %v6921_v20 }
 0xab5   :  { %16880 = vtanh.f32 %v7351_v19  ;;  %8082 = vmatpush1.bf16.msra.mxu0 %v20867_v18  ;;  %8123 = vmatpush1.bf16.msra.mxu1 %v20874_v47  ;;  %24303 = vst [vmem:[#allocation107_spill] sm:$0xff] %v20906_v59  ;;  %24304 = vst [vmem:[#allocation30_spill] sm:$0xff] %v20911_v53  ;;  %v20918_v37 = vld [vmem:[%s23447_s5 + $0x160] ss:$16 sps:$4 sm:$0xff]   ;;  %v20923_v8 = vld [vmem:[%s23447_s5 + $0x168] ss:$16 sps:$4 sm:$0xff]  }
 0xab6   :  { %8083 = vmatprep.subr.bf16.mxu0 %v20881_v6  ;;  %8124 = vmatprep.subr.bf16.mxu1 %v20886_v26  ;;  %16882 = vtanh.f32 %v7328_v50  ;;  %24305 = vst [vmem:[#allocation31_spill] sm:$0xff] %v20918_v37  ;;  %24306 = vst [vmem:[#allocation32_spill] sm:$0xff] %v20923_v8  ;;  %v20930_v23 = vld [vmem:[%s23447_s5 + $0x184] ss:$16 sps:$4 sm:$0xff]   ;;  %v7352_v19 = vmul.f32 0.5, %v7326_v32 }
 0xab7   :  { %24307 = vst [vmem:[#allocation33_spill] sm:$0xff] %v20930_v23  ;;  %24308 = vst [vmem:[#allocation34_spill] sm:$0xff] %v20935_v4  ;;  %v20942_v20 = vld [vmem:[%s23447_s5 + $0x180] ss:$16 sps:$4 sm:$0xff]   ;;  %v20954_v32 = vld [vmem:[%s23447_s5 + $0x1a4] ss:$16 sps:$4 sm:$0xff]  }
 0xab8   :  { %16884 = vtanh.f32 %v7352_v19 }
 0xab9   :  { %8084 = vmatpush1.bf16.msra.mxu0 %v20894_v63  ;;  %8125 = vmatpush1.bf16.msra.mxu1 %v20899_v16 }
 0xaba   :  { %8085 = vmatprep.subr.bf16.mxu0 %v20906_v59  ;;  %8126 = vmatprep.subr.bf16.mxu1 %v20911_v53  ;;  %v20947_v53 = vld [vmem:[%s23447_s5 + $0x188] ss:$16 sps:$4 sm:$0xff]  }
 0xabd   :  { %8086 = vmatpush1.bf16.msra.mxu0 %v20918_v37  ;;  %8127 = vmatpush1.bf16.msra.mxu1 %v20923_v8  ;;  %v20959_v8 = vld [vmem:[%s23447_s5 + $0x1ac] ss:$16 sps:$4 sm:$0xff]  }
 0xabe   :  { %v16879_v50 = vpop.eup %16878  ;;  %8087 = vmatprep.subr.bf16.mxu0 %v20930_v23  ;;  %8128 = vmatprep.subr.bf16.mxu1 %v20935_v4  ;;  %v20971_v4 = vld [vmem:[%s23447_s5 + $0x1a8] ss:$16 sps:$4 sm:$0xff]  }
 0xabf   :  { %v7356_v59 = vmul.f32 0.5, %v16879_v50  ;;  %v16881_v37 = vpop.eup %16880  ;;  %v20966_v50 = vld [vmem:[%s23447_s5 + $0x1a0] ss:$16 sps:$4 sm:$0xff]   ;;  %24310 = vst [vmem:[#allocation36_spill] sm:$0xff] %v20971_v4 }
 0xac0   :  { %v7357_v63 = vmul.f32 0.5, %v16881_v37  ;;  %v16883_v26 = vpop.eup %16882  ;;  %24309 = vst [vmem:[#allocation35_spill] sm:$0xff] %v20966_v50  ;;  %v20983_v37 = vld [vmem:[%s23447_s5 + $0x1cc] ss:$16 sps:$4 sm:$0xff]  }
 0xac1   :  { %v7359_v16 = vadd.f32 0.5, %v7356_v59  ;;  %8088 = vmatpush1.bf16.msra.mxu0 %v20942_v20  ;;  %8129 = vmatpush1.bf16.msra.mxu1 %v20947_v53  ;;  %v20978_v59 = vld [vmem:[%s23447_s5 + $0x1c4] ss:$16 sps:$4 sm:$0xff]   ;;  %24312 = vst [vmem:[#allocation113_spill] sm:$0xff] %v20983_v37 }
 0xac2   :  { %v7360_v23 = vadd.f32 0.5, %v7357_v63  ;;  %8089 = vmatprep.subr.bf16.mxu0 %v20954_v32  ;;  %8130 = vmatprep.subr.bf16.mxu1 %v20959_v8  ;;  %24311 = vst [vmem:[#allocation37_spill] sm:$0xff] %v20978_v59  ;;  %v20996_v63 = vld [vmem:[%s23447_s5 + $0x1c8] ss:$16 sps:$4 sm:$0xff]  }
 0xac3   :  { %v7364_v6 = vmul.f32 %v16883_v26, %v7359_v16  ;;  %v20991_v26 = vld [vmem:[%s23447_s5 + $0x1c0] ss:$16 sps:$4 sm:$0xff]   ;;  %24314 = vst [vmem:[#allocation22_spill] sm:$0xff] %v20996_v63 }
 0xac4   :  { %v7363_v19 = vmul.f32 %v7360_v23, %v20519_v36  ;;  %24313 = vst [vmem:[#allocation14_spill] sm:$0xff] %v20991_v26  ;;  %v21005_v36 = vld [vmem:[%s23447_s5 + $0x1e4] ss:$16 sps:$4 sm:$0xff]   ;;  %v21010_v23 = vld [vmem:[%s23447_s5 + $0x1ec] ss:$16 sps:$4 sm:$0xff]  }
 0xac5   :  { %8090 = vmatpush1.bf16.msra.mxu0 %v20966_v50  ;;  %8131 = vmatpush1.bf16.msra.mxu1 %v20971_v4 }
 0xac6   :  { %v20998_v16 = vadd.f32 %v7364_v6, %v7363_v19  ;;  %8091 = vmatprep.subr.bf16.mxu0 %v20978_v59  ;;  %8132 = vmatprep.subr.bf16.mxu1 %v20983_v37  ;;  %v21018_v6 = vld [vmem:[%s23447_s5 + $0x1e0] ss:$16 sps:$4 sm:$0xff]   ;;  %v21023_v19 = vld [vmem:[%s23447_s5 + $0x1e8] ss:$16 sps:$4 sm:$0xff]   ;;  %v16885_v37 = vpop.eup %16884 }
 0xac7   :  { %24315 = vst [vmem:[#allocation23_spill] sm:$0xff] %v21023_v19  ;;  %v7358_v59 = vmul.f32 0.5, %v16885_v37  ;;  %v21125_v37 = vld [vmem:[%s23445_s3 + $0xac] ss:$16 sps:$4 sm:$0xff]  }
 0xac8   :  { %16886 = vtanh.f32 %v20998_v16  ;;  %24330 = vst [vmem:[#allocation72_spill] sm:$0xff] %v21125_v37 }
 0xac9   :  { %8092 = vmatpush1.bf16.msra.mxu0 %v20991_v26  ;;  %8133 = vmatpush1.bf16.msra.mxu1 %v20996_v63  ;;  %v7361_v63 = vadd.f32 0.5, %v7358_v59  ;;  %v21120_v59 = vld [vmem:[%s23445_s3 + $0xa8] ss:$16 sps:$4 sm:$0xff]  }
 0xaca   :  { %8093 = vmatprep.subr.bf16.mxu0 %v21005_v36  ;;  %8134 = vmatprep.subr.bf16.mxu1 %v21010_v23  ;;  %24329 = vst [vmem:[#allocation71_spill] sm:$0xff] %v21120_v59 }
 0xacd   :  { %8094 = vmatpush1.bf16.msra.mxu0 %v21018_v6  ;;  %8135 = vmatpush1.bf16.msra.mxu1 %v21023_v19 }
 0xace   :  { %8424 = vmatprep.subr.bf16.mxu1 %v20554_v48  ;;  %v21050_v48 = vld [vmem:[%s23445_s3 + $0x4] ss:$16 sps:$4 sm:$0xff]  }
 0xacf   :  { %24317 = vst [vmem:[#allocation25_spill] sm:$0xff] %v21050_v48  ;;  %8383 = vmatprep.subr.bf16.mxu0 %v21050_v48 }
 0xad2   :  { %v16887_v26 = vpop.eup %16886 }
 0xad3   :  { %v21030_v4 = vmul.f32 %v16887_v26, %v7361_v63  ;;  %v21130_v26 = vld [vmem:[%s23445_s3 + $0xc4] ss:$16 sps:$4 sm:$0xff]   ;;  %v21136_v63 = vld [vmem:[%s23445_s3 + $0xcc] ss:$16 sps:$4 sm:$0xff]  }
 0xad4   :  { %24331 = vst [vmem:[#allocation74_spill] sm:$0xff] %v21130_v26  ;;  %24332 = vst [vmem:[#allocation75_spill] sm:$0xff] %v21136_v63 }
 0xad5   :  { %24316 = vst [vmem:[#allocation24_spill] sm:$0xff] %v21030_v4  ;;  %v7656_v50 = vpack.c.bf16 %v21030_v4, %v21030_v4  ;;  %v21144_v4 = vld [vmem:[%s23445_s3 + $0xc0] ss:$16 sps:$4 sm:$0xff]  }
 0xad6   :  { %24333 = vst [vmem:[#allocation76_spill] sm:$0xff] %v21144_v4 }
 0xad7   :  { %8095 = vmatprep.mubr.bf16.mxu0 %v7656_v50  ;;  %8136 = vmatprep.mubr.bf16.mxu1 %v7656_v50  ;;  %v21115_v50 = vld [vmem:[%s23445_s3 + $0xa4] ss:$16 sps:$4 sm:$0xff]  }
 0xad8   :  { %8096 = vmatmul.mubr.bf16.vlgmr.msra.gmra.mrb[108].mxu0 %v20652_v12  ;;  %8137 = vmatmul.mubr.bf16.vlgmr.msra.gmra.mrb[116].mxu1 %v20652_v12  ;;  %v21110_v12 = vld [vmem:[%s23445_s3 + $0xa0] ss:$16 sps:$4 sm:$0xff]   ;;  %24328 = vst [vmem:[#allocation21_spill] sm:$0xff] %v21115_v50 }
 0xad9   :  { %8425 = vmatpush1.bf16.msra.mxu1 %v20559_v43  ;;  %8415 = vmatprep.mubr.bf16.mxu0 %v24268_v27  ;;  %v21055_v43 = vld [vmem:[%s23445_s3] ss:$16 sps:$4 sm:$0xff]   ;;  %24327 = vst [vmem:[#allocation20_spill] sm:$0xff] %v21110_v12 }
 0xada   :  { %8426 = vmatprep.subr.bf16.mxu1 %v20568_v38  ;;  %8456 = vmatprep.mubr.bf16.mxu1 %v24268_v27  ;;  %24318 = vst [vmem:[#allocation26_spill] sm:$0xff] %v21055_v43  ;;  %v21062_v38 = vld [vmem:[%s23445_s3 + $0x24] ss:$16 sps:$4 sm:$0xff]  }
 0xadb   :  { %8384 = vmatpush1.bf16.msra.mxu0 %v21055_v43  ;;  %24319 = vst [vmem:[#allocation27_spill] sm:$0xff] %v21062_v38 }
 0xadc   :  { %8385 = vmatprep.subr.bf16.mxu0 %v21062_v38 }
 0xadd   :  { %8427 = vmatpush1.bf16.msra.mxu1 %v20573_v46  ;;  %v21067_v46 = vld [vmem:[%s23445_s3 + $0x20] ss:$16 sps:$4 sm:$0xff]  }
 0xade   :  { %8428 = vmatprep.subr.bf16.mxu1 %v20582_v3  ;;  %24320 = vst [vmem:[#allocation28_spill] sm:$0xff] %v21067_v46  ;;  %v21074_v3 = vld [vmem:[%s23445_s3 + $0x44] ss:$16 sps:$4 sm:$0xff]  }
 0xadf   :  { %8386 = vmatpush1.bf16.msra.mxu0 %v21067_v46  ;;  %24321 = vst [vmem:[#allocation29_spill] sm:$0xff] %v21074_v3  ;;  %v24342_v46 = vld [vmem:[#allocation45_spill] sm:$0xff] }
 0xae0   :  { %8387 = vmatprep.subr.bf16.mxu0 %v21074_v3  ;;  %v24341_v3 = vld [vmem:[#allocation44_spill] sm:$0xff] }
 0xae1   :  { %8429 = vmatpush1.bf16.msra.mxu1 %v20587_v25  ;;  %v21079_v25 = vld [vmem:[%s23445_s3 + $0x40] ss:$16 sps:$4 sm:$0xff]  }
 0xae2   :  { %8430 = vmatprep.subr.bf16.mxu1 %v20595_v24  ;;  %24322 = vst [vmem:[#allocation16_spill] sm:$0xff] %v21079_v25  ;;  %v21086_v24 = vld [vmem:[%s23445_s3 + $0x64] ss:$16 sps:$4 sm:$0xff]  }
 0xae3   :  { %8388 = vmatpush1.bf16.msra.mxu0 %v21079_v25  ;;  %24323 = vst [vmem:[#allocation17_spill] sm:$0xff] %v21086_v24 }
 0xae4   :  { %8389 = vmatprep.subr.bf16.mxu0 %v21086_v24 }
 0xae5   :  { %8431 = vmatpush1.bf16.msra.mxu1 %v20600_v57  ;;  %v21091_v57 = vld [vmem:[%s23445_s3 + $0x60] ss:$16 sps:$4 sm:$0xff]  }
 0xae6   :  { %8432 = vmatprep.subr.bf16.mxu1 %v20607_v45  ;;  %24324 = vst [vmem:[#allocation18_spill] sm:$0xff] %v21091_v57  ;;  %v21098_v45 = vld [vmem:[%s23445_s3 + $0x84] ss:$16 sps:$4 sm:$0xff]  }
 0xae7   :  { %8390 = vmatpush1.bf16.msra.mxu0 %v21091_v57  ;;  %24325 = vst [vmem:[#allocation19_spill] sm:$0xff] %v21098_v45 }
 0xae8   :  { %8391 = vmatprep.subr.bf16.mxu0 %v21098_v45  ;;  %v24340_v45 = vld [vmem:[#allocation43_spill] sm:$0xff] }
 0xae9   :  { %8433 = vmatpush1.bf16.msra.mxu1 %v20612_v30  ;;  %v21103_v30 = vld [vmem:[%s23445_s3 + $0x80] ss:$16 sps:$4 sm:$0xff]  }
 0xaea   :  { %24326 = vst [vmem:[#allocation73_spill] sm:$0xff] %v21103_v30  ;;  %8434 = vmatprep.subr.bf16.mxu1 %v21125_v37  ;;  %v21156_v37 = vld [vmem:[%s23445_s3 + $0xe4] ss:$16 sps:$4 sm:$0xff]  }
 0xaeb   :  { %8392 = vmatpush1.bf16.msra.mxu0 %v21103_v30  ;;  %24335 = vst [vmem:[#allocation79_spill] sm:$0xff] %v21156_v37 }
 0xaec   :  { %8393 = vmatprep.subr.bf16.mxu0 %v21115_v50  ;;  %v21149_v50 = vld [vmem:[%s23445_s3 + $0xc8] ss:$16 sps:$4 sm:$0xff]  }
 0xaed   :  { %8435 = vmatpush1.bf16.msra.mxu1 %v21120_v59  ;;  %24334 = vst [vmem:[#allocation78_spill] sm:$0xff] %v21149_v50  ;;  %v21161_v59 = vld [vmem:[%s23445_s3 + $0xec] ss:$16 sps:$4 sm:$0xff]  }
 0xaee   :  { %8436 = vmatprep.subr.bf16.mxu1 %v21136_v63  ;;  %24336 = vst [vmem:[#allocation80_spill] sm:$0xff] %v21161_v59  ;;  %v21173_v63 = vld [vmem:[%s23445_s3 + $0xe8] ss:$16 sps:$4 sm:$0xff]  }
 0xaef   :  { %8394 = vmatpush1.bf16.msra.mxu0 %v21110_v12  ;;  %24338 = vst [vmem:[#allocation81_spill] sm:$0xff] %v21173_v63  ;;  %v24339_v12 = vld [vmem:[#allocation42_spill] sm:$0xff] }
 0xaf0   :  { %8395 = vmatprep.subr.bf16.mxu0 %v21130_v26  ;;  %v21168_v26 = vld [vmem:[%s23445_s3 + $0xe0] ss:$16 sps:$4 sm:$0xff]  }
 0xaf1   :  { %8437 = vmatpush1.bf16.msra.mxu1 %v21149_v50  ;;  %24337 = vst [vmem:[#allocation85_spill] sm:$0xff] %v21168_v26 }
 0xaf2   :  { %8438 = vmatprep.subr.bf16.mxu1 %v21161_v59 }
 0xaf3   :  { %8396 = vmatpush1.bf16.msra.mxu0 %v21144_v4 }
 0xaf4   :  { %8397 = vmatprep.subr.bf16.mxu0 %v21156_v37 }
 0xaf5   :  { %8439 = vmatpush1.bf16.msra.mxu1 %v21173_v63 }
 0xaf6   :  { %8917 = vmatprep.subr.bf16.mxu1 %v20630_v34 }
 0xaf7   :  { %8398 = vmatpush1.bf16.msra.mxu0 %v21168_v26 }
 0xaf8   :  { %8876 = vmatprep.subr.bf16.mxu0 %v20625_v22 }
 0xb63   :  { %v7604_v50 = vpop.f32.mrb[104].mxu0  ;;  %v7645_v4 = vpop.f32.mrb[112].mxu1 }
 0xb64   :  { %v7652_v30 = vadd.f32 %v7604_v50, %v24339_v12  ;;  %v7654_v57 = vadd.f32 %v7645_v4, %v24340_v45  ;;  %v7606_v24 = vpop.f32.mrb[105].mxu0  ;;  %v7647_v25 = vpop.f32.mrb[113].mxu1 }
 0xb65   :  { %v7653_v37 = vadd.f32 %v7606_v24, %v24341_v3  ;;  %v7655_v59 = vadd.f32 %v7647_v25, %v24342_v46  ;;  %v7608_v38 = vpop.f32.mrb[106].mxu0  ;;  %v7649_v26 = vpop.f32.mrb[114].mxu1 }
 0xb66   :  { %v8145_v27 = vmul.f32 0.5, %v7652_v30  ;;  %v7609_v63 = vpop.f32.mrb[107].mxu0  ;;  %v7650_v43 = vpop.f32.mrb[115].mxu1  ;;  %v8147_v34 = vmul.f32 0.5, %v7654_v57  ;;  %v24357_v26 = vld [vmem:[#allocation31_spill] sm:$0xff] }
 0xb67   :  { %v8146_v22 = vmul.f32 0.5, %v7653_v37  ;;  %v24359_v63 = vld [vmem:[#allocation33_spill] sm:$0xff] }
 0xb68   :  { %16888 = vtanh.f32 %v8145_v27 }
 0xb69   :  { %16890 = vtanh.f32 %v8146_v22  ;;  %v24360_v22 = vld [vmem:[#allocation34_spill] sm:$0xff] }
 0xb6a   :  { %16892 = vtanh.f32 %v7655_v59 }
 0xb6b   :  { %16894 = vtanh.f32 %v8147_v34 }
 0xb72   :  { %v16889_v48 = vpop.eup %16888 }
 0xb73   :  { %v8151_v12 = vmul.f32 0.5, %v16889_v48  ;;  %v16891_v50 = vpop.eup %16890  ;;  %v24356_v48 = vld [vmem:[#allocation30_spill] sm:$0xff] }
 0xb74   :  { %v8152_v45 = vmul.f32 0.5, %v16891_v50  ;;  %v16893_v19 = vpop.eup %16892 }
 0xb75   :  { %v8154_v4 = vadd.f32 0.5, %v8151_v12  ;;  %v16895_v43 = vpop.eup %16894 }
 0xb76   :  { %v8155_v3 = vadd.f32 0.5, %v8152_v45  ;;  %v8153_v27 = vmul.f32 0.5, %v16895_v43  ;;  %v24361_v43 = vld [vmem:[#allocation35_spill] sm:$0xff] }
 0xb77   :  { %v8159_v24 = vmul.f32 %v16893_v19, %v8154_v4  ;;  %v24353_v19 = vld [vmem:[#allocation111_spill] sm:$0xff] }
 0xb78   :  { %v8158_v38 = vmul.f32 %v8155_v3, %v20639_v40  ;;  %v8156_v25 = vadd.f32 0.5, %v8153_v27  ;;  %v7721_v40 = vld [vmem:[%s23448_s6] sm:$0xf]  ;;  %v24362_v27 = vld [vmem:[#allocation36_spill] sm:$0xff] }
 0xb7a   :  { %v21186_v46 = vadd.f32 %v8159_v24, %v8158_v38 }
 0xb7c   :  { %16896 = vtanh.f32 %v21186_v46 }
 0xb86   :  { %v16897_v30 = vpop.eup %16896 }
 0xb87   :  { %v8162_v57 = vmul.f32 %v16897_v30, %v8156_v25  ;;  %v24363_v25 = vld [vmem:[#allocation37_spill] sm:$0xff] }
 0xb88   :  { %v24364_v30 = vld [vmem:[#allocation113_spill] sm:$0xff] }
 0xb89   :  { %v21189_v59 = vpack.c.bf16 %v8162_v57, %v8162_v57 }
 0xb8b   :  { %8416 = vmatmul.mubr.bf16.vlgmr.msra.gmra.mrb[112].mxu0 %v21189_v59  ;;  %8457 = vmatmul.mubr.bf16.vlgmr.msra.gmra.mrb[120].mxu1 %v21189_v59 }
 0xb8c   :  { %8877 = vmatpush1.bf16.msra.mxu0 %v20645_v14  ;;  %8918 = vmatpush1.bf16.msra.mxu1 %v20650_v51  ;;  %v24343_v14 = vld [vmem:[#allocation102_spill] sm:$0xff]  ;;  %v24344_v51 = vld [vmem:[#allocation104_spill] sm:$0xff] }
 0xb8d   :  { %8878 = vmatprep.subr.bf16.mxu0 %v20657_v13  ;;  %8919 = vmatprep.subr.bf16.mxu1 %v20662_v58  ;;  %v24345_v13 = vld [vmem:[#allocation10_spill] sm:$0xff] }
 0xb8e   :  { %v7726_v58 = vrot.slane %v7721_v40, %v24345_v13 }
 0xb90   :  { %8879 = vmatpush1.bf16.msra.mxu0 %v20671_v1  ;;  %8920 = vmatpush1.bf16.msra.mxu1 %v20676_v0  ;;  %v24346_v1 = vld [vmem:[#allocation12_spill] sm:$0xff] }
 0xb91   :  { %8880 = vmatprep.subr.bf16.mxu0 %v20683_v31  ;;  %8921 = vmatprep.subr.bf16.mxu1 %v20688_v11  ;;  %v7730_v0 = vrot.slane %v7721_v40, %v24346_v1  ;;  %v24347_v31 = vld [vmem:[#allocation106_spill] sm:$0xff]  ;;  %v24348_v11 = vld [vmem:[#allocation115_spill] sm:$0xff] }
 0xb94   :  { %8881 = vmatpush1.bf16.msra.mxu0 %v20695_v62  ;;  %8922 = vmatpush1.bf16.msra.mxu1 %v20700_v52  ;;  %v24349_v62 = vld [vmem:[#allocation110_spill] sm:$0xff]  ;;  %v24350_v52 = vld [vmem:[#allocation108_spill] sm:$0xff] }
 0xb95   :  { %8882 = vmatprep.subr.bf16.mxu0 %v20707_v56  ;;  %8923 = vmatprep.subr.bf16.mxu1 %v20712_v49 }
 0xb98   :  { %8883 = vmatpush1.bf16.msra.mxu0 %v20719_v39  ;;  %8924 = vmatpush1.bf16.msra.mxu1 %v20724_v33 }
 0xb99   :  { %8884 = vmatprep.subr.bf16.mxu0 %v20731_v44  ;;  %8925 = vmatprep.subr.bf16.mxu1 %v20736_v55  ;;  %v7738_v44 = vrot.slane %v7721_v40, %v24244_v17 }
 0xb9c   :  { %8885 = vmatpush1.bf16.msra.mxu0 %v20743_v41  ;;  %8926 = vmatpush1.bf16.msra.mxu1 %v20748_v35 }
 0xb9d   :  { %8886 = vmatprep.subr.bf16.mxu0 %v20755_v15  ;;  %8927 = vmatprep.subr.bf16.mxu1 %v20760_v5 }
 0xba0   :  { %8887 = vmatpush1.bf16.msra.mxu0 %v20767_v61  ;;  %8928 = vmatpush1.bf16.msra.mxu1 %v20772_v10 }
 0xba1   :  { %8888 = vmatprep.subr.bf16.mxu0 %v20779_v28  ;;  %8929 = vmatprep.subr.bf16.mxu1 %v20784_v9 }
 0xba4   :  { %8889 = vmatpush1.bf16.msra.mxu0 %v20791_v60  ;;  %8930 = vmatpush1.bf16.msra.mxu1 %v20796_v29  ;;  %v7734_v60 = vrot.slane %v7721_v40, %v24245_v2  ;;  %v24351_v29 = vld [vmem:[#allocation105_spill] sm:$0xff] }
 0xba5   :  { %8890 = vmatprep.subr.bf16.mxu0 %v24343_v14  ;;  %8931 = vmatprep.subr.bf16.mxu1 %v24344_v51  ;;  %v24368_v40 = vld [vmem:[#allocation25_spill] sm:$0xff] }
 0xba8   :  { %8891 = vmatpush1.bf16.msra.mxu0 %v24347_v31  ;;  %8932 = vmatpush1.bf16.msra.mxu1 %v24348_v11  ;;  %v24373_v31 = vld [vmem:[#allocation28_spill] sm:$0xff]  ;;  %v24374_v11 = vld [vmem:[#allocation29_spill] sm:$0xff] }
 0xba9   :  { %8892 = vmatprep.subr.bf16.mxu0 %v24349_v62  ;;  %8933 = vmatprep.subr.bf16.mxu1 %v24350_v52  ;;  %v24375_v62 = vld [vmem:[#allocation16_spill] sm:$0xff]  ;;  %v24376_v52 = vld [vmem:[#allocation17_spill] sm:$0xff] }
 0xbab   :  { %v8097_v56 = vpop.f32.mrb[108].mxu0  ;;  %v8138_v49 = vpop.f32.mrb[116].mxu1 }
 0xbac   :  { %v8098_v39 = vadd.f32 %v8097_v56, %v7726_v58  ;;  %v8099_v33 = vpop.f32.mrb[109].mxu0  ;;  %v8140_v55 = vpop.f32.mrb[117].mxu1  ;;  %8893 = vmatpush1.bf16.msra.mxu0 %v20844_v7  ;;  %8934 = vmatpush1.bf16.msra.mxu1 %v20849_v54  ;;  %v24352_v7 = vld [vmem:[#allocation114_spill] sm:$0xff]  ;;  %v8139_v54 = vadd.f32 %v8138_v49, %v7734_v60  ;;  %v24378_v49 = vld [vmem:[#allocation19_spill] sm:$0xff]  ;;  %v24385_v60 = vld [vmem:[#allocation85_spill] sm:$0xff] }
 0xbad   :  { %v8100_v41 = vadd.f32 %v8099_v33, %v7730_v0  ;;  %v8101_v35 = vpop.f32.mrb[110].mxu0  ;;  %v8142_v15 = vpop.f32.mrb[118].mxu1  ;;  %8894 = vmatprep.subr.bf16.mxu0 %v20856_v21  ;;  %8935 = vmatprep.subr.bf16.mxu1 %v20861_v42  ;;  %v8141_v9 = vadd.f32 %v8140_v55, %v7738_v44  ;;  %v24354_v21 = vld [vmem:[#allocation112_spill] sm:$0xff]  ;;  %v24355_v42 = vld [vmem:[#allocation107_spill] sm:$0xff]  ;;  %v24377_v56 = vld [vmem:[#allocation18_spill] sm:$0xff] }
 0xbae   :  { %v8163_v5 = vmul.f32 0.5, %v8098_v39  ;;  %v8102_v61 = vpop.f32.mrb[111].mxu0  ;;  %v8143_v10 = vpop.f32.mrb[119].mxu1  ;;  %v8165_v37 = vmul.f32 0.5, %v8139_v54  ;;  %v24379_v39 = vld [vmem:[#allocation73_spill] sm:$0xff]  ;;  %v24382_v15 = vld [vmem:[#allocation74_spill] sm:$0xff] }
 0xbaf   :  { %v8164_v28 = vmul.f32 0.5, %v8100_v41  ;;  %v21292_v33 = vld [vmem:[%s23445_s3 + $0x8] ss:$16 sps:$4 sm:$0xff]   ;;  %v21300_v55 = vld [vmem:[%s23445_s3 + $0x2c] ss:$16 sps:$4 sm:$0xff]   ;;  %v24381_v41 = vld [vmem:[#allocation20_spill] sm:$0xff] }
 0xbb0   :  { %16898 = vtanh.f32 %v8163_v5  ;;  %8895 = vmatpush1.bf16.msra.mxu0 %v20867_v18  ;;  %8936 = vmatpush1.bf16.msra.mxu1 %v20874_v47  ;;  %v24358_v18 = vld [vmem:[#allocation32_spill] sm:$0xff]  ;;  %v24380_v44 = vld [vmem:[#allocation21_spill] sm:$0xff] }
 0xbb1   :  { %16900 = vtanh.f32 %v8164_v28  ;;  %8896 = vmatprep.subr.bf16.mxu0 %v24351_v29  ;;  %8937 = vmatprep.subr.bf16.mxu1 %v24352_v7  ;;  %v21306_v35 = vld [vmem:[%s23445_s3 + $0x28] ss:$16 sps:$4 sm:$0xff]   ;;  %v21314_v5 = vld [vmem:[%s23445_s3 + $0x4c] ss:$16 sps:$4 sm:$0xff]   ;;  %v24383_v61 = vld [vmem:[#allocation76_spill] sm:$0xff] }
 0xbb2   :  { %16902 = vtanh.f32 %v8141_v9  ;;  %v21320_v10 = vld [vmem:[%s23445_s3 + $0x48] ss:$16 sps:$4 sm:$0xff]   ;;  %v21328_v9 = vld [vmem:[%s23445_s3 + $0x6c] ss:$16 sps:$4 sm:$0xff]  }
 0xbb3   :  { %16904 = vtanh.f32 %v8165_v37  ;;  %v24384_v28 = vld [vmem:[#allocation79_spill] sm:$0xff]  ;;  %v24390_v37 = vld [vmem:[#allocation80_spill] sm:$0xff] }
 0xbb4   :  { %8897 = vmatpush1.bf16.msra.mxu0 %v24353_v19  ;;  %8938 = vmatpush1.bf16.msra.mxu1 %v24354_v21  ;;  %v21334_v29 = vld [vmem:[%s23445_s3 + $0x68] ss:$16 sps:$4 sm:$0xff]   ;;  %v21341_v7 = vld [vmem:[%s23445_s3 + $0x8c] ss:$16 sps:$4 sm:$0xff]   ;;  %v24386_v19 = vld [vmem:[#allocation72_spill] sm:$0xff] }
 0xbb5   :  { %8898 = vmatprep.subr.bf16.mxu0 %v24355_v42  ;;  %8939 = vmatprep.subr.bf16.mxu1 %v24356_v48  ;;  %v21346_v54 = vld [vmem:[%s23445_s3 + $0x88] ss:$16 sps:$4 sm:$0xff]   ;;  %v24389_v48 = vld [vmem:[#allocation78_spill] sm:$0xff] }
 0xbb6   :  { %v24387_v21 = vld [vmem:[#allocation71_spill] sm:$0xff] }
 0xbb7   :  { %v24388_v42 = vld [vmem:[#allocation75_spill] sm:$0xff] }
 0xbb8   :  { %8899 = vmatpush1.bf16.msra.mxu0 %v24357_v26  ;;  %8940 = vmatpush1.bf16.msra.mxu1 %v24358_v18  ;;  %v24391_v26 = vld [vmem:[#allocation81_spill] sm:$0xff]  ;;  %v21359_v18 = vld [vmem:[%s23447_s5 + $0x4] ss:$16 sps:$4 sm:$0xff]  }
 0xbb9   :  { %8900 = vmatprep.subr.bf16.mxu0 %v24359_v63  ;;  %8941 = vmatprep.subr.bf16.mxu1 %v24360_v22 }
 0xbba   :  { %v16899_v47 = vpop.eup %16898 }
 0xbbb   :  { %v8169_v34 = vmul.f32 0.5, %v16899_v47  ;;  %v16901_v12 = vpop.eup %16900  ;;  %v21364_v47 = vld [vmem:[%s23447_s5 + $0xc] ss:$16 sps:$4 sm:$0xff]  }
 0xbbc   :  { %v8170_v4 = vmul.f32 0.5, %v16901_v12  ;;  %8901 = vmatpush1.bf16.msra.mxu0 %v20942_v20  ;;  %8942 = vmatpush1.bf16.msra.mxu1 %v20947_v53  ;;  %v16903_v45 = vpop.eup %16902  ;;  %v24365_v53 = vld [vmem:[#allocation14_spill] sm:$0xff] }
 0xbbd   :  { %v8172_v50 = vadd.f32 0.5, %v8169_v34  ;;  %8902 = vmatprep.subr.bf16.mxu0 %v20954_v32  ;;  %8943 = vmatprep.subr.bf16.mxu1 %v20959_v8  ;;  %v24366_v32 = vld [vmem:[#allocation22_spill] sm:$0xff]  ;;  %v16905_v8 = vpop.eup %16904 }
 0xbbe   :  { %v8173_v3 = vadd.f32 0.5, %v8170_v4  ;;  %v8171_v57 = vmul.f32 0.5, %v16905_v8  ;;  %v24392_v34 = vld [vmem:[#allocation46_spill] sm:$0xff] }
 0xbbf   :  { %v8177_v24 = vmul.f32 %v16903_v45, %v8172_v50  ;;  %v24393_v50 = vld [vmem:[#allocation47_spill] sm:$0xff] }
 0xbc0   :  { %v8176_v38 = vmul.f32 %v8173_v3, %v20998_v16  ;;  %8903 = vmatpush1.bf16.msra.mxu0 %v24361_v43  ;;  %8944 = vmatpush1.bf16.msra.mxu1 %v24362_v27  ;;  %v24367_v16 = vld [vmem:[#allocation23_spill] sm:$0xff]  ;;  %v8174_v14 = vadd.f32 0.5, %v8171_v57  ;;  %v24395_v43 = vld [vmem:[#allocation49_spill] sm:$0xff] }
 0xbc1   :  { %8904 = vmatprep.subr.bf16.mxu0 %v24363_v25  ;;  %8945 = vmatprep.subr.bf16.mxu1 %v24364_v30 }
 0xbc2   :  { %v21257_v20 = vadd.f32 %v8177_v24, %v8176_v38  ;;  %v24394_v24 = vld [vmem:[#allocation48_spill] sm:$0xff] }
 0xbc4   :  { %16906 = vtanh.f32 %v21257_v20  ;;  %8905 = vmatpush1.bf16.msra.mxu0 %v24365_v53  ;;  %8946 = vmatpush1.bf16.msra.mxu1 %v24366_v32 }
 0xbc5   :  { %8906 = vmatprep.subr.bf16.mxu0 %v21005_v36  ;;  %8947 = vmatprep.subr.bf16.mxu1 %v21010_v23  ;;  %v24370_v36 = vld [vmem:[#allocation26_spill] sm:$0xff]  ;;  %v24371_v23 = vmov 0  }
 0xbc8   :  { %8907 = vmatpush1.bf16.msra.mxu0 %v21018_v6  ;;  %8948 = vmatpush1.bf16.msra.mxu1 %v24367_v16  ;;  %v24372_v6 = vld [vmem:[#allocation27_spill] sm:$0xff] }
 0xbc9   :  { %9196 = vmatprep.subr.bf16.mxu0 %v24368_v40 }
 0xbce   :  { %v16907_v51 = vpop.eup %16906 }
 0xbcf   :  { %v21267_v58 = vmul.f32 %v16907_v51, %v8174_v14 }
 0xbd1   :  { %24369 = vst [vmem:[#allocation82_spill] sm:$0xff] %v21267_v58  ;;  %v8469_v0 = vpack.c.bf16 %v21267_v58, %v21267_v58 }
 0xbd3   :  { %8908 = vmatprep.mubr.bf16.mxu0 %v8469_v0  ;;  %8949 = vmatprep.mubr.bf16.mxu1 %v8469_v0 }
 0xbd4   :  { %8909 = vmatmul.mubr.bf16.vlgmr.msra.gmra.mrb[116].mxu0 %v21189_v59  ;;  %8950 = vmatmul.mubr.bf16.vlgmr.msra.gmra.mrb[124].mxu1 %v21189_v59  ;;  %v21286_v59 = vld [vmem:[%s23445_s3 + $0xc] ss:$16 sps:$4 sm:$0xff]  }
 0xbd5   :  { %9197 = vmatpush1.bf16.msra.mxu0 %v24370_v36  ;;  %9228 = vmatprep.mubr.bf16.mxu0 %v24371_v23 }
 0xbd6   :  { %9198 = vmatprep.subr.bf16.mxu0 %v24372_v6  ;;  %9269 = vmatprep.mubr.bf16.mxu1 %v24371_v23 }
 0xbd7   :  { %9237 = vmatprep.subr.bf16.mxu1 %v21286_v59 }
 0xbd8   :  { %9238 = vmatpush1.bf16.msra.mxu1 %v21292_v33 }
 0xbd9   :  { %9199 = vmatpush1.bf16.msra.mxu0 %v24373_v31  ;;  %9239 = vmatprep.subr.bf16.mxu1 %v21300_v55 }
 0xbda   :  { %9200 = vmatprep.subr.bf16.mxu0 %v24374_v11 }
 0xbdc   :  { %9240 = vmatpush1.bf16.msra.mxu1 %v21306_v35 }
 0xbdd   :  { %9201 = vmatpush1.bf16.msra.mxu0 %v24375_v62  ;;  %9241 = vmatprep.subr.bf16.mxu1 %v21314_v5 }
 0xbde   :  { %9202 = vmatprep.subr.bf16.mxu0 %v24376_v52 }
 0xbe0   :  { %9242 = vmatpush1.bf16.msra.mxu1 %v21320_v10 }
 0xbe1   :  { %9203 = vmatpush1.bf16.msra.mxu0 %v24377_v56  ;;  %9243 = vmatprep.subr.bf16.mxu1 %v21328_v9 }
 0xbe2   :  { %9204 = vmatprep.subr.bf16.mxu0 %v24378_v49 }
 0xbe4   :  { %9244 = vmatpush1.bf16.msra.mxu1 %v21334_v29 }
 0xbe5   :  { %9205 = vmatpush1.bf16.msra.mxu0 %v24379_v39  ;;  %9245 = vmatprep.subr.bf16.mxu1 %v21341_v7 }
 0xbe6   :  { %9206 = vmatprep.subr.bf16.mxu0 %v24380_v44 }
 0xbe8   :  { %9246 = vmatpush1.bf16.msra.mxu1 %v21346_v54 }
 0xbe9   :  { %9207 = vmatpush1.bf16.msra.mxu0 %v24381_v41  ;;  %9247 = vmatprep.subr.bf16.mxu1 %v24386_v19  ;;  %v21405_v19 = vld [vmem:[%s23447_s5 + $0x20] ss:$16 sps:$4 sm:$0xff]  }
 0xbea   :  { %9208 = vmatprep.subr.bf16.mxu0 %v24382_v15  ;;  %v21379_v15 = vld [vmem:[%s23447_s5] ss:$16 sps:$4 sm:$0xff]  }
 0xbec   :  { %9248 = vmatpush1.bf16.msra.mxu1 %v24387_v21  ;;  %v21410_v21 = vld [vmem:[%s23447_s5 + $0x28] ss:$16 sps:$4 sm:$0xff]  }
 0xbed   :  { %9209 = vmatpush1.bf16.msra.mxu0 %v24383_v61  ;;  %9249 = vmatprep.subr.bf16.mxu1 %v24388_v42  ;;  %v21384_v61 = vld [vmem:[%s23447_s5 + $0x8] ss:$16 sps:$4 sm:$0xff]   ;;  %v21417_v42 = vld [vmem:[%s23447_s5 + $0x44] ss:$16 sps:$4 sm:$0xff]  }
 0xbee   :  { %9210 = vmatprep.subr.bf16.mxu0 %v24384_v28  ;;  %v21391_v28 = vld [vmem:[%s23447_s5 + $0x24] ss:$16 sps:$4 sm:$0xff]  }
 0xbf0   :  { %9250 = vmatpush1.bf16.msra.mxu1 %v24389_v48  ;;  %v21422_v48 = vld [vmem:[%s23447_s5 + $0x4c] ss:$16 sps:$4 sm:$0xff]  }
 0xbf1   :  { %9211 = vmatpush1.bf16.msra.mxu0 %v24385_v60  ;;  %9251 = vmatprep.subr.bf16.mxu1 %v24390_v37  ;;  %v21396_v60 = vld [vmem:[%s23447_s5 + $0x2c] ss:$16 sps:$4 sm:$0xff]   ;;  %v21429_v37 = vld [vmem:[%s23447_s5 + $0x40] ss:$16 sps:$4 sm:$0xff]  }
 0xbf2   :  { %9689 = vmatprep.subr.bf16.mxu0 %v21359_v18 }
 0xbf4   :  { %9252 = vmatpush1.bf16.msra.mxu1 %v24391_v26  ;;  %v21434_v26 = vld [vmem:[%s23447_s5 + $0x48] ss:$16 sps:$4 sm:$0xff]  }
 0xbf5   :  { %9730 = vmatprep.subr.bf16.mxu1 %v21364_v47 }
 0xc5e   :  { %v8417_v63 = vpop.f32.mrb[112].mxu0  ;;  %v8458_v22 = vpop.f32.mrb[120].mxu1 }
 0xc5f   :  { %v8465_v12 = vadd.f32 %v8417_v63, %v24392_v34  ;;  %v8467_v4 = vadd.f32 %v8458_v22, %v24393_v50  ;;  %v8419_v45 = vpop.f32.mrb[113].mxu0  ;;  %v8460_v3 = vpop.f32.mrb[121].mxu1  ;;  %v21441_v63 = vld [vmem:[%s23447_s5 + $0x64] ss:$16 sps:$4 sm:$0xff]   ;;  %v21446_v22 = vld [vmem:[%s23447_s5 + $0x6c] ss:$16 sps:$4 sm:$0xff]  }
 0xc60   :  { %v8466_v38 = vadd.f32 %v8419_v45, %v24394_v24  ;;  %v8468_v27 = vadd.f32 %v8460_v3, %v24395_v43  ;;  %v8421_v25 = vpop.f32.mrb[114].mxu0  ;;  %v8462_v30 = vpop.f32.mrb[122].mxu1  ;;  %v21453_v34 = vld [vmem:[%s23447_s5 + $0x60] ss:$16 sps:$4 sm:$0xff]   ;;  %v21465_v50 = vld [vmem:[%s23447_s5 + $0x84] ss:$16 sps:$4 sm:$0xff]  }
 0xc61   :  { %v8958_v53 = vmul.f32 0.5, %v8465_v12  ;;  %v8422_v32 = vpop.f32.mrb[115].mxu0  ;;  %v8463_v8 = vpop.f32.mrb[123].mxu1  ;;  %v8960_v57 = vmul.f32 0.5, %v8467_v4  ;;  %v21458_v12 = vld [vmem:[%s23447_s5 + $0x68] ss:$16 sps:$4 sm:$0xff]  }
 0xc62   :  { %v8959_v16 = vmul.f32 0.5, %v8466_v38  ;;  %v21470_v4 = vld [vmem:[%s23447_s5 + $0x8c] ss:$16 sps:$4 sm:$0xff]   ;;  %v21477_v45 = vld [vmem:[%s23447_s5 + $0x80] ss:$16 sps:$4 sm:$0xff]  }
 0xc63   :  { %16908 = vtanh.f32 %v8958_v53  ;;  %v21482_v3 = vld [vmem:[%s23447_s5 + $0x88] ss:$16 sps:$4 sm:$0xff]   ;;  %v21489_v24 = vld [vmem:[%s23447_s5 + $0xa4] ss:$16 sps:$4 sm:$0xff]   ;;  %v21494_v38 = vld [vmem:[%s23447_s5 + $0xac] ss:$16 sps:$4 sm:$0xff]  }
 0xc64   :  { %16910 = vtanh.f32 %v8959_v16  ;;  %v21501_v43 = vld [vmem:[%s23447_s5 + $0xa0] ss:$16 sps:$4 sm:$0xff]   ;;  %v21513_v25 = vld [vmem:[%s23447_s5 + $0xc4] ss:$16 sps:$4 sm:$0xff]   ;;  %v21518_v30 = vld [vmem:[%s23447_s5 + $0xcc] ss:$16 sps:$4 sm:$0xff]  }
 0xc65   :  { %16912 = vtanh.f32 %v8468_v27  ;;  %v21506_v27 = vld [vmem:[%s23447_s5 + $0xa8] ss:$16 sps:$4 sm:$0xff]   ;;  %v21525_v53 = vld [vmem:[%s23447_s5 + $0xc0] ss:$16 sps:$4 sm:$0xff]   ;;  %v21537_v8 = vld [vmem:[%s23447_s5 + $0xe4] ss:$16 sps:$4 sm:$0xff]  }
 0xc66   :  { %16914 = vtanh.f32 %v8960_v57  ;;  %v21530_v32 = vld [vmem:[%s23447_s5 + $0xc8] ss:$16 sps:$4 sm:$0xff]   ;;  %v21542_v16 = vld [vmem:[%s23447_s5 + $0xec] ss:$16 sps:$4 sm:$0xff]   ;;  %v21549_v57 = vld [vmem:[%s23447_s5 + $0xe0] ss:$16 sps:$4 sm:$0xff]  }
 0xc67   :  { %24396 = vst [vmem:[#allocation83_spill] sm:$0xff] %v21549_v57 }
 0xc6d   :  { %v16909_v40 = vpop.eup %16908 }
 0xc6e   :  { %v8964_v14 = vmul.f32 0.5, %v16909_v40  ;;  %v16911_v51 = vpop.eup %16910  ;;  %v21554_v40 = vld [vmem:[%s23447_s5 + $0xe8] ss:$16 sps:$4 sm:$0xff]  }
 0xc6f   :  { %v8965_v36 = vmul.f32 0.5, %v16911_v51  ;;  %v16913_v6 = vpop.eup %16912  ;;  %24397 = vst [vmem:[#allocation84_spill] sm:$0xff] %v21554_v40  ;;  %v21564_v51 = vld [vmem:[%s23447_s5 + $0x104] ss:$16 sps:$4 sm:$0xff]  }
 0xc70   :  { %v8967_v0 = vadd.f32 0.5, %v8964_v14  ;;  %v16915_v56 = vpop.eup %16914  ;;  %v8534_v14 = vld [vmem:[%s23448_s6] sm:$0xf]  ;;  %24398 = vst [vmem:[#allocation86_spill] sm:$0xff] %v21564_v51 }
 0xc71   :  { %v8968_v31 = vadd.f32 0.5, %v8965_v36  ;;  %v8966_v49 = vmul.f32 0.5, %v16915_v56  ;;  %v8539_v36 = vrot.slane %v8534_v14, %v24345_v13  ;;  %v21595_v56 = vld [vmem:[%s23447_s5 + $0x12c] ss:$16 sps:$4 sm:$0xff]   ;;  %v8551_v58 = vrot.slane %v8534_v14, %v24244_v17  ;;  %v21615_v17 = vld [vmem:[%s23447_s5 + $0x144] ss:$16 sps:$4 sm:$0xff]  }
 0xc72   :  { %v8972_v11 = vmul.f32 %v16913_v6, %v8967_v0  ;;  %v21569_v0 = vld [vmem:[%s23447_s5 + $0x10c] ss:$16 sps:$4 sm:$0xff]   ;;  %v21577_v6 = vld [vmem:[%s23447_s5 + $0x100] ss:$16 sps:$4 sm:$0xff]  }
 0xc73   :  { %v8971_v62 = vmul.f32 %v8968_v31, %v21186_v46  ;;  %v8969_v39 = vadd.f32 0.5, %v8966_v49  ;;  %24399 = vst [vmem:[#allocation87_spill] sm:$0xff] %v21569_v0  ;;  %24400 = vst [vmem:[#allocation89_spill] sm:$0xff] %v21577_v6  ;;  %v21582_v31 = vld [vmem:[%s23447_s5 + $0x108] ss:$16 sps:$4 sm:$0xff]  }
 0xc74   :  { %24401 = vst [vmem:[#allocation88_spill] sm:$0xff] %v21582_v31 }
 0xc75   :  { %v21373_v52 = vadd.f32 %v8972_v11, %v8971_v62  ;;  %v8543_v11 = vrot.slane %v8534_v14, %v24346_v1  ;;  %v21590_v62 = vld [vmem:[%s23447_s5 + $0x124] ss:$16 sps:$4 sm:$0xff]  }
 0xc77   :  { %16916 = vtanh.f32 %v21373_v52 }
 0xc81   :  { %v16917_v44 = vpop.eup %16916 }
 0xc82   :  { %v8975_v41 = vmul.f32 %v16917_v44, %v8969_v39 }
 0xc84   :  { %v21386_v46 = vpack.c.bf16 %v8975_v41, %v8975_v41 }
 0xc86   :  { %9229 = vmatmul.mubr.bf16.vlgmr.msra.gmra.mrb[120].mxu0 %v21386_v46  ;;  %9270 = vmatmul.mubr.bf16.vlgmr.msra.gmra.mrb[128].mxu1 %v21386_v46 }
 0xc87   :  { %9690 = vmatpush1.bf16.msra.mxu0 %v21379_v15  ;;  %9731 = vmatpush1.bf16.msra.mxu1 %v21384_v61 }
 0xc88   :  { %9691 = vmatprep.subr.bf16.mxu0 %v21391_v28  ;;  %9732 = vmatprep.subr.bf16.mxu1 %v21396_v60 }
 0xc8b   :  { %9692 = vmatpush1.bf16.msra.mxu0 %v21405_v19  ;;  %9733 = vmatpush1.bf16.msra.mxu1 %v21410_v21 }
 0xc8c   :  { %9693 = vmatprep.subr.bf16.mxu0 %v21417_v42  ;;  %9734 = vmatprep.subr.bf16.mxu1 %v21422_v48 }
 0xc8f   :  { %9694 = vmatpush1.bf16.msra.mxu0 %v21429_v37  ;;  %9735 = vmatpush1.bf16.msra.mxu1 %v21434_v26 }
 0xc90   :  { %9695 = vmatprep.subr.bf16.mxu0 %v21441_v63  ;;  %9736 = vmatprep.subr.bf16.mxu1 %v21446_v22 }
 0xc93   :  { %9696 = vmatpush1.bf16.msra.mxu0 %v21453_v34  ;;  %9737 = vmatpush1.bf16.msra.mxu1 %v21458_v12 }
 0xc94   :  { %9697 = vmatprep.subr.bf16.mxu0 %v21465_v50  ;;  %9738 = vmatprep.subr.bf16.mxu1 %v21470_v4 }
 0xc97   :  { %9698 = vmatpush1.bf16.msra.mxu0 %v21477_v45  ;;  %9739 = vmatpush1.bf16.msra.mxu1 %v21482_v3 }
 0xc98   :  { %9699 = vmatprep.subr.bf16.mxu0 %v21489_v24  ;;  %9740 = vmatprep.subr.bf16.mxu1 %v21494_v38 }
 0xc9b   :  { %9700 = vmatpush1.bf16.msra.mxu0 %v21501_v43  ;;  %9741 = vmatpush1.bf16.msra.mxu1 %v21506_v27 }
 0xc9c   :  { %9701 = vmatprep.subr.bf16.mxu0 %v21513_v25  ;;  %9742 = vmatprep.subr.bf16.mxu1 %v21518_v30 }
 0xc9f   :  { %9702 = vmatpush1.bf16.msra.mxu0 %v21525_v53  ;;  %9743 = vmatpush1.bf16.msra.mxu1 %v21530_v32 }
 0xca0   :  { %9703 = vmatprep.subr.bf16.mxu0 %v21537_v8  ;;  %9744 = vmatprep.subr.bf16.mxu1 %v21542_v16 }
 0xca3   :  { %9704 = vmatpush1.bf16.msra.mxu0 %v21549_v57  ;;  %9745 = vmatpush1.bf16.msra.mxu1 %v21554_v40 }
 0xca4   :  { %9705 = vmatprep.subr.bf16.mxu0 %v21564_v51  ;;  %9746 = vmatprep.subr.bf16.mxu1 %v21569_v0  ;;  %v21603_v0 = vld [vmem:[%s23447_s5 + $0x120] ss:$16 sps:$4 sm:$0xff]   ;;  %v21608_v51 = vld [vmem:[%s23447_s5 + $0x128] ss:$16 sps:$4 sm:$0xff]  }
 0xca7   :  { %v8910_v49 = vpop.f32.mrb[116].mxu0  ;;  %v8951_v39 = vpop.f32.mrb[124].mxu1  ;;  %9706 = vmatpush1.bf16.msra.mxu0 %v21577_v6  ;;  %9747 = vmatpush1.bf16.msra.mxu1 %v21582_v31  ;;  %v21620_v31 = vld [vmem:[%s23447_s5 + $0x14c] ss:$16 sps:$4 sm:$0xff]  }
 0xca8   :  { %v8911_v44 = vadd.f32 %v8910_v49, %v8539_v36  ;;  %v8912_v41 = vpop.f32.mrb[117].mxu0  ;;  %v8953_v1 = vpop.f32.mrb[125].mxu1  ;;  %9707 = vmatprep.subr.bf16.mxu0 %v21590_v62  ;;  %9748 = vmatprep.subr.bf16.mxu1 %v21595_v56 }
 0xca9   :  { %v8913_v13 = vadd.f32 %v8912_v41, %v8543_v11  ;;  %v8914_v36 = vpop.f32.mrb[118].mxu0  ;;  %v8955_v49 = vpop.f32.mrb[126].mxu1  ;;  %v8954_v41 = vadd.f32 %v8953_v1, %v8551_v58  ;;  %v21645_v1 = vld [vmem:[%s23447_s5 + $0x16c] ss:$16 sps:$4 sm:$0xff]   ;;  %v21652_v58 = vld [vmem:[%s23447_s5 + $0x160] ss:$16 sps:$4 sm:$0xff]  }
 0xcaa   :  { %v8976_v6 = vmul.f32 0.5, %v8911_v44  ;;  %v8915_v40 = vpop.f32.mrb[119].mxu0  ;;  %v8956_v57 = vpop.f32.mrb[127].mxu1  ;;  %v21627_v36 = vld [vmem:[%s23447_s5 + $0x140] ss:$16 sps:$4 sm:$0xff]   ;;  %24405 = vst [vmem:[#allocation100_spill] sm:$0xff] %v21645_v1 }
 0xcab   :  { %v8977_v11 = vmul.f32 0.5, %v8913_v13  ;;  %9708 = vmatpush1.bf16.msra.mxu0 %v21603_v0  ;;  %9749 = vmatpush1.bf16.msra.mxu1 %v21608_v51  ;;  %24402 = vst [vmem:[#allocation93_spill] sm:$0xff] %v21627_v36  ;;  %v21632_v49 = vld [vmem:[%s23447_s5 + $0x148] ss:$16 sps:$4 sm:$0xff]   ;;  %v8547_v40 = vrot.slane %v8534_v14, %v24245_v2  ;;  %v21640_v13 = vld [vmem:[%s23447_s5 + $0x164] ss:$16 sps:$4 sm:$0xff]  }
 0xcac   :  { %16918 = vtanh.f32 %v8976_v6  ;;  %24403 = vst [vmem:[#allocation96_spill] sm:$0xff] %v21632_v49  ;;  %9709 = vmatprep.subr.bf16.mxu0 %v21615_v17  ;;  %9750 = vmatprep.subr.bf16.mxu1 %v21620_v31  ;;  %24404 = vst [vmem:[#allocation98_spill] sm:$0xff] %v21640_v13  ;;  %v21657_v57 = vld [vmem:[%s23447_s5 + $0x168] ss:$16 sps:$4 sm:$0xff]   ;;  %v21664_v6 = vld [vmem:[%s23447_s5 + $0x184] ss:$16 sps:$4 sm:$0xff]  }
 0xcad   :  { %16920 = vtanh.f32 %v8977_v11  ;;  %24406 = vst [vmem:[#allocation92_spill] sm:$0xff] %v21652_v58  ;;  %24407 = vst [vmem:[#allocation91_spill] sm:$0xff] %v21657_v57  ;;  %v8952_v14 = vadd.f32 %v8951_v39, %v8547_v40  ;;  %v21669_v44 = vld [vmem:[%s23447_s5 + $0x18c] ss:$16 sps:$4 sm:$0xff]   ;;  %v21676_v39 = vld [vmem:[%s23447_s5 + $0x180] ss:$16 sps:$4 sm:$0xff]  }
 0xcae   :  { %16922 = vtanh.f32 %v8954_v41  ;;  %24408 = vst [vmem:[#allocation95_spill] sm:$0xff] %v21664_v6  ;;  %24409 = vst [vmem:[#allocation97_spill] sm:$0xff] %v21669_v44  ;;  %v21681_v11 = vld [vmem:[%s23447_s5 + $0x188] ss:$16 sps:$4 sm:$0xff]   ;;  %v21688_v40 = vld [vmem:[%s23447_s5 + $0x1a4] ss:$16 sps:$4 sm:$0xff]  }
 0xcaf   :  { %9710 = vmatpush1.bf16.msra.mxu0 %v21627_v36  ;;  %9751 = vmatpush1.bf16.msra.mxu1 %v21632_v49  ;;  %24410 = vst [vmem:[#allocation99_spill] sm:$0xff] %v21676_v39  ;;  %24411 = vst [vmem:[#allocation101_spill] sm:$0xff] %v21681_v11  ;;  %v8978_v41 = vmul.f32 0.5, %v8952_v14  ;;  %v21700_v14 = vld [vmem:[%s23447_s5 + $0x1a0] ss:$16 sps:$4 sm:$0xff]  }
 0xcb0   :  { %9711 = vmatprep.subr.bf16.mxu0 %v21640_v13  ;;  %9752 = vmatprep.subr.bf16.mxu1 %v21645_v1 }
 0xcb1   :  { %16924 = vtanh.f32 %v8978_v41 }
 0xcb3   :  { %9712 = vmatpush1.bf16.msra.mxu0 %v21652_v58  ;;  %9753 = vmatpush1.bf16.msra.mxu1 %v21657_v57  ;;  %v21693_v57 = vld [vmem:[%s23447_s5 + $0x1ac] ss:$16 sps:$4 sm:$0xff]  }
 0xcb4   :  { %9713 = vmatprep.subr.bf16.mxu0 %v21664_v6  ;;  %9754 = vmatprep.subr.bf16.mxu1 %v21669_v44  ;;  %v21705_v44 = vld [vmem:[%s23447_s5 + $0x1a8] ss:$16 sps:$4 sm:$0xff]  }
 0xcb6   :  { %v16919_v58 = vpop.eup %16918 }
 0xcb7   :  { %v8982_v1 = vmul.f32 0.5, %v16919_v58  ;;  %v16921_v13 = vpop.eup %16920  ;;  %9714 = vmatpush1.bf16.msra.mxu0 %v21676_v39  ;;  %9755 = vmatpush1.bf16.msra.mxu1 %v21681_v11  ;;  %v21712_v58 = vld [vmem:[%s23447_s5 + $0x1c4] ss:$16 sps:$4 sm:$0xff]   ;;  %v21717_v11 = vld [vmem:[%s23447_s5 + $0x1cc] ss:$16 sps:$4 sm:$0xff]  }
 0xcb8   :  { %v8983_v49 = vmul.f32 0.5, %v16921_v13  ;;  %9715 = vmatprep.subr.bf16.mxu0 %v21688_v40  ;;  %9756 = vmatprep.subr.bf16.mxu1 %v21693_v57  ;;  %24412 = vst [vmem:[#allocation38_spill] sm:$0xff] %v21712_v58  ;;  %24413 = vst [vmem:[#allocation39_spill] sm:$0xff] %v21717_v11  ;;  %v16923_v39 = vpop.eup %16922  ;;  %v21724_v13 = vld [vmem:[%s23447_s5 + $0x1c0] ss:$16 sps:$4 sm:$0xff]  }
 0xcb9   :  { %v8985_v6 = vadd.f32 0.5, %v8982_v1  ;;  %24414 = vst [vmem:[#allocation40_spill] sm:$0xff] %v21724_v13  ;;  %v21729_v1 = vld [vmem:[%s23447_s5 + $0x1c8] ss:$16 sps:$4 sm:$0xff]  }
 0xcba   :  { %v8986_v36 = vadd.f32 0.5, %v8983_v49  ;;  %24415 = vst [vmem:[#allocation41_spill] sm:$0xff] %v21729_v1  ;;  %v21737_v49 = vld [vmem:[%s23447_s5 + $0x1e4] ss:$16 sps:$4 sm:$0xff]  }
 0xcbb   :  { %v8990_v2 = vmul.f32 %v16923_v39, %v8985_v6  ;;  %9716 = vmatpush1.bf16.msra.mxu0 %v21700_v14  ;;  %9757 = vmatpush1.bf16.msra.mxu1 %v21705_v44  ;;  %v21742_v6 = vld [vmem:[%s23447_s5 + $0x1ec] ss:$16 sps:$4 sm:$0xff]  }
 0xcbc   :  { %v8989_v41 = vmul.f32 %v8986_v36, %v21257_v20  ;;  %9717 = vmatprep.subr.bf16.mxu0 %v21712_v58  ;;  %9758 = vmatprep.subr.bf16.mxu1 %v21717_v11  ;;  %v21751_v20 = vld [vmem:[%s23447_s5 + $0x1e0] ss:$16 sps:$4 sm:$0xff]   ;;  %v21756_v36 = vld [vmem:[%s23447_s5 + $0x1e8] ss:$16 sps:$4 sm:$0xff]  }
 0xcbd   :  { %24416 = vst [vmem:[#allocation42_spill] sm:$0xff] %v21756_v36 }
 0xcbe   :  { %v21744_v39 = vadd.f32 %v8990_v2, %v8989_v41  ;;  %v16925_v2 = vpop.eup %16924 }
 0xcbf   :  { %9718 = vmatpush1.bf16.msra.mxu0 %v21724_v13  ;;  %9759 = vmatpush1.bf16.msra.mxu1 %v21729_v1  ;;  %v8984_v41 = vmul.f32 0.5, %v16925_v2  ;;  %v21864_v2 = vld [vmem:[%s23445_s3 + $0xc4] ss:$16 sps:$4 sm:$0xff]  }
 0xcc0   :  { %16926 = vtanh.f32 %v21744_v39  ;;  %9719 = vmatprep.subr.bf16.mxu0 %v21737_v49  ;;  %9760 = vmatprep.subr.bf16.mxu1 %v21742_v6  ;;  %24432 = vst [vmem:[#allocation31_spill] sm:$0xff] %v21864_v2 }
 0xcc1   :  { %v8987_v1 = vadd.f32 0.5, %v8984_v41  ;;  %v21870_v41 = vld [vmem:[%s23445_s3 + $0xcc] ss:$16 sps:$4 sm:$0xff]  }
 0xcc2   :  { %24433 = vst [vmem:[#allocation32_spill] sm:$0xff] %v21870_v41 }
 0xcc3   :  { %9720 = vmatpush1.bf16.msra.mxu0 %v21751_v20  ;;  %9761 = vmatpush1.bf16.msra.mxu1 %v21756_v36 }
 0xcc4   :  { %10050 = vmatprep.subr.bf16.mxu1 %v21286_v59  ;;  %v21783_v59 = vld [vmem:[%s23445_s3 + $0x4] ss:$16 sps:$4 sm:$0xff]  }
 0xcc5   :  { %24418 = vst [vmem:[#allocation44_spill] sm:$0xff] %v21783_v59  ;;  %10009 = vmatprep.subr.bf16.mxu0 %v21783_v59 }
 0xcca   :  { %v16927_v13 = vpop.eup %16926 }
 0xccb   :  { %v21764_v11 = vmul.f32 %v16927_v13, %v8987_v1  ;;  %v21854_v13 = vld [vmem:[%s23445_s3 + $0xa8] ss:$16 sps:$4 sm:$0xff]   ;;  %v21859_v1 = vld [vmem:[%s23445_s3 + $0xac] ss:$16 sps:$4 sm:$0xff]  }
 0xccc   :  { %24430 = vst [vmem:[#allocation107_spill] sm:$0xff] %v21854_v13  ;;  %24431 = vst [vmem:[#allocation30_spill] sm:$0xff] %v21859_v1 }
 0xccd   :  { %24417 = vst [vmem:[#allocation43_spill] sm:$0xff] %v21764_v11  ;;  %v9282_v58 = vpack.c.bf16 %v21764_v11, %v21764_v11  ;;  %v21878_v11 = vld [vmem:[%s23445_s3 + $0xc0] ss:$16 sps:$4 sm:$0xff]  }
 0xcce   :  { %24434 = vst [vmem:[#allocation33_spill] sm:$0xff] %v21878_v11 }
 0xccf   :  { %9721 = vmatprep.mubr.bf16.mxu0 %v9282_v58  ;;  %9762 = vmatprep.mubr.bf16.mxu1 %v9282_v58  ;;  %v21849_v58 = vld [vmem:[%s23445_s3 + $0xa4] ss:$16 sps:$4 sm:$0xff]  }
 0xcd0   :  { %9722 = vmatmul.mubr.bf16.vlgmr.msra.gmra.mrb[124].mxu0 %v21386_v46  ;;  %9763 = vmatmul.mubr.bf16.vlgmr.msra.gmra.mrb[132].mxu1 %v21386_v46  ;;  %v21844_v46 = vld [vmem:[%s23445_s3 + $0xa0] ss:$16 sps:$4 sm:$0xff]   ;;  %24429 = vst [vmem:[#allocation112_spill] sm:$0xff] %v21849_v58 }
 0xcd1   :  { %10051 = vmatpush1.bf16.msra.mxu1 %v21292_v33  ;;  %10041 = vmatprep.mubr.bf16.mxu0 %v24371_v23  ;;  %v21788_v33 = vld [vmem:[%s23445_s3] ss:$16 sps:$4 sm:$0xff]   ;;  %24428 = vst [vmem:[#allocation111_spill] sm:$0xff] %v21844_v46 }
 0xcd2   :  { %10052 = vmatprep.subr.bf16.mxu1 %v21300_v55  ;;  %10082 = vmatprep.mubr.bf16.mxu1 %v24371_v23  ;;  %24419 = vst [vmem:[#allocation45_spill] sm:$0xff] %v21788_v33  ;;  %v21796_v55 = vld [vmem:[%s23445_s3 + $0x24] ss:$16 sps:$4 sm:$0xff]  }
 0xcd3   :  { %10010 = vmatpush1.bf16.msra.mxu0 %v21788_v33  ;;  %24420 = vst [vmem:[#allocation102_spill] sm:$0xff] %v21796_v55 }
 0xcd4   :  { %10011 = vmatprep.subr.bf16.mxu0 %v21796_v55 }
 0xcd5   :  { %10053 = vmatpush1.bf16.msra.mxu1 %v21306_v35  ;;  %v21801_v35 = vld [vmem:[%s23445_s3 + $0x20] ss:$16 sps:$4 sm:$0xff]  }
 0xcd6   :  { %10054 = vmatprep.subr.bf16.mxu1 %v21314_v5  ;;  %24421 = vst [vmem:[#allocation104_spill] sm:$0xff] %v21801_v35  ;;  %v21808_v5 = vld [vmem:[%s23445_s3 + $0x44] ss:$16 sps:$4 sm:$0xff]  }
 0xcd7   :  { %10012 = vmatpush1.bf16.msra.mxu0 %v21801_v35  ;;  %24422 = vst [vmem:[#allocation106_spill] sm:$0xff] %v21808_v5  ;;  %v24443_v35 = vld [vmem:[#allocation53_spill] sm:$0xff] }
 0xcd8   :  { %10013 = vmatprep.subr.bf16.mxu0 %v21808_v5  ;;  %v24442_v5 = vld [vmem:[#allocation52_spill] sm:$0xff] }
 0xcd9   :  { %10055 = vmatpush1.bf16.msra.mxu1 %v21320_v10  ;;  %v21813_v10 = vld [vmem:[%s23445_s3 + $0x40] ss:$16 sps:$4 sm:$0xff]  }
 0xcda   :  { %10056 = vmatprep.subr.bf16.mxu1 %v21328_v9  ;;  %24423 = vst [vmem:[#allocation115_spill] sm:$0xff] %v21813_v10  ;;  %v21820_v9 = vld [vmem:[%s23445_s3 + $0x64] ss:$16 sps:$4 sm:$0xff]  }
 0xcdb   :  { %10014 = vmatpush1.bf16.msra.mxu0 %v21813_v10  ;;  %24424 = vst [vmem:[#allocation110_spill] sm:$0xff] %v21820_v9 }
 0xcdc   :  { %10015 = vmatprep.subr.bf16.mxu0 %v21820_v9 }
 0xcdd   :  { %10057 = vmatpush1.bf16.msra.mxu1 %v21334_v29  ;;  %v21825_v29 = vld [vmem:[%s23445_s3 + $0x60] ss:$16 sps:$4 sm:$0xff]  }
 0xcde   :  { %10058 = vmatprep.subr.bf16.mxu1 %v21341_v7  ;;  %24425 = vst [vmem:[#allocation108_spill] sm:$0xff] %v21825_v29  ;;  %v21832_v7 = vld [vmem:[%s23445_s3 + $0x84] ss:$16 sps:$4 sm:$0xff]  }
 0xcdf   :  { %10016 = vmatpush1.bf16.msra.mxu0 %v21825_v29  ;;  %24426 = vst [vmem:[#allocation105_spill] sm:$0xff] %v21832_v7 }
 0xce0   :  { %10017 = vmatprep.subr.bf16.mxu0 %v21832_v7  ;;  %v24441_v7 = vld [vmem:[#allocation51_spill] sm:$0xff] }
 0xce1   :  { %10059 = vmatpush1.bf16.msra.mxu1 %v21346_v54  ;;  %v21837_v54 = vld [vmem:[%s23445_s3 + $0x80] ss:$16 sps:$4 sm:$0xff]  }
 0xce2   :  { %24427 = vst [vmem:[#allocation114_spill] sm:$0xff] %v21837_v54  ;;  %10060 = vmatprep.subr.bf16.mxu1 %v21859_v1  ;;  %v21890_v1 = vld [vmem:[%s23445_s3 + $0xe4] ss:$16 sps:$4 sm:$0xff]  }
 0xce3   :  { %10018 = vmatpush1.bf16.msra.mxu0 %v21837_v54  ;;  %24436 = vst [vmem:[#allocation35_spill] sm:$0xff] %v21890_v1 }
 0xce4   :  { %10019 = vmatprep.subr.bf16.mxu0 %v21849_v58  ;;  %v21883_v58 = vld [vmem:[%s23445_s3 + $0xc8] ss:$16 sps:$4 sm:$0xff]  }
 0xce5   :  { %10061 = vmatpush1.bf16.msra.mxu1 %v21854_v13  ;;  %24435 = vst [vmem:[#allocation34_spill] sm:$0xff] %v21883_v58  ;;  %v21895_v13 = vld [vmem:[%s23445_s3 + $0xec] ss:$16 sps:$4 sm:$0xff]  }
 0xce6   :  { %10062 = vmatprep.subr.bf16.mxu1 %v21870_v41  ;;  %24437 = vst [vmem:[#allocation36_spill] sm:$0xff] %v21895_v13  ;;  %v21907_v41 = vld [vmem:[%s23445_s3 + $0xe8] ss:$16 sps:$4 sm:$0xff]  }
 0xce7   :  { %10020 = vmatpush1.bf16.msra.mxu0 %v21844_v46  ;;  %24439 = vst [vmem:[#allocation113_spill] sm:$0xff] %v21907_v41  ;;  %v24440_v46 = vld [vmem:[#allocation50_spill] sm:$0xff] }
 0xce8   :  { %10021 = vmatprep.subr.bf16.mxu0 %v21864_v2  ;;  %v21902_v2 = vld [vmem:[%s23445_s3 + $0xe0] ss:$16 sps:$4 sm:$0xff]  }
 0xce9   :  { %10063 = vmatpush1.bf16.msra.mxu1 %v21883_v58  ;;  %24438 = vst [vmem:[#allocation37_spill] sm:$0xff] %v21902_v2 }
 0xcea   :  { %10064 = vmatprep.subr.bf16.mxu1 %v21895_v13 }
 0xceb   :  { %10022 = vmatpush1.bf16.msra.mxu0 %v21878_v11 }
 0xcec   :  { %10023 = vmatprep.subr.bf16.mxu0 %v21890_v1 }
 0xced   :  { %10065 = vmatpush1.bf16.msra.mxu1 %v21907_v41 }
 0xcee   :  { %10543 = vmatprep.subr.bf16.mxu1 %v21364_v47 }
 0xcef   :  { %10024 = vmatpush1.bf16.msra.mxu0 %v21902_v2 }
 0xcf0   :  { %10502 = vmatprep.subr.bf16.mxu0 %v21359_v18 }
 0xd59   :  { %v9230_v58 = vpop.f32.mrb[120].mxu0  ;;  %v9271_v11 = vpop.f32.mrb[128].mxu1 }
 0xd5a   :  { %v9278_v54 = vadd.f32 %v9230_v58, %v24440_v46  ;;  %v9280_v29 = vadd.f32 %v9271_v11, %v24441_v7  ;;  %v9232_v9 = vpop.f32.mrb[121].mxu0  ;;  %v9273_v10 = vpop.f32.mrb[129].mxu1 }
 0xd5b   :  { %v9279_v1 = vadd.f32 %v9232_v9, %v24442_v5  ;;  %v9281_v13 = vadd.f32 %v9273_v10, %v24443_v35  ;;  %v9234_v55 = vpop.f32.mrb[122].mxu0  ;;  %v9275_v2 = vpop.f32.mrb[130].mxu1 }
 0xd5c   :  { %v9771_v23 = vmul.f32 0.5, %v9278_v54  ;;  %v9235_v41 = vpop.f32.mrb[123].mxu0  ;;  %v9276_v33 = vpop.f32.mrb[131].mxu1  ;;  %v9773_v47 = vmul.f32 0.5, %v9280_v29 }
 0xd5d   :  { %v9772_v18 = vmul.f32 0.5, %v9279_v1 }
 0xd5e   :  { %16928 = vtanh.f32 %v9771_v23 }
 0xd5f   :  { %16930 = vtanh.f32 %v9772_v18  ;;  %v24462_v18 = vld [vmem:[#allocation99_spill] sm:$0xff] }
 0xd60   :  { %16932 = vtanh.f32 %v9281_v13 }
 0xd61   :  { %16934 = vtanh.f32 %v9773_v47  ;;  %v24463_v47 = vld [vmem:[#allocation101_spill] sm:$0xff] }
 0xd68   :  { %v16929_v59 = vpop.eup %16928 }
 0xd69   :  { %v9777_v46 = vmul.f32 0.5, %v16929_v59  ;;  %v16931_v58 = vpop.eup %16930  ;;  %v24459_v59 = vld [vmem:[#allocation91_spill] sm:$0xff] }
 0xd6a   :  { %v9778_v7 = vmul.f32 0.5, %v16931_v58  ;;  %v16933_v36 = vpop.eup %16932 }
 0xd6b   :  { %v9780_v11 = vadd.f32 0.5, %v9777_v46  ;;  %v16935_v33 = vpop.eup %16934 }
 0xd6c   :  { %v9781_v5 = vadd.f32 0.5, %v9778_v7  ;;  %v9779_v23 = vmul.f32 0.5, %v16935_v33  ;;  %v24465_v33 = vld [vmem:[#allocation39_spill] sm:$0xff] }
 0xd6d   :  { %v9785_v9 = vmul.f32 %v16933_v36, %v9780_v11  ;;  %v24457_v36 = vld [vmem:[#allocation100_spill] sm:$0xff] }
 0xd6e   :  { %v9784_v55 = vmul.f32 %v9781_v5, %v21373_v52  ;;  %v9782_v10 = vadd.f32 0.5, %v9779_v23  ;;  %v9347_v52 = vld [vmem:[%s23448_s6] sm:$0xf] }
 0xd70   :  { %v21920_v35 = vadd.f32 %v9785_v9, %v9784_v55  ;;  %v24464_v55 = vld [vmem:[#allocation38_spill] sm:$0xff] }
 0xd72   :  { %16936 = vtanh.f32 %v21920_v35 }
 0xd7c   :  { %v16937_v54 = vpop.eup %16936 }
 0xd7d   :  { %v9788_v29 = vmul.f32 %v16937_v54, %v9782_v10  ;;  %v24469_v54 = vld [vmem:[#allocation44_spill] sm:$0xff] }
 0xd7f   :  { %v21923_v13 = vpack.c.bf16 %v9788_v29, %v9788_v29 }
 0xd81   :  { %10042 = vmatmul.mubr.bf16.vlgmr.msra.gmra.mrb[128].mxu0 %v21923_v13  ;;  %10083 = vmatmul.mubr.bf16.vlgmr.msra.gmra.mrb[136].mxu1 %v21923_v13 }
 0xd82   :  { %10503 = vmatpush1.bf16.msra.mxu0 %v21379_v15  ;;  %10544 = vmatpush1.bf16.msra.mxu1 %v21384_v61  ;;  %v24444_v15 = vld [vmem:[#allocation83_spill] sm:$0xff]  ;;  %v24445_v61 = vld [vmem:[#allocation84_spill] sm:$0xff] }
 0xd83   :  { %10504 = vmatprep.subr.bf16.mxu0 %v21391_v28  ;;  %10545 = vmatprep.subr.bf16.mxu1 %v21396_v60  ;;  %v24446_v28 = vld [vmem:[#allocation10_spill] sm:$0xff] }
 0xd84   :  { %v9352_v60 = vrot.slane %v9347_v52, %v24446_v28 }
 0xd86   :  { %10505 = vmatpush1.bf16.msra.mxu0 %v21405_v19  ;;  %10546 = vmatpush1.bf16.msra.mxu1 %v21410_v21  ;;  %v24447_v19 = vld [vmem:[#allocation86_spill] sm:$0xff]  ;;  %v24448_v21 = vld [vmem:[#allocation87_spill] sm:$0xff] }
 0xd87   :  { %10506 = vmatprep.subr.bf16.mxu0 %v21417_v42  ;;  %10547 = vmatprep.subr.bf16.mxu1 %v21422_v48  ;;  %v24449_v42 = vld [vmem:[#allocation12_spill] sm:$0xff] }
 0xd88   :  { %v9356_v48 = vrot.slane %v9347_v52, %v24449_v42 }
 0xd8a   :  { %10507 = vmatpush1.bf16.msra.mxu0 %v21429_v37  ;;  %10548 = vmatpush1.bf16.msra.mxu1 %v21434_v26 }
 0xd8b   :  { %10508 = vmatprep.subr.bf16.mxu0 %v21441_v63  ;;  %10549 = vmatprep.subr.bf16.mxu1 %v21446_v22  ;;  %v24450_v63 = vld [vmem:[#allocation89_spill] sm:$0xff]  ;;  %v24451_v22 = vld [vmem:[#allocation88_spill] sm:$0xff] }
 0xd8e   :  { %10509 = vmatpush1.bf16.msra.mxu0 %v21453_v34  ;;  %10550 = vmatpush1.bf16.msra.mxu1 %v21458_v12 }
 0xd8f   :  { %10510 = vmatprep.subr.bf16.mxu0 %v21465_v50  ;;  %10551 = vmatprep.subr.bf16.mxu1 %v21470_v4  ;;  %v24452_v50 = vld [vmem:[#allocation13_spill] sm:$0xff] }
 0xd90   :  { %v9364_v4 = vrot.slane %v9347_v52, %v24452_v50 }
 0xd92   :  { %10511 = vmatpush1.bf16.msra.mxu0 %v21477_v45  ;;  %10552 = vmatpush1.bf16.msra.mxu1 %v21482_v3 }
 0xd93   :  { %10512 = vmatprep.subr.bf16.mxu0 %v21489_v24  ;;  %10553 = vmatprep.subr.bf16.mxu1 %v21494_v38 }
 0xd96   :  { %10513 = vmatpush1.bf16.msra.mxu0 %v21501_v43  ;;  %10554 = vmatpush1.bf16.msra.mxu1 %v21506_v27 }
 0xd97   :  { %10514 = vmatprep.subr.bf16.mxu0 %v21513_v25  ;;  %10555 = vmatprep.subr.bf16.mxu1 %v21518_v30 }
 0xd9a   :  { %10515 = vmatpush1.bf16.msra.mxu0 %v21525_v53  ;;  %10556 = vmatpush1.bf16.msra.mxu1 %v21530_v32  ;;  %v24453_v32 = vld [vmem:[#allocation11_spill] sm:$0xff] }
 0xd9b   :  { %10516 = vmatprep.subr.bf16.mxu0 %v21537_v8  ;;  %10557 = vmatprep.subr.bf16.mxu1 %v21542_v16  ;;  %v9360_v8 = vrot.slane %v9347_v52, %v24453_v32  ;;  %v24454_v16 = vld [vmem:[#allocation93_spill] sm:$0xff] }
 0xd9e   :  { %10517 = vmatpush1.bf16.msra.mxu0 %v24444_v15  ;;  %10558 = vmatpush1.bf16.msra.mxu1 %v24445_v61 }
 0xd9f   :  { %10518 = vmatprep.subr.bf16.mxu0 %v24447_v19  ;;  %10559 = vmatprep.subr.bf16.mxu1 %v24448_v21  ;;  %v24475_v19 = vld [vmem:[#allocation106_spill] sm:$0xff]  ;;  %v24476_v21 = vld [vmem:[#allocation115_spill] sm:$0xff] }
 0xda2   :  { %10519 = vmatpush1.bf16.msra.mxu0 %v24450_v63  ;;  %10560 = vmatpush1.bf16.msra.mxu1 %v24451_v22  ;;  %v22025_v63 = vld [vmem:[%s23445_s3 + $0x8] ss:$16 sps:$4 sm:$0xff]   ;;  %v24480_v22 = vld [vmem:[#allocation114_spill] sm:$0xff] }
 0xda3   :  { %v9723_v37 = vpop.f32.mrb[124].mxu0  ;;  %v9764_v26 = vpop.f32.mrb[132].mxu1  ;;  %10520 = vmatprep.subr.bf16.mxu0 %v21590_v62  ;;  %10561 = vmatprep.subr.bf16.mxu1 %v21595_v56  ;;  %v24455_v62 = vld [vmem:[#allocation96_spill] sm:$0xff]  ;;  %v24456_v56 = vld [vmem:[#allocation98_spill] sm:$0xff] }
 0xda4   :  { %v9724_v34 = vadd.f32 %v9723_v37, %v9352_v60  ;;  %v9725_v12 = vpop.f32.mrb[125].mxu0  ;;  %v9766_v45 = vpop.f32.mrb[133].mxu1  ;;  %v24474_v60 = vld [vmem:[#allocation104_spill] sm:$0xff] }
 0xda5   :  { %v9726_v3 = vadd.f32 %v9725_v12, %v9356_v48  ;;  %v9727_v24 = vpop.f32.mrb[126].mxu0  ;;  %v9768_v38 = vpop.f32.mrb[134].mxu1  ;;  %v9767_v53 = vadd.f32 %v9766_v45, %v9364_v4  ;;  %v24477_v48 = vld [vmem:[#allocation110_spill] sm:$0xff]  ;;  %v24478_v37 = vld [vmem:[#allocation108_spill] sm:$0xff]  ;;  %v22034_v12 = vld [vmem:[%s23445_s3 + $0x2c] ss:$16 sps:$4 sm:$0xff]  }
 0xda6   :  { %v9789_v43 = vmul.f32 0.5, %v9724_v34  ;;  %v9728_v27 = vpop.f32.mrb[127].mxu0  ;;  %v9769_v25 = vpop.f32.mrb[135].mxu1  ;;  %10521 = vmatpush1.bf16.msra.mxu0 %v21603_v0  ;;  %10562 = vmatpush1.bf16.msra.mxu1 %v21608_v51  ;;  %v9765_v0 = vadd.f32 %v9764_v26, %v9360_v8  ;;  %v24458_v51 = vld [vmem:[#allocation92_spill] sm:$0xff]  ;;  %v24479_v26 = vld [vmem:[#allocation105_spill] sm:$0xff]  ;;  %v24482_v45 = vld [vmem:[#allocation111_spill] sm:$0xff] }
 0xda7   :  { %v9790_v30 = vmul.f32 0.5, %v9726_v3  ;;  %10522 = vmatprep.subr.bf16.mxu0 %v21615_v17  ;;  %10563 = vmatprep.subr.bf16.mxu1 %v21620_v31  ;;  %v24460_v17 = vld [vmem:[#allocation95_spill] sm:$0xff]  ;;  %v24461_v31 = vld [vmem:[#allocation97_spill] sm:$0xff]  ;;  %v24481_v34 = vld [vmem:[#allocation112_spill] sm:$0xff] }
 0xda8   :  { %16938 = vtanh.f32 %v9789_v43  ;;  %v9791_v1 = vmul.f32 0.5, %v9765_v0  ;;  %v22039_v4 = vld [vmem:[%s23445_s3 + $0x28] ss:$16 sps:$4 sm:$0xff]   ;;  %v22048_v24 = vld [vmem:[%s23445_s3 + $0x4c] ss:$16 sps:$4 sm:$0xff]   ;;  %v24490_v0 = vld [vmem:[#allocation34_spill] sm:$0xff] }
 0xda9   :  { %16940 = vtanh.f32 %v9790_v30  ;;  %v24483_v3 = vld [vmem:[#allocation31_spill] sm:$0xff]  ;;  %v24484_v43 = vld [vmem:[#allocation33_spill] sm:$0xff] }
 0xdaa   :  { %10523 = vmatpush1.bf16.msra.mxu0 %v24454_v16  ;;  %10564 = vmatpush1.bf16.msra.mxu1 %v24455_v62  ;;  %16942 = vtanh.f32 %v9767_v53  ;;  %v22053_v38 = vld [vmem:[%s23445_s3 + $0x48] ss:$16 sps:$4 sm:$0xff]   ;;  %v22062_v25 = vld [vmem:[%s23445_s3 + $0x6c] ss:$16 sps:$4 sm:$0xff]   ;;  %v24487_v62 = vld [vmem:[#allocation30_spill] sm:$0xff] }
 0xdab   :  { %10524 = vmatprep.subr.bf16.mxu0 %v24456_v56  ;;  %10565 = vmatprep.subr.bf16.mxu1 %v24457_v36  ;;  %16944 = vtanh.f32 %v9791_v1  ;;  %v24485_v27 = vld [vmem:[#allocation35_spill] sm:$0xff]  ;;  %v24486_v53 = vld [vmem:[#allocation37_spill] sm:$0xff]  ;;  %v24489_v36 = vld [vmem:[#allocation32_spill] sm:$0xff] }
 0xdac   :  { %v22067_v30 = vld [vmem:[%s23445_s3 + $0x68] ss:$16 sps:$4 sm:$0xff]   ;;  %v22075_v8 = vld [vmem:[%s23445_s3 + $0x8c] ss:$16 sps:$4 sm:$0xff]  }
 0xdad   :  { %v22080_v16 = vld [vmem:[%s23445_s3 + $0x88] ss:$16 sps:$4 sm:$0xff]  }
 0xdae   :  { %10525 = vmatpush1.bf16.msra.mxu0 %v24458_v51  ;;  %10566 = vmatpush1.bf16.msra.mxu1 %v24459_v59  ;;  %v24488_v56 = vld [vmem:[#allocation107_spill] sm:$0xff]  ;;  %v24491_v51 = vld [vmem:[#allocation36_spill] sm:$0xff]  ;;  %v24492_v59 = vld [vmem:[#allocation113_spill] sm:$0xff] }
 0xdaf   :  { %10526 = vmatprep.subr.bf16.mxu0 %v24460_v17  ;;  %10567 = vmatprep.subr.bf16.mxu1 %v24461_v31  ;;  %v22093_v17 = vld [vmem:[%s23447_s5 + $0x4] ss:$16 sps:$4 sm:$0xff]   ;;  %v22098_v31 = vld [vmem:[%s23447_s5 + $0xc] ss:$16 sps:$4 sm:$0xff]  }
 0xdb2   :  { %v16939_v2 = vpop.eup %16938  ;;  %10527 = vmatpush1.bf16.msra.mxu0 %v24462_v18  ;;  %10568 = vmatpush1.bf16.msra.mxu1 %v24463_v47  ;;  %v24494_v47 = vld [vmem:[#allocation55_spill] sm:$0xff] }
 0xdb3   :  { %v9795_v41 = vmul.f32 0.5, %v16939_v2  ;;  %v16941_v46 = vpop.eup %16940  ;;  %10528 = vmatprep.subr.bf16.mxu0 %v21688_v40  ;;  %10569 = vmatprep.subr.bf16.mxu1 %v21693_v57  ;;  %v24466_v40 = vld [vmem:[#allocation40_spill] sm:$0xff]  ;;  %v24467_v57 = vld [vmem:[#allocation41_spill] sm:$0xff] }
 0xdb4   :  { %v9796_v11 = vmul.f32 0.5, %v16941_v46  ;;  %v16943_v7 = vpop.eup %16942 }
 0xdb5   :  { %v9798_v58 = vadd.f32 0.5, %v9795_v41  ;;  %v24493_v41 = vld [vmem:[#allocation54_spill] sm:$0xff] }
 0xdb6   :  { %v9799_v5 = vadd.f32 0.5, %v9796_v11  ;;  %10529 = vmatpush1.bf16.msra.mxu0 %v21700_v14  ;;  %10570 = vmatpush1.bf16.msra.mxu1 %v21705_v44  ;;  %v16945_v14 = vpop.eup %16944  ;;  %v24468_v44 = vld [vmem:[#allocation42_spill] sm:$0xff] }
 0xdb7   :  { %v9803_v9 = vmul.f32 %v16943_v7, %v9798_v58  ;;  %10530 = vmatprep.subr.bf16.mxu0 %v24464_v55  ;;  %10571 = vmatprep.subr.bf16.mxu1 %v24465_v33  ;;  %v24495_v7 = vld [vmem:[#allocation56_spill] sm:$0xff] }
 0xdb8   :  { %v9802_v23 = vmul.f32 %v9799_v5, %v21744_v39  ;;  %v9797_v39 = vmul.f32 0.5, %v16945_v14 }
 0xdba   :  { %v21991_v10 = vadd.f32 %v9803_v9, %v9802_v23  ;;  %10531 = vmatpush1.bf16.msra.mxu0 %v24466_v40  ;;  %10572 = vmatpush1.bf16.msra.mxu1 %v24467_v57  ;;  %v9800_v29 = vadd.f32 0.5, %v9797_v39  ;;  %v24496_v9 = vld [vmem:[#allocation57_spill] sm:$0xff] }
 0xdbb   :  { %10532 = vmatprep.subr.bf16.mxu0 %v21737_v49  ;;  %10573 = vmatprep.subr.bf16.mxu1 %v21742_v6  ;;  %v24471_v49 = vld [vmem:[#allocation45_spill] sm:$0xff]  ;;  %v24472_v6 = vmov 0  }
 0xdbc   :  { %16946 = vtanh.f32 %v21991_v10 }
 0xdbe   :  { %10533 = vmatpush1.bf16.msra.mxu0 %v21751_v20  ;;  %10574 = vmatpush1.bf16.msra.mxu1 %v24468_v44  ;;  %v24473_v20 = vld [vmem:[#allocation102_spill] sm:$0xff] }
 0xdbf   :  { %10822 = vmatprep.subr.bf16.mxu0 %v24469_v54 }
 0xdc6   :  { %v16947_v52 = vpop.eup %16946 }
 0xdc7   :  { %v22001_v15 = vmul.f32 %v16947_v52, %v9800_v29 }
 0xdc9   :  { %24470 = vst [vmem:[#allocation14_spill] sm:$0xff] %v22001_v15  ;;  %v10095_v61 = vpack.c.bf16 %v22001_v15, %v22001_v15  ;;  %v22348_v15 = vld [vmem:[%s23447_s5 + $0x144] ss:$16 sps:$4 sm:$0xff]  }
 0xdcb   :  { %10534 = vmatprep.mubr.bf16.mxu0 %v10095_v61  ;;  %10575 = vmatprep.mubr.bf16.mxu1 %v10095_v61 }
 0xdcc   :  { %10535 = vmatmul.mubr.bf16.vlgmr.msra.gmra.mrb[132].mxu0 %v21923_v13  ;;  %10576 = vmatmul.mubr.bf16.vlgmr.msra.gmra.mrb[140].mxu1 %v21923_v13  ;;  %v22020_v13 = vld [vmem:[%s23445_s3 + $0xc] ss:$16 sps:$4 sm:$0xff]  }
 0xdcd   :  { %10823 = vmatpush1.bf16.msra.mxu0 %v24471_v49  ;;  %10854 = vmatprep.mubr.bf16.mxu0 %v24472_v6 }
 0xdce   :  { %10824 = vmatprep.subr.bf16.mxu0 %v24473_v20  ;;  %10895 = vmatprep.mubr.bf16.mxu1 %v24472_v6 }
 0xdcf   :  { %10863 = vmatprep.subr.bf16.mxu1 %v22020_v13 }
 0xdd0   :  { %10864 = vmatpush1.bf16.msra.mxu1 %v22025_v63 }
 0xdd1   :  { %10825 = vmatpush1.bf16.msra.mxu0 %v24474_v60  ;;  %10865 = vmatprep.subr.bf16.mxu1 %v22034_v12 }
 0xdd2   :  { %10826 = vmatprep.subr.bf16.mxu0 %v24475_v19 }
 0xdd4   :  { %10866 = vmatpush1.bf16.msra.mxu1 %v22039_v4 }
 0xdd5   :  { %10827 = vmatpush1.bf16.msra.mxu0 %v24476_v21  ;;  %10867 = vmatprep.subr.bf16.mxu1 %v22048_v24 }
 0xdd6   :  { %10828 = vmatprep.subr.bf16.mxu0 %v24477_v48 }
 0xdd8   :  { %10868 = vmatpush1.bf16.msra.mxu1 %v22053_v38 }
 0xdd9   :  { %10829 = vmatpush1.bf16.msra.mxu0 %v24478_v37  ;;  %10869 = vmatprep.subr.bf16.mxu1 %v22062_v25 }
 0xdda   :  { %10830 = vmatprep.subr.bf16.mxu0 %v24479_v26 }
 0xddc   :  { %10870 = vmatpush1.bf16.msra.mxu1 %v22067_v30 }
 0xddd   :  { %10831 = vmatpush1.bf16.msra.mxu0 %v24480_v22  ;;  %10871 = vmatprep.subr.bf16.mxu1 %v22075_v8 }
 0xdde   :  { %10832 = vmatprep.subr.bf16.mxu0 %v24481_v34 }
 0xde0   :  { %10872 = vmatpush1.bf16.msra.mxu1 %v22080_v16 }
 0xde1   :  { %10833 = vmatpush1.bf16.msra.mxu0 %v24482_v45  ;;  %10873 = vmatprep.subr.bf16.mxu1 %v24487_v62  ;;  %v22139_v62 = vld [vmem:[%s23447_s5 + $0x20] ss:$16 sps:$4 sm:$0xff]  }
 0xde2   :  { %10834 = vmatprep.subr.bf16.mxu0 %v24483_v3  ;;  %v22113_v3 = vld [vmem:[%s23447_s5] ss:$16 sps:$4 sm:$0xff]  }
 0xde4   :  { %10874 = vmatpush1.bf16.msra.mxu1 %v24488_v56  ;;  %v22144_v56 = vld [vmem:[%s23447_s5 + $0x28] ss:$16 sps:$4 sm:$0xff]  }
 0xde5   :  { %10835 = vmatpush1.bf16.msra.mxu0 %v24484_v43  ;;  %10875 = vmatprep.subr.bf16.mxu1 %v24489_v36  ;;  %v22118_v43 = vld [vmem:[%s23447_s5 + $0x8] ss:$16 sps:$4 sm:$0xff]   ;;  %v22151_v36 = vld [vmem:[%s23447_s5 + $0x44] ss:$16 sps:$4 sm:$0xff]  }
 0xde6   :  { %10836 = vmatprep.subr.bf16.mxu0 %v24485_v27  ;;  %v22125_v27 = vld [vmem:[%s23447_s5 + $0x24] ss:$16 sps:$4 sm:$0xff]  }
 0xde8   :  { %10876 = vmatpush1.bf16.msra.mxu1 %v24490_v0  ;;  %v22156_v0 = vld [vmem:[%s23447_s5 + $0x4c] ss:$16 sps:$4 sm:$0xff]  }
 0xde9   :  { %10837 = vmatpush1.bf16.msra.mxu0 %v24486_v53  ;;  %10877 = vmatprep.subr.bf16.mxu1 %v24491_v51  ;;  %v22130_v53 = vld [vmem:[%s23447_s5 + $0x2c] ss:$16 sps:$4 sm:$0xff]   ;;  %v22163_v51 = vld [vmem:[%s23447_s5 + $0x40] ss:$16 sps:$4 sm:$0xff]  }
 0xdea   :  { %11315 = vmatprep.subr.bf16.mxu0 %v22093_v17 }
 0xdec   :  { %10878 = vmatpush1.bf16.msra.mxu1 %v24492_v59  ;;  %v22168_v59 = vld [vmem:[%s23447_s5 + $0x48] ss:$16 sps:$4 sm:$0xff]  }
 0xded   :  { %11356 = vmatprep.subr.bf16.mxu1 %v22098_v31 }
 0xe54   :  { %v10043_v1 = vpop.f32.mrb[128].mxu0  ;;  %v10084_v2 = vpop.f32.mrb[136].mxu1 }
 0xe55   :  { %v10091_v18 = vadd.f32 %v10043_v1, %v24493_v41  ;;  %v10093_v46 = vadd.f32 %v10084_v2, %v24494_v47  ;;  %v10045_v58 = vpop.f32.mrb[129].mxu0  ;;  %v10086_v11 = vpop.f32.mrb[137].mxu1  ;;  %v22175_v1 = vld [vmem:[%s23447_s5 + $0x64] ss:$16 sps:$4 sm:$0xff]   ;;  %v22180_v2 = vld [vmem:[%s23447_s5 + $0x6c] ss:$16 sps:$4 sm:$0xff]  }
 0xe56   :  { %v10092_v5 = vadd.f32 %v10045_v58, %v24495_v7  ;;  %v10094_v55 = vadd.f32 %v10086_v11, %v24496_v9  ;;  %v10047_v33 = vpop.f32.mrb[130].mxu0  ;;  %v10088_v23 = vpop.f32.mrb[138].mxu1  ;;  %v22187_v41 = vld [vmem:[%s23447_s5 + $0x60] ss:$16 sps:$4 sm:$0xff]   ;;  %v22199_v47 = vld [vmem:[%s23447_s5 + $0x84] ss:$16 sps:$4 sm:$0xff]  }
 0xe57   :  { %v10584_v40 = vmul.f32 0.5, %v10091_v18  ;;  %v10048_v57 = vpop.f32.mrb[131].mxu0  ;;  %v10089_v14 = vpop.f32.mrb[139].mxu1  ;;  %v10586_v54 = vmul.f32 0.5, %v10093_v46  ;;  %v22192_v18 = vld [vmem:[%s23447_s5 + $0x68] ss:$16 sps:$4 sm:$0xff]  }
 0xe58   :  { %v10585_v44 = vmul.f32 0.5, %v10092_v5  ;;  %v22204_v46 = vld [vmem:[%s23447_s5 + $0x8c] ss:$16 sps:$4 sm:$0xff]   ;;  %v22211_v58 = vld [vmem:[%s23447_s5 + $0x80] ss:$16 sps:$4 sm:$0xff]  }
 0xe59   :  { %16948 = vtanh.f32 %v10584_v40  ;;  %v22216_v11 = vld [vmem:[%s23447_s5 + $0x88] ss:$16 sps:$4 sm:$0xff]   ;;  %v22223_v7 = vld [vmem:[%s23447_s5 + $0xa4] ss:$16 sps:$4 sm:$0xff]   ;;  %v22228_v5 = vld [vmem:[%s23447_s5 + $0xac] ss:$16 sps:$4 sm:$0xff]  }
 0xe5a   :  { %16950 = vtanh.f32 %v10585_v44  ;;  %v22235_v9 = vld [vmem:[%s23447_s5 + $0xa0] ss:$16 sps:$4 sm:$0xff]   ;;  %v22247_v33 = vld [vmem:[%s23447_s5 + $0xc4] ss:$16 sps:$4 sm:$0xff]   ;;  %v22252_v23 = vld [vmem:[%s23447_s5 + $0xcc] ss:$16 sps:$4 sm:$0xff]  }
 0xe5b   :  { %16952 = vtanh.f32 %v10094_v55  ;;  %v22240_v55 = vld [vmem:[%s23447_s5 + $0xa8] ss:$16 sps:$4 sm:$0xff]   ;;  %v22259_v40 = vld [vmem:[%s23447_s5 + $0xc0] ss:$16 sps:$4 sm:$0xff]   ;;  %v22271_v14 = vld [vmem:[%s23447_s5 + $0xe4] ss:$16 sps:$4 sm:$0xff]  }
 0xe5c   :  { %16954 = vtanh.f32 %v10586_v54  ;;  %v22264_v57 = vld [vmem:[%s23447_s5 + $0xc8] ss:$16 sps:$4 sm:$0xff]   ;;  %24497 = vst [vmem:[#allocation22_spill] sm:$0xff] %v22271_v14  ;;  %v22276_v44 = vld [vmem:[%s23447_s5 + $0xec] ss:$16 sps:$4 sm:$0xff]  }
 0xe5d   :  { %24498 = vst [vmem:[#allocation23_spill] sm:$0xff] %v22276_v44  ;;  %v22283_v54 = vld [vmem:[%s23447_s5 + $0xe0] ss:$16 sps:$4 sm:$0xff]  }
 0xe5e   :  { %24499 = vst [vmem:[#allocation25_spill] sm:$0xff] %v22283_v54 }
 0xe63   :  { %v16949_v39 = vpop.eup %16948 }
 0xe64   :  { %v10590_v29 = vmul.f32 0.5, %v16949_v39  ;;  %v16951_v52 = vpop.eup %16950  ;;  %v22288_v39 = vld [vmem:[%s23447_s5 + $0xe8] ss:$16 sps:$4 sm:$0xff]  }
 0xe65   :  { %v10591_v49 = vmul.f32 0.5, %v16951_v52  ;;  %v16953_v20 = vpop.eup %16952  ;;  %24500 = vst [vmem:[#allocation26_spill] sm:$0xff] %v22288_v39  ;;  %v22300_v52 = vld [vmem:[%s23447_s5 + $0x10c] ss:$16 sps:$4 sm:$0xff]  }
 0xe66   :  { %v10593_v61 = vadd.f32 0.5, %v10590_v29  ;;  %v16955_v37 = vpop.eup %16954  ;;  %v22295_v29 = vld [vmem:[%s23447_s5 + $0x104] ss:$16 sps:$4 sm:$0xff]   ;;  %24502 = vst [vmem:[#allocation28_spill] sm:$0xff] %v22300_v52 }
 0xe67   :  { %v10594_v60 = vadd.f32 0.5, %v10591_v49  ;;  %v10592_v26 = vmul.f32 0.5, %v16955_v37  ;;  %24501 = vst [vmem:[#allocation27_spill] sm:$0xff] %v22295_v29  ;;  %v22310_v49 = vld [vmem:[%s23447_s5 + $0x100] ss:$16 sps:$4 sm:$0xff]  }
 0xe68   :  { %v10598_v19 = vmul.f32 %v16953_v20, %v10593_v61  ;;  %v10160_v61 = vld [vmem:[%s23448_s6] sm:$0xf]  ;;  %24503 = vst [vmem:[#allocation29_spill] sm:$0xff] %v22310_v49  ;;  %v22315_v20 = vld [vmem:[%s23447_s5 + $0x108] ss:$16 sps:$4 sm:$0xff]  }
 0xe69   :  { %v10597_v21 = vmul.f32 %v10594_v60, %v21920_v35  ;;  %v10595_v22 = vadd.f32 0.5, %v10592_v26  ;;  %24504 = vst [vmem:[#allocation16_spill] sm:$0xff] %v22315_v20  ;;  %v22322_v60 = vld [vmem:[%s23447_s5 + $0x124] ss:$16 sps:$4 sm:$0xff]   ;;  %v10169_v37 = vrot.slane %v10160_v61, %v24449_v42  ;;  %v22336_v26 = vld [vmem:[%s23447_s5 + $0x120] ss:$16 sps:$4 sm:$0xff]  }
 0xe6a   :  { %24505 = vst [vmem:[#allocation17_spill] sm:$0xff] %v22322_v60 }
 0xe6b   :  { %v22107_v48 = vadd.f32 %v10598_v19, %v10597_v21  ;;  %v22327_v19 = vld [vmem:[%s23447_s5 + $0x12c] ss:$16 sps:$4 sm:$0xff]   ;;  %v10165_v21 = vrot.slane %v10160_v61, %v24446_v28  ;;  %v10177_v28 = vrot.slane %v10160_v61, %v24452_v50 }
 0xe6c   :  { %24506 = vst [vmem:[#allocation18_spill] sm:$0xff] %v22327_v19 }
 0xe6d   :  { %16956 = vtanh.f32 %v22107_v48 }
 0xe77   :  { %v16957_v34 = vpop.eup %16956 }
 0xe78   :  { %v10601_v45 = vmul.f32 %v16957_v34, %v10595_v22  ;;  %v22341_v22 = vld [vmem:[%s23447_s5 + $0x128] ss:$16 sps:$4 sm:$0xff]  }
 0xe7a   :  { %v22120_v35 = vpack.c.bf16 %v10601_v45, %v10601_v45 }
 0xe7c   :  { %10855 = vmatmul.mubr.bf16.vlgmr.msra.gmra.mrb[136].mxu0 %v22120_v35  ;;  %10896 = vmatmul.mubr.bf16.vlgmr.msra.gmra.mrb[144].mxu1 %v22120_v35 }
 0xe7d   :  { %11316 = vmatpush1.bf16.msra.mxu0 %v22113_v3  ;;  %11357 = vmatpush1.bf16.msra.mxu1 %v22118_v43 }
 0xe7e   :  { %11317 = vmatprep.subr.bf16.mxu0 %v22125_v27  ;;  %11358 = vmatprep.subr.bf16.mxu1 %v22130_v53 }
 0xe81   :  { %11318 = vmatpush1.bf16.msra.mxu0 %v22139_v62  ;;  %11359 = vmatpush1.bf16.msra.mxu1 %v22144_v56 }
 0xe82   :  { %11319 = vmatprep.subr.bf16.mxu0 %v22151_v36  ;;  %11360 = vmatprep.subr.bf16.mxu1 %v22156_v0 }
 0xe85   :  { %11320 = vmatpush1.bf16.msra.mxu0 %v22163_v51  ;;  %11361 = vmatpush1.bf16.msra.mxu1 %v22168_v59 }
 0xe86   :  { %11321 = vmatprep.subr.bf16.mxu0 %v22175_v1  ;;  %11362 = vmatprep.subr.bf16.mxu1 %v22180_v2 }
 0xe89   :  { %11322 = vmatpush1.bf16.msra.mxu0 %v22187_v41  ;;  %11363 = vmatpush1.bf16.msra.mxu1 %v22192_v18 }
 0xe8a   :  { %11323 = vmatprep.subr.bf16.mxu0 %v22199_v47  ;;  %11364 = vmatprep.subr.bf16.mxu1 %v22204_v46 }
 0xe8d   :  { %11324 = vmatpush1.bf16.msra.mxu0 %v22211_v58  ;;  %11365 = vmatpush1.bf16.msra.mxu1 %v22216_v11 }
 0xe8e   :  { %11325 = vmatprep.subr.bf16.mxu0 %v22223_v7  ;;  %11366 = vmatprep.subr.bf16.mxu1 %v22228_v5 }
 0xe91   :  { %11326 = vmatpush1.bf16.msra.mxu0 %v22235_v9  ;;  %11367 = vmatpush1.bf16.msra.mxu1 %v22240_v55 }
 0xe92   :  { %11327 = vmatprep.subr.bf16.mxu0 %v22247_v33  ;;  %11368 = vmatprep.subr.bf16.mxu1 %v22252_v23 }
 0xe95   :  { %11328 = vmatpush1.bf16.msra.mxu0 %v22259_v40  ;;  %11369 = vmatpush1.bf16.msra.mxu1 %v22264_v57 }
 0xe96   :  { %11329 = vmatprep.subr.bf16.mxu0 %v22271_v14  ;;  %11370 = vmatprep.subr.bf16.mxu1 %v22276_v44 }
 0xe99   :  { %11330 = vmatpush1.bf16.msra.mxu0 %v22283_v54  ;;  %11371 = vmatpush1.bf16.msra.mxu1 %v22288_v39 }
 0xe9a   :  { %11331 = vmatprep.subr.bf16.mxu0 %v22295_v29  ;;  %11372 = vmatprep.subr.bf16.mxu1 %v22300_v52 }
 0xe9d   :  { %11332 = vmatpush1.bf16.msra.mxu0 %v22310_v49  ;;  %11373 = vmatpush1.bf16.msra.mxu1 %v22315_v20  ;;  %v22353_v20 = vld [vmem:[%s23447_s5 + $0x14c] ss:$16 sps:$4 sm:$0xff]  }
 0xe9e   :  { %11333 = vmatprep.subr.bf16.mxu0 %v22322_v60  ;;  %11374 = vmatprep.subr.bf16.mxu1 %v22327_v19  ;;  %v22359_v19 = vld [vmem:[%s23447_s5 + $0x140] ss:$16 sps:$4 sm:$0xff]  }
 0xe9f   :  { %v10536_v34 = vpop.f32.mrb[132].mxu0  ;;  %v10577_v45 = vpop.f32.mrb[140].mxu1 }
 0xea0   :  { %v10537_v49 = vadd.f32 %v10536_v34, %v10165_v21  ;;  %v10538_v42 = vpop.f32.mrb[133].mxu0  ;;  %v10579_v52 = vpop.f32.mrb[141].mxu1  ;;  %v22366_v21 = vld [vmem:[%s23447_s5 + $0x148] ss:$16 sps:$4 sm:$0xff]   ;;  %v22422_v34 = vld [vmem:[%s23447_s5 + $0x1a4] ss:$16 sps:$4 sm:$0xff]  }
 0xea1   :  { %v10539_v29 = vadd.f32 %v10538_v42, %v10169_v37  ;;  %v10540_v39 = vpop.f32.mrb[134].mxu0  ;;  %v10581_v60 = vpop.f32.mrb[142].mxu1  ;;  %11334 = vmatpush1.bf16.msra.mxu0 %v22336_v26  ;;  %11375 = vmatpush1.bf16.msra.mxu1 %v22341_v22  ;;  %v22415_v37 = vld [vmem:[%s23447_s5 + $0x188] ss:$16 sps:$4 sm:$0xff]   ;;  %24515 = vst [vmem:[#allocation72_spill] sm:$0xff] %v22422_v34 }
 0xea2   :  { %v10602_v54 = vmul.f32 0.5, %v10537_v49  ;;  %v10541_v44 = vpop.f32.mrb[135].mxu0  ;;  %v10582_v14 = vpop.f32.mrb[143].mxu1  ;;  %11335 = vmatprep.subr.bf16.mxu0 %v22348_v15  ;;  %11376 = vmatprep.subr.bf16.mxu1 %v22353_v20  ;;  %v22373_v39 = vld [vmem:[%s23447_s5 + $0x164] ss:$16 sps:$4 sm:$0xff]   ;;  %v10173_v49 = vrot.slane %v10160_v61, %v24453_v32  ;;  %24514 = vst [vmem:[#allocation85_spill] sm:$0xff] %v22415_v37 }
 0xea3   :  { %v10603_v42 = vmul.f32 0.5, %v10539_v29  ;;  %24507 = vst [vmem:[#allocation19_spill] sm:$0xff] %v22373_v39  ;;  %v22378_v14 = vld [vmem:[%s23447_s5 + $0x16c] ss:$16 sps:$4 sm:$0xff]   ;;  %v10580_v44 = vadd.f32 %v10579_v52, %v10177_v28  ;;  %v22386_v29 = vld [vmem:[%s23447_s5 + $0x160] ss:$16 sps:$4 sm:$0xff]  }
 0xea4   :  { %24508 = vst [vmem:[#allocation73_spill] sm:$0xff] %v22378_v14  ;;  %16958 = vtanh.f32 %v10602_v54  ;;  %24509 = vst [vmem:[#allocation21_spill] sm:$0xff] %v22386_v29  ;;  %v22391_v60 = vld [vmem:[%s23447_s5 + $0x168] ss:$16 sps:$4 sm:$0xff]   ;;  %v22398_v28 = vld [vmem:[%s23447_s5 + $0x184] ss:$16 sps:$4 sm:$0xff]   ;;  %v10578_v52 = vadd.f32 %v10577_v45, %v10173_v49 }
 0xea5   :  { %16960 = vtanh.f32 %v10603_v42  ;;  %11336 = vmatpush1.bf16.msra.mxu0 %v22359_v19  ;;  %11377 = vmatpush1.bf16.msra.mxu1 %v22366_v21  ;;  %24510 = vst [vmem:[#allocation20_spill] sm:$0xff] %v22391_v60  ;;  %24511 = vst [vmem:[#allocation74_spill] sm:$0xff] %v22398_v28  ;;  %v22403_v54 = vld [vmem:[%s23447_s5 + $0x18c] ss:$16 sps:$4 sm:$0xff]   ;;  %v22410_v61 = vld [vmem:[%s23447_s5 + $0x180] ss:$16 sps:$4 sm:$0xff]  }
 0xea6   :  { %11337 = vmatprep.subr.bf16.mxu0 %v22373_v39  ;;  %11378 = vmatprep.subr.bf16.mxu1 %v22378_v14  ;;  %24512 = vst [vmem:[#allocation76_spill] sm:$0xff] %v22403_v54  ;;  %16962 = vtanh.f32 %v10580_v44  ;;  %24513 = vst [vmem:[#allocation79_spill] sm:$0xff] %v22410_v61  ;;  %v22427_v45 = vld [vmem:[%s23447_s5 + $0x1ac] ss:$16 sps:$4 sm:$0xff]   ;;  %v10604_v42 = vmul.f32 0.5, %v10578_v52 }
 0xea7   :  { %24516 = vst [vmem:[#allocation71_spill] sm:$0xff] %v22427_v45  ;;  %v22434_v49 = vld [vmem:[%s23447_s5 + $0x1a0] ss:$16 sps:$4 sm:$0xff]   ;;  %v22446_v52 = vld [vmem:[%s23447_s5 + $0x1c4] ss:$16 sps:$4 sm:$0xff]  }
 0xea8   :  { %16964 = vtanh.f32 %v10604_v42 }
 0xea9   :  { %11338 = vmatpush1.bf16.msra.mxu0 %v22386_v29  ;;  %11379 = vmatpush1.bf16.msra.mxu1 %v22391_v60 }
 0xeaa   :  { %11339 = vmatprep.subr.bf16.mxu0 %v22398_v28  ;;  %11380 = vmatprep.subr.bf16.mxu1 %v22403_v54  ;;  %v22439_v54 = vld [vmem:[%s23447_s5 + $0x1a8] ss:$16 sps:$4 sm:$0xff]  }
 0xead   :  { %11340 = vmatpush1.bf16.msra.mxu0 %v22410_v61  ;;  %11381 = vmatpush1.bf16.msra.mxu1 %v22415_v37  ;;  %v22451_v37 = vld [vmem:[%s23447_s5 + $0x1cc] ss:$16 sps:$4 sm:$0xff]  }
 0xeae   :  { %v16959_v44 = vpop.eup %16958  ;;  %11341 = vmatprep.subr.bf16.mxu0 %v22422_v34  ;;  %11382 = vmatprep.subr.bf16.mxu1 %v22427_v45  ;;  %24517 = vst [vmem:[#allocation75_spill] sm:$0xff] %v22451_v37  ;;  %v22463_v45 = vld [vmem:[%s23447_s5 + $0x1c8] ss:$16 sps:$4 sm:$0xff]  }
 0xeaf   :  { %v10608_v28 = vmul.f32 0.5, %v16959_v44  ;;  %v16961_v61 = vpop.eup %16960  ;;  %v22458_v44 = vld [vmem:[%s23447_s5 + $0x1c0] ss:$16 sps:$4 sm:$0xff]   ;;  %24519 = vst [vmem:[#allocation80_spill] sm:$0xff] %v22463_v45 }
 0xeb0   :  { %v10609_v29 = vmul.f32 0.5, %v16961_v61  ;;  %v16963_v14 = vpop.eup %16962  ;;  %24518 = vst [vmem:[#allocation78_spill] sm:$0xff] %v22458_v44  ;;  %v22475_v61 = vld [vmem:[%s23447_s5 + $0x1ec] ss:$16 sps:$4 sm:$0xff]  }
 0xeb1   :  { %v10611_v60 = vadd.f32 0.5, %v10608_v28  ;;  %11342 = vmatpush1.bf16.msra.mxu0 %v22434_v49  ;;  %11383 = vmatpush1.bf16.msra.mxu1 %v22439_v54  ;;  %v22470_v28 = vld [vmem:[%s23447_s5 + $0x1e4] ss:$16 sps:$4 sm:$0xff]  }
 0xeb2   :  { %v10612_v34 = vadd.f32 0.5, %v10609_v29  ;;  %11343 = vmatprep.subr.bf16.mxu0 %v22446_v52  ;;  %11384 = vmatprep.subr.bf16.mxu1 %v22451_v37  ;;  %v22488_v29 = vld [vmem:[%s23447_s5 + $0x1e8] ss:$16 sps:$4 sm:$0xff]  }
 0xeb3   :  { %v10616_v39 = vmul.f32 %v16963_v14, %v10611_v60  ;;  %v22483_v14 = vld [vmem:[%s23447_s5 + $0x1e0] ss:$16 sps:$4 sm:$0xff]  }
 0xeb4   :  { %v10615_v42 = vmul.f32 %v10612_v34, %v21991_v10  ;;  %v16965_v10 = vpop.eup %16964 }
 0xeb5   :  { %11344 = vmatpush1.bf16.msra.mxu0 %v22458_v44  ;;  %11385 = vmatpush1.bf16.msra.mxu1 %v22463_v45  ;;  %v10610_v34 = vmul.f32 0.5, %v16965_v10  ;;  %v22598_v10 = vld [vmem:[%s23445_s3 + $0xc4] ss:$16 sps:$4 sm:$0xff]  }
 0xeb6   :  { %v22490_v60 = vadd.f32 %v10616_v39, %v10615_v42  ;;  %11345 = vmatprep.subr.bf16.mxu0 %v22470_v28  ;;  %11386 = vmatprep.subr.bf16.mxu1 %v22475_v61  ;;  %v22593_v42 = vld [vmem:[%s23445_s3 + $0xac] ss:$16 sps:$4 sm:$0xff]   ;;  %24535 = vst [vmem:[#allocation93_spill] sm:$0xff] %v22598_v10 }
 0xeb7   :  { %v10613_v45 = vadd.f32 0.5, %v10610_v34  ;;  %24534 = vst [vmem:[#allocation88_spill] sm:$0xff] %v22593_v42  ;;  %v22604_v34 = vld [vmem:[%s23445_s3 + $0xcc] ss:$16 sps:$4 sm:$0xff]  }
 0xeb8   :  { %16966 = vtanh.f32 %v22490_v60  ;;  %24536 = vst [vmem:[#allocation96_spill] sm:$0xff] %v22604_v34 }
 0xeb9   :  { %11346 = vmatpush1.bf16.msra.mxu0 %v22483_v14  ;;  %11387 = vmatpush1.bf16.msra.mxu1 %v22488_v29 }
 0xeba   :  { %11676 = vmatprep.subr.bf16.mxu1 %v22020_v13  ;;  %v22516_v13 = vld [vmem:[%s23445_s3 + $0x4] ss:$16 sps:$4 sm:$0xff]  }
 0xebb   :  { %24521 = vst [vmem:[#allocation46_spill] sm:$0xff] %v22516_v13  ;;  %11635 = vmatprep.subr.bf16.mxu0 %v22516_v13 }
 0xec2   :  { %v16967_v44 = vpop.eup %16966 }
 0xec3   :  { %v22498_v37 = vmul.f32 %v16967_v44, %v10613_v45  ;;  %v22583_v45 = vld [vmem:[%s23445_s3 + $0xa4] ss:$16 sps:$4 sm:$0xff]   ;;  %v22588_v44 = vld [vmem:[%s23445_s3 + $0xa8] ss:$16 sps:$4 sm:$0xff]  }
 0xec4   :  { %24532 = vst [vmem:[#allocation87_spill] sm:$0xff] %v22583_v45  ;;  %24533 = vst [vmem:[#allocation89_spill] sm:$0xff] %v22588_v44 }
 0xec5   :  { %24520 = vst [vmem:[#allocation81_spill] sm:$0xff] %v22498_v37  ;;  %v10908_v39 = vpack.c.bf16 %v22498_v37, %v22498_v37  ;;  %v22617_v37 = vld [vmem:[%s23445_s3 + $0xc8] ss:$16 sps:$4 sm:$0xff]  }
 0xec6   :  { %24538 = vst [vmem:[#allocation100_spill] sm:$0xff] %v22617_v37 }
 0xec7   :  { %11347 = vmatprep.mubr.bf16.mxu0 %v10908_v39  ;;  %11388 = vmatprep.mubr.bf16.mxu1 %v10908_v39  ;;  %v22612_v39 = vld [vmem:[%s23445_s3 + $0xc0] ss:$16 sps:$4 sm:$0xff]  }
 0xec8   :  { %11348 = vmatmul.mubr.bf16.vlgmr.msra.gmra.mrb[140].mxu0 %v22120_v35  ;;  %11389 = vmatmul.mubr.bf16.vlgmr.msra.gmra.mrb[148].mxu1 %v22120_v35  ;;  %v22578_v35 = vld [vmem:[%s23445_s3 + $0xa0] ss:$16 sps:$4 sm:$0xff]   ;;  %24537 = vst [vmem:[#allocation98_spill] sm:$0xff] %v22612_v39 }
 0xec9   :  { %11677 = vmatpush1.bf16.msra.mxu1 %v22025_v63  ;;  %11667 = vmatprep.mubr.bf16.mxu0 %v24472_v6  ;;  %v22522_v63 = vld [vmem:[%s23445_s3] ss:$16 sps:$4 sm:$0xff]   ;;  %24531 = vst [vmem:[#allocation86_spill] sm:$0xff] %v22578_v35 }
 0xeca   :  { %11678 = vmatprep.subr.bf16.mxu1 %v22034_v12  ;;  %11708 = vmatprep.mubr.bf16.mxu1 %v24472_v6  ;;  %24522 = vst [vmem:[#allocation47_spill] sm:$0xff] %v22522_v63  ;;  %v22530_v12 = vld [vmem:[%s23445_s3 + $0x24] ss:$16 sps:$4 sm:$0xff]  }
 0xecb   :  { %11636 = vmatpush1.bf16.msra.mxu0 %v22522_v63  ;;  %24523 = vst [vmem:[#allocation48_spill] sm:$0xff] %v22530_v12 }
 0xecc   :  { %11637 = vmatprep.subr.bf16.mxu0 %v22530_v12 }
 0xecd   :  { %11679 = vmatpush1.bf16.msra.mxu1 %v22039_v4  ;;  %v22535_v4 = vld [vmem:[%s23445_s3 + $0x20] ss:$16 sps:$4 sm:$0xff]  }
 0xece   :  { %11680 = vmatprep.subr.bf16.mxu1 %v22048_v24  ;;  %24524 = vst [vmem:[#allocation49_spill] sm:$0xff] %v22535_v4  ;;  %v22542_v24 = vld [vmem:[%s23445_s3 + $0x44] ss:$16 sps:$4 sm:$0xff]  }
 0xecf   :  { %11638 = vmatpush1.bf16.msra.mxu0 %v22535_v4  ;;  %24525 = vst [vmem:[#allocation50_spill] sm:$0xff] %v22542_v24 }
 0xed0   :  { %11639 = vmatprep.subr.bf16.mxu0 %v22542_v24  ;;  %v24546_v24 = vld [vmem:[#allocation61_spill] sm:$0xff] }
 0xed1   :  { %11681 = vmatpush1.bf16.msra.mxu1 %v22053_v38  ;;  %v22547_v38 = vld [vmem:[%s23445_s3 + $0x40] ss:$16 sps:$4 sm:$0xff]  }
 0xed2   :  { %11682 = vmatprep.subr.bf16.mxu1 %v22062_v25  ;;  %24526 = vst [vmem:[#allocation51_spill] sm:$0xff] %v22547_v38  ;;  %v22554_v25 = vld [vmem:[%s23445_s3 + $0x64] ss:$16 sps:$4 sm:$0xff]  }
 0xed3   :  { %11640 = vmatpush1.bf16.msra.mxu0 %v22547_v38  ;;  %24527 = vst [vmem:[#allocation52_spill] sm:$0xff] %v22554_v25  ;;  %v24545_v38 = vld [vmem:[#allocation60_spill] sm:$0xff] }
 0xed4   :  { %11641 = vmatprep.subr.bf16.mxu0 %v22554_v25 }
 0xed5   :  { %11683 = vmatpush1.bf16.msra.mxu1 %v22067_v30  ;;  %v22559_v30 = vld [vmem:[%s23445_s3 + $0x60] ss:$16 sps:$4 sm:$0xff]  }
 0xed6   :  { %11684 = vmatprep.subr.bf16.mxu1 %v22075_v8  ;;  %24528 = vst [vmem:[#allocation53_spill] sm:$0xff] %v22559_v30  ;;  %v22566_v8 = vld [vmem:[%s23445_s3 + $0x84] ss:$16 sps:$4 sm:$0xff]  }
 0xed7   :  { %11642 = vmatpush1.bf16.msra.mxu0 %v22559_v30  ;;  %24529 = vst [vmem:[#allocation83_spill] sm:$0xff] %v22566_v8 }
 0xed8   :  { %11643 = vmatprep.subr.bf16.mxu0 %v22566_v8 }
 0xed9   :  { %11685 = vmatpush1.bf16.msra.mxu1 %v22080_v16  ;;  %v22571_v16 = vld [vmem:[%s23445_s3 + $0x80] ss:$16 sps:$4 sm:$0xff]  }
 0xeda   :  { %24530 = vst [vmem:[#allocation84_spill] sm:$0xff] %v22571_v16  ;;  %11686 = vmatprep.subr.bf16.mxu1 %v22593_v42  ;;  %v22624_v42 = vld [vmem:[%s23445_s3 + $0xe4] ss:$16 sps:$4 sm:$0xff]  }
 0xedb   :  { %11644 = vmatpush1.bf16.msra.mxu0 %v22571_v16  ;;  %24539 = vst [vmem:[#allocation92_spill] sm:$0xff] %v22624_v42  ;;  %v24544_v16 = vld [vmem:[#allocation59_spill] sm:$0xff] }
 0xedc   :  { %11645 = vmatprep.subr.bf16.mxu0 %v22583_v45 }
 0xedd   :  { %11687 = vmatpush1.bf16.msra.mxu1 %v22588_v44  ;;  %v22629_v44 = vld [vmem:[%s23445_s3 + $0xec] ss:$16 sps:$4 sm:$0xff]  }
 0xede   :  { %11688 = vmatprep.subr.bf16.mxu1 %v22604_v34  ;;  %24540 = vst [vmem:[#allocation91_spill] sm:$0xff] %v22629_v44  ;;  %v22641_v34 = vld [vmem:[%s23445_s3 + $0xe8] ss:$16 sps:$4 sm:$0xff]  }
 0xedf   :  { %11646 = vmatpush1.bf16.msra.mxu0 %v22578_v35  ;;  %24542 = vst [vmem:[#allocation97_spill] sm:$0xff] %v22641_v34  ;;  %v24543_v35 = vld [vmem:[#allocation58_spill] sm:$0xff] }
 0xee0   :  { %11647 = vmatprep.subr.bf16.mxu0 %v22598_v10  ;;  %v22636_v10 = vld [vmem:[%s23445_s3 + $0xe0] ss:$16 sps:$4 sm:$0xff]  }
 0xee1   :  { %11689 = vmatpush1.bf16.msra.mxu1 %v22617_v37  ;;  %24541 = vst [vmem:[#allocation95_spill] sm:$0xff] %v22636_v10 }
 0xee2   :  { %11690 = vmatprep.subr.bf16.mxu1 %v22629_v44 }
 0xee3   :  { %11648 = vmatpush1.bf16.msra.mxu0 %v22612_v39 }
 0xee4   :  { %11649 = vmatprep.subr.bf16.mxu0 %v22624_v42 }
 0xee5   :  { %11691 = vmatpush1.bf16.msra.mxu1 %v22641_v34 }
 0xee6   :  { %12169 = vmatprep.subr.bf16.mxu1 %v22098_v31 }
 0xee7   :  { %11650 = vmatpush1.bf16.msra.mxu0 %v22636_v10 }
 0xee8   :  { %12128 = vmatprep.subr.bf16.mxu0 %v22093_v17 }
 0xf4f   :  { %v10856_v37 = vpop.f32.mrb[136].mxu0  ;;  %v10897_v39 = vpop.f32.mrb[144].mxu1 }
 0xf50   :  { %v10904_v45 = vadd.f32 %v10856_v37, %v24543_v35  ;;  %v10906_v8 = vadd.f32 %v10897_v39, %v24544_v16  ;;  %v10858_v30 = vpop.f32.mrb[137].mxu0  ;;  %v10899_v25 = vpop.f32.mrb[145].mxu1 }
 0xf51   :  { %v10905_v42 = vadd.f32 %v10858_v30, %v24545_v38  ;;  %v10907_v44 = vadd.f32 %v10899_v25, %v24546_v24  ;;  %v10860_v4 = vpop.f32.mrb[138].mxu0  ;;  %v10901_v10 = vpop.f32.mrb[146].mxu1 }
 0xf52   :  { %v11397_v12 = vmul.f32 0.5, %v10904_v45  ;;  %v10861_v34 = vpop.f32.mrb[139].mxu0  ;;  %v10902_v6 = vpop.f32.mrb[147].mxu1  ;;  %v11399_v31 = vmul.f32 0.5, %v10906_v8 }
 0xf53   :  { %v11398_v17 = vmul.f32 0.5, %v10905_v42  ;;  %v24561_v34 = vld [vmem:[#allocation21_spill] sm:$0xff] }
 0xf54   :  { %16968 = vtanh.f32 %v11397_v12 }
 0xf55   :  { %16970 = vtanh.f32 %v11398_v17  ;;  %v24564_v17 = vld [vmem:[#allocation76_spill] sm:$0xff] }
 0xf56   :  { %16972 = vtanh.f32 %v10907_v44 }
 0xf57   :  { %16974 = vtanh.f32 %v11399_v31 }
 0xf5e   :  { %v16969_v63 = vpop.eup %16968 }
 0xf5f   :  { %v11403_v37 = vmul.f32 0.5, %v16969_v63  ;;  %v16971_v35 = vpop.eup %16970 }
 0xf60   :  { %v11404_v39 = vmul.f32 0.5, %v16971_v35  ;;  %v16973_v13 = vpop.eup %16972  ;;  %v24567_v35 = vld [vmem:[#allocation72_spill] sm:$0xff] }
 0xf61   :  { %v11406_v16 = vadd.f32 0.5, %v11403_v37  ;;  %v16975_v6 = vpop.eup %16974  ;;  %v24565_v37 = vld [vmem:[#allocation79_spill] sm:$0xff] }
 0xf62   :  { %v11407_v38 = vadd.f32 0.5, %v11404_v39  ;;  %v11405_v12 = vmul.f32 0.5, %v16975_v6 }
 0xf63   :  { %v11411_v30 = vmul.f32 %v16973_v13, %v11406_v16  ;;  %v24568_v16 = vld [vmem:[#allocation71_spill] sm:$0xff] }
 0xf64   :  { %v11410_v4 = vmul.f32 %v11407_v38, %v22107_v48  ;;  %v11408_v25 = vadd.f32 0.5, %v11405_v12  ;;  %v24547_v48 = vld [vmem:[#allocation22_spill] sm:$0xff]  ;;  %v24569_v12 = vld [vmem:[#allocation75_spill] sm:$0xff] }
 0xf66   :  { %v22654_v24 = vadd.f32 %v11411_v30, %v11410_v4 }
 0xf68   :  { %16976 = vtanh.f32 %v22654_v24 }
 0xf72   :  { %v16977_v45 = vpop.eup %16976 }
 0xf73   :  { %v11414_v8 = vmul.f32 %v16977_v45, %v11408_v25 }
 0xf75   :  { %v22657_v44 = vpack.c.bf16 %v11414_v8, %v11414_v8 }
 0xf77   :  { %11668 = vmatmul.mubr.bf16.vlgmr.msra.gmra.mrb[144].mxu0 %v22657_v44  ;;  %11709 = vmatmul.mubr.bf16.vlgmr.msra.gmra.mrb[152].mxu1 %v22657_v44 }
 0xf78   :  { %12129 = vmatpush1.bf16.msra.mxu0 %v22113_v3  ;;  %12170 = vmatpush1.bf16.msra.mxu1 %v22118_v43  ;;  %v24548_v3 = vld [vmem:[#allocation23_spill] sm:$0xff]  ;;  %v10973_v43 = vld [vmem:[%s23448_s6] sm:$0xf] }
 0xf79   :  { %12130 = vmatprep.subr.bf16.mxu0 %v22125_v27  ;;  %12171 = vmatprep.subr.bf16.mxu1 %v22130_v53  ;;  %v24549_v27 = vld [vmem:[#allocation25_spill] sm:$0xff]  ;;  %v24550_v53 = vld [vmem:[#allocation26_spill] sm:$0xff]  ;;  %v10986_v42 = vrot.slane %v10973_v43, %v24453_v32 }
 0xf7c   :  { %12131 = vmatpush1.bf16.msra.mxu0 %v22139_v62  ;;  %12172 = vmatpush1.bf16.msra.mxu1 %v22144_v56  ;;  %v24551_v62 = vld [vmem:[#allocation27_spill] sm:$0xff]  ;;  %v24552_v56 = vld [vmem:[#allocation28_spill] sm:$0xff] }
 0xf7d   :  { %12132 = vmatprep.subr.bf16.mxu0 %v22151_v36  ;;  %12173 = vmatprep.subr.bf16.mxu1 %v22156_v0  ;;  %v24553_v36 = vld [vmem:[#allocation10_spill] sm:$0xff] }
 0xf7e   :  { %v10978_v0 = vrot.slane %v10973_v43, %v24553_v36 }
 0xf80   :  { %12133 = vmatpush1.bf16.msra.mxu0 %v22163_v51  ;;  %12174 = vmatpush1.bf16.msra.mxu1 %v22168_v59  ;;  %v24554_v51 = vld [vmem:[#allocation12_spill] sm:$0xff] }
 0xf81   :  { %12134 = vmatprep.subr.bf16.mxu0 %v22175_v1  ;;  %12175 = vmatprep.subr.bf16.mxu1 %v22180_v2  ;;  %v10982_v59 = vrot.slane %v10973_v43, %v24554_v51  ;;  %v24555_v1 = vld [vmem:[#allocation29_spill] sm:$0xff]  ;;  %v24556_v2 = vld [vmem:[#allocation16_spill] sm:$0xff] }
 0xf84   :  { %12135 = vmatpush1.bf16.msra.mxu0 %v22187_v41  ;;  %12176 = vmatpush1.bf16.msra.mxu1 %v22192_v18  ;;  %v24557_v41 = vld [vmem:[#allocation17_spill] sm:$0xff]  ;;  %v24558_v18 = vld [vmem:[#allocation18_spill] sm:$0xff] }
 0xf85   :  { %12136 = vmatprep.subr.bf16.mxu0 %v22199_v47  ;;  %12177 = vmatprep.subr.bf16.mxu1 %v22204_v46 }
 0xf88   :  { %12137 = vmatpush1.bf16.msra.mxu0 %v22211_v58  ;;  %12178 = vmatpush1.bf16.msra.mxu1 %v22216_v11 }
 0xf89   :  { %12138 = vmatprep.subr.bf16.mxu0 %v22223_v7  ;;  %12179 = vmatprep.subr.bf16.mxu1 %v22228_v5  ;;  %v10990_v7 = vrot.slane %v10973_v43, %v24452_v50 }
 0xf8c   :  { %12139 = vmatpush1.bf16.msra.mxu0 %v22235_v9  ;;  %12180 = vmatpush1.bf16.msra.mxu1 %v22240_v55 }
 0xf8d   :  { %12140 = vmatprep.subr.bf16.mxu0 %v22247_v33  ;;  %12181 = vmatprep.subr.bf16.mxu1 %v22252_v23 }
 0xf90   :  { %12141 = vmatpush1.bf16.msra.mxu0 %v22259_v40  ;;  %12182 = vmatpush1.bf16.msra.mxu1 %v22264_v57 }
 0xf91   :  { %12142 = vmatprep.subr.bf16.mxu0 %v24547_v48  ;;  %12183 = vmatprep.subr.bf16.mxu1 %v24548_v3  ;;  %v24570_v48 = vld [vmem:[#allocation78_spill] sm:$0xff]  ;;  %v24571_v3 = vld [vmem:[#allocation80_spill] sm:$0xff] }
 0xf94   :  { %12143 = vmatpush1.bf16.msra.mxu0 %v24549_v27  ;;  %12184 = vmatpush1.bf16.msra.mxu1 %v24550_v53 }
 0xf95   :  { %12144 = vmatprep.subr.bf16.mxu0 %v24551_v62  ;;  %12185 = vmatprep.subr.bf16.mxu1 %v24552_v56  ;;  %v24577_v62 = vld [vmem:[#allocation49_spill] sm:$0xff]  ;;  %v24578_v56 = vld [vmem:[#allocation50_spill] sm:$0xff] }
 0xf98   :  { %12145 = vmatpush1.bf16.msra.mxu0 %v24555_v1  ;;  %12186 = vmatpush1.bf16.msra.mxu1 %v24556_v2  ;;  %v24581_v1 = vld [vmem:[#allocation53_spill] sm:$0xff] }
 0xf99   :  { %12146 = vmatprep.subr.bf16.mxu0 %v24557_v41  ;;  %12187 = vmatprep.subr.bf16.mxu1 %v24558_v18  ;;  %v16599_v2 = vld [vmem:[%s23445_s3 + $0x8] ss:$16 sps:$4 sm:$0xff]   ;;  %v16604_v18 = vld [vmem:[%s23445_s3 + $0x2c] ss:$16 sps:$4 sm:$0xff]  }
 0xf9a   :  { %v24582_v41 = vld [vmem:[#allocation83_spill] sm:$0xff] }
 0xf9b   :  { %v11349_v47 = vpop.f32.mrb[140].mxu0  ;;  %v11390_v46 = vpop.f32.mrb[148].mxu1 }
 0xf9c   :  { %v11350_v58 = vadd.f32 %v11349_v47, %v10978_v0  ;;  %v11351_v11 = vpop.f32.mrb[141].mxu0  ;;  %v11392_v5 = vpop.f32.mrb[149].mxu1  ;;  %12147 = vmatpush1.bf16.msra.mxu0 %v22336_v26  ;;  %12188 = vmatpush1.bf16.msra.mxu1 %v22341_v22  ;;  %v24559_v26 = vld [vmem:[#allocation19_spill] sm:$0xff]  ;;  %v24560_v22 = vld [vmem:[#allocation73_spill] sm:$0xff]  ;;  %v11391_v10 = vadd.f32 %v11390_v46, %v10986_v42  ;;  %v24583_v47 = vld [vmem:[#allocation84_spill] sm:$0xff] }
 0xf9d   :  { %v11352_v9 = vadd.f32 %v11351_v11, %v10982_v59  ;;  %v11353_v55 = vpop.f32.mrb[142].mxu0  ;;  %v11394_v33 = vpop.f32.mrb[150].mxu1  ;;  %12148 = vmatprep.subr.bf16.mxu0 %v22348_v15  ;;  %12189 = vmatprep.subr.bf16.mxu1 %v22353_v20  ;;  %v11393_v63 = vadd.f32 %v11392_v5, %v10990_v7  ;;  %v24562_v15 = vld [vmem:[#allocation20_spill] sm:$0xff]  ;;  %v24563_v20 = vld [vmem:[#allocation74_spill] sm:$0xff]  ;;  %v24579_v0 = vld [vmem:[#allocation51_spill] sm:$0xff] }
 0xf9e   :  { %v11415_v23 = vmul.f32 0.5, %v11350_v58  ;;  %v11354_v40 = vpop.f32.mrb[143].mxu0  ;;  %v11395_v57 = vpop.f32.mrb[151].mxu1  ;;  %v11417_v31 = vmul.f32 0.5, %v11391_v10  ;;  %v24580_v59 = vld [vmem:[#allocation52_spill] sm:$0xff]  ;;  %v24584_v58 = vld [vmem:[#allocation87_spill] sm:$0xff] }
 0xf9f   :  { %v11416_v13 = vmul.f32 0.5, %v11352_v9  ;;  %v16602_v46 = vld [vmem:[%s23445_s3 + $0x28] ss:$16 sps:$4 sm:$0xff]   ;;  %v16607_v11 = vld [vmem:[%s23445_s3 + $0x4c] ss:$16 sps:$4 sm:$0xff]   ;;  %v24585_v7 = vld [vmem:[#allocation86_spill] sm:$0xff] }
 0xfa0   :  { %16978 = vtanh.f32 %v11415_v23  ;;  %12149 = vmatpush1.bf16.msra.mxu0 %v22359_v19  ;;  %12190 = vmatpush1.bf16.msra.mxu1 %v22366_v21  ;;  %v24566_v19 = vld [vmem:[#allocation85_spill] sm:$0xff]  ;;  %v24587_v33 = vld [vmem:[#allocation98_spill] sm:$0xff]  ;;  %v24588_v40 = vld [vmem:[#allocation92_spill] sm:$0xff] }
 0xfa1   :  { %16980 = vtanh.f32 %v11416_v13  ;;  %12150 = vmatprep.subr.bf16.mxu0 %v24559_v26  ;;  %12191 = vmatprep.subr.bf16.mxu1 %v24560_v22  ;;  %v16605_v5 = vld [vmem:[%s23445_s3 + $0x48] ss:$16 sps:$4 sm:$0xff]   ;;  %v16610_v55 = vld [vmem:[%s23445_s3 + $0x6c] ss:$16 sps:$4 sm:$0xff]   ;;  %v24590_v42 = vld [vmem:[#allocation88_spill] sm:$0xff] }
 0xfa2   :  { %16982 = vtanh.f32 %v11393_v63  ;;  %v24586_v9 = vld [vmem:[#allocation93_spill] sm:$0xff]  ;;  %v24589_v13 = vld [vmem:[#allocation95_spill] sm:$0xff]  ;;  %v24592_v22 = vld [vmem:[#allocation96_spill] sm:$0xff] }
 0xfa3   :  { %16984 = vtanh.f32 %v11417_v31  ;;  %v16608_v23 = vld [vmem:[%s23445_s3 + $0x68] ss:$16 sps:$4 sm:$0xff]   ;;  %v16613_v57 = vld [vmem:[%s23445_s3 + $0x8c] ss:$16 sps:$4 sm:$0xff]   ;;  %v24593_v10 = vld [vmem:[#allocation100_spill] sm:$0xff] }
 0xfa4   :  { %12151 = vmatpush1.bf16.msra.mxu0 %v24561_v34  ;;  %12192 = vmatpush1.bf16.msra.mxu1 %v24562_v15  ;;  %v16611_v63 = vld [vmem:[%s23445_s3 + $0x88] ss:$16 sps:$4 sm:$0xff]  }
 0xfa5   :  { %12152 = vmatprep.subr.bf16.mxu0 %v24563_v20  ;;  %12193 = vmatprep.subr.bf16.mxu1 %v24564_v17  ;;  %v24591_v26 = vld [vmem:[#allocation89_spill] sm:$0xff]  ;;  %v24594_v34 = vld [vmem:[#allocation91_spill] sm:$0xff]  ;;  %v22797_v20 = vld [vmem:[%s23447_s5 + $0x4] ss:$16 sps:$4 sm:$0xff]  }
 0xfa6   :  { %v24595_v15 = vld [vmem:[#allocation97_spill] sm:$0xff] }
 0xfa7   :  { %v22802_v17 = vld [vmem:[%s23447_s5 + $0xc] ss:$16 sps:$4 sm:$0xff]  }
 0xfa8   :  { %12153 = vmatpush1.bf16.msra.mxu0 %v24565_v37  ;;  %12194 = vmatpush1.bf16.msra.mxu1 %v24566_v19  ;;  %v24596_v19 = vld [vmem:[#allocation62_spill] sm:$0xff] }
 0xfa9   :  { %12154 = vmatprep.subr.bf16.mxu0 %v24567_v35  ;;  %12195 = vmatprep.subr.bf16.mxu1 %v24568_v16  ;;  %v24597_v35 = vld [vmem:[#allocation63_spill] sm:$0xff] }
 0xfaa   :  { %v16979_v21 = vpop.eup %16978 }
 0xfab   :  { %v11421_v39 = vmul.f32 0.5, %v16979_v21  ;;  %v16981_v38 = vpop.eup %16980 }
 0xfac   :  { %v11422_v4 = vmul.f32 0.5, %v16981_v38  ;;  %12155 = vmatpush1.bf16.msra.mxu0 %v22434_v49  ;;  %12196 = vmatpush1.bf16.msra.mxu1 %v22439_v54  ;;  %v16983_v6 = vpop.eup %16982  ;;  %v24572_v54 = vld [vmem:[#allocation46_spill] sm:$0xff] }
 0xfad   :  { %v11424_v30 = vadd.f32 0.5, %v11421_v39  ;;  %12156 = vmatprep.subr.bf16.mxu0 %v22446_v52  ;;  %12197 = vmatprep.subr.bf16.mxu1 %v24569_v12  ;;  %v16985_v52 = vpop.eup %16984 }
 0xfae   :  { %v11425_v25 = vadd.f32 0.5, %v11422_v4 }
 0xfaf   :  { %v11429_v45 = vmul.f32 %v16983_v6, %v11424_v30  ;;  %v24598_v30 = vld [vmem:[#allocation64_spill] sm:$0xff]  ;;  %v24599_v6 = vld [vmem:[#allocation65_spill] sm:$0xff] }
 0xfb0   :  { %v11428_v8 = vmul.f32 %v11425_v25, %v22490_v60  ;;  %12157 = vmatpush1.bf16.msra.mxu0 %v24570_v48  ;;  %12198 = vmatpush1.bf16.msra.mxu1 %v24571_v3  ;;  %v11423_v60 = vmul.f32 0.5, %v16985_v52 }
 0xfb1   :  { %12158 = vmatprep.subr.bf16.mxu0 %v22470_v28  ;;  %12199 = vmatprep.subr.bf16.mxu1 %v22475_v61  ;;  %v24574_v61 = vld [vmem:[#allocation47_spill] sm:$0xff] }
 0xfb2   :  { %v22729_v49 = vadd.f32 %v11429_v45, %v11428_v8  ;;  %v11426_v43 = vadd.f32 0.5, %v11423_v60 }
 0xfb4   :  { %16986 = vtanh.f32 %v22729_v49  ;;  %12159 = vmatpush1.bf16.msra.mxu0 %v22483_v14  ;;  %12200 = vmatpush1.bf16.msra.mxu1 %v22488_v29  ;;  %v24575_v14 = vmov 0   ;;  %v24576_v29 = vld [vmem:[#allocation48_spill] sm:$0xff] }
 0xfb5   :  { %12448 = vmatprep.subr.bf16.mxu0 %v24572_v54 }
 0xfbe   :  { %v16987_v27 = vpop.eup %16986 }
 0xfbf   :  { %v22735_v53 = vmul.f32 %v16987_v27, %v11426_v43 }
 0xfc1   :  { %24573 = vst [vmem:[#allocation99_spill] sm:$0xff] %v22735_v53  ;;  %v11721_v28 = vpack.c.bf16 %v22735_v53, %v22735_v53 }
 0xfc3   :  { %12160 = vmatprep.mubr.bf16.mxu0 %v11721_v28  ;;  %12201 = vmatprep.mubr.bf16.mxu1 %v11721_v28 }
 0xfc4   :  { %12161 = vmatmul.mubr.bf16.vlgmr.msra.gmra.mrb[148].mxu0 %v22657_v44  ;;  %12202 = vmatmul.mubr.bf16.vlgmr.msra.gmra.mrb[156].mxu1 %v22657_v44  ;;  %v16601_v44 = vld [vmem:[%s23445_s3 + $0xc] ss:$16 sps:$4 sm:$0xff]  }
 0xfc5   :  { %12449 = vmatpush1.bf16.msra.mxu0 %v24574_v61  ;;  %12480 = vmatprep.mubr.bf16.mxu0 %v24575_v14 }
 0xfc6   :  { %12450 = vmatprep.subr.bf16.mxu0 %v24576_v29  ;;  %12521 = vmatprep.mubr.bf16.mxu1 %v24575_v14 }
 0xfc7   :  { %12489 = vmatprep.subr.bf16.mxu1 %v16601_v44 }
 0xfc8   :  { %12490 = vmatpush1.bf16.msra.mxu1 %v16599_v2 }
 0xfc9   :  { %12451 = vmatpush1.bf16.msra.mxu0 %v24577_v62  ;;  %12491 = vmatprep.subr.bf16.mxu1 %v16604_v18  ;;  %v22817_v18 = vld [vmem:[%s23447_s5] ss:$16 sps:$4 sm:$0xff]  }
 0xfca   :  { %12452 = vmatprep.subr.bf16.mxu0 %v24578_v56 }
 0xfcc   :  { %12492 = vmatpush1.bf16.msra.mxu1 %v16602_v46  ;;  %v22829_v46 = vld [vmem:[%s23447_s5 + $0x24] ss:$16 sps:$4 sm:$0xff]  }
 0xfcd   :  { %12453 = vmatpush1.bf16.msra.mxu0 %v24579_v0  ;;  %12493 = vmatprep.subr.bf16.mxu1 %v16607_v11  ;;  %v22843_v11 = vld [vmem:[%s23447_s5 + $0x20] ss:$16 sps:$4 sm:$0xff]  }
 0xfce   :  { %12454 = vmatprep.subr.bf16.mxu0 %v24580_v59 }
 0xfd0   :  { %12494 = vmatpush1.bf16.msra.mxu1 %v16605_v5  ;;  %v22855_v5 = vld [vmem:[%s23447_s5 + $0x44] ss:$16 sps:$4 sm:$0xff]  }
 0xfd1   :  { %12455 = vmatpush1.bf16.msra.mxu0 %v24581_v1  ;;  %12495 = vmatprep.subr.bf16.mxu1 %v16610_v55  ;;  %v22867_v55 = vld [vmem:[%s23447_s5 + $0x40] ss:$16 sps:$4 sm:$0xff]  }
 0xfd2   :  { %12456 = vmatprep.subr.bf16.mxu0 %v24582_v41 }
 0xfd4   :  { %12496 = vmatpush1.bf16.msra.mxu1 %v16608_v23  ;;  %v22879_v23 = vld [vmem:[%s23447_s5 + $0x64] ss:$16 sps:$4 sm:$0xff]  }
 0xfd5   :  { %12457 = vmatpush1.bf16.msra.mxu0 %v24583_v47  ;;  %12497 = vmatprep.subr.bf16.mxu1 %v16613_v57  ;;  %v22822_v47 = vld [vmem:[%s23447_s5 + $0x8] ss:$16 sps:$4 sm:$0xff]   ;;  %v22891_v57 = vld [vmem:[%s23447_s5 + $0x60] ss:$16 sps:$4 sm:$0xff]  }
 0xfd6   :  { %12458 = vmatprep.subr.bf16.mxu0 %v24584_v58  ;;  %v22834_v58 = vld [vmem:[%s23447_s5 + $0x2c] ss:$16 sps:$4 sm:$0xff]  }
 0xfd8   :  { %12498 = vmatpush1.bf16.msra.mxu1 %v16611_v63  ;;  %v22903_v63 = vld [vmem:[%s23447_s5 + $0x84] ss:$16 sps:$4 sm:$0xff]  }
 0xfd9   :  { %12459 = vmatpush1.bf16.msra.mxu0 %v24585_v7  ;;  %12499 = vmatprep.subr.bf16.mxu1 %v24590_v42  ;;  %v22848_v7 = vld [vmem:[%s23447_s5 + $0x28] ss:$16 sps:$4 sm:$0xff]   ;;  %v22908_v42 = vld [vmem:[%s23447_s5 + $0x8c] ss:$16 sps:$4 sm:$0xff]  }
 0xfda   :  { %12460 = vmatprep.subr.bf16.mxu0 %v24586_v9  ;;  %v22860_v9 = vld [vmem:[%s23447_s5 + $0x4c] ss:$16 sps:$4 sm:$0xff]  }
 0xfdc   :  { %12500 = vmatpush1.bf16.msra.mxu1 %v24591_v26  ;;  %v22915_v26 = vld [vmem:[%s23447_s5 + $0x80] ss:$16 sps:$4 sm:$0xff]  }
 0xfdd   :  { %12461 = vmatpush1.bf16.msra.mxu0 %v24587_v33  ;;  %12501 = vmatprep.subr.bf16.mxu1 %v24592_v22  ;;  %v22872_v33 = vld [vmem:[%s23447_s5 + $0x48] ss:$16 sps:$4 sm:$0xff]  }
 0xfde   :  { %12462 = vmatprep.subr.bf16.mxu0 %v24588_v40  ;;  %v22884_v40 = vld [vmem:[%s23447_s5 + $0x6c] ss:$16 sps:$4 sm:$0xff]   ;;  %v22920_v22 = vld [vmem:[%s23447_s5 + $0x88] ss:$16 sps:$4 sm:$0xff]  }
 0xfe0   :  { %12502 = vmatpush1.bf16.msra.mxu1 %v24593_v10  ;;  %v22927_v10 = vld [vmem:[%s23447_s5 + $0xa4] ss:$16 sps:$4 sm:$0xff]  }
 0xfe1   :  { %12463 = vmatpush1.bf16.msra.mxu0 %v24589_v13  ;;  %12503 = vmatprep.subr.bf16.mxu1 %v24594_v34  ;;  %v22896_v13 = vld [vmem:[%s23447_s5 + $0x68] ss:$16 sps:$4 sm:$0xff]   ;;  %v22932_v34 = vld [vmem:[%s23447_s5 + $0xac] ss:$16 sps:$4 sm:$0xff]  }
 0xfe2   :  { %12941 = vmatprep.subr.bf16.mxu0 %v22797_v20 }
 0xfe4   :  { %12504 = vmatpush1.bf16.msra.mxu1 %v24595_v15  ;;  %v22939_v15 = vld [vmem:[%s23447_s5 + $0xa0] ss:$16 sps:$4 sm:$0xff]  }
 0xfe5   :  { %12982 = vmatprep.subr.bf16.mxu1 %v22802_v17 }
0x104a   :  { %v11669_v31 = vpop.f32.mrb[144].mxu0  ;;  %v11710_v37 = vpop.f32.mrb[152].mxu1 }
0x104b   :  { %v11717_v21 = vadd.f32 %v11669_v31, %v24596_v19  ;;  %v11719_v16 = vadd.f32 %v11710_v37, %v24597_v35  ;;  %v11671_v39 = vpop.f32.mrb[145].mxu0  ;;  %v11712_v38 = vpop.f32.mrb[153].mxu1  ;;  %v22944_v31 = vld [vmem:[%s23447_s5 + $0xa8] ss:$16 sps:$4 sm:$0xff]   ;;  %v22951_v37 = vld [vmem:[%s23447_s5 + $0xc4] ss:$16 sps:$4 sm:$0xff]  }
0x104c   :  { %v11718_v4 = vadd.f32 %v11671_v39, %v24598_v30  ;;  %v11720_v12 = vadd.f32 %v11712_v38, %v24599_v6  ;;  %v11673_v25 = vpop.f32.mrb[146].mxu0  ;;  %v11714_v45 = vpop.f32.mrb[154].mxu1  ;;  %v22956_v19 = vld [vmem:[%s23447_s5 + $0xcc] ss:$16 sps:$4 sm:$0xff]   ;;  %v22968_v35 = vld [vmem:[%s23447_s5 + $0xc8] ss:$16 sps:$4 sm:$0xff]  }
0x104d   :  { %v12210_v8 = vmul.f32 0.5, %v11717_v21  ;;  %v11674_v48 = vpop.f32.mrb[147].mxu0  ;;  %v11715_v3 = vpop.f32.mrb[155].mxu1  ;;  %v12212_v52 = vmul.f32 0.5, %v11719_v16  ;;  %v22963_v21 = vld [vmem:[%s23447_s5 + $0xc0] ss:$16 sps:$4 sm:$0xff]  }
0x104e   :  { %v12211_v54 = vmul.f32 0.5, %v11718_v4  ;;  %v22975_v16 = vld [vmem:[%s23447_s5 + $0xe4] ss:$16 sps:$4 sm:$0xff]   ;;  %v22980_v39 = vld [vmem:[%s23447_s5 + $0xec] ss:$16 sps:$4 sm:$0xff]  }
0x104f   :  { %16988 = vtanh.f32 %v12210_v8  ;;  %v22987_v38 = vld [vmem:[%s23447_s5 + $0xe0] ss:$16 sps:$4 sm:$0xff]   ;;  %v22992_v30 = vld [vmem:[%s23447_s5 + $0xe8] ss:$16 sps:$4 sm:$0xff]   ;;  %v22999_v4 = vld [vmem:[%s23447_s5 + $0x104] ss:$16 sps:$4 sm:$0xff]  }
0x1050   :  { %16990 = vtanh.f32 %v12211_v54  ;;  %v23004_v6 = vld [vmem:[%s23447_s5 + $0x10c] ss:$16 sps:$4 sm:$0xff]   ;;  %v23016_v25 = vld [vmem:[%s23447_s5 + $0x108] ss:$16 sps:$4 sm:$0xff]   ;;  %v11786_v45 = vld [vmem:[%s23448_s6] sm:$0xf] }
0x1051   :  { %16992 = vtanh.f32 %v11720_v12  ;;  %v23011_v12 = vld [vmem:[%s23447_s5 + $0x100] ss:$16 sps:$4 sm:$0xff]   ;;  %v23026_v8 = vld [vmem:[%s23447_s5 + $0x124] ss:$16 sps:$4 sm:$0xff]   ;;  %v23031_v48 = vld [vmem:[%s23447_s5 + $0x12c] ss:$16 sps:$4 sm:$0xff]   ;;  %v11791_v3 = vrot.slane %v11786_v45, %v24553_v36 }
0x1052   :  { %16994 = vtanh.f32 %v12212_v52  ;;  %v23039_v54 = vld [vmem:[%s23447_s5 + $0x120] ss:$16 sps:$4 sm:$0xff]   ;;  %v23044_v52 = vld [vmem:[%s23447_s5 + $0x128] ss:$16 sps:$4 sm:$0xff]  }
0x1059   :  { %v16989_v60 = vpop.eup %16988 }
0x105a   :  { %v12216_v43 = vmul.f32 0.5, %v16989_v60  ;;  %v16991_v27 = vpop.eup %16990  ;;  %v11795_v60 = vrot.slane %v11786_v45, %v24554_v51 }
0x105b   :  { %v12217_v61 = vmul.f32 0.5, %v16991_v27  ;;  %v16993_v14 = vpop.eup %16992  ;;  %v23057_v27 = vld [vmem:[%s23447_s5 + $0x14c] ss:$16 sps:$4 sm:$0xff]  }
0x105c   :  { %v12219_v28 = vadd.f32 0.5, %v12216_v43  ;;  %v16995_v59 = vpop.eup %16994  ;;  %v23052_v43 = vld [vmem:[%s23447_s5 + $0x144] ss:$16 sps:$4 sm:$0xff]  }
0x105d   :  { %v12220_v29 = vadd.f32 0.5, %v12217_v61  ;;  %v12218_v44 = vmul.f32 0.5, %v16995_v59  ;;  %v23065_v59 = vld [vmem:[%s23447_s5 + $0x140] ss:$16 sps:$4 sm:$0xff]  }
0x105e   :  { %v12224_v62 = vmul.f32 %v16993_v14, %v12219_v28 }
0x105f   :  { %v12223_v56 = vmul.f32 %v12220_v29, %v22654_v24  ;;  %v12221_v1 = vadd.f32 0.5, %v12218_v44  ;;  %v23070_v44 = vld [vmem:[%s23447_s5 + $0x148] ss:$16 sps:$4 sm:$0xff]  }
0x1061   :  { %v22811_v0 = vadd.f32 %v12224_v62, %v12223_v56  ;;  %v11803_v62 = vrot.slane %v11786_v45, %v24452_v50 }
0x1063   :  { %24600 = vst [vmem:[#allocation101_spill] sm:$0xff] %v22811_v0  ;;  %16996 = vtanh.f32 %v22811_v0 }
0x106d   :  { %v16997_v2 = vpop.eup %16996 }
0x106e   :  { %v12227_v41 = vmul.f32 %v16997_v2, %v12221_v1 }
0x1070   :  { %v22824_v24 = vpack.c.bf16 %v12227_v41, %v12227_v41 }
0x1072   :  { %12481 = vmatmul.mubr.bf16.vlgmr.msra.gmra.mrb[152].mxu0 %v22824_v24  ;;  %12522 = vmatmul.mubr.bf16.vlgmr.msra.gmra.mrb[160].mxu1 %v22824_v24 }
0x1073   :  { %12942 = vmatpush1.bf16.msra.mxu0 %v22817_v18  ;;  %12983 = vmatpush1.bf16.msra.mxu1 %v22822_v47 }
0x1074   :  { %12943 = vmatprep.subr.bf16.mxu0 %v22829_v46  ;;  %12984 = vmatprep.subr.bf16.mxu1 %v22834_v58 }
0x1077   :  { %12944 = vmatpush1.bf16.msra.mxu0 %v22843_v11  ;;  %12985 = vmatpush1.bf16.msra.mxu1 %v22848_v7 }
0x1078   :  { %12945 = vmatprep.subr.bf16.mxu0 %v22855_v5  ;;  %12986 = vmatprep.subr.bf16.mxu1 %v22860_v9 }
0x107b   :  { %12946 = vmatpush1.bf16.msra.mxu0 %v22867_v55  ;;  %12987 = vmatpush1.bf16.msra.mxu1 %v22872_v33 }
0x107c   :  { %12947 = vmatprep.subr.bf16.mxu0 %v22879_v23  ;;  %12988 = vmatprep.subr.bf16.mxu1 %v22884_v40 }
0x107f   :  { %12948 = vmatpush1.bf16.msra.mxu0 %v22891_v57  ;;  %12989 = vmatpush1.bf16.msra.mxu1 %v22896_v13 }
0x1080   :  { %12949 = vmatprep.subr.bf16.mxu0 %v22903_v63  ;;  %12990 = vmatprep.subr.bf16.mxu1 %v22908_v42 }
0x1083   :  { %12950 = vmatpush1.bf16.msra.mxu0 %v22915_v26  ;;  %12991 = vmatpush1.bf16.msra.mxu1 %v22920_v22 }
0x1084   :  { %12951 = vmatprep.subr.bf16.mxu0 %v22927_v10  ;;  %12992 = vmatprep.subr.bf16.mxu1 %v22932_v34 }
0x1087   :  { %12952 = vmatpush1.bf16.msra.mxu0 %v22939_v15  ;;  %12993 = vmatpush1.bf16.msra.mxu1 %v22944_v31 }
0x1088   :  { %12953 = vmatprep.subr.bf16.mxu0 %v22951_v37  ;;  %12994 = vmatprep.subr.bf16.mxu1 %v22956_v19 }
0x108b   :  { %12954 = vmatpush1.bf16.msra.mxu0 %v22963_v21  ;;  %12995 = vmatpush1.bf16.msra.mxu1 %v22968_v35 }
0x108c   :  { %12955 = vmatprep.subr.bf16.mxu0 %v22975_v16  ;;  %12996 = vmatprep.subr.bf16.mxu1 %v22980_v39 }
0x108f   :  { %12956 = vmatpush1.bf16.msra.mxu0 %v22987_v38  ;;  %12997 = vmatpush1.bf16.msra.mxu1 %v22992_v30 }
0x1090   :  { %12957 = vmatprep.subr.bf16.mxu0 %v22999_v4  ;;  %12998 = vmatprep.subr.bf16.mxu1 %v23004_v6 }
0x1093   :  { %12958 = vmatpush1.bf16.msra.mxu0 %v23011_v12  ;;  %12999 = vmatpush1.bf16.msra.mxu1 %v23016_v25 }
0x1094   :  { %12959 = vmatprep.subr.bf16.mxu0 %v23026_v8  ;;  %13000 = vmatprep.subr.bf16.mxu1 %v23031_v48 }
0x1097   :  { %v12162_v28 = vpop.f32.mrb[148].mxu0  ;;  %v12203_v61 = vpop.f32.mrb[156].mxu1  ;;  %12960 = vmatpush1.bf16.msra.mxu0 %v23039_v54  ;;  %13001 = vmatpush1.bf16.msra.mxu1 %v23044_v52 }
0x1098   :  { %v12163_v14 = vadd.f32 %v12162_v28, %v11791_v3  ;;  %v12164_v29 = vpop.f32.mrb[149].mxu0  ;;  %v12205_v56 = vpop.f32.mrb[157].mxu1  ;;  %12961 = vmatprep.subr.bf16.mxu0 %v23052_v43  ;;  %13002 = vmatprep.subr.bf16.mxu1 %v23057_v27  ;;  %v23077_v3 = vld [vmem:[%s23447_s5 + $0x164] ss:$16 sps:$4 sm:$0xff]   ;;  %v23082_v28 = vld [vmem:[%s23447_s5 + $0x16c] ss:$16 sps:$4 sm:$0xff]  }
0x1099   :  { %v12165_v1 = vadd.f32 %v12164_v29, %v11795_v60  ;;  %v12166_v2 = vpop.f32.mrb[150].mxu0  ;;  %v12207_v41 = vpop.f32.mrb[158].mxu1  ;;  %v12206_v29 = vadd.f32 %v12205_v56, %v11803_v62  ;;  %v23126_v56 = vld [vmem:[%s23447_s5 + $0x1a4] ss:$16 sps:$4 sm:$0xff]  }
0x109a   :  { %v12228_v53 = vmul.f32 0.5, %v12163_v14  ;;  %v12167_v50 = vpop.f32.mrb[151].mxu0  ;;  %v12208_v51 = vpop.f32.mrb[159].mxu1  ;;  %v23089_v2 = vld [vmem:[%s23447_s5 + $0x160] ss:$16 sps:$4 sm:$0xff]   ;;  %24605 = vst [vmem:[#allocation42_spill] sm:$0xff] %v23126_v56 }
0x109b   :  { %v12229_v60 = vmul.f32 0.5, %v12165_v1  ;;  %12962 = vmatpush1.bf16.msra.mxu0 %v23065_v59  ;;  %13003 = vmatpush1.bf16.msra.mxu1 %v23070_v44  ;;  %v23094_v41 = vld [vmem:[%s23447_s5 + $0x168] ss:$16 sps:$4 sm:$0xff]   ;;  %v11799_v50 = vrot.slane %v11786_v45, %v24453_v32  ;;  %v23102_v51 = vld [vmem:[%s23447_s5 + $0x184] ss:$16 sps:$4 sm:$0xff]  }
0x109c   :  { %16998 = vtanh.f32 %v12228_v53  ;;  %12963 = vmatprep.subr.bf16.mxu0 %v23077_v3  ;;  %13004 = vmatprep.subr.bf16.mxu1 %v23082_v28  ;;  %24601 = vst [vmem:[#allocation38_spill] sm:$0xff] %v23102_v51  ;;  %v23107_v53 = vld [vmem:[%s23447_s5 + $0x18c] ss:$16 sps:$4 sm:$0xff]   ;;  %v23114_v45 = vld [vmem:[%s23447_s5 + $0x180] ss:$16 sps:$4 sm:$0xff]  }
0x109d   :  { %24602 = vst [vmem:[#allocation39_spill] sm:$0xff] %v23107_v53  ;;  %17000 = vtanh.f32 %v12229_v60  ;;  %24603 = vst [vmem:[#allocation40_spill] sm:$0xff] %v23114_v45  ;;  %v23119_v14 = vld [vmem:[%s23447_s5 + $0x188] ss:$16 sps:$4 sm:$0xff]   ;;  %v12204_v62 = vadd.f32 %v12203_v61, %v11799_v50  ;;  %v23131_v1 = vld [vmem:[%s23447_s5 + $0x1ac] ss:$16 sps:$4 sm:$0xff]  }
0x109e   :  { %17002 = vtanh.f32 %v12206_v29  ;;  %24604 = vst [vmem:[#allocation41_spill] sm:$0xff] %v23119_v14  ;;  %24606 = vst [vmem:[#allocation44_spill] sm:$0xff] %v23131_v1  ;;  %v23138_v61 = vld [vmem:[%s23447_s5 + $0x1a0] ss:$16 sps:$4 sm:$0xff]   ;;  %v23143_v60 = vld [vmem:[%s23447_s5 + $0x1a8] ss:$16 sps:$4 sm:$0xff]  }
0x109f   :  { %12964 = vmatpush1.bf16.msra.mxu0 %v23089_v2  ;;  %13005 = vmatpush1.bf16.msra.mxu1 %v23094_v41  ;;  %24607 = vst [vmem:[#allocation45_spill] sm:$0xff] %v23138_v61  ;;  %24608 = vst [vmem:[#allocation102_spill] sm:$0xff] %v23143_v60  ;;  %v12230_v29 = vmul.f32 0.5, %v12204_v62  ;;  %v23150_v50 = vld [vmem:[%s23447_s5 + $0x1c4] ss:$16 sps:$4 sm:$0xff]  }
0x10a0   :  { %12965 = vmatprep.subr.bf16.mxu0 %v23102_v51  ;;  %13006 = vmatprep.subr.bf16.mxu1 %v23107_v53  ;;  %v23155_v32 = vld [vmem:[%s23447_s5 + $0x1cc] ss:$16 sps:$4 sm:$0xff]   ;;  %v23162_v62 = vld [vmem:[%s23447_s5 + $0x1c0] ss:$16 sps:$4 sm:$0xff]  }
0x10a1   :  { %17004 = vtanh.f32 %v12230_v29 }
0x10a3   :  { %12966 = vmatpush1.bf16.msra.mxu0 %v23114_v45  ;;  %13007 = vmatpush1.bf16.msra.mxu1 %v23119_v14 }
0x10a4   :  { %12967 = vmatprep.subr.bf16.mxu0 %v23126_v56  ;;  %13008 = vmatprep.subr.bf16.mxu1 %v23131_v1  ;;  %v23167_v1 = vld [vmem:[%s23447_s5 + $0x1c8] ss:$16 sps:$4 sm:$0xff]  }
0x10a5   :  { %24609 = vst [vmem:[#allocation104_spill] sm:$0xff] %v23167_v1 }
0x10a6   :  { %v16999_v36 = vpop.eup %16998 }
0x10a7   :  { %v12234_v0 = vmul.f32 0.5, %v16999_v36  ;;  %v17001_v14 = vpop.eup %17000  ;;  %12968 = vmatpush1.bf16.msra.mxu0 %v23138_v61  ;;  %13009 = vmatpush1.bf16.msra.mxu1 %v23143_v60  ;;  %v23174_v36 = vld [vmem:[%s23447_s5 + $0x1e4] ss:$16 sps:$4 sm:$0xff]   ;;  %v23179_v60 = vld [vmem:[%s23447_s5 + $0x1ec] ss:$16 sps:$4 sm:$0xff]  }
0x10a8   :  { %v12235_v45 = vmul.f32 0.5, %v17001_v14  ;;  %12969 = vmatprep.subr.bf16.mxu0 %v23150_v50  ;;  %13010 = vmatprep.subr.bf16.mxu1 %v23155_v32  ;;  %v17003_v61 = vpop.eup %17002  ;;  %v23191_v14 = vld [vmem:[%s23447_s5 + $0x1e8] ss:$16 sps:$4 sm:$0xff]  }
0x10a9   :  { %v12237_v56 = vadd.f32 0.5, %v12234_v0  ;;  %v23186_v0 = vld [vmem:[%s23447_s5 + $0x1e0] ss:$16 sps:$4 sm:$0xff]  }
0x10aa   :  { %v12238_v53 = vadd.f32 0.5, %v12235_v45 }
0x10ab   :  { %v12242_v51 = vmul.f32 %v17003_v61, %v12237_v56  ;;  %12970 = vmatpush1.bf16.msra.mxu0 %v23162_v62  ;;  %13011 = vmatpush1.bf16.msra.mxu1 %v23167_v1  ;;  %v17005_v56 = vpop.eup %17004 }
0x10ac   :  { %v12241_v29 = vmul.f32 %v12238_v53, %v22729_v49  ;;  %12971 = vmatprep.subr.bf16.mxu0 %v23174_v36  ;;  %13012 = vmatprep.subr.bf16.mxu1 %v23179_v60  ;;  %v12236_v61 = vmul.f32 0.5, %v17005_v56 }
0x10ae   :  { %v23196_v45 = vadd.f32 %v12242_v51, %v12241_v29  ;;  %v12239_v1 = vadd.f32 0.5, %v12236_v61 }
0x10af   :  { %12972 = vmatpush1.bf16.msra.mxu0 %v23186_v0  ;;  %13013 = vmatpush1.bf16.msra.mxu1 %v23191_v14 }
0x10b0   :  { %17006 = vtanh.f32 %v23196_v45  ;;  %13469 = vmatprep.subr.bf16.mxu0 %v22797_v20  ;;  %13510 = vmatprep.subr.bf16.mxu1 %v22802_v17  ;;  %v24610_v20 = vld [vmem:[#allocation38_spill] sm:$0xff]  ;;  %v24611_v17 = vld [vmem:[#allocation39_spill] sm:$0xff] }
0x10ba   :  { %v17007_v49 = vpop.eup %17006 }
0x10bb   :  { %v23203_v53 = vmul.f32 %v17007_v49, %v12239_v1 }
0x10bd   :  { %v12534_v51 = vpack.c.bf16 %v23203_v53, %v23203_v53 }
0x10bf   :  { %12973 = vmatprep.mubr.bf16.mxu0 %v12534_v51  ;;  %13014 = vmatprep.mubr.bf16.mxu1 %v12534_v51 }
0x10c0   :  { %12974 = vmatmul.mubr.bf16.vlgmr.msra.gmra.mrb[156].mxu0 %v22824_v24  ;;  %13015 = vmatmul.mubr.bf16.vlgmr.msra.gmra.mrb[164].mxu1 %v22824_v24  ;;  %v24614_v24 = vld [vmem:[#allocation42_spill] sm:$0xff] }
0x10c1   :  { %13470 = vmatpush1.bf16.msra.mxu0 %v22817_v18  ;;  %13511 = vmatpush1.bf16.msra.mxu1 %v22822_v47  ;;  %v24612_v18 = vld [vmem:[#allocation40_spill] sm:$0xff]  ;;  %v24613_v47 = vld [vmem:[#allocation41_spill] sm:$0xff] }
0x10c2   :  { %13471 = vmatprep.subr.bf16.mxu0 %v22829_v46  ;;  %13512 = vmatprep.subr.bf16.mxu1 %v22834_v58  ;;  %v24615_v46 = vld [vmem:[#allocation44_spill] sm:$0xff]  ;;  %v24616_v58 = vld [vmem:[#allocation45_spill] sm:$0xff] }
0x10c5   :  { %13472 = vmatpush1.bf16.msra.mxu0 %v22843_v11  ;;  %13513 = vmatpush1.bf16.msra.mxu1 %v22848_v7  ;;  %v24617_v11 = vld [vmem:[#allocation102_spill] sm:$0xff]  ;;  %v24618_v7 = vld [vmem:[#allocation104_spill] sm:$0xff] }
0x10c6   :  { %13473 = vmatprep.subr.bf16.mxu0 %v22855_v5  ;;  %13514 = vmatprep.subr.bf16.mxu1 %v22860_v9  ;;  %v23274_v5 = vld [vmem:[%s23449_s7] sm:$0xff]  }
0x10c9   :  { %13474 = vmatpush1.bf16.msra.mxu0 %v22867_v55  ;;  %13515 = vmatpush1.bf16.msra.mxu1 %v22872_v33  ;;  %v24619_v55 = vld [vmem:[#allocation66_spill] sm:$0xff] }
0x10ca   :  { %13475 = vmatprep.subr.bf16.mxu0 %v22879_v23  ;;  %13516 = vmatprep.subr.bf16.mxu1 %v22884_v40  ;;  %v24620_v23 = vld [vmem:[#allocation67_spill] sm:$0xff] }
0x10cd   :  { %13476 = vmatpush1.bf16.msra.mxu0 %v22891_v57  ;;  %13517 = vmatpush1.bf16.msra.mxu1 %v22896_v13 }
0x10ce   :  { %13477 = vmatprep.subr.bf16.mxu0 %v22903_v63  ;;  %13518 = vmatprep.subr.bf16.mxu1 %v22908_v42  ;;  %v24621_v63 = vld [vmem:[#allocation68_spill] sm:$0xff] }
0x10d1   :  { %13478 = vmatpush1.bf16.msra.mxu0 %v22915_v26  ;;  %13519 = vmatpush1.bf16.msra.mxu1 %v22920_v22  ;;  %v24622_v26 = vld [vmem:[#allocation69_spill] sm:$0xff] }
0x10d2   :  { %13479 = vmatprep.subr.bf16.mxu0 %v22927_v10  ;;  %13520 = vmatprep.subr.bf16.mxu1 %v22932_v34 }
0x10d5   :  { %13480 = vmatpush1.bf16.msra.mxu0 %v22939_v15  ;;  %13521 = vmatpush1.bf16.msra.mxu1 %v22944_v31 }
0x10d6   :  { %13481 = vmatprep.subr.bf16.mxu0 %v22951_v37  ;;  %13522 = vmatprep.subr.bf16.mxu1 %v22956_v19 }
0x10d9   :  { %13482 = vmatpush1.bf16.msra.mxu0 %v22963_v21  ;;  %13523 = vmatpush1.bf16.msra.mxu1 %v22968_v35 }
0x10da   :  { %13483 = vmatprep.subr.bf16.mxu0 %v22975_v16  ;;  %13524 = vmatprep.subr.bf16.mxu1 %v22980_v39 }
0x10dd   :  { %13484 = vmatpush1.bf16.msra.mxu0 %v22987_v38  ;;  %13525 = vmatpush1.bf16.msra.mxu1 %v22992_v30 }
0x10de   :  { %13485 = vmatprep.subr.bf16.mxu0 %v22999_v4  ;;  %13526 = vmatprep.subr.bf16.mxu1 %v23004_v6 }
0x10e1   :  { %13486 = vmatpush1.bf16.msra.mxu0 %v23011_v12  ;;  %13527 = vmatpush1.bf16.msra.mxu1 %v23016_v25  ;;  %v24623_v25 = vld [vmem:[#allocation101_spill] sm:$0xff] }
0x10e2   :  { %13487 = vmatprep.subr.bf16.mxu0 %v23026_v8  ;;  %13528 = vmatprep.subr.bf16.mxu1 %v23031_v48 }
0x10e5   :  { %13488 = vmatpush1.bf16.msra.mxu0 %v23039_v54  ;;  %13529 = vmatpush1.bf16.msra.mxu1 %v23044_v52 }
0x10e6   :  { %13489 = vmatprep.subr.bf16.mxu0 %v23052_v43  ;;  %13530 = vmatprep.subr.bf16.mxu1 %v23057_v27 }
0x10e9   :  { %13490 = vmatpush1.bf16.msra.mxu0 %v23065_v59  ;;  %13531 = vmatpush1.bf16.msra.mxu1 %v23070_v44  ;;  %v12599_v44 = vld [vmem:[%s23448_s6] sm:$0xf] }
0x10ea   :  { %13491 = vmatprep.subr.bf16.mxu0 %v23077_v3  ;;  %13532 = vmatprep.subr.bf16.mxu1 %v23082_v28  ;;  %v24624_v3 = vld [vmem:[#allocation10_spill] sm:$0xff] }
0x10eb   :  { %v12604_v28 = vrot.slane %v12599_v44, %v24624_v3 }
0x10ed   :  { %13492 = vmatpush1.bf16.msra.mxu0 %v23089_v2  ;;  %13533 = vmatpush1.bf16.msra.mxu1 %v23094_v41  ;;  %v24625_v2 = vld [vmem:[#allocation12_spill] sm:$0xff] }
0x10ee   :  { %13493 = vmatprep.subr.bf16.mxu0 %v24610_v20  ;;  %13534 = vmatprep.subr.bf16.mxu1 %v24611_v17  ;;  %v12608_v41 = vrot.slane %v12599_v44, %v24625_v2 }
0x10f1   :  { %13494 = vmatpush1.bf16.msra.mxu0 %v24612_v18  ;;  %13535 = vmatpush1.bf16.msra.mxu1 %v24613_v47  ;;  %v24627_v47 = vld [vmem:[#allocation11_spill] sm:$0xff] }
0x10f2   :  { %13495 = vmatprep.subr.bf16.mxu0 %v24614_v24  ;;  %13536 = vmatprep.subr.bf16.mxu1 %v24615_v46  ;;  %v12612_v24 = vrot.slane %v12599_v44, %v24627_v47 }
0x10f5   :  { %13496 = vmatpush1.bf16.msra.mxu0 %v24616_v58  ;;  %13537 = vmatpush1.bf16.msra.mxu1 %v24617_v11 }
0x10f6   :  { %13497 = vmatprep.subr.bf16.mxu0 %v23150_v50  ;;  %13538 = vmatprep.subr.bf16.mxu1 %v23155_v32 }
0x10f9   :  { %13498 = vmatpush1.bf16.msra.mxu0 %v23162_v62  ;;  %13539 = vmatpush1.bf16.msra.mxu1 %v24618_v7 }
0x10fa   :  { %13499 = vmatprep.subr.bf16.mxu0 %v23174_v36  ;;  %13540 = vmatprep.subr.bf16.mxu1 %v23179_v60  ;;  %v24626_v36 = vld [vmem:[#allocation13_spill] sm:$0xff] }
0x10fd   :  { %13500 = vmatpush1.bf16.msra.mxu0 %v23186_v0  ;;  %13541 = vmatpush1.bf16.msra.mxu1 %v23191_v14  ;;  %v12616_v0 = vrot.slane %v12599_v44, %v24626_v36  ;;  %v24638_v44 = vld [vmem:[#allocation14_spill] sm:$0xff] }
0x10fe   :  { %15470 = vmatprep.subr.bf16.mxu0 %v23274_v5 }
0x1145   :  { %v12482_v32 = vpop.f32.mrb[152].mxu0  ;;  %v12523_v9 = vpop.f32.mrb[160].mxu1 }
0x1146   :  { %v12530_v33 = vadd.f32 %v12482_v32, %v24619_v55  ;;  %v12532_v40 = vadd.f32 %v12523_v9, %v24620_v23  ;;  %v12484_v57 = vpop.f32.mrb[153].mxu0  ;;  %v12525_v13 = vpop.f32.mrb[161].mxu1 }
0x1147   :  { %v12531_v42 = vadd.f32 %v12484_v57, %v24621_v63  ;;  %v12533_v22 = vadd.f32 %v12525_v13, %v24622_v26  ;;  %v12486_v10 = vpop.f32.mrb[154].mxu0  ;;  %v12527_v34 = vpop.f32.mrb[162].mxu1 }
0x1148   :  { %v13023_v15 = vmul.f32 0.5, %v12530_v33  ;;  %v12487_v31 = vpop.f32.mrb[155].mxu0  ;;  %v12528_v37 = vpop.f32.mrb[163].mxu1  ;;  %v13025_v21 = vmul.f32 0.5, %v12532_v40 }
0x1149   :  { %v13024_v19 = vmul.f32 0.5, %v12531_v42  ;;  %v16711_v31 = vld [vmem:[%s23449_s7 + $0x8] sm:$0xff]   ;;  %v24629_v37 = vld [vmem:[#allocation94_spill] sm:$0xff] }
0x114a   :  { %17008 = vtanh.f32 %v13023_v15 }
0x114b   :  { %17010 = vtanh.f32 %v13024_v19 }
0x114c   :  { %17012 = vtanh.f32 %v12533_v22 }
0x114d   :  { %17014 = vtanh.f32 %v13025_v21  ;;  %v16712_v21 = vld [vmem:[%s23449_s7 + $0x10] sm:$0xff]  }
0x1154   :  { %v17009_v35 = vpop.eup %17008 }
0x1155   :  { %v13029_v16 = vmul.f32 0.5, %v17009_v35  ;;  %v17011_v39 = vpop.eup %17010  ;;  %v16713_v35 = vld [vmem:[%s23449_s7 + $0x18] sm:$0xff]  }
0x1156   :  { %v13030_v30 = vmul.f32 0.5, %v17011_v39  ;;  %v17013_v4 = vpop.eup %17012  ;;  %v16716_v39 = vld [vmem:[%s23449_s7 + $0x30] sm:$0xff]  }
0x1157   :  { %v13032_v38 = vadd.f32 0.5, %v13029_v16  ;;  %v17015_v54 = vpop.eup %17014  ;;  %v16714_v16 = vld [vmem:[%s23449_s7 + $0x20] sm:$0xff]  }
0x1158   :  { %v13033_v6 = vadd.f32 0.5, %v13030_v30  ;;  %v13031_v52 = vmul.f32 0.5, %v17015_v54  ;;  %v24630_v30 = vld [vmem:[#allocation15_spill] sm:$0xff]  ;;  %v24635_v54 = vld [vmem:[#allocation24_spill] sm:$0xff] }
0x1159   :  { %v13037_v12 = vmul.f32 %v17013_v4, %v13032_v38  ;;  %v16717_v38 = vld [vmem:[%s23449_s7 + $0x38] sm:$0xff]   ;;  %v24631_v4 = vld [vmem:[#allocation90_spill] sm:$0xff] }
0x115a   :  { %v13036_v8 = vmul.f32 %v13033_v6, %v24623_v25  ;;  %v13034_v43 = vadd.f32 0.5, %v13031_v52  ;;  %v13587_v6 = vpack.c.bf16 %v24631_v4, %v24630_v30  ;;  %v24633_v25 = vld [vmem:[#allocation77_spill] sm:$0xff] }
0x115c   :  { %v13038_v48 = vadd.f32 %v13037_v12, %v13036_v8  ;;  %v24632_v12 = vld [vmem:[#allocation109_spill] sm:$0xff] }
0x115d   :  { %v13588_v8 = vpack.c.bf16 %v24633_v25, %v24632_v12 }
0x115e   :  { %17016 = vtanh.f32 %v13038_v48  ;;  %13781 = vst [vmem:[#allocation6] sm:$0xff] %v13038_v48  ;;  %v24634_v48 = vld [vmem:[#allocation103_spill] sm:$0xff] }
0x115f   :  { %v13589_v52 = vpack.c.bf16 %v24635_v54, %v24634_v48 }
0x1168   :  { %v17017_v27 = vpop.eup %17016 }
0x1169   :  { %v13040_v59 = vmul.f32 %v17017_v27, %v13034_v43  ;;  %v24636_v43 = vld [vmem:[#allocation82_spill] sm:$0xff]  ;;  %v24637_v27 = vld [vmem:[#allocation43_spill] sm:$0xff] }
0x116b   :  { %13778 = vst [vmem:[#allocation4] sm:$0xff] %v13040_v59  ;;  %v13061_v15 = vpack.c.bf16 %v13040_v59, %v13040_v59  ;;  %v13590_v59 = vpack.c.bf16 %v24637_v27, %v24636_v43 }
0x1193   :  { %v12975_v1 = vpop.f32.mrb[156].mxu0  ;;  %v13016_v60 = vpop.f32.mrb[164].mxu1 }
0x1194   :  { %v12976_v50 = vadd.f32 %v12975_v1, %v12604_v28  ;;  %v12977_v62 = vpop.f32.mrb[157].mxu0  ;;  %v13018_v14 = vpop.f32.mrb[165].mxu1  ;;  %v13017_v46 = vadd.f32 %v13016_v60, %v12612_v24  ;;  %v24639_v28 = vld [vmem:[#allocation81_spill] sm:$0xff]  ;;  %v24640_v1 = vld [vmem:[#allocation99_spill] sm:$0xff] }
0x1195   :  { %v12978_v29 = vadd.f32 %v12977_v62, %v12608_v41  ;;  %v12979_v56 = vpop.f32.mrb[158].mxu0  ;;  %v13020_v61 = vpop.f32.mrb[166].mxu1  ;;  %v13019_v18 = vadd.f32 %v13018_v14, %v12616_v0  ;;  %v13591_v41 = vpack.c.bf16 %v24639_v28, %v24638_v44  ;;  %v13592_v60 = vpack.c.bf16 %v23203_v53, %v24640_v1 }
0x1196   :  { %v13041_v49 = vmul.f32 0.5, %v12976_v50  ;;  %v12980_v51 = vpop.f32.mrb[159].mxu0  ;;  %v13021_v20 = vpop.f32.mrb[167].mxu1  ;;  %v13043_v58 = vmul.f32 0.5, %v13017_v46  ;;  %v13127_v50 = vld [vmem:[%s23448_s6] sm:$0xf] }
0x1197   :  { %v13042_v17 = vmul.f32 0.5, %v12978_v29  ;;  %v13132_v62 = vrot.slane %v13127_v50, %v24624_v3  ;;  %v13136_v0 = vrot.slane %v13127_v50, %v24625_v2  ;;  %v13140_v3 = vrot.slane %v13127_v50, %v24627_v47  ;;  %v23344_v47 = vld [vmem:[%s23450_s8] ss:$0 sm:$0xff]  ;;  %s17089_s6 = smov [#allocation6]  }
0x1198   :  { %17018 = vtanh.f32 %v13041_v49  ;;  %v13144_v49 = vrot.slane %v13127_v50, %v24626_v36  ;;  %s13803_s26 = sshll.u32 %s17089_s6, 4  ;;  %s23395_s26 = int_to_ptr.vmem [resolvable:$true] %s13803_s26 }
0x1199   :  { %17020 = vtanh.f32 %v13042_v17 }
0x119a   :  { %17022 = vtanh.f32 %v13019_v18 }
0x119b   :  { %17024 = vtanh.f32 %v13043_v58 }
0x11a2   :  { %v17019_v11 = vpop.eup %17018 }
0x11a3   :  { %v13047_v7 = vmul.f32 0.5, %v17019_v11  ;;  %v17021_v32 = vpop.eup %17020 }
0x11a4   :  { %v13048_v55 = vmul.f32 0.5, %v17021_v32  ;;  %v17023_v33 = vpop.eup %17022 }
0x11a5   :  { %v13050_v9 = vadd.f32 0.5, %v13047_v7  ;;  %v17025_v63 = vpop.eup %17024 }
0x11a6   :  { %v13051_v23 = vadd.f32 0.5, %v13048_v55  ;;  %v13049_v42 = vmul.f32 0.5, %v17025_v63 }
0x11a7   :  { %v13055_v40 = vmul.f32 %v17023_v33, %v13050_v9 }
0x11a8   :  { %v13054_v57 = vmul.f32 %v13051_v23, %v23196_v45  ;;  %v13052_v26 = vadd.f32 0.5, %v13049_v42  ;;  %v24628_v45 = vld [vmem:[#allocation70_spill] sm:$0xff] }
0x11a9   :  { %v13586_v19 = vpack.c.bf16 %v24629_v37, %v24628_v45 }
0x11aa   :  { %v23290_v13 = vadd.f32 %v13055_v40, %v13054_v57 }
0x11ac   :  { %17026 = vtanh.f32 %v23290_v13 }
0x11b6   :  { %v17027_v22 = vpop.eup %17026 }
0x11b7   :  { %v23293_v10 = vmul.f32 %v17027_v22, %v13052_v26 }
0x11b9   :  { %v13062_v34 = vpack.c.bf16 %v23293_v10, %v23293_v10 }
0x11bb   :  { %13501 = vmatprep.mubr.bf16.mxu0 %v13062_v34  ;;  %13542 = vmatprep.mubr.bf16.mxu1 %v13062_v34 }
0x11bc   :  { %13502 = vmatmul.mubr.bf16.vlgmr.msra.gmra.mrb[160].mxu0 %v13061_v15  ;;  %13543 = vmatmul.mubr.bf16.vlgmr.msra.gmra.mrb[168].mxu1 %v13061_v15 }
0x11bd   :  { %15471 = vmatpush3.bf16.msra.mxu0 %v23274_v5  ;;  %15486 = vmatprep.mubr.bf16.mxu0 %v13586_v19  ;;  %v16715_v5 = vld [vmem:[%s23449_s7 + $0x28] sm:$0xff]   ;;  %s17088_s7 = smov [#allocation4]  }
0x11be   :  { %15472 = vmatprep.subr.bf16.mxu0 %v16711_v31  ;;  %s13791_s25 = sshll.u32 %s17088_s7, 4  ;;  %s13792_s25 = int_to_ptr.vmem [resolvable:$true] %s13791_s25 }
0x11bf   :  { %s17038_s27 = scalar_lea.vmem %s13792_s25, 256  ;;  %p17043_p1 = scmp.lt.s32.totalorder %s13792_s25, %s13792_s25 }
0x11c0   :  { %p17039_p0 = scmp.ne.s32.totalorder %s13792_s25, %s17038_s27  ;;  %p17044_p2 = scmp.lt.s32.totalorder %s17038_s27, %s17038_s27 }
0x11c1   :  { %15473 = vmatpush3.bf16.msra.mxu0 %v16711_v31 }
0x11c2   :  { %15474 = vmatprep.subr.bf16.mxu0 %v16712_v21  ;;  %p17045_p3 = por %p17044_p2, %p17043_p1 }
0x11c4   :  { %p17046_p4 = pnand %p17045_p3, %p17039_p0 }
0x11c5   :  { %15475 = vmatpush3.bf16.msra.mxu0 %v16712_v21 }
0x11c6   :  { %15476 = vmatprep.subr.bf16.mxu0 %v16713_v35 }
0x11c9   :  { %15477 = vmatpush3.bf16.msra.mxu0 %v16713_v35 }
0x11ca   :  { %15478 = vmatprep.subr.bf16.mxu0 %v16714_v16 }
0x11cd   :  { %15479 = vmatpush3.bf16.msra.mxu0 %v16714_v16 }
0x11ce   :  { %15480 = vmatprep.subr.bf16.mxu0 %v16715_v5 }
0x11d1   :  { %15481 = vmatpush3.bf16.msra.mxu0 %v16715_v5 }
0x11d2   :  { %15482 = vmatprep.subr.bf16.mxu0 %v16716_v39 }
0x11d5   :  { %15483 = vmatpush3.bf16.msra.mxu0 %v16716_v39 }
0x11d6   :  { %15484 = vmatprep.subr.bf16.mxu0 %v16717_v38 }
0x11d9   :  { %15485 = vmatpush3.bf16.msra.mxu0 %v16717_v38 }
0x11dc   :  { %15487 = vmatmul.mubr.bf16.vlgmr.msra.gmra.mrb[164].mxu0 %v13587_v6 }
0x11dd   :  { %15490 = vmatprep.mubr.bf16.mxu0 %v13588_v8 }
0x11e4   :  { %15491 = vmatmul.mubr.bf16.gmra.mrb[168].mxu0 %v13589_v52 }
0x11e5   :  { %15494 = vmatprep.mubr.bf16.mxu0 %v13590_v59 }
0x11ec   :  { %15495 = vmatmul.mubr.bf16.gmra.mrb[172].mxu0 %v13591_v41 }
0x11ed   :  { %15498 = vmatprep.mubr.bf16.mxu0 %v13592_v60 }
0x128f   :  { %v13503_v14 = vpop.f32.mrb[160].mxu0  ;;  %v13544_v29 = vpop.f32.mrb[168].mxu1 }
0x1290   :  { %v13504_v56 = vadd.f32 %v13503_v14, %v13132_v62  ;;  %v13505_v61 = vpop.f32.mrb[161].mxu0  ;;  %v13546_v51 = vpop.f32.mrb[169].mxu1  ;;  %v13545_v2 = vadd.f32 %v13544_v29, %v13140_v3 }
0x1291   :  { %v13506_v20 = vadd.f32 %v13505_v61, %v13136_v0  ;;  %v13507_v17 = vpop.f32.mrb[162].mxu0  ;;  %v13548_v53 = vpop.f32.mrb[170].mxu1  ;;  %v13547_v11 = vadd.f32 %v13546_v51, %v13144_v49 }
0x1292   :  { %v13551_v18 = vmul.f32 0.5, %v13504_v56  ;;  %v13508_v24 = vpop.f32.mrb[163].mxu0  ;;  %v13549_v46 = vpop.f32.mrb[171].mxu1  ;;  %v13553_v7 = vmul.f32 0.5, %v13545_v2 }
0x1293   :  { %v13552_v58 = vmul.f32 0.5, %v13506_v20 }
0x1294   :  { %17028 = vtanh.f32 %v13551_v18 }
0x1295   :  { %17030 = vtanh.f32 %v13552_v58 }
0x1296   :  { %17032 = vtanh.f32 %v13547_v11 }
0x1297   :  { %17034 = vtanh.f32 %v13553_v7 }
0x129e   :  { %v17029_v32 = vpop.eup %17028 }
0x129f   :  { %v13557_v9 = vmul.f32 0.5, %v17029_v32  ;;  %v17031_v55 = vpop.eup %17030 }
0x12a0   :  { %v13558_v33 = vmul.f32 0.5, %v17031_v55  ;;  %v17033_v23 = vpop.eup %17032 }
0x12a1   :  { %v13560_v36 = vadd.f32 0.5, %v13557_v9  ;;  %v17035_v26 = vpop.eup %17034 }
0x12a2   :  { %v13561_v40 = vadd.f32 0.5, %v13558_v33  ;;  %v13559_v22 = vmul.f32 0.5, %v17035_v26 }
0x12a3   :  { %v13565_v57 = vmul.f32 %v17033_v23, %v13560_v36 }
0x12a4   :  { %v13564_v63 = vmul.f32 %v13561_v40, %v23290_v13  ;;  %v13562_v19 = vadd.f32 0.5, %v13559_v22 }
0x12a6   :  { %v13566_v42 = vadd.f32 %v13565_v57, %v13564_v63 }
0x12a8   :  { %17036 = vtanh.f32 %v13566_v42  ;;  %13783 = vst [vmem:[#allocation6 + $0x8] sm:$0xff] %v13566_v42 }
0x12af   :  { %v15488_v34 = vpop.f32.mrb[164].mxu0 }
0x12b0   :  { %v13708_v15 = vadd.f32 %v15488_v34, %v23344_v47  ;;  %v13699_v31 = vpop.f32.mrb[165].mxu0 }
0x12b1   :  { %v13700_v45 = vadd.f32 %v23344_v47, %v13699_v31  ;;  %v15489_v37 = vpop.f32.mrb[166].mxu0 }
0x12b2   :  { %13764 = vst [vmem:[%s23453_s11 + $0x10] sm:$0xff] %v13708_v15  ;;  %v13711_v13 = vadd.f32 %v15489_v37, %v23344_v47  ;;  %v13702_v21 = vpop.f32.mrb[167].mxu0  ;;  %v17037_v35 = vpop.eup %17036 }
0x12b3   :  { %13762 = vst [vmem:[%s23453_s11] sm:$0xff] %v13700_v45  ;;  %v13703_v16 = vadd.f32 %v23344_v47, %v13702_v21  ;;  %v13568_v5 = vmul.f32 %v17037_v35, %v13562_v19 }
0x12b4   :  { %13765 = vst [vmem:[%s23453_s11 + $0x18] sm:$0xff] %v13711_v13 }
0x12b5   :  { %13763 = vst [vmem:[%s23453_s11 + $0x8] sm:$0xff] %v13703_v16  ;;  %v13593_v39 = vpack.c.bf16 %v13568_v5, %v23293_v10  ;;  %13780 = vst [vmem:[#allocation4 + $0x8] sm:$0xff] %v13568_v5 }
0x12b7   :  { %v15492_v38 = vpop.f32.mrb[168].mxu0  ;;  %15499 = vmatmul.mubr.bf16.gmra.mrb[176].mxu0 %v13593_v39 }
0x12b8   :  { %v13724_v30 = vadd.f32 %v15492_v38, %v23344_v47  ;;  %v13715_v4 = vpop.f32.mrb[169].mxu0 }
0x12b9   :  { %v13716_v6 = vadd.f32 %v23344_v47, %v13715_v4  ;;  %v15493_v12 = vpop.f32.mrb[170].mxu0 }
0x12ba   :  { %13768 = vst [vmem:[%s23453_s11 + $0x30] sm:$0xff] %v13724_v30  ;;  %v13727_v25 = vadd.f32 %v15493_v12, %v23344_v47  ;;  %v13718_v8 = vpop.f32.mrb[171].mxu0 }
0x12bb   :  { %13766 = vst [vmem:[%s23453_s11 + $0x20] sm:$0xff] %v13716_v6  ;;  %v13719_v10 = vadd.f32 %v23344_v47, %v13718_v8 }
0x12bc   :  { %13769 = vst [vmem:[%s23453_s11 + $0x38] sm:$0xff] %v13727_v25 }
0x12bd   :  { %13767 = vst [vmem:[%s23453_s11 + $0x28] sm:$0xff] %v13719_v10 }
0x12bf   :  { %v15496_v48 = vpop.f32.mrb[172].mxu0 }
0x12c0   :  { %v13740_v54 = vadd.f32 %v15496_v48, %v23344_v47  ;;  %v13731_v52 = vpop.f32.mrb[173].mxu0 }
0x12c1   :  { %v13732_v43 = vadd.f32 %v23344_v47, %v13731_v52  ;;  %v15497_v27 = vpop.f32.mrb[174].mxu0 }
0x12c2   :  { %13772 = vst [vmem:[%s23453_s11 + $0x50] sm:$0xff] %v13740_v54  ;;  %v13743_v59 = vadd.f32 %v15497_v27, %v23344_v47  ;;  %v13734_v44 = vpop.f32.mrb[175].mxu0 }
0x12c3   :  { %13770 = vst [vmem:[%s23453_s11 + $0x40] sm:$0xff] %v13732_v43  ;;  %v13735_v28 = vadd.f32 %v23344_v47, %v13734_v44 }
0x12c4   :  { %13773 = vst [vmem:[%s23453_s11 + $0x58] sm:$0xff] %v13743_v59 }
0x12c5   :  { %13771 = vst [vmem:[%s23453_s11 + $0x48] sm:$0xff] %v13735_v28 }
0x12c6   :  { %17049 = shalt.err (!%p17046_p4)
}
0x12c7   :  { %s17050_s8 = scalar_lea.hbm %s23454_s12, 256 }
0x12c8   :  { %p17051_p5 = scmp.ne.s32.totalorder %s23454_s12, %s17050_s8  ;;  %p17054_p6 = scmp.lt.u32.totalorder %s17050_s8, %s23454_s12 }
0x12ca   :  { %p17056_p7 = pnand %p17054_p6, %p17051_p5 }
0x12cc   :  { %17059 = shalt.err (!%p17056_p7)
}
0x12cd   :  { %s17090_s16 = smov 128   ;;  %s17091_s17 = smov 8  }
0x12ce   :  { %13797 = dma.vmem_to_hbm [thread:$0]  %s13792_s25, 256, %s23454_s12, [#allocation5], %s17090_s16, %s17090_s16, %s17091_s17  }
0x12cf   :  { %s17060_s19 = scalar_lea.vmem %s23395_s26, 256  ;;  %p17065_p9 = scmp.lt.s32.totalorder %s23395_s26, %s23395_s26 }
0x12d0   :  { %p17061_p8 = scmp.ne.s32.totalorder %s23395_s26, %s17060_s19  ;;  %p17066_p10 = scmp.lt.s32.totalorder %s17060_s19, %s17060_s19 }
0x12d2   :  { %p17067_p11 = por %p17066_p10, %p17065_p9 }
0x12d4   :  { %p17068_p12 = pnand %p17067_p11, %p17061_p8 }
0x12d6   :  { %17071 = shalt.err (!%p17068_p12)
}
0x12d7   :  { %s17072_s21 = scalar_lea.hbm %s23455_s13, 256 }
0x12d8   :  { %p17073_p13 = scmp.ne.s32.totalorder %s23455_s13, %s17072_s21  ;;  %p17076_p0 = scmp.lt.u32.totalorder %s17072_s21, %s23455_s13 }
0x12da   :  { %p17078_p1 = pnand %p17076_p0, %p17073_p13 }
0x12dc   :  { %17081 = shalt.err (!%p17078_p1)
}
0x12dd   :  { %13809 = dma.vmem_to_hbm [thread:$0]  %s23395_s26, 256, %s23455_s13, [#allocation7], %s17090_s16, %s17090_s16, %s17091_s17  }
0x138a   :  { %v15500_v41 = vpop.f32.mrb[176].mxu0 }
0x138b   :  { %v13756_v1 = vadd.f32 %v15500_v41, %v23344_v47  ;;  %v13747_v60 = vpop.f32.mrb[177].mxu0 }
0x138c   :  { %v13748_v50 = vadd.f32 %v23344_v47, %v13747_v60  ;;  %v15501_v62 = vpop.f32.mrb[178].mxu0 }
0x138d   :  { %13776 = vst [vmem:[%s23453_s11 + $0x70] sm:$0xff] %v13756_v1  ;;  %v13759_v0 = vadd.f32 %v15501_v62, %v23344_v47  ;;  %v13750_v14 = vpop.f32.mrb[179].mxu0 }
0x138e   :  { %13774 = vst [vmem:[%s23453_s11 + $0x60] sm:$0xff] %v13748_v50  ;;  %v13751_v29 = vadd.f32 %v23344_v47, %v13750_v14 }
0x138f   :  { %13777 = vst [vmem:[%s23453_s11 + $0x78] sm:$0xff] %v13759_v0 }
0x1390   :  { %13775 = vst [vmem:[%s23453_s11 + $0x68] sm:$0xff] %v13751_v29 }
0x1391   :  { %17082 = dma.done.wait [#allocation5], 256  }
0x1392   :  { %17083 = vsyncadd [#allocation5], 4294967040 }
0x1393   :  { %17084 = dma.done.wait [#allocation7], 256  }
0x1394   :  { %17085 = vsyncadd [#allocation7], 4294967040 }
0x1395   :  { %13818 = vsyncpa [#allocation5], 1 }
0x1396   :  { %13819 = vsyncpa [#allocation7], 1 }

</bundles_post_ra>
